<compile_context>
chip_gen: v5e
topology: v5e:2x2
jax: 0.10.0
libtpu: 0.0.40
codegen_flags: <defaults>
</compile_context>

<pallas_src>
import functools

import numpy as np

import jax
import jax.numpy as jnp
from jax.experimental import pallas as pl
from jax.experimental.pallas import tpu as pltpu


def _round_up(x, m):
    return (x + m - 1) // m * m


def _largest_tile(n, cap):
    t = cap
    while t > 8 and n % t != 0:
        t //= 2
    return t if n % t == 0 else n


def choose_tiles(n_pad):
    """(tm, tq, tk) node tiles; prefer an even #q-tiles for v7x megacore balance."""
    tm = _largest_tile(n_pad, 512)
    tq = _largest_tile(n_pad, 256)
    if (n_pad // tq) % 2 == 1 and tq > 128 and n_pad % (tq // 2) == 0:
        tq //= 2
    tk = _largest_tile(n_pad, 1024)
    return tm, tq, tk


# ------------------------------- kernel bodies ------------------------------ #

def linear_alpha_kernel(x_ref, wcat_ref, xw_ref, alpha_ref, *, d):
    """[xw | alpha_src | alpha_dst] = x @ [W | W@A_src | W@A_dst] in one MXU pass."""
    res = jnp.dot(x_ref[...], wcat_ref[...], preferred_element_type=jnp.float32)
    xw_ref[...] = res[:, :d].astype(xw_ref.dtype)
    alpha_ref[...] = res[:, d:]


def _attention_update(kv_ref, asrc_ref, adst_ref, adj_ref, m_sc, l_sc, acc_sc,
                      num_heads, head_dim):
    """One (target-tile, source-tile) step of masked GAT attention, all heads.

    Flash-style online softmax with lane-dense scratch:
      m_sc, l_sc : (TQ, H)   running max / denominator
      acc_sc     : (TQ, H*C) running weighted sums (heads side by side)
    Scores/softmax stay f32; only MXU operands are bf16.
    """
    maskf = adj_ref[...].astype(jnp.float32)               # (TQ, TK) 0/1
    m_prev = m_sc[...]                                      # (TQ, H)
    l_prev = l_sc[...]
    acc_prev = acc_sc[...]                                  # (TQ, H*C)
    m_out, l_out, acc_out = [], [], []
    for h in range(num_heads):                              # static unroll
        c0 = h * head_dim
        # e[i, j] = LeakyReLU(alpha_dst[i] + alpha_src[j], slope=0.2)
        e = adst_ref[:, h:h + 1] + asrc_ref[h:h + 1, :]     # (TQ, TK)
        e = jnp.maximum(e, 0.2 * e)
        m_p = m_prev[:, h:h + 1]
        # un-masked row max is a valid (>= masked) rescaling reference; masked
        # entries are zeroed in p below, so the softmax is unaffected.
        m_n = jnp.maximum(m_p, jnp.max(e, axis=-1, keepdims=True))
        scale = jnp.exp(m_p - m_n)
        p = jnp.exp(e - m_n) * maskf                        # masked numerator
        l_out.append(scale * l_prev[:, h:h + 1] +
                     jnp.sum(p, axis=-1, keepdims=True))
        acc_out.append(scale * acc_prev[:, c0:c0 + head_dim] +
                       jnp.dot(p.astype(jnp.bfloat16),
                               kv_ref[:, c0:c0 + head_dim],
                               preferred_element_type=jnp.float32))
        m_out.append(m_n)
    m_sc[...] = jnp.concatenate(m_out, axis=-1)
    l_sc[...] = jnp.concatenate(l_out, axis=-1)
    acc_sc[...] = jnp.concatenate(acc_out, axis=-1)


def gat_layer1_kernel(kcount_ref, ktable_ref, kv_ref, asrc_ref, adst_ref,
                      adj_ref, b_ref, w2cat_ref, xw2_ref, alpha2_ref,
                      m_sc, l_sc, acc_sc, *, num_heads, head_dim, d2):
    """conv1 attention (+bias +ELU) fused with conv2's linear and alpha scalars."""
    i = pl.program_id(0)
    k = pl.program_id(1)

    @pl.when(k == 0)
    def _init():
        m_sc[...] = jnp.full_like(m_sc, -1e30)
        l_sc[...] = jnp.zeros_like(l_sc)
        acc_sc[...] = jnp.zeros_like(acc_sc)

    @pl.when(k < kcount_ref[i])                 # skip empty adjacency tiles
    def _update():
        _attention_update(kv_ref, asrc_ref, adst_ref, adj_ref,
                          m_sc, l_sc, acc_sc, num_heads, head_dim)

    @pl.when(k == pl.num_programs(1) - 1)
    def _finalize():
        inv = pl.reciprocal(jnp.maximum(l_sc[...], 1e-9), approx=True)   # (TQ, H)
        acc = acc_sc[...]                                                # (TQ, H*C)
        out = jnp.concatenate(
            [acc[:, h * head_dim:(h + 1) * head_dim] * inv[:, h:h + 1]
             for h in range(num_heads)], axis=-1) + b_ref[...]
        out = jnp.where(out > 0, out, jnp.exp(jnp.minimum(out, 0.0)) - 1.0)  # ELU
        # single finalize matmul: [xw2 | alpha2] = ELU(out) @ [W2 | W2@A2]
        res = jnp.dot(out.astype(jnp.bfloat16), w2cat_ref[...],
                      preferred_element_type=jnp.float32)
        xw2_ref[...] = res[:, :d2].astype(xw2_ref.dtype)
        alpha2_ref[...] = res[:, d2:]


def gat_layer2_kernel(kcount_ref, ktable_ref, kv_ref, asrc_ref, adst_ref,
                      adj_ref, b_ref, o_ref, m_sc, l_sc, acc_sc,
                      *, num_heads, head_dim):
    """conv2 attention + head mean + bias + log_softmax (concat=False)."""
    i = pl.program_id(0)
    k = pl.program_id(1)

    @pl.when(k == 0)
    def _init():
        m_sc[...] = jnp.full_like(m_sc, -1e30)
        l_sc[...] = jnp.zeros_like(l_sc)
        acc_sc[...] = jnp.zeros_like(acc_sc)

    @pl.when(k < kcount_ref[i])                 # skip empty adjacency tiles
    def _update():
        _attention_update(kv_ref, asrc_ref, adst_ref, adj_ref,
                          m_sc, l_sc, acc_sc, num_heads, head_dim)

    @pl.when(k == pl.num_programs(1) - 1)
    def _finalize():
        inv = pl.reciprocal(jnp.maximum(l_sc[...], 1e-9), approx=True)   # (TQ, H)
        acc = acc_sc[...]
        out = acc[:, :head_dim] * inv[:, 0:1]
        for h in range(1, num_heads):
            out = out + acc[:, h * head_dim:(h + 1) * head_dim] * inv[:, h:h + 1]
        out = out * (1.0 / num_heads) + b_ref[...]        # head mean + bias
        mx = jnp.max(out, axis=-1, keepdims=True)         # exact log_softmax
        z = out - mx
        o_ref[...] = z - jnp.log(jnp.sum(jnp.exp(z), axis=-1, keepdims=True))


# ------------------------------ pallas wrappers ----------------------------- #

def pallas_linear_alpha(x, wcat, *, d, tm):
    n, f = x.shape
    dcat = wcat.shape[1]
    return pl.pallas_call(
        functools.partial(linear_alpha_kernel, d=d),
        out_shape=(jax.ShapeDtypeStruct((n, d), jnp.bfloat16),
                   jax.ShapeDtypeStruct((n, dcat - d), jnp.float32)),
        grid_spec=pltpu.PrefetchScalarGridSpec(
            num_scalar_prefetch=0,
            grid=(n // tm,),
            in_specs=[pl.BlockSpec((tm, f), lambda i: (i, 0)),
                      pl.BlockSpec((f, dcat), lambda i: (0, 0))],
            out_specs=(pl.BlockSpec((tm, d), lambda i: (i, 0)),
                       pl.BlockSpec((tm, dcat - d), lambda i: (i, 0)))),
        compiler_params=pltpu.CompilerParams(dimension_semantics=("parallel",)),
    )(x, wcat)


def pallas_gat_layer1(kcount, ktable, xw_kv, asrc_t, adst, adj, bias, w2cat,
                      *, num_heads, head_dim, d2, tq, tk):
    n, hc = xw_kv.shape
    dcat2 = w2cat.shape[1]
    kernel = functools.partial(gat_layer1_kernel, num_heads=num_heads,
                               head_dim=head_dim, d2=d2)
    return pl.pallas_call(
        kernel,
        out_shape=(jax.ShapeDtypeStruct((n, d2), jnp.bfloat16),
                   jax.ShapeDtypeStruct((n, dcat2 - d2), jnp.float32)),
        grid_spec=pltpu.PrefetchScalarGridSpec(
            num_scalar_prefetch=2,
            grid=(n // tq, ktable.shape[1]),
            in_specs=[
                pl.BlockSpec((tk, hc), lambda i, k, kc, kt: (kt[i, k], 0)),
                pl.BlockSpec((num_heads, tk), lambda i, k, kc, kt: (0, kt[i, k])),
                pl.BlockSpec((tq, num_heads), lambda i, k, kc, kt: (i, 0)),
                pl.BlockSpec((tq, tk), lambda i, k, kc, kt: (i, kt[i, k])),
                pl.BlockSpec((1, hc), lambda i, k, kc, kt: (0, 0)),
                pl.BlockSpec((hc, dcat2), lambda i, k, kc, kt: (0, 0)),
            ],
            out_specs=(pl.BlockSpec((tq, d2), lambda i, k, kc, kt: (i, 0)),
                       pl.BlockSpec((tq, dcat2 - d2),
                                    lambda i, k, kc, kt: (i, 0))),
            scratch_shapes=[pltpu.VMEM((tq, num_heads), jnp.float32),
                            pltpu.VMEM((tq, num_heads), jnp.float32),
                            pltpu.VMEM((tq, hc), jnp.float32)]),
        compiler_params=pltpu.CompilerParams(
            dimension_semantics=("parallel", "arbitrary")),
    )(kcount, ktable, xw_kv, asrc_t, adst, adj, bias, w2cat)


def pallas_gat_layer2(kcount, ktable, xw_kv, asrc_t, adst, adj, bias,
                      *, num_heads, head_dim, tq, tk):
    n, hc = xw_kv.shape
    kernel = functools.partial(gat_layer2_kernel, num_heads=num_heads,
                               head_dim=head_dim)
    return pl.pallas_call(
        kernel,
        out_shape=jax.ShapeDtypeStruct((n, head_dim), jnp.float32),
        grid_spec=pltpu.PrefetchScalarGridSpec(
            num_scalar_prefetch=2,
            grid=(n // tq, ktable.shape[1]),
            in_specs=[
                pl.BlockSpec((tk, hc), lambda i, k, kc, kt: (kt[i, k], 0)),
                pl.BlockSpec((num_heads, tk), lambda i, k, kc, kt: (0, kt[i, k])),
                pl.BlockSpec((tq, num_heads), lambda i, k, kc, kt: (i, 0)),
                pl.BlockSpec((tq, tk), lambda i, k, kc, kt: (i, kt[i, k])),
                pl.BlockSpec((1, head_dim), lambda i, k, kc, kt: (0, 0)),
            ],
            out_specs=pl.BlockSpec((tq, head_dim), lambda i, k, kc, kt: (i, 0)),
            scratch_shapes=[pltpu.VMEM((tq, num_heads), jnp.float32),
                            pltpu.VMEM((tq, num_heads), jnp.float32),
                            pltpu.VMEM((tq, hc), jnp.float32)]),
        compiler_params=pltpu.CompilerParams(
            dimension_semantics=("parallel", "arbitrary")),
    )(kcount, ktable, xw_kv, asrc_t, adst, adj, bias)


# ----------------------------------- model ---------------------------------- #

def _build_wcat(W, a_src, a_dst):
    """[W | W@A] with A = block-diag per-head [a_src | a_dst] columns (bf16)."""
    H, C = a_src.shape
    A = jnp.zeros((H * C, 2 * H), jnp.float32)
    for h in range(H):
        A = A.at[h * C:(h + 1) * C, h].set(a_src[h])
        A = A.at[h * C:(h + 1) * C, H + h].set(a_dst[h])
    return jnp.concatenate([W, W @ A], axis=1).astype(jnp.bfloat16)


def build_tile_schedule(adj_mask, tq, tk):
    """Per-target-tile list of non-empty source tiles (host-side, numpy).

    Returns kcount (nq,) int32 and ktable (nq, max_k) int32; padded entries repeat
    the last valid tile index so their DMA is elided by the pipeline.
    """
    n = adj_mask.shape[0]
    nq, nk = n // tq, n // tk
    nonempty = (adj_mask.reshape(nq, tq, nk, tk) != 0).any(axis=(1, 3))
    kcount = nonempty.sum(axis=1).astype(np.int32)
    max_k = max(int(kcount.max()), 1)
    ktable = np.zeros((nq, max_k), dtype=np.int32)
    for i in range(nq):
        idx = np.nonzero(nonempty[i])[0]
        if idx.size:
            ktable[i, :idx.size] = idx
            ktable[i, idx.size:] = idx[-1]
    return jnp.asarray(kcount), jnp.asarray(ktable)


@functools.partial(jax.jit, static_argnames=("num_nodes",))
def net_forward(x, adj, kcount, ktable, params, num_nodes):
    """x: (Npad, nfeat) zero-padded features; adj: (Npad, Npad) int8 edge mask."""
    n_pad = x.shape[0]
    tm, tq, tk = choose_tiles(n_pad)
    h1, c1 = params["a_src1"].shape          # (in_head, nhid)
    h2, c2 = params["a_src2"].shape          # (out_head, nclass)
    d1, d2 = h1 * c1, h2 * c2

    w1cat = _build_wcat(params["W1"], params["a_src1"], params["a_dst1"])
    w2cat = _build_wcat(params["W2"], params["a_src2"], params["a_dst2"])

    # F.dropout(p=0.6, training=False) -> identity in eval mode.
    xw1, alpha1 = pallas_linear_alpha(x.astype(jnp.bfloat16), w1cat, d=d1, tm=tm)
    asrc1_t = jnp.transpose(alpha1[:, :h1])          # (H1, Npad) tiny transpose
    adst1 = alpha1[:, h1:]                           # (Npad, H1)

    # conv1 attention + bias + ELU + (dropout=identity) + conv2 linear/alpha, fused.
    xw2, alpha2 = pallas_gat_layer1(kcount, ktable, xw1, asrc1_t, adst1, adj,
                                    params["b1"].reshape(1, -1), w2cat,
                                    num_heads=h1, head_dim=c1, d2=d2, tq=tq, tk=tk)

    # TODO(synk): torch.distributed isend/irecv/barrier halo exchange omitted
    # (single-partition semantics: the exchange is a no-op).

    asrc2_t = jnp.transpose(alpha2[:, :h2])
    adst2 = alpha2[:, h2:]

    # conv2 attention + head mean + bias + log_softmax, fused.
    out = pallas_gat_layer2(kcount, ktable, xw2, asrc2_t, adst2, adj,
                            params["b2"].reshape(1, -1),
                            num_heads=h2, head_dim=c2, tq=tq, tk=tk)
    return out[:num_nodes]


def init_params(key, nfeat, nhid, in_head, out_head, nclass):
    ks = jax.random.split(key, 6)

    def glorot(k, shape, fan_in, fan_out):
        scale = jnp.sqrt(6.0 / (fan_in + fan_out))
        return jax.random.uniform(k, shape, jnp.float32, -scale, scale)

    return {
        "W1": glorot(ks[0], (nfeat, in_head * nhid), nfeat, in_head * nhid),
        "a_src1": glorot(ks[1], (in_head, nhid), nhid, 1),
        "a_dst1": glorot(ks[2], (in_head, nhid), nhid, 1),
        "b1": jnp.zeros((in_head * nhid,), jnp.float32),
        "W2": glorot(ks[3], (in_head * nhid, out_head * nclass),
                     in_head * nhid, out_head * nclass),
        "a_src2": glorot(ks[4], (out_head, nclass), nclass, 1),
        "a_dst2": glorot(ks[5], (out_head, nclass), nclass, 1),
        "b2": jnp.zeros((nclass,), jnp.float32),
    }


if __name__ == "__main__":
    # Small synthetic problem consistent with the module's __init__ shapes.
    N_NODES = 32
    NFEAT, NHID, IN_HEAD, OUT_HEAD, NCLASS = 16, 8, 4, 1, 8
    N_EDGES = 64

    key = jax.random.PRNGKey(0)
    k_x, k_e, k_p = jax.random.split(key, 3)

    NPAD = _round_up(N_NODES, 128)

    x = jax.random.normal(k_x, (N_NODES, NFEAT), jnp.float32)
    x_pad = jnp.zeros((NPAD, NFEAT), jnp.float32).at[:N_NODES].set(x)

    # edge_index: (2, E) with row 0 = source, row 1 = target.
    edge_index = np.asarray(jax.random.randint(k_e, (2, N_EDGES), 0, N_NODES))
    # dense adjacency mask adj[target, source] + self loops (real nodes only),
    # stored as int8 (0/1 exact) to shrink the dominant N^2 HBM stream.
    adj_np = np.zeros((NPAD, NPAD), dtype=np.int8)
    adj_np[edge_index[1], edge_index[0]] = 1
    adj_np[np.arange(N_NODES), np.arange(N_NODES)] = 1
    adj = jnp.asarray(adj_np)

    # host-side block-sparsity schedule (same tiles as net_forward will choose).
    _, TQ, TK = choose_tiles(NPAD)
    kcount, ktable = build_tile_schedule(adj_np, TQ, TK)

    params = init_params(k_p, NFEAT, NHID, IN_HEAD, OUT_HEAD, NCLASS)

    out = net_forward(x_pad, adj, kcount, ktable, params, num_nodes=N_NODES)
    out = jax.block_until_ready(out)

    assert out.shape == (N_NODES, NCLASS)
    assert bool(jnp.all(jnp.isfinite(out)))
    # rows of log_softmax should sum (in prob space) to 1
    assert bool(jnp.allclose(jnp.exp(out).sum(-1), 1.0, atol=1e-4))
    print("KERNEL_OK")
</pallas_src>

<mosaic_0001>
module attributes {stable_mosaic.version = 11 : i64} {
  func.func @linear_alpha_kernel(%arg0: i32, %arg1: memref<128x16xbf16, #tpu.memory_space<vmem>>, %arg2: memref<16x40xbf16, #tpu.memory_space<vmem>>, %arg3: memref<128x32xbf16, #tpu.memory_space<vmem>>, %arg4: memref<128x8xf32, #tpu.memory_space<vmem>>) attributes {dimension_semantics = [#tpu.dimension_semantics<parallel>], iteration_bounds = array<i64: 1>, scalar_prefetch = 0 : i64, scratch_operands = 0 : i64, tpu.core_type = #tpu.core_type<tc>, window_params = [{transform_indices = @transform_0, window_bounds = array<i64: 128, 16>}, {pipeline_mode = #tpu.pipeline_mode<synchronous>, transform_indices = @transform_1, window_bounds = array<i64: 16, 40>}, {transform_indices = @transform_2, window_bounds = array<i64: 128, 32>}, {transform_indices = @transform_3, window_bounds = array<i64: 128, 8>}]} {
    %c0 = arith.constant 0 : index
    %c0_0 = arith.constant 0 : index
    %0 = vector.load %arg1[%c0, %c0_0] : memref<128x16xbf16, #tpu.memory_space<vmem>>, vector<128x16xbf16>
    %c0_1 = arith.constant 0 : index
    %c0_2 = arith.constant 0 : index
    %1 = vector.load %arg2[%c0_1, %c0_2] : memref<16x40xbf16, #tpu.memory_space<vmem>>, vector<16x40xbf16>
    %cst = arith.constant dense<0.000000e+00> : vector<128x40xf32>
    %2 = tpu.matmul %0, %1, %cst {dimension_numbers = #tpu.dot_dimension_numbers<[1], [0], [0], [1], [0, 0, 1, 1], [], []>} : vector<128x16xbf16>, vector<16x40xbf16>, vector<128x40xf32> -> vector<128x40xf32>
    %3 = vector.extract_strided_slice %2 {offsets = [0, 0], sizes = [128, 32], strides = [1, 1]} : vector<128x40xf32> to vector<128x32xf32>
    %4 = arith.truncf %3 : vector<128x32xf32> to vector<128x32xbf16>
    %c0_3 = arith.constant 0 : index
    %c0_4 = arith.constant 0 : index
    %5 = vector.load %arg3[%c0_3, %c0_4] : memref<128x32xbf16, #tpu.memory_space<vmem>>, vector<128x32xbf16>
    tpu.vector_store %arg3[%c0_3, %c0_4], %4 {strides = array<i32>} : memref<128x32xbf16, #tpu.memory_space<vmem>>, vector<128x32xbf16>,
    %6 = vector.extract_strided_slice %2 {offsets = [0, 32], sizes = [128, 8], strides = [1, 1]} : vector<128x40xf32> to vector<128x8xf32>
    %c0_5 = arith.constant 0 : index
    %c0_6 = arith.constant 0 : index
    %7 = vector.load %arg4[%c0_5, %c0_6] : memref<128x8xf32, #tpu.memory_space<vmem>>, vector<128x8xf32>
    tpu.vector_store %arg4[%c0_5, %c0_6], %6 {strides = array<i32>} : memref<128x8xf32, #tpu.memory_space<vmem>>, vector<128x8xf32>,
    return
  }
  func.func @transform_0(%arg0: i32) -> (i32, i32) {
    %c0_i32 = arith.constant 0 : i32
    %c0_i32_0 = arith.constant 0 : i32
    return %arg0, %c0_i32 : i32, i32
  }
  func.func @transform_1(%arg0: i32) -> (i32, i32) {
    %c0_i32 = arith.constant 0 : i32
    %c0_i32_0 = arith.constant 0 : i32
    %c0_i32_1 = arith.constant 0 : i32
    return %c0_i32, %c0_i32_0 : i32, i32
  }
  func.func @transform_2(%arg0: i32) -> (i32, i32) {
    %c0_i32 = arith.constant 0 : i32
    %c0_i32_0 = arith.constant 0 : i32
    return %arg0, %c0_i32 : i32, i32
  }
  func.func @transform_3(%arg0: i32) -> (i32, i32) {
    %c0_i32 = arith.constant 0 : i32
    %c0_i32_0 = arith.constant 0 : i32
    return %arg0, %c0_i32 : i32, i32
  }
}

module attributes {stable_mosaic.version = 11 : i64} {
  func.func @gat_layer2_kernel(%arg0: i32, %arg1: i32, %arg2: memref<1xi32, #tpu.memory_space<smem>>, %arg3: memref<1x1xi32, #tpu.memory_space<smem>>, %arg4: memref<128x8xbf16, #tpu.memory_space<vmem>>, %arg5: memref<1x128xf32, #tpu.memory_space<vmem>>, %arg6: memref<128x1xf32, #tpu.memory_space<vmem>>, %arg7: memref<128x128xi8, #tpu.memory_space<vmem>>, %arg8: memref<1x8xf32, #tpu.memory_space<vmem>>, %arg9: memref<128x8xf32, #tpu.memory_space<vmem>>, %arg10: memref<128x1xf32, #tpu.memory_space<vmem>>, %arg11: memref<128x1xf32, #tpu.memory_space<vmem>>, %arg12: memref<128x8xf32, #tpu.memory_space<vmem>>) attributes {dimension_semantics = [#tpu.dimension_semantics<parallel>, #tpu.dimension_semantics<arbitrary>], iteration_bounds = array<i64: 1, 1>, scalar_prefetch = 2 : i64, scratch_operands = 3 : i64, tpu.core_type = #tpu.core_type<tc>, window_params = [{transform_indices = @transform_0, window_bounds = array<i64: 128, 8>}, {transform_indices = @transform_1, window_bounds = array<i64: 1, 128>}, {transform_indices = @transform_2, window_bounds = array<i64: 128, 1>}, {transform_indices = @transform_3, window_bounds = array<i64: 128, 128>}, {pipeline_mode = #tpu.pipeline_mode<synchronous>, transform_indices = @transform_4, window_bounds = array<i64: 1, 8>}, {transform_indices = @transform_5, window_bounds = array<i64: 128, 8>}]} {
    %c0_i32 = arith.constant 0 : i32
    %0 = arith.cmpi eq, %arg1, %c0_i32 : i32
    %1 = arith.extui %0 : i1 to i32
    %c0_i32_0 = arith.constant 0 : i32
    %2 = arith.cmpi ne, %1, %c0_i32_0 : i32
    scf.if %2 {
      %cst = arith.constant -1.000000e+30 : f32
      %11 = vector.broadcast %cst : f32 to vector<128x1xf32>
      %c0 = arith.constant 0 : index
      %c0_4 = arith.constant 0 : index
      %12 = vector.load %arg10[%c0, %c0_4] : memref<128x1xf32, #tpu.memory_space<vmem>>, vector<128x1xf32>
      tpu.vector_store %arg10[%c0, %c0_4], %11 {strides = array<i32>} : memref<128x1xf32, #tpu.memory_space<vmem>>, vector<128x1xf32>,
      %cst_5 = arith.constant 0.000000e+00 : f32
      %13 = vector.broadcast %cst_5 : f32 to vector<128x1xf32>
      %c0_6 = arith.constant 0 : index
      %c0_7 = arith.constant 0 : index
      %14 = vector.load %arg11[%c0_6, %c0_7] : memref<128x1xf32, #tpu.memory_space<vmem>>, vector<128x1xf32>
      tpu.vector_store %arg11[%c0_6, %c0_7], %13 {strides = array<i32>} : memref<128x1xf32, #tpu.memory_space<vmem>>, vector<128x1xf32>,
      %cst_8 = arith.constant 0.000000e+00 : f32
      %15 = vector.broadcast %cst_8 : f32 to vector<128x8xf32>
      %c0_9 = arith.constant 0 : index
      %c0_10 = arith.constant 0 : index
      %16 = vector.load %arg12[%c0_9, %c0_10] : memref<128x8xf32, #tpu.memory_space<vmem>>, vector<128x8xf32>
      tpu.vector_store %arg12[%c0_9, %c0_10], %15 {strides = array<i32>} : memref<128x8xf32, #tpu.memory_space<vmem>>, vector<128x8xf32>,
    } else {
    }
    %3 = arith.index_cast %arg0 : i32 to index
    %4 = memref.load %arg2[%3] : memref<1xi32, #tpu.memory_space<smem>>
    %5 = arith.cmpi slt, %arg1, %4 : i32
    %6 = arith.extui %5 : i1 to i32
    %c0_i32_1 = arith.constant 0 : i32
    %7 = arith.cmpi ne, %6, %c0_i32_1 : i32
    scf.if %7 {
      %c0 = arith.constant 0 : index
      %c0_4 = arith.constant 0 : index
      %11 = vector.load %arg7[%c0, %c0_4] : memref<128x128xi8, #tpu.memory_space<vmem>>, vector<128x128xi8>
      %12 = arith.sitofp %11 : vector<128x128xi8> to vector<128x128xf32>
      %c0_5 = arith.constant 0 : index
      %c0_6 = arith.constant 0 : index
      %13 = vector.load %arg10[%c0_5, %c0_6] : memref<128x1xf32, #tpu.memory_space<vmem>>, vector<128x1xf32>
      %c0_7 = arith.constant 0 : index
      %c0_8 = arith.constant 0 : index
      %14 = vector.load %arg11[%c0_7, %c0_8] : memref<128x1xf32, #tpu.memory_space<vmem>>, vector<128x1xf32>
      %c0_9 = arith.constant 0 : index
      %c0_10 = arith.constant 0 : index
      %15 = vector.load %arg12[%c0_9, %c0_10] : memref<128x8xf32, #tpu.memory_space<vmem>>, vector<128x8xf32>
      %c0_11 = arith.constant 0 : index
      %c0_12 = arith.constant 0 : index
      %16 = vector.load %arg6[%c0_11, %c0_12] : memref<128x1xf32, #tpu.memory_space<vmem>>, vector<128x1xf32>
      %c0_13 = arith.constant 0 : index
      %c0_14 = arith.constant 0 : index
      %17 = vector.load %arg5[%c0_13, %c0_14] : memref<1x128xf32, #tpu.memory_space<vmem>>, vector<1x128xf32>
      %18 = vector.broadcast %16 : vector<128x1xf32> to vector<128x128xf32>
      %19 = vector.broadcast %17 : vector<1x128xf32> to vector<128x128xf32>
      %20 = arith.addf %18, %19 : vector<128x128xf32>
      %cst = arith.constant 2.000000e-01 : f32
      %21 = vector.broadcast %cst : f32 to vector<128x128xf32>
      %22 = arith.mulf %21, %20 : vector<128x128xf32>
      %23 = arith.maximumf %20, %22 : vector<128x128xf32>
      %cst_15 = arith.constant dense<0xFF800000> : vector<128xf32>
      %24 = vector.multi_reduction <maximumf>, %23, %cst_15 [1] : vector<128x128xf32> to vector<128xf32>
      %25 = vector.shape_cast %24 : vector<128xf32> to vector<128x1xf32>
      %26 = arith.maximumf %13, %25 : vector<128x1xf32>
      %27 = arith.subf %13, %26 : vector<128x1xf32>
      %28 = math.exp %27 : vector<128x1xf32>
      %29 = vector.broadcast %26 : vector<128x1xf32> to vector<128x128xf32>
      %30 = arith.subf %23, %29 : vector<128x128xf32>
      %31 = math.exp %30 : vector<128x128xf32>
      %32 = arith.mulf %31, %12 : vector<128x128xf32>
      %33 = arith.mulf %28, %14 : vector<128x1xf32>
      %cst_16 = arith.constant dense<0.000000e+00> : vector<128xf32>
      %34 = vector.multi_reduction <add>, %32, %cst_16 [1] : vector<128x128xf32> to vector<128xf32>
      %35 = vector.shape_cast %34 : vector<128xf32> to vector<128x1xf32>
      %36 = arith.addf %33, %35 : vector<128x1xf32>
      %37 = vector.broadcast %28 : vector<128x1xf32> to vector<128x8xf32>
      %38 = arith.mulf %37, %15 : vector<128x8xf32>
      %39 = arith.truncf %32 : vector<128x128xf32> to vector<128x128xbf16>
      %c0_17 = arith.constant 0 : index
      %c0_18 = arith.constant 0 : index
      %40 = vector.load %arg4[%c0_17, %c0_18] : memref<128x8xbf16, #tpu.memory_space<vmem>>, vector<128x8xbf16>
      %cst_19 = arith.constant dense<0.000000e+00> : vector<128x8xf32>
      %41 = tpu.matmul %39, %40, %cst_19 {dimension_numbers = #tpu.dot_dimension_numbers<[1], [0], [0], [1], [0, 0, 1, 1], [], []>} : vector<128x128xbf16>, vector<128x8xbf16>, vector<128x8xf32> -> vector<128x8xf32>
      %42 = arith.addf %38, %41 : vector<128x8xf32>
      %c0_20 = arith.constant 0 : index
      %c0_21 = arith.constant 0 : index
      %43 = vector.load %arg10[%c0_20, %c0_21] : memref<128x1xf32, #tpu.memory_space<vmem>>, vector<128x1xf32>
      tpu.vector_store %arg10[%c0_20, %c0_21], %26 {strides = array<i32>} : memref<128x1xf32, #tpu.memory_space<vmem>>, vector<128x1xf32>,
      %c0_22 = arith.constant 0 : index
      %c0_23 = arith.constant 0 : index
      %44 = vector.load %arg11[%c0_22, %c0_23] : memref<128x1xf32, #tpu.memory_space<vmem>>, vector<128x1xf32>
      tpu.vector_store %arg11[%c0_22, %c0_23], %36 {strides = array<i32>} : memref<128x1xf32, #tpu.memory_space<vmem>>, vector<128x1xf32>,
      %c0_24 = arith.constant 0 : index
      %c0_25 = arith.constant 0 : index
      %45 = vector.load %arg12[%c0_24, %c0_25] : memref<128x8xf32, #tpu.memory_space<vmem>>, vector<128x8xf32>
      tpu.vector_store %arg12[%c0_24, %c0_25], %42 {strides = array<i32>} : memref<128x8xf32, #tpu.memory_space<vmem>>, vector<128x8xf32>,
    } else {
    }
    %c0_i32_2 = arith.constant 0 : i32
    %8 = arith.cmpi eq, %arg1, %c0_i32_2 : i32
    %9 = arith.extui %8 : i1 to i32
    %c0_i32_3 = arith.constant 0 : i32
    %10 = arith.cmpi ne, %9, %c0_i32_3 : i32
    scf.if %10 {
      %c0 = arith.constant 0 : index
      %c0_4 = arith.constant 0 : index
      %11 = vector.load %arg11[%c0, %c0_4] : memref<128x1xf32, #tpu.memory_space<vmem>>, vector<128x1xf32>
      %cst = arith.constant 9.99999971E-10 : f32
      %12 = vector.broadcast %cst : f32 to vector<128x1xf32>
      %13 = arith.maximumf %11, %12 : vector<128x1xf32>
      %14 = tpu.reciprocal %13 {approx = true} : vector<128x1xf32> -> vector<128x1xf32>
      %c0_5 = arith.constant 0 : index
      %c0_6 = arith.constant 0 : index
      %15 = vector.load %arg12[%c0_5, %c0_6] : memref<128x8xf32, #tpu.memory_space<vmem>>, vector<128x8xf32>
      %16 = vector.broadcast %14 : vector<128x1xf32> to vector<128x8xf32>
      %17 = arith.mulf %15, %16 : vector<128x8xf32>
      %cst_7 = arith.constant 1.000000e+00 : f32
      %18 = vector.broadcast %cst_7 : f32 to vector<128x8xf32>
      %19 = arith.mulf %17, %18 : vector<128x8xf32>
      %c0_8 = arith.constant 0 : index
      %c0_9 = arith.constant 0 : index
      %20 = vector.load %arg8[%c0_8, %c0_9] : memref<1x8xf32, #tpu.memory_space<vmem>>, vector<1x8xf32>
      %21 = vector.broadcast %20 : vector<1x8xf32> to vector<128x8xf32>
      %22 = arith.addf %19, %21 : vector<128x8xf32>
      %cst_10 = arith.constant dense<0xFF800000> : vector<128xf32>
      %23 = vector.multi_reduction <maximumf>, %22, %cst_10 [1] : vector<128x8xf32> to vector<128xf32>
      %24 = vector.shape_cast %23 : vector<128xf32> to vector<128x1xf32>
      %25 = vector.broadcast %24 : vector<128x1xf32> to vector<128x8xf32>
      %26 = arith.subf %22, %25 : vector<128x8xf32>
      %27 = math.exp %26 : vector<128x8xf32>
      %cst_11 = arith.constant dense<0.000000e+00> : vector<128xf32>
      %28 = vector.multi_reduction <add>, %27, %cst_11 [1] : vector<128x8xf32> to vector<128xf32>
      %29 = vector.shape_cast %28 : vector<128xf32> to vector<128x1xf32>
      %30 = math.log %29 : vector<128x1xf32>
      %31 = vector.broadcast %30 : vector<128x1xf32> to vector<128x8xf32>
      %32 = arith.subf %26, %31 : vector<128x8xf32>
      %c0_12 = arith.constant 0 : index
      %c0_13 = arith.constant 0 : index
      %33 = vector.load %arg9[%c0_12, %c0_13] : memref<128x8xf32, #tpu.memory_space<vmem>>, vector<128x8xf32>
      tpu.vector_store %arg9[%c0_12, %c0_13], %32 {strides = array<i32>} : memref<128x8xf32, #tpu.memory_space<vmem>>, vector<128x8xf32>,
    } else {
    }
    return
  }
  func.func @transform_0(%arg0: i32, %arg1: i32, %arg2: memref<1xi32, #tpu.memory_space<smem>>, %arg3: memref<1x1xi32, #tpu.memory_space<smem>>) -> (i32, i32) {
    %0 = arith.index_cast %arg0 : i32 to index
    %1 = arith.index_cast %arg1 : i32 to index
    %2 = memref.load %arg3[%0, %1] : memref<1x1xi32, #tpu.memory_space<smem>>
    %c0_i32 = arith.constant 0 : i32
    %c0_i32_0 = arith.constant 0 : i32
    return %2, %c0_i32 : i32, i32
  }
  func.func @transform_1(%arg0: i32, %arg1: i32, %arg2: memref<1xi32, #tpu.memory_space<smem>>, %arg3: memref<1x1xi32, #tpu.memory_space<smem>>) -> (i32, i32) {
    %0 = arith.index_cast %arg0 : i32 to index
    %1 = arith.index_cast %arg1 : i32 to index
    %2 = memref.load %arg3[%0, %1] : memref<1x1xi32, #tpu.memory_space<smem>>
    %c0_i32 = arith.constant 0 : i32
    %c0_i32_0 = arith.constant 0 : i32
    return %c0_i32, %2 : i32, i32
  }
  func.func @transform_2(%arg0: i32, %arg1: i32, %arg2: memref<1xi32, #tpu.memory_space<smem>>, %arg3: memref<1x1xi32, #tpu.memory_space<smem>>) -> (i32, i32) {
    %c0_i32 = arith.constant 0 : i32
    %c0_i32_0 = arith.constant 0 : i32
    return %arg0, %c0_i32 : i32, i32
  }
  func.func @transform_3(%arg0: i32, %arg1: i32, %arg2: memref<1xi32, #tpu.memory_space<smem>>, %arg3: memref<1x1xi32, #tpu.memory_space<smem>>) -> (i32, i32) {
    %0 = arith.index_cast %arg0 : i32 to index
    %1 = arith.index_cast %arg1 : i32 to index
    %2 = memref.load %arg3[%0, %1] : memref<1x1xi32, #tpu.memory_space<smem>>
    %c0_i32 = arith.constant 0 : i32
    return %arg0, %2 : i32, i32
  }
  func.func @transform_4(%arg0: i32, %arg1: i32, %arg2: memref<1xi32, #tpu.memory_space<smem>>, %arg3: memref<1x1xi32, #tpu.memory_space<smem>>) -> (i32, i32) {
    %c0_i32 = arith.constant 0 : i32
    %c0_i32_0 = arith.constant 0 : i32
    %c0_i32_1 = arith.constant 0 : i32
    return %c0_i32, %c0_i32_0 : i32, i32
  }
  func.func @transform_5(%arg0: i32, %arg1: i32, %arg2: memref<1xi32, #tpu.memory_space<smem>>, %arg3: memref<1x1xi32, #tpu.memory_space<smem>>) -> (i32, i32) {
    %c0_i32 = arith.constant 0 : i32
    %c0_i32_0 = arith.constant 0 : i32
    return %arg0, %c0_i32 : i32, i32
  }
}

module attributes {stable_mosaic.version = 11 : i64} {
  func.func @gat_layer1_kernel(%arg0: i32, %arg1: i32, %arg2: memref<1xi32, #tpu.memory_space<smem>>, %arg3: memref<1x1xi32, #tpu.memory_space<smem>>, %arg4: memref<128x32xbf16, #tpu.memory_space<vmem>>, %arg5: memref<4x128xf32, #tpu.memory_space<vmem>>, %arg6: memref<128x4xf32, #tpu.memory_space<vmem>>, %arg7: memref<128x128xi8, #tpu.memory_space<vmem>>, %arg8: memref<1x32xf32, #tpu.memory_space<vmem>>, %arg9: memref<32x10xbf16, #tpu.memory_space<vmem>>, %arg10: memref<128x8xbf16, #tpu.memory_space<vmem>>, %arg11: memref<128x2xf32, #tpu.memory_space<vmem>>, %arg12: memref<128x4xf32, #tpu.memory_space<vmem>>, %arg13: memref<128x4xf32, #tpu.memory_space<vmem>>, %arg14: memref<128x32xf32, #tpu.memory_space<vmem>>) attributes {dimension_semantics = [#tpu.dimension_semantics<parallel>, #tpu.dimension_semantics<arbitrary>], iteration_bounds = array<i64: 1, 1>, scalar_prefetch = 2 : i64, scratch_operands = 3 : i64, tpu.core_type = #tpu.core_type<tc>, window_params = [{transform_indices = @transform_0, window_bounds = array<i64: 128, 32>}, {transform_indices = @transform_1, window_bounds = array<i64: 4, 128>}, {transform_indices = @transform_2, window_bounds = array<i64: 128, 4>}, {transform_indices = @transform_3, window_bounds = array<i64: 128, 128>}, {pipeline_mode = #tpu.pipeline_mode<synchronous>, transform_indices = @transform_4, window_bounds = array<i64: 1, 32>}, {pipeline_mode = #tpu.pipeline_mode<synchronous>, transform_indices = @transform_5, window_bounds = array<i64: 32, 10>}, {transform_indices = @transform_6, window_bounds = array<i64: 128, 8>}, {transform_indices = @transform_7, window_bounds = array<i64: 128, 2>}]} {
    %c0_i32 = arith.constant 0 : i32
    %0 = arith.cmpi eq, %arg1, %c0_i32 : i32
    %1 = arith.extui %0 : i1 to i32
    %c0_i32_0 = arith.constant 0 : i32
    %2 = arith.cmpi ne, %1, %c0_i32_0 : i32
    scf.if %2 {
      %cst = arith.constant -1.000000e+30 : f32
      %11 = vector.broadcast %cst : f32 to vector<128x4xf32>
      %c0 = arith.constant 0 : index
      %c0_4 = arith.constant 0 : index
      %12 = vector.load %arg12[%c0, %c0_4] : memref<128x4xf32, #tpu.memory_space<vmem>>, vector<128x4xf32>
      tpu.vector_store %arg12[%c0, %c0_4], %11 {strides = array<i32>} : memref<128x4xf32, #tpu.memory_space<vmem>>, vector<128x4xf32>,
      %cst_5 = arith.constant 0.000000e+00 : f32
      %13 = vector.broadcast %cst_5 : f32 to vector<128x4xf32>
      %c0_6 = arith.constant 0 : index
      %c0_7 = arith.constant 0 : index
      %14 = vector.load %arg13[%c0_6, %c0_7] : memref<128x4xf32, #tpu.memory_space<vmem>>, vector<128x4xf32>
      tpu.vector_store %arg13[%c0_6, %c0_7], %13 {strides = array<i32>} : memref<128x4xf32, #tpu.memory_space<vmem>>, vector<128x4xf32>,
      %cst_8 = arith.constant 0.000000e+00 : f32
      %15 = vector.broadcast %cst_8 : f32 to vector<128x32xf32>
      %c0_9 = arith.constant 0 : index
      %c0_10 = arith.constant 0 : index
      %16 = vector.load %arg14[%c0_9, %c0_10] : memref<128x32xf32, #tpu.memory_space<vmem>>, vector<128x32xf32>
      tpu.vector_store %arg14[%c0_9, %c0_10], %15 {strides = array<i32>} : memref<128x32xf32, #tpu.memory_space<vmem>>, vector<128x32xf32>,
    } else {
    }
    %3 = arith.index_cast %arg0 : i32 to index
    %4 = memref.load %arg2[%3] : memref<1xi32, #tpu.memory_space<smem>>
    %5 = arith.cmpi slt, %arg1, %4 : i32
    %6 = arith.extui %5 : i1 to i32
    %c0_i32_1 = arith.constant 0 : i32
    %7 = arith.cmpi ne, %6, %c0_i32_1 : i32
    scf.if %7 {
      %c0 = arith.constant 0 : index
      %c0_4 = arith.constant 0 : index
      %11 = vector.load %arg7[%c0, %c0_4] : memref<128x128xi8, #tpu.memory_space<vmem>>, vector<128x128xi8>
      %12 = arith.sitofp %11 : vector<128x128xi8> to vector<128x128xf32>
      %c0_5 = arith.constant 0 : index
      %c0_6 = arith.constant 0 : index
      %13 = vector.load %arg12[%c0_5, %c0_6] : memref<128x4xf32, #tpu.memory_space<vmem>>, vector<128x4xf32>
      %c0_7 = arith.constant 0 : index
      %c0_8 = arith.constant 0 : index
      %14 = vector.load %arg13[%c0_7, %c0_8] : memref<128x4xf32, #tpu.memory_space<vmem>>, vector<128x4xf32>
      %c0_9 = arith.constant 0 : index
      %c0_10 = arith.constant 0 : index
      %15 = vector.load %arg14[%c0_9, %c0_10] : memref<128x32xf32, #tpu.memory_space<vmem>>, vector<128x32xf32>
      %c0_11 = arith.constant 0 : index
      %c0_12 = arith.constant 0 : index
      %16 = vector.load %arg6[%c0_11, %c0_12] : memref<128x4xf32, #tpu.memory_space<vmem>>, vector<128x1xf32>
      %c0_13 = arith.constant 0 : index
      %c0_14 = arith.constant 0 : index
      %17 = vector.load %arg5[%c0_13, %c0_14] : memref<4x128xf32, #tpu.memory_space<vmem>>, vector<1x128xf32>
      %18 = vector.broadcast %16 : vector<128x1xf32> to vector<128x128xf32>
      %19 = vector.broadcast %17 : vector<1x128xf32> to vector<128x128xf32>
      %20 = arith.addf %18, %19 : vector<128x128xf32>
      %cst = arith.constant 2.000000e-01 : f32
      %21 = vector.broadcast %cst : f32 to vector<128x128xf32>
      %22 = arith.mulf %21, %20 : vector<128x128xf32>
      %23 = arith.maximumf %20, %22 : vector<128x128xf32>
      %24 = vector.extract_strided_slice %13 {offsets = [0, 0], sizes = [128, 1], strides = [1, 1]} : vector<128x4xf32> to vector<128x1xf32>
      %cst_15 = arith.constant dense<0xFF800000> : vector<128xf32>
      %25 = vector.multi_reduction <maximumf>, %23, %cst_15 [1] : vector<128x128xf32> to vector<128xf32>
      %26 = vector.shape_cast %25 : vector<128xf32> to vector<128x1xf32>
      %27 = arith.maximumf %24, %26 : vector<128x1xf32>
      %28 = arith.subf %24, %27 : vector<128x1xf32>
      %29 = math.exp %28 : vector<128x1xf32>
      %30 = vector.broadcast %27 : vector<128x1xf32> to vector<128x128xf32>
      %31 = arith.subf %23, %30 : vector<128x128xf32>
      %32 = math.exp %31 : vector<128x128xf32>
      %33 = arith.mulf %32, %12 : vector<128x128xf32>
      %34 = vector.extract_strided_slice %14 {offsets = [0, 0], sizes = [128, 1], strides = [1, 1]} : vector<128x4xf32> to vector<128x1xf32>
      %35 = arith.mulf %29, %34 : vector<128x1xf32>
      %cst_16 = arith.constant dense<0.000000e+00> : vector<128xf32>
      %36 = vector.multi_reduction <add>, %33, %cst_16 [1] : vector<128x128xf32> to vector<128xf32>
      %37 = vector.shape_cast %36 : vector<128xf32> to vector<128x1xf32>
      %38 = arith.addf %35, %37 : vector<128x1xf32>
      %39 = vector.extract_strided_slice %15 {offsets = [0, 0], sizes = [128, 8], strides = [1, 1]} : vector<128x32xf32> to vector<128x8xf32>
      %40 = vector.broadcast %29 : vector<128x1xf32> to vector<128x8xf32>
      %41 = arith.mulf %40, %39 : vector<128x8xf32>
      %42 = arith.truncf %33 : vector<128x128xf32> to vector<128x128xbf16>
      %c0_17 = arith.constant 0 : index
      %c0_18 = arith.constant 0 : index
      %43 = vector.load %arg4[%c0_17, %c0_18] : memref<128x32xbf16, #tpu.memory_space<vmem>>, vector<128x8xbf16>
      %cst_19 = arith.constant dense<0.000000e+00> : vector<128x8xf32>
      %44 = tpu.matmul %42, %43, %cst_19 {dimension_numbers = #tpu.dot_dimension_numbers<[1], [0], [0], [1], [0, 0, 1, 1], [], []>} : vector<128x128xbf16>, vector<128x8xbf16>, vector<128x8xf32> -> vector<128x8xf32>
      %45 = arith.addf %41, %44 : vector<128x8xf32>
      %c0_20 = arith.constant 0 : index
      %c1 = arith.constant 1 : index
      %46 = vector.load %arg6[%c0_20, %c1] : memref<128x4xf32, #tpu.memory_space<vmem>>, vector<128x1xf32>
      %c1_21 = arith.constant 1 : index
      %c0_22 = arith.constant 0 : index
      %47 = vector.load %arg5[%c1_21, %c0_22] : memref<4x128xf32, #tpu.memory_space<vmem>>, vector<1x128xf32>
      %48 = vector.broadcast %46 : vector<128x1xf32> to vector<128x128xf32>
      %49 = vector.broadcast %47 : vector<1x128xf32> to vector<128x128xf32>
      %50 = arith.addf %48, %49 : vector<128x128xf32>
      %cst_23 = arith.constant 2.000000e-01 : f32
      %51 = vector.broadcast %cst_23 : f32 to vector<128x128xf32>
      %52 = arith.mulf %51, %50 : vector<128x128xf32>
      %53 = arith.maximumf %50, %52 : vector<128x128xf32>
      %54 = vector.extract_strided_slice %13 {offsets = [0, 1], sizes = [128, 1], strides = [1, 1]} : vector<128x4xf32> to vector<128x1xf32>
      %cst_24 = arith.constant dense<0xFF800000> : vector<128xf32>
      %55 = vector.multi_reduction <maximumf>, %53, %cst_24 [1] : vector<128x128xf32> to vector<128xf32>
      %56 = vector.shape_cast %55 : vector<128xf32> to vector<128x1xf32>
      %57 = arith.maximumf %54, %56 : vector<128x1xf32>
      %58 = arith.subf %54, %57 : vector<128x1xf32>
      %59 = math.exp %58 : vector<128x1xf32>
      %60 = vector.broadcast %57 : vector<128x1xf32> to vector<128x128xf32>
      %61 = arith.subf %53, %60 : vector<128x128xf32>
      %62 = math.exp %61 : vector<128x128xf32>
      %63 = arith.mulf %62, %12 : vector<128x128xf32>
      %64 = vector.extract_strided_slice %14 {offsets = [0, 1], sizes = [128, 1], strides = [1, 1]} : vector<128x4xf32> to vector<128x1xf32>
      %65 = arith.mulf %59, %64 : vector<128x1xf32>
      %cst_25 = arith.constant dense<0.000000e+00> : vector<128xf32>
      %66 = vector.multi_reduction <add>, %63, %cst_25 [1] : vector<128x128xf32> to vector<128xf32>
      %67 = vector.shape_cast %66 : vector<128xf32> to vector<128x1xf32>
      %68 = arith.addf %65, %67 : vector<128x1xf32>
      %69 = vector.extract_strided_slice %15 {offsets = [0, 8], sizes = [128, 8], strides = [1, 1]} : vector<128x32xf32> to vector<128x8xf32>
      %70 = vector.broadcast %59 : vector<128x1xf32> to vector<128x8xf32>
      %71 = arith.mulf %70, %69 : vector<128x8xf32>
      %72 = arith.truncf %63 : vector<128x128xf32> to vector<128x128xbf16>
      %c0_26 = arith.constant 0 : index
      %c8 = arith.constant 8 : index
      %73 = vector.load %arg4[%c0_26, %c8] : memref<128x32xbf16, #tpu.memory_space<vmem>>, vector<128x8xbf16>
      %cst_27 = arith.constant dense<0.000000e+00> : vector<128x8xf32>
      %74 = tpu.matmul %72, %73, %cst_27 {dimension_numbers = #tpu.dot_dimension_numbers<[1], [0], [0], [1], [0, 0, 1, 1], [], []>} : vector<128x128xbf16>, vector<128x8xbf16>, vector<128x8xf32> -> vector<128x8xf32>
      %75 = arith.addf %71, %74 : vector<128x8xf32>
      %c0_28 = arith.constant 0 : index
      %c2 = arith.constant 2 : index
      %76 = vector.load %arg6[%c0_28, %c2] : memref<128x4xf32, #tpu.memory_space<vmem>>, vector<128x1xf32>
      %c2_29 = arith.constant 2 : index
      %c0_30 = arith.constant 0 : index
      %77 = vector.load %arg5[%c2_29, %c0_30] : memref<4x128xf32, #tpu.memory_space<vmem>>, vector<1x128xf32>
      %78 = vector.broadcast %76 : vector<128x1xf32> to vector<128x128xf32>
      %79 = vector.broadcast %77 : vector<1x128xf32> to vector<128x128xf32>
      %80 = arith.addf %78, %79 : vector<128x128xf32>
      %cst_31 = arith.constant 2.000000e-01 : f32
      %81 = vector.broadcast %cst_31 : f32 to vector<128x128xf32>
      %82 = arith.mulf %81, %80 : vector<128x128xf32>
      %83 = arith.maximumf %80, %82 : vector<128x128xf32>
      %84 = vector.extract_strided_slice %13 {offsets = [0, 2], sizes = [128, 1], strides = [1, 1]} : vector<128x4xf32> to vector<128x1xf32>
      %cst_32 = arith.constant dense<0xFF800000> : vector<128xf32>
      %85 = vector.multi_reduction <maximumf>, %83, %cst_32 [1] : vector<128x128xf32> to vector<128xf32>
      %86 = vector.shape_cast %85 : vector<128xf32> to vector<128x1xf32>
      %87 = arith.maximumf %84, %86 : vector<128x1xf32>
      %88 = arith.subf %84, %87 : vector<128x1xf32>
      %89 = math.exp %88 : vector<128x1xf32>
      %90 = vector.broadcast %87 : vector<128x1xf32> to vector<128x128xf32>
      %91 = arith.subf %83, %90 : vector<128x128xf32>
      %92 = math.exp %91 : vector<128x128xf32>
      %93 = arith.mulf %92, %12 : vector<128x128xf32>
      %94 = vector.extract_strided_slice %14 {offsets = [0, 2], sizes = [128, 1], strides = [1, 1]} : vector<128x4xf32> to vector<128x1xf32>
      %95 = arith.mulf %89, %94 : vector<128x1xf32>
      %cst_33 = arith.constant dense<0.000000e+00> : vector<128xf32>
      %96 = vector.multi_reduction <add>, %93, %cst_33 [1] : vector<128x128xf32> to vector<128xf32>
      %97 = vector.shape_cast %96 : vector<128xf32> to vector<128x1xf32>
      %98 = arith.addf %95, %97 : vector<128x1xf32>
      %99 = vector.extract_strided_slice %15 {offsets = [0, 16], sizes = [128, 8], strides = [1, 1]} : vector<128x32xf32> to vector<128x8xf32>
      %100 = vector.broadcast %89 : vector<128x1xf32> to vector<128x8xf32>
      %101 = arith.mulf %100, %99 : vector<128x8xf32>
      %102 = arith.truncf %93 : vector<128x128xf32> to vector<128x128xbf16>
      %c0_34 = arith.constant 0 : index
      %c16 = arith.constant 16 : index
      %103 = vector.load %arg4[%c0_34, %c16] : memref<128x32xbf16, #tpu.memory_space<vmem>>, vector<128x8xbf16>
      %cst_35 = arith.constant dense<0.000000e+00> : vector<128x8xf32>
      %104 = tpu.matmul %102, %103, %cst_35 {dimension_numbers = #tpu.dot_dimension_numbers<[1], [0], [0], [1], [0, 0, 1, 1], [], []>} : vector<128x128xbf16>, vector<128x8xbf16>, vector<128x8xf32> -> vector<128x8xf32>
      %105 = arith.addf %101, %104 : vector<128x8xf32>
      %c0_36 = arith.constant 0 : index
      %c3 = arith.constant 3 : index
      %106 = vector.load %arg6[%c0_36, %c3] : memref<128x4xf32, #tpu.memory_space<vmem>>, vector<128x1xf32>
      %c3_37 = arith.constant 3 : index
      %c0_38 = arith.constant 0 : index
      %107 = vector.load %arg5[%c3_37, %c0_38] : memref<4x128xf32, #tpu.memory_space<vmem>>, vector<1x128xf32>
      %108 = vector.broadcast %106 : vector<128x1xf32> to vector<128x128xf32>
      %109 = vector.broadcast %107 : vector<1x128xf32> to vector<128x128xf32>
      %110 = arith.addf %108, %109 : vector<128x128xf32>
      %cst_39 = arith.constant 2.000000e-01 : f32
      %111 = vector.broadcast %cst_39 : f32 to vector<128x128xf32>
      %112 = arith.mulf %111, %110 : vector<128x128xf32>
      %113 = arith.maximumf %110, %112 : vector<128x128xf32>
      %114 = vector.extract_strided_slice %13 {offsets = [0, 3], sizes = [128, 1], strides = [1, 1]} : vector<128x4xf32> to vector<128x1xf32>
      %cst_40 = arith.constant dense<0xFF800000> : vector<128xf32>
      %115 = vector.multi_reduction <maximumf>, %113, %cst_40 [1] : vector<128x128xf32> to vector<128xf32>
      %116 = vector.shape_cast %115 : vector<128xf32> to vector<128x1xf32>
      %117 = arith.maximumf %114, %116 : vector<128x1xf32>
      %118 = arith.subf %114, %117 : vector<128x1xf32>
      %119 = math.exp %118 : vector<128x1xf32>
      %120 = vector.broadcast %117 : vector<128x1xf32> to vector<128x128xf32>
      %121 = arith.subf %113, %120 : vector<128x128xf32>
      %122 = math.exp %121 : vector<128x128xf32>
      %123 = arith.mulf %122, %12 : vector<128x128xf32>
      %124 = vector.extract_strided_slice %14 {offsets = [0, 3], sizes = [128, 1], strides = [1, 1]} : vector<128x4xf32> to vector<128x1xf32>
      %125 = arith.mulf %119, %124 : vector<128x1xf32>
      %cst_41 = arith.constant dense<0.000000e+00> : vector<128xf32>
      %126 = vector.multi_reduction <add>, %123, %cst_41 [1] : vector<128x128xf32> to vector<128xf32>
      %127 = vector.shape_cast %126 : vector<128xf32> to vector<128x1xf32>
      %128 = arith.addf %125, %127 : vector<128x1xf32>
      %129 = vector.extract_strided_slice %15 {offsets = [0, 24], sizes = [128, 8], strides = [1, 1]} : vector<128x32xf32> to vector<128x8xf32>
      %130 = vector.broadcast %119 : vector<128x1xf32> to vector<128x8xf32>
      %131 = arith.mulf %130, %129 : vector<128x8xf32>
      %132 = arith.truncf %123 : vector<128x128xf32> to vector<128x128xbf16>
      %c0_42 = arith.constant 0 : index
      %c24 = arith.constant 24 : index
      %133 = vector.load %arg4[%c0_42, %c24] : memref<128x32xbf16, #tpu.memory_space<vmem>>, vector<128x8xbf16>
      %cst_43 = arith.constant dense<0.000000e+00> : vector<128x8xf32>
      %134 = tpu.matmul %132, %133, %cst_43 {dimension_numbers = #tpu.dot_dimension_numbers<[1], [0], [0], [1], [0, 0, 1, 1], [], []>} : vector<128x128xbf16>, vector<128x8xbf16>, vector<128x8xf32> -> vector<128x8xf32>
      %135 = arith.addf %131, %134 : vector<128x8xf32>
      %136 = tpu.concatenate %27, %57, %87, %117 in 1 : vector<128x1xf32>, vector<128x1xf32>, vector<128x1xf32>, vector<128x1xf32> -> vector<128x4xf32>
      %c0_44 = arith.constant 0 : index
      %c0_45 = arith.constant 0 : index
      %137 = vector.load %arg12[%c0_44, %c0_45] : memref<128x4xf32, #tpu.memory_space<vmem>>, vector<128x4xf32>
      tpu.vector_store %arg12[%c0_44, %c0_45], %136 {strides = array<i32>} : memref<128x4xf32, #tpu.memory_space<vmem>>, vector<128x4xf32>,
      %138 = tpu.concatenate %38, %68, %98, %128 in 1 : vector<128x1xf32>, vector<128x1xf32>, vector<128x1xf32>, vector<128x1xf32> -> vector<128x4xf32>
      %c0_46 = arith.constant 0 : index
      %c0_47 = arith.constant 0 : index
      %139 = vector.load %arg13[%c0_46, %c0_47] : memref<128x4xf32, #tpu.memory_space<vmem>>, vector<128x4xf32>
      tpu.vector_store %arg13[%c0_46, %c0_47], %138 {strides = array<i32>} : memref<128x4xf32, #tpu.memory_space<vmem>>, vector<128x4xf32>,
      %140 = tpu.concatenate %45, %75, %105, %135 in 1 : vector<128x8xf32>, vector<128x8xf32>, vector<128x8xf32>, vector<128x8xf32> -> vector<128x32xf32>
      %c0_48 = arith.constant 0 : index
      %c0_49 = arith.constant 0 : index
      %141 = vector.load %arg14[%c0_48, %c0_49] : memref<128x32xf32, #tpu.memory_space<vmem>>, vector<128x32xf32>
      tpu.vector_store %arg14[%c0_48, %c0_49], %140 {strides = array<i32>} : memref<128x32xf32, #tpu.memory_space<vmem>>, vector<128x32xf32>,
    } else {
    }
    %c0_i32_2 = arith.constant 0 : i32
    %8 = arith.cmpi eq, %arg1, %c0_i32_2 : i32
    %9 = arith.extui %8 : i1 to i32
    %c0_i32_3 = arith.constant 0 : i32
    %10 = arith.cmpi ne, %9, %c0_i32_3 : i32
    scf.if %10 {
      %c0 = arith.constant 0 : index
      %c0_4 = arith.constant 0 : index
      %11 = vector.load %arg13[%c0, %c0_4] : memref<128x4xf32, #tpu.memory_space<vmem>>, vector<128x4xf32>
      %cst = arith.constant 9.99999971E-10 : f32
      %12 = vector.broadcast %cst : f32 to vector<128x4xf32>
      %13 = arith.maximumf %11, %12 : vector<128x4xf32>
      %14 = tpu.reciprocal %13 {approx = true} : vector<128x4xf32> -> vector<128x4xf32>
      %c0_5 = arith.constant 0 : index
      %c0_6 = arith.constant 0 : index
      %15 = vector.load %arg14[%c0_5, %c0_6] : memref<128x32xf32, #tpu.memory_space<vmem>>, vector<128x32xf32>
      %16 = vector.extract_strided_slice %15 {offsets = [0, 0], sizes = [128, 8], strides = [1, 1]} : vector<128x32xf32> to vector<128x8xf32>
      %17 = vector.extract_strided_slice %14 {offsets = [0, 0], sizes = [128, 1], strides = [1, 1]} : vector<128x4xf32> to vector<128x1xf32>
      %18 = vector.broadcast %17 : vector<128x1xf32> to vector<128x8xf32>
      %19 = arith.mulf %16, %18 : vector<128x8xf32>
      %20 = vector.extract_strided_slice %15 {offsets = [0, 8], sizes = [128, 8], strides = [1, 1]} : vector<128x32xf32> to vector<128x8xf32>
      %21 = vector.extract_strided_slice %14 {offsets = [0, 1], sizes = [128, 1], strides = [1, 1]} : vector<128x4xf32> to vector<128x1xf32>
      %22 = vector.broadcast %21 : vector<128x1xf32> to vector<128x8xf32>
      %23 = arith.mulf %20, %22 : vector<128x8xf32>
      %24 = vector.extract_strided_slice %15 {offsets = [0, 16], sizes = [128, 8], strides = [1, 1]} : vector<128x32xf32> to vector<128x8xf32>
      %25 = vector.extract_strided_slice %14 {offsets = [0, 2], sizes = [128, 1], strides = [1, 1]} : vector<128x4xf32> to vector<128x1xf32>
      %26 = vector.broadcast %25 : vector<128x1xf32> to vector<128x8xf32>
      %27 = arith.mulf %24, %26 : vector<128x8xf32>
      %28 = vector.extract_strided_slice %15 {offsets = [0, 24], sizes = [128, 8], strides = [1, 1]} : vector<128x32xf32> to vector<128x8xf32>
      %29 = vector.extract_strided_slice %14 {offsets = [0, 3], sizes = [128, 1], strides = [1, 1]} : vector<128x4xf32> to vector<128x1xf32>
      %30 = vector.broadcast %29 : vector<128x1xf32> to vector<128x8xf32>
      %31 = arith.mulf %28, %30 : vector<128x8xf32>
      %32 = tpu.concatenate %19, %23, %27, %31 in 1 : vector<128x8xf32>, vector<128x8xf32>, vector<128x8xf32>, vector<128x8xf32> -> vector<128x32xf32>
      %c0_7 = arith.constant 0 : index
      %c0_8 = arith.constant 0 : index
      %33 = vector.load %arg8[%c0_7, %c0_8] : memref<1x32xf32, #tpu.memory_space<vmem>>, vector<1x32xf32>
      %34 = vector.broadcast %33 : vector<1x32xf32> to vector<128x32xf32>
      %35 = arith.addf %32, %34 : vector<128x32xf32>
      %cst_9 = arith.constant 0.000000e+00 : f32
      %36 = vector.broadcast %cst_9 : f32 to vector<128x32xf32>
      %37 = arith.cmpf ogt, %35, %36 : vector<128x32xf32>
      %cst_10 = arith.constant 0.000000e+00 : f32
      %38 = vector.broadcast %cst_10 : f32 to vector<128x32xf32>
      %39 = arith.minimumf %35, %38 : vector<128x32xf32>
      %40 = math.exp %39 : vector<128x32xf32>
      %cst_11 = arith.constant 1.000000e+00 : f32
      %41 = vector.broadcast %cst_11 : f32 to vector<128x32xf32>
      %42 = arith.subf %40, %41 : vector<128x32xf32>
      %43 = arith.select %37, %35, %42 : vector<128x32xi1>, vector<128x32xf32>
      %44 = arith.truncf %43 : vector<128x32xf32> to vector<128x32xbf16>
      %c0_12 = arith.constant 0 : index
      %c0_13 = arith.constant 0 : index
      %45 = vector.load %arg9[%c0_12, %c0_13] : memref<32x10xbf16, #tpu.memory_space<vmem>>, vector<32x10xbf16>
      %cst_14 = arith.constant dense<0.000000e+00> : vector<128x10xf32>
      %46 = tpu.matmul %44, %45, %cst_14 {dimension_numbers = #tpu.dot_dimension_numbers<[1], [0], [0], [1], [0, 0, 1, 1], [], []>} : vector<128x32xbf16>, vector<32x10xbf16>, vector<128x10xf32> -> vector<128x10xf32>
      %47 = vector.extract_strided_slice %46 {offsets = [0, 0], sizes = [128, 8], strides = [1, 1]} : vector<128x10xf32> to vector<128x8xf32>
      %48 = arith.truncf %47 : vector<128x8xf32> to vector<128x8xbf16>
      %c0_15 = arith.constant 0 : index
      %c0_16 = arith.constant 0 : index
      %49 = vector.load %arg10[%c0_15, %c0_16] : memref<128x8xbf16, #tpu.memory_space<vmem>>, vector<128x8xbf16>
      tpu.vector_store %arg10[%c0_15, %c0_16], %48 {strides = array<i32>} : memref<128x8xbf16, #tpu.memory_space<vmem>>, vector<128x8xbf16>,
      %50 = vector.extract_strided_slice %46 {offsets = [0, 8], sizes = [128, 2], strides = [1, 1]} : vector<128x10xf32> to vector<128x2xf32>
      %c0_17 = arith.constant 0 : index
      %c0_18 = arith.constant 0 : index
      %51 = vector.load %arg11[%c0_17, %c0_18] : memref<128x2xf32, #tpu.memory_space<vmem>>, vector<128x2xf32>
      tpu.vector_store %arg11[%c0_17, %c0_18], %50 {strides = array<i32>} : memref<128x2xf32, #tpu.memory_space<vmem>>, vector<128x2xf32>,
    } else {
    }
    return
  }
  func.func @transform_0(%arg0: i32, %arg1: i32, %arg2: memref<1xi32, #tpu.memory_space<smem>>, %arg3: memref<1x1xi32, #tpu.memory_space<smem>>) -> (i32, i32) {
    %0 = arith.index_cast %arg0 : i32 to index
    %1 = arith.index_cast %arg1 : i32 to index
    %2 = memref.load %arg3[%0, %1] : memref<1x1xi32, #tpu.memory_space<smem>>
    %c0_i32 = arith.constant 0 : i32
    %c0_i32_0 = arith.constant 0 : i32
    return %2, %c0_i32 : i32, i32
  }
  func.func @transform_1(%arg0: i32, %arg1: i32, %arg2: memref<1xi32, #tpu.memory_space<smem>>, %arg3: memref<1x1xi32, #tpu.memory_space<smem>>) -> (i32, i32) {
    %0 = arith.index_cast %arg0 : i32 to index
    %1 = arith.index_cast %arg1 : i32 to index
    %2 = memref.load %arg3[%0, %1] : memref<1x1xi32, #tpu.memory_space<smem>>
    %c0_i32 = arith.constant 0 : i32
    %c0_i32_0 = arith.constant 0 : i32
    return %c0_i32, %2 : i32, i32
  }
  func.func @transform_2(%arg0: i32, %arg1: i32, %arg2: memref<1xi32, #tpu.memory_space<smem>>, %arg3: memref<1x1xi32, #tpu.memory_space<smem>>) -> (i32, i32) {
    %c0_i32 = arith.constant 0 : i32
    %c0_i32_0 = arith.constant 0 : i32
    return %arg0, %c0_i32 : i32, i32
  }
  func.func @transform_3(%arg0: i32, %arg1: i32, %arg2: memref<1xi32, #tpu.memory_space<smem>>, %arg3: memref<1x1xi32, #tpu.memory_space<smem>>) -> (i32, i32) {
    %0 = arith.index_cast %arg0 : i32 to index
    %1 = arith.index_cast %arg1 : i32 to index
    %2 = memref.load %arg3[%0, %1] : memref<1x1xi32, #tpu.memory_space<smem>>
    %c0_i32 = arith.constant 0 : i32
    return %arg0, %2 : i32, i32
  }
  func.func @transform_4(%arg0: i32, %arg1: i32, %arg2: memref<1xi32, #tpu.memory_space<smem>>, %arg3: memref<1x1xi32, #tpu.memory_space<smem>>) -> (i32, i32) {
    %c0_i32 = arith.constant 0 : i32
    %c0_i32_0 = arith.constant 0 : i32
    %c0_i32_1 = arith.constant 0 : i32
    return %c0_i32, %c0_i32_0 : i32, i32
  }
  func.func @transform_5(%arg0: i32, %arg1: i32, %arg2: memref<1xi32, #tpu.memory_space<smem>>, %arg3: memref<1x1xi32, #tpu.memory_space<smem>>) -> (i32, i32) {
    %c0_i32 = arith.constant 0 : i32
    %c0_i32_0 = arith.constant 0 : i32
    %c0_i32_1 = arith.constant 0 : i32
    return %c0_i32, %c0_i32_0 : i32, i32
  }
  func.func @transform_6(%arg0: i32, %arg1: i32, %arg2: memref<1xi32, #tpu.memory_space<smem>>, %arg3: memref<1x1xi32, #tpu.memory_space<smem>>) -> (i32, i32) {
    %c0_i32 = arith.constant 0 : i32
    %c0_i32_0 = arith.constant 0 : i32
    return %arg0, %c0_i32 : i32, i32
  }
  func.func @transform_7(%arg0: i32, %arg1: i32, %arg2: memref<1xi32, #tpu.memory_space<smem>>, %arg3: memref<1x1xi32, #tpu.memory_space<smem>>) -> (i32, i32) {
    %c0_i32 = arith.constant 0 : i32
    %c0_i32_0 = arith.constant 0 : i32
    return %arg0, %c0_i32 : i32, i32
  }
}

</mosaic_0001>

<bundles_post_ra>
// kernel: net_forward.3
= control target key start
LH: loop header
LB: loop body
LE: loop exit
PB: predicated region body
PF: predicated region fallthrough
CT: control target
= control target key end

     0   :  { %vm78_vm0 = vcmask 130048   ;;  %vm168_vm1 = vcmask 257024   ;;  %s331_s29 = smov 96   ;;  %vm249_vm2 = vcmask 64512   ;;  %s531_s1 = inlined_call_operand.vmem [shape: bf16[16,40], index: 1, kind: input, shape index: {}]   ;;  %s532_s0 = inlined_call_operand.vmem [shape: bf16[128,16], index: 0, kind: input, shape index: {}]   ;;  %s533_s2 = inlined_call_operand.vmem [shape: bf16[128,32], index: 2, kind: output, shape index: {0}]   ;;  %s534_s3 = inlined_call_operand.vmem [shape: f32[128,8], index: 3, kind: output, shape index: {1}]  }
   0x1   :  { %v326_v0 = vld [vmem:[%s531_s1] sm:$0xff]  ;;  %v320_v2 = vld [vmem:[%s532_s0 + $0x10] sm:$0xff]  ;;  %v319_v5 = vld [vmem:[%s532_s0 + $0x8] sm:$0xff] }
   0x2   :  { %v318_v1 = vld [vmem:[%s532_s0] sm:$0xff]  ;;  %110 = vmatpush.bf16.msra.mxu0 %v326_v0  ;;  %327 = vmatpush.bf16.msra.mxu1 %v326_v0  ;;  %v324_v4 = vld [vmem:[%s532_s0 + $0x30] sm:$0xff]  ;;  %v321_v6 = vld [vmem:[%s532_s0 + $0x18] sm:$0xff] }
   0x3   :  { %v322_v3 = vld [vmem:[%s532_s0 + $0x20] sm:$0xff]  ;;  %328 = vmatpush.bf16.msra.mxu2 %v326_v0  ;;  %329 = vmatpush.bf16.msra.mxu3 %v326_v0  ;;  %v323_v7 = vld [vmem:[%s532_s0 + $0x28] sm:$0xff]  ;;  %v325_v8 = vld [vmem:[%s532_s0 + $0x38] sm:$0xff] }
   0x5   :  { %310 = vmatmul.msk.bf16.vlgmr.msra.gmra.mxu0 %vm78_vm0, %v318_v1  ;;  %312 = vmatmul.msk.bf16.vlgmr.msra.gmra.mxu1 %vm78_vm0, %v320_v2 }
   0x6   :  { %314 = vmatmul.msk.bf16.vlgmr.msra.gmra.mxu2 %vm78_vm0, %v322_v3  ;;  %316 = vmatmul.msk.bf16.vlgmr.msra.gmra.mxu3 %vm78_vm0, %v324_v4 }
  0x15   :  { %311 = vmatmul.msk.bf16.gmra.mxu0 %vm78_vm0, %v319_v5  ;;  %313 = vmatmul.msk.bf16.gmra.mxu1 %vm78_vm0, %v321_v6 }
  0x16   :  { %315 = vmatmul.msk.bf16.gmra.mxu2 %vm78_vm0, %v323_v7  ;;  %317 = vmatmul.msk.bf16.gmra.mxu3 %vm78_vm0, %v325_v8 }
  0x82   :  { %v112_v9 = vpop.f32.mrf.mxu0  ;;  %v122_v10 = vpop.f32.mrf.mxu1 }
  0x83   :  { %v152_v11 = vpack.c.bf16 %v112_v9, %v112_v9  ;;  %v156_v12 = vpack.c.bf16 %v122_v10, %v122_v10  ;;  %209 = vrot.lane.b32.xlu2 %v122_v10, %s331_s29  ;;  %201 = vrot.lane.b32.xlu0 %v112_v9, %s331_s29 }
  0x85   :  { %169 = vst.msk [vmem:[%s533_s2] sm:$0xf] %vm168_vm1, %v152_v11 }
  0x86   :  { %173 = vst.msk [vmem:[%s533_s2 + $0x10] sm:$0xf] %vm168_vm1, %v156_v12 }
  0x89   :  { %v132_v13 = vpop.f32.mrf.mxu2  ;;  %v142_v14 = vpop.f32.mrf.mxu3 }
  0x8a   :  { %v160_v15 = vpack.c.bf16 %v132_v13, %v132_v13  ;;  %v114_v16 = vpop.f32.mrf.mxu0  ;;  %v164_v17 = vpack.c.bf16 %v142_v14, %v142_v14  ;;  %v124_v18 = vpop.f32.mrf.mxu1 }
  0x8b   :  { %v153_v19 = vpack.c.bf16 %v114_v16, %v114_v16  ;;  %217 = vrot.lane.b32.xlu2 %v132_v13, %s331_s29  ;;  %225 = vrot.lane.b32.xlu0 %v142_v14, %s331_s29  ;;  %v157_v20 = vpack.c.bf16 %v124_v18, %v124_v18 }
  0x8c   :  { %177 = vst.msk [vmem:[%s533_s2 + $0x20] sm:$0xf] %vm168_vm1, %v160_v15 }
  0x8d   :  { %170 = vst.msk [vmem:[%s533_s2 + $0x4] sm:$0xf] %vm168_vm1, %v153_v19 }
  0x8e   :  { %181 = vst.msk [vmem:[%s533_s2 + $0x30] sm:$0xf] %vm168_vm1, %v164_v17 }
  0x8f   :  { %174 = vst.msk [vmem:[%s533_s2 + $0x14] sm:$0xf] %vm168_vm1, %v157_v20 }
  0x91   :  { %v134_v21 = vpop.f32.mrf.mxu2  ;;  %v144_v22 = vpop.f32.mrf.mxu3 }
  0x92   :  { %v161_v23 = vpack.c.bf16 %v134_v21, %v134_v21  ;;  %v117_v24 = vpop.f32.mrf.mxu0  ;;  %v165_v25 = vpack.c.bf16 %v144_v22, %v144_v22  ;;  %v127_v26 = vpop.f32.mrf.mxu1 }
  0x93   :  { %v154_v27 = vpack.c.bf16 %v117_v24, %v117_v24  ;;  %211 = vrot.lane.b32.xlu2 %v124_v18, %s331_s29  ;;  %203 = vrot.lane.b32.xlu0 %v114_v16, %s331_s29  ;;  %v158_v28 = vpack.c.bf16 %v127_v26, %v127_v26 }
  0x94   :  { %178 = vst.msk [vmem:[%s533_s2 + $0x24] sm:$0xf] %vm168_vm1, %v161_v23  ;;  %205 = vrot.lane.b32.xlu1 %v117_v24, %s331_s29 }
  0x95   :  { %171 = vst.msk [vmem:[%s533_s2 + $0x8] sm:$0xf] %vm168_vm1, %v154_v27 }
  0x96   :  { %182 = vst.msk [vmem:[%s533_s2 + $0x34] sm:$0xf] %vm168_vm1, %v165_v25 }
  0x97   :  { %175 = vst.msk [vmem:[%s533_s2 + $0x18] sm:$0xf] %vm168_vm1, %v158_v28 }
  0x99   :  { %v137_v29 = vpop.f32.mrf.mxu2  ;;  %v147_v30 = vpop.f32.mrf.mxu3 }
  0x9a   :  { %v162_v31 = vpack.c.bf16 %v137_v29, %v137_v29  ;;  %v119_v32 = vpop.f32.mrf.mxu0  ;;  %v129_v33 = vpop.f32.mrf.mxu1  ;;  %v166_v36 = vpack.c.bf16 %v147_v30, %v147_v30 }
  0x9b   :  { %v155_v34 = vpack.c.bf16 %v119_v32, %v119_v32  ;;  %219 = vrot.lane.b32.xlu0 %v134_v21, %s331_s29  ;;  %v159_v35 = vpack.c.bf16 %v129_v33, %v129_v33 }
  0x9c   :  { %179 = vst.msk [vmem:[%s533_s2 + $0x28] sm:$0xf] %vm168_vm1, %v162_v31  ;;  %221 = vrot.lane.b32.xlu1 %v137_v29, %s331_s29 }
  0x9d   :  { %172 = vst.msk [vmem:[%s533_s2 + $0xc] sm:$0xf] %vm168_vm1, %v155_v34 }
  0x9e   :  { %176 = vst.msk [vmem:[%s533_s2 + $0x1c] sm:$0xf] %vm168_vm1, %v159_v35 }
  0x9f   :  { %183 = vst.msk [vmem:[%s533_s2 + $0x38] sm:$0xf] %vm168_vm1, %v166_v36 }
  0xa1   :  { %v139_v37 = vpop.f32.mrf.mxu2  ;;  %v149_v38 = vpop.f32.mrf.mxu3 }
  0xa2   :  { %v163_v39 = vpack.c.bf16 %v139_v37, %v139_v37  ;;  %223 = vrot.lane.b32.xlu2 %v139_v37, %s331_s29  ;;  %v167_v40 = vpack.c.bf16 %v149_v38, %v149_v38 }
  0xa3   :  { %213 = vrot.lane.b32.xlu0 %v127_v26, %s331_s29 }
  0xa4   :  { %180 = vst.msk [vmem:[%s533_s2 + $0x2c] sm:$0xf] %vm168_vm1, %v163_v39  ;;  %207 = vrot.lane.b32.xlu1 %v119_v32, %s331_s29 }
  0xa5   :  { %184 = vst.msk [vmem:[%s533_s2 + $0x3c] sm:$0xf] %vm168_vm1, %v167_v40 }
  0xaa   :  { %229 = vrot.lane.b32.xlu2 %v147_v30, %s331_s29 }
  0xab   :  { %231 = vrot.lane.b32.xlu0 %v149_v38, %s331_s29 }
  0xac   :  { %215 = vrot.lane.b32.xlu1 %v129_v33, %s331_s29 }
  0xb4   :  { %227 = vrot.lane.b32.xlu1 %v144_v22, %s331_s29 }
  0xdd   :  { %v210_v41 = vpop.permute.xlu2 %209 }
  0xde   :  { %254 = vst.msk [vmem:[%s534_s3 + $0x20] sm:$0xff] %vm249_vm2, %v210_v41 }
  0xe5   :  { %v218_v42 = vpop.permute.xlu2 %217 }
  0xe6   :  { %258 = vst.msk [vmem:[%s534_s3 + $0x40] sm:$0xff] %vm249_vm2, %v218_v42 }
  0xed   :  { %v212_v43 = vpop.permute.xlu2 %211 }
  0xee   :  { %255 = vst.msk [vmem:[%s534_s3 + $0x28] sm:$0xff] %vm249_vm2, %v212_v43 }
  0xf5   :  { %v202_v44 = vpop.permute.xlu0 %201 }
  0xf6   :  { %250 = vst.msk [vmem:[%s534_s3] sm:$0xff] %vm249_vm2, %v202_v44 }
  0xfc   :  { %v224_v45 = vpop.permute.xlu2 %223 }
  0xfd   :  { %261 = vst.msk [vmem:[%s534_s3 + $0x58] sm:$0xff] %vm249_vm2, %v224_v45  ;;  %v226_v46 = vpop.permute.xlu0 %225 }
  0xfe   :  { %262 = vst.msk [vmem:[%s534_s3 + $0x60] sm:$0xff] %vm249_vm2, %v226_v46 }
 0x104   :  { %v230_v47 = vpop.permute.xlu2 %229 }
 0x105   :  { %264 = vst.msk [vmem:[%s534_s3 + $0x70] sm:$0xff] %vm249_vm2, %v230_v47  ;;  %v204_v48 = vpop.permute.xlu0 %203 }
 0x106   :  { %251 = vst.msk [vmem:[%s534_s3 + $0x8] sm:$0xff] %vm249_vm2, %v204_v48  ;;  %v206_v49 = vpop.permute.xlu1 %205 }
 0x107   :  { %252 = vst.msk [vmem:[%s534_s3 + $0x10] sm:$0xff] %vm249_vm2, %v206_v49 }
 0x10d   :  { %v220_v50 = vpop.permute.xlu0 %219 }
 0x10e   :  { %259 = vst.msk [vmem:[%s534_s3 + $0x48] sm:$0xff] %vm249_vm2, %v220_v50  ;;  %v222_v51 = vpop.permute.xlu1 %221 }
 0x10f   :  { %260 = vst.msk [vmem:[%s534_s3 + $0x50] sm:$0xff] %vm249_vm2, %v222_v51 }
 0x115   :  { %v214_v52 = vpop.permute.xlu0 %213 }
 0x116   :  { %256 = vst.msk [vmem:[%s534_s3 + $0x30] sm:$0xff] %vm249_vm2, %v214_v52  ;;  %v208_v53 = vpop.permute.xlu1 %207 }
 0x117   :  { %253 = vst.msk [vmem:[%s534_s3 + $0x18] sm:$0xff] %vm249_vm2, %v208_v53 }
 0x11d   :  { %v232_v54 = vpop.permute.xlu0 %231 }
 0x11e   :  { %265 = vst.msk [vmem:[%s534_s3 + $0x78] sm:$0xff] %vm249_vm2, %v232_v54  ;;  %v216_v55 = vpop.permute.xlu1 %215 }
 0x11f   :  { %257 = vst.msk [vmem:[%s534_s3 + $0x38] sm:$0xff] %vm249_vm2, %v216_v55 }
 0x126   :  { %v228_v56 = vpop.permute.xlu1 %227 }
 0x127   :  { %263 = vst.msk [vmem:[%s534_s3 + $0x68] sm:$0xff] %vm249_vm2, %v228_v56 }

// kernel: net_forward.5
= control target key start
LH: loop header
LB: loop body
LE: loop exit
PB: predicated region body
PF: predicated region fallthrough
CT: control target
= control target key end

     0   :  { %vm126_vm0 = vcmask 7168   ;;  %v1652_v0 = vmov -1e+30   ;;  %v1653_v1 = vmov 0.0   ;;  %vm159_vm1 = vcmask 64512   ;;  %s2463_s0 = inlined_call_operand.<no memory space> [shape: s32[1], index: 0, kind: input, shape index: {}]   ;;  %s2464_s1 = inlined_call_operand.<no memory space> [shape: s32[1,1], index: 1, kind: input, shape index: {}]   ;;  %s2465_s4 = inlined_call_operand.vmem [shape: f32[128,1], index: 4, kind: input, shape index: {}]   ;;  %s2466_s6 = inlined_call_operand.vmem [shape: f32[1,8], index: 6, kind: input, shape index: {}]   ;;  %s2467_s7 = inlined_call_operand.vmem [shape: f32[128,8], index: 7, kind: output, shape index: {}]   ;;  %s2468_s3 = inlined_call_operand.vmem [shape: f32[1,128], index: 3, kind: input, shape index: {}]   ;;  %s2469_s5 = inlined_call_operand.vmem [shape: s8[128,128], index: 5, kind: input, shape index: {}]   ;;  %s2470_s2 = inlined_call_operand.vmem [shape: bf16[128,8], index: 2, kind: input, shape index: {}]  }
   0x1   :  { %s1411_s26 = sshll.u32 %s2464_s1, 4  ;;  %p103_p0 = scmp.lt.s32.totalorder %s2464_s1, 0  ;;  %127 = vst.msk [vmem:[#allocation2] sm:$0xff] %vm126_vm0, %v1652_v0 }
   0x2   :  { %p90_p1 = scmp.lt.s32.totalorder %s1411_s26, 15  ;;  %128 = vst.msk [vmem:[#allocation2 + $0x8] sm:$0xff] %vm126_vm0, %v1652_v0  ;;  %p1415_p2 = scmp.le.s32.totalorder %s2463_s0, 0 }
   0x3   :  { %s2472_s1 = smov (!%p103_p0, %s2464_s1), 0  ;;  %129 = vst.msk [vmem:[#allocation2 + $0x10] sm:$0xff] %vm126_vm0, %v1652_v0 }
   0x4   :  { %s2474_s26 = smov (!%p90_p1, %s1411_s26), 15  ;;  %130 = vst.msk [vmem:[#allocation2 + $0x18] sm:$0xff] %vm126_vm0, %v1652_v0  ;;  %s105_s10 = scalar_lea.vmem %s2468_s3, %s2472_s1 }
   0x5   :  { %s1413_s11 = sshll.u32 %s2472_s1, 3  ;;  %131 = vst.msk [vmem:[#allocation2 + $0x20] sm:$0xff] %vm126_vm0, %v1652_v0  ;;  %s1412_s12 = sshll.u32 %s2474_s26, 2 }
   0x6   :  { %s1720_s15 = scalar_lea.vmem %s2469_s5, %s1413_s11  ;;  %132 = vst.msk [vmem:[#allocation2 + $0x28] sm:$0xff] %vm126_vm0, %v1652_v0  ;;  %s1726_s18 = scalar_lea.vmem %s2470_s2, %s1412_s12 }
   0x7   :  { %133 = vst.msk [vmem:[#allocation2 + $0x30] sm:$0xff] %vm126_vm0, %v1652_v0 }
   0x8   :  { %134 = vst.msk [vmem:[#allocation2 + $0x38] sm:$0xff] %vm126_vm0, %v1652_v0 }
   0x9   :  { %135 = vst.msk [vmem:[#allocation2 + $0x40] sm:$0xff] %vm126_vm0, %v1652_v0 }
   0xa   :  { %136 = vst.msk [vmem:[#allocation2 + $0x48] sm:$0xff] %vm126_vm0, %v1652_v0 }
   0xb   :  { %137 = vst.msk [vmem:[#allocation2 + $0x50] sm:$0xff] %vm126_vm0, %v1652_v0 }
   0xc   :  { %138 = vst.msk [vmem:[#allocation2 + $0x58] sm:$0xff] %vm126_vm0, %v1652_v0 }
   0xd   :  { %139 = vst.msk [vmem:[#allocation2 + $0x60] sm:$0xff] %vm126_vm0, %v1652_v0 }
   0xe   :  { %140 = vst.msk [vmem:[#allocation2 + $0x68] sm:$0xff] %vm126_vm0, %v1652_v0 }
   0xf   :  { %141 = vst.msk [vmem:[#allocation2 + $0x70] sm:$0xff] %vm126_vm0, %v1652_v0 }
  0x10   :  { %142 = vst.msk [vmem:[#allocation2 + $0x78] sm:$0xff] %vm126_vm0, %v1652_v0 }
  0x11   :  { %143 = vst.msk [vmem:[#allocation3] sm:$0xff] %vm126_vm0, %v1653_v1 }
  0x12   :  { %144 = vst.msk [vmem:[#allocation3 + $0x8] sm:$0xff] %vm126_vm0, %v1653_v1 }
  0x13   :  { %145 = vst.msk [vmem:[#allocation3 + $0x10] sm:$0xff] %vm126_vm0, %v1653_v1 }
  0x14   :  { %146 = vst.msk [vmem:[#allocation3 + $0x18] sm:$0xff] %vm126_vm0, %v1653_v1 }
  0x15   :  { %147 = vst.msk [vmem:[#allocation3 + $0x20] sm:$0xff] %vm126_vm0, %v1653_v1 }
  0x16   :  { %148 = vst.msk [vmem:[#allocation3 + $0x28] sm:$0xff] %vm126_vm0, %v1653_v1 }
  0x17   :  { %149 = vst.msk [vmem:[#allocation3 + $0x30] sm:$0xff] %vm126_vm0, %v1653_v1 }
  0x18   :  { %150 = vst.msk [vmem:[#allocation3 + $0x38] sm:$0xff] %vm126_vm0, %v1653_v1 }
  0x19   :  { %151 = vst.msk [vmem:[#allocation3 + $0x40] sm:$0xff] %vm126_vm0, %v1653_v1 }
  0x1a   :  { %152 = vst.msk [vmem:[#allocation3 + $0x48] sm:$0xff] %vm126_vm0, %v1653_v1 }
  0x1b   :  { %153 = vst.msk [vmem:[#allocation3 + $0x50] sm:$0xff] %vm126_vm0, %v1653_v1 }
  0x1c   :  { %154 = vst.msk [vmem:[#allocation3 + $0x58] sm:$0xff] %vm126_vm0, %v1653_v1 }
  0x1d   :  { %155 = vst.msk [vmem:[#allocation3 + $0x60] sm:$0xff] %vm126_vm0, %v1653_v1 }
  0x1e   :  { %156 = vst.msk [vmem:[#allocation3 + $0x68] sm:$0xff] %vm126_vm0, %v1653_v1 }
  0x1f   :  { %157 = vst.msk [vmem:[#allocation3 + $0x70] sm:$0xff] %vm126_vm0, %v1653_v1 }
  0x20   :  { %158 = vst.msk [vmem:[#allocation3 + $0x78] sm:$0xff] %vm126_vm0, %v1653_v1 }
  0x21   :  { %160 = vst.msk [vmem:[#allocation4] sm:$0xff] %vm159_vm1, %v1653_v1 }
  0x22   :  { %161 = vst.msk [vmem:[#allocation4 + $0x8] sm:$0xff] %vm159_vm1, %v1653_v1 }
  0x23   :  { %162 = vst.msk [vmem:[#allocation4 + $0x10] sm:$0xff] %vm159_vm1, %v1653_v1 }
  0x24   :  { %163 = vst.msk [vmem:[#allocation4 + $0x18] sm:$0xff] %vm159_vm1, %v1653_v1 }
  0x25   :  { %164 = vst.msk [vmem:[#allocation4 + $0x20] sm:$0xff] %vm159_vm1, %v1653_v1 }
  0x26   :  { %165 = vst.msk [vmem:[#allocation4 + $0x28] sm:$0xff] %vm159_vm1, %v1653_v1 }
  0x27   :  { %166 = vst.msk [vmem:[#allocation4 + $0x30] sm:$0xff] %vm159_vm1, %v1653_v1 }
  0x28   :  { %167 = vst.msk [vmem:[#allocation4 + $0x38] sm:$0xff] %vm159_vm1, %v1653_v1 }
  0x29   :  { %168 = vst.msk [vmem:[#allocation4 + $0x40] sm:$0xff] %vm159_vm1, %v1653_v1 }
  0x2a   :  { %169 = vst.msk [vmem:[#allocation4 + $0x48] sm:$0xff] %vm159_vm1, %v1653_v1 }
  0x2b   :  { %170 = vst.msk [vmem:[#allocation4 + $0x50] sm:$0xff] %vm159_vm1, %v1653_v1 }
  0x2c   :  { %171 = vst.msk [vmem:[#allocation4 + $0x58] sm:$0xff] %vm159_vm1, %v1653_v1  ;;  %180 = sbr.rel (%p1415_p2) target bundleno = 614 (0x266), region = 29 }
  0x2d   :  { %172 = vst.msk [vmem:[#allocation4 + $0x60] sm:$0xff] %vm159_vm1, %v1653_v1 }
  0x2e   :  { %173 = vst.msk [vmem:[#allocation4 + $0x68] sm:$0xff] %vm159_vm1, %v1653_v1 }
  0x2f   :  { %174 = vst.msk [vmem:[#allocation4 + $0x70] sm:$0xff] %vm159_vm1, %v1653_v1 }
  0x30   :  { %175 = vst.msk [vmem:[#allocation4 + $0x78] sm:$0xff] %vm159_vm1, %v1653_v1 }
  0x31   :  { %v267_v2 = vld [vmem:[%s2465_s4 + $0x10] sm:$0xff]  ;;  %v265_v3 = vld [vmem:[%s2465_s4] sm:$0xff]  ;;  %v1654_v4 = vmov 0   ;;  %v268_v6 = vld [vmem:[%s2465_s4 + $0x18] sm:$0xff] }
  0x32   :  { %1485 = vset.pattern.permute.xlu1 %v1654_v4  ;;  %1484 = vset.pattern.permute.xlu0 %v1654_v4  ;;  %v269_v5 = vld [vmem:[%s2465_s4 + $0x20] sm:$0xff]  ;;  %v266_v7 = vld [vmem:[%s2465_s4 + $0x8] sm:$0xff]  ;;  %v272_v9 = vld [vmem:[%s2465_s4 + $0x38] sm:$0xff] }
  0x33   :  { %294 = vperm.xlu1 %1485, %v267_v2   ;;  %284 = vperm.xlu0 %1484, %v265_v3   ;;  %v270_v8 = vld [vmem:[%s2465_s4 + $0x28] sm:$0xff]  ;;  %v271_v10 = vld [vmem:[%s2465_s4 + $0x30] sm:$0xff]  ;;  %v273_v11 = vld [vmem:[%s2465_s4 + $0x40] sm:$0xff] }
  0x34   :  { %1486 = vset.pattern.permute.xlu2 %v1654_v4  ;;  %v275_v12 = vld [vmem:[%s2465_s4 + $0x50] sm:$0xff]  ;;  %v274_v13 = vld [vmem:[%s2465_s4 + $0x48] sm:$0xff]  ;;  %v276_v14 = vld [vmem:[%s2465_s4 + $0x58] sm:$0xff] }
  0x35   :  { %304 = vperm.xlu2 %1486, %v269_v5   ;;  %v278_v15 = vld [vmem:[%s2465_s4 + $0x68] sm:$0xff]  ;;  %v277_v16 = vld [vmem:[%s2465_s4 + $0x60] sm:$0xff]  ;;  %v279_v17 = vld [vmem:[%s2465_s4 + $0x70] sm:$0xff] }
  0x36   :  { %v280_v18 = vld [vmem:[%s2465_s4 + $0x78] sm:$0xff]  ;;  %v1826_v19 = vld [vmem:[%s105_s10] ss:$0 sm:$0xff] }
  0x3b   :  { %299 = vperm.xlu1 %1485, %v268_v6   ;;  %289 = vperm.xlu0 %1484, %v266_v7  }
  0x3d   :  { %309 = vperm.xlu2 %1486, %v270_v8  }
  0x43   :  { %319 = vperm.xlu1 %1485, %v272_v9   ;;  %314 = vperm.xlu0 %1484, %v271_v10  }
  0x45   :  { %324 = vperm.xlu2 %1486, %v273_v11  }
  0x4b   :  { %334 = vperm.xlu1 %1485, %v275_v12   ;;  %329 = vperm.xlu0 %1484, %v274_v13  }
  0x4d   :  { %339 = vperm.xlu2 %1486, %v276_v14  }
  0x53   :  { %349 = vperm.xlu1 %1485, %v278_v15   ;;  %344 = vperm.xlu0 %1484, %v277_v16  }
  0x55   :  { %354 = vperm.xlu2 %1486, %v279_v17  }
  0x5b   :  { %359 = vperm.xlu0 %1484, %v280_v18  }
  0x8f   :  { %v305_v22 = vpop.permute.xlu2 %304 }
  0x90   :  { %v369_v25 = vadd.f32 %v1826_v19, %v305_v22  ;;  %v1894_v22 = vld [vmem:[#allocation2 + $0x10] sm:$0xff] }
  0x92   :  { %v385_v30 = vmul.f32 0.2, %v369_v25 }
  0x94   :  { %v1838_v36 = vmax.f32 %v369_v25, %v385_v30 }
  0x97   :  { %v310_v34 = vpop.permute.xlu2 %309 }
  0x98   :  { %v370_v46 = vadd.f32 %v1826_v19, %v310_v34  ;;  %v1924_v34 = vld [vmem:[#allocation2 + $0x38] sm:$0xff] }
  0x9a   :  { %v386_v53 = vmul.f32 0.2, %v370_v46 }
  0x9c   :  { %v1862_v60 = vmax.f32 %v370_v46, %v386_v53  ;;  %v1949_v46 = vld [vmem:[#allocation2 + $0x28] sm:$0xff] }
  0x9f   :  { %v325_v47 = vpop.permute.xlu2 %324 }
  0xa0   :  { %v373_v58 = vadd.f32 %v1826_v19, %v325_v47  ;;  %v1951_v47 = vld [vmem:[#allocation2 + $0x48] sm:$0xff] }
  0xa2   :  { %v389_v1 = vmul.f32 0.2, %v373_v58 }
  0xa4   :  { %v1874_v8 = vmax.f32 %v373_v58, %v389_v1  ;;  %v1968_v58 = vld [vmem:[#allocation2 + $0x40] sm:$0xff] }
  0xa5   :  { %v295_v20 = vpop.permute.xlu1 %294  ;;  %v285_v21 = vpop.permute.xlu0 %284 }
  0xa6   :  { %v367_v23 = vadd.f32 %v1826_v19, %v295_v20  ;;  %v365_v24 = vadd.f32 %v1826_v19, %v285_v21  ;;  %v1892_v21 = vld [vmem:[#allocation2] sm:$0xff] }
  0xa7   :  { %v340_v62 = vpop.permute.xlu2 %339 }
  0xa8   :  { %v383_v26 = vmul.f32 0.2, %v367_v23  ;;  %v381_v27 = vmul.f32 0.2, %v365_v24  ;;  %v376_v6 = vadd.f32 %v1826_v19, %v340_v62  ;;  %v1970_v62 = vld [vmem:[#allocation2 + $0x60] sm:$0xff] }
  0xaa   :  { %v1831_v28 = vmax.f32 %v367_v23, %v383_v26  ;;  %v1833_v29 = vmax.f32 %v365_v24, %v381_v27  ;;  %v392_v11 = vmul.f32 0.2, %v376_v6  ;;  %v1908_v26 = vld [vmem:[#allocation2 + $0x20] sm:$0xff]  ;;  %v1910_v27 = vld [vmem:[#allocation2 + $0x8] sm:$0xff] }
  0xac   :  { %417 = vmax.xlane.f32.xlu0 %v1831_v28  ;;  %413 = vmax.xlane.f32.xlu1 %v1833_v29  ;;  %v1883_v16 = vmax.f32 %v376_v6, %v392_v11  ;;  %v1992_v11 = vld [vmem:[#allocation2 + $0x78] sm:$0xff] }
  0xad   :  { %v300_v31 = vpop.permute.xlu1 %299  ;;  %v290_v32 = vpop.permute.xlu0 %289 }
  0xae   :  { %v366_v33 = vadd.f32 %v1826_v19, %v290_v32  ;;  %v368_v37 = vadd.f32 %v1826_v19, %v300_v31 }
  0xaf   :  { %v355_v13 = vpop.permute.xlu2 %354 }
  0xb0   :  { %v382_v35 = vmul.f32 0.2, %v366_v33  ;;  %v384_v41 = vmul.f32 0.2, %v368_v37  ;;  %v379_v15 = vadd.f32 %v1826_v19, %v355_v13 }
  0xb2   :  { %v1841_v38 = vmax.f32 %v366_v33, %v382_v35  ;;  %v1850_v49 = vmax.f32 %v368_v37, %v384_v41  ;;  %v395_v18 = vmul.f32 0.2, %v379_v15  ;;  %v1926_v35 = vld [vmem:[#allocation2 + $0x18] sm:$0xff]  ;;  %v1928_v37 = vld [vmem:[#allocation2 + $0x30] sm:$0xff] }
  0xb4   :  { %421 = vmax.xlane.f32.xlu1 %v1838_v36  ;;  %415 = vmax.xlane.f32.xlu2 %v1841_v38  ;;  %v1889_v20 = vmax.f32 %v379_v15, %v395_v18 }
  0xb5   :  { %v320_v39 = vpop.permute.xlu1 %319  ;;  %v315_v40 = vpop.permute.xlu0 %314 }
  0xb6   :  { %v372_v42 = vadd.f32 %v1826_v19, %v320_v39  ;;  %v371_v43 = vadd.f32 %v1826_v19, %v315_v40 }
  0xb8   :  { %v388_v44 = vmul.f32 0.2, %v372_v42  ;;  %v387_v45 = vmul.f32 0.2, %v371_v43 }
  0xba   :  { %v1848_v48 = vmax.f32 %v372_v42, %v388_v44  ;;  %v1852_v50 = vmax.f32 %v371_v43, %v387_v45  ;;  %v1947_v45 = vld [vmem:[#allocation2 + $0x50] sm:$0xff] }
  0xbc   :  { %427 = vmax.xlane.f32.xlu1 %v1848_v48  ;;  %419 = vmax.xlane.f32.xlu2 %v1850_v49 }
  0xbd   :  { %425 = vmax.xlane.f32.xlu0 %v1852_v50  ;;  %v335_v51 = vpop.permute.xlu1 %334  ;;  %v330_v52 = vpop.permute.xlu0 %329 }
  0xbe   :  { %v375_v54 = vadd.f32 %v1826_v19, %v335_v51  ;;  %v374_v55 = vadd.f32 %v1826_v19, %v330_v52 }
  0xc0   :  { %v391_v56 = vmul.f32 0.2, %v375_v54  ;;  %v390_v57 = vmul.f32 0.2, %v374_v55 }
  0xc2   :  { %v1860_v59 = vmax.f32 %v375_v54, %v391_v56  ;;  %v1864_v61 = vmax.f32 %v374_v55, %v390_v57  ;;  %v1966_v57 = vld [vmem:[#allocation2 + $0x68] sm:$0xff] }
  0xc4   :  { %433 = vmax.xlane.f32.xlu1 %v1860_v59  ;;  %423 = vmax.xlane.f32.xlu2 %v1862_v60 }
  0xc5   :  { %431 = vmax.xlane.f32.xlu0 %v1864_v61  ;;  %v350_v63 = vpop.permute.xlu1 %349  ;;  %v345_v0 = vpop.permute.xlu0 %344 }
  0xc6   :  { %v378_v2 = vadd.f32 %v1826_v19, %v350_v63  ;;  %v377_v3 = vadd.f32 %v1826_v19, %v345_v0 }
  0xc8   :  { %v394_v4 = vmul.f32 0.2, %v378_v2  ;;  %v393_v5 = vmul.f32 0.2, %v377_v3 }
  0xca   :  { %v1872_v7 = vmax.f32 %v378_v2, %v394_v4  ;;  %v1876_v9 = vmax.f32 %v377_v3, %v393_v5 }
  0xcc   :  { %439 = vmax.xlane.f32.xlu1 %v1872_v7  ;;  %429 = vmax.xlane.f32.xlu2 %v1874_v8 }
  0xcd   :  { %437 = vmax.xlane.f32.xlu0 %v1876_v9  ;;  %v360_v10 = vpop.permute.xlu0 %359 }
  0xce   :  { %v380_v12 = vadd.f32 %v1826_v19, %v360_v10  ;;  %v1990_v10 = vld [vmem:[#allocation2 + $0x58] sm:$0xff] }
  0xd0   :  { %v396_v14 = vmul.f32 0.2, %v380_v12 }
  0xd2   :  { %v1885_v17 = vmax.f32 %v380_v12, %v396_v14 }
  0xd4   :  { %435 = vmax.xlane.f32.xlu2 %v1883_v16 }
  0xd5   :  { %443 = vmax.xlane.f32.xlu0 %v1885_v17 }
  0xdc   :  { %441 = vmax.xlane.f32.xlu2 %v1889_v20 }
 0x11f   :  { %v414_v23 = vpop.xlane.xlu1 %413  ;;  %v418_v24 = vpop.xlane.xlu0 %417 }
 0x120   :  { %v1897_v19 = vmax.f32 %v1892_v21, %v414_v23  ;;  %v1900_v25 = vmax.f32 %v1894_v22, %v418_v24 }
 0x122   :  { %951 = vst.msk [vmem:[#allocation2] sm:$0xff] %vm126_vm0, %v1897_v19  ;;  %521 = vperm.xlu0 %1484, %v1900_v25   ;;  %511 = vperm.xlu1 %1485, %v1897_v19   ;;  %v463_v6 = vsub.f32 %v1894_v22, %v1900_v25  ;;  %v461_v23 = vsub.f32 %v1892_v21, %v1897_v19  ;;  %v2011_v19 = vld [vmem:[#allocation2 + $0x70] sm:$0xff] }
 0x123   :  { %953 = vst.msk [vmem:[#allocation2 + $0x10] sm:$0xff] %vm126_vm0, %v1900_v25 }
 0x124   :  { %v481_v13 = vmul.f32 1.442695, %v463_v6  ;;  %v477_v25 = vmul.f32 1.442695, %v461_v23 }
 0x126   :  { %1488 = vpow2.f32 %v481_v13 }
 0x127   :  { %v422_v30 = vpop.xlane.xlu1 %421  ;;  %v416_v31 = vpop.xlane.xlu2 %415  ;;  %1490 = vpow2.f32 %v477_v25 }
 0x128   :  { %v1913_v32 = vmax.f32 %v1908_v26, %v422_v30  ;;  %v1916_v33 = vmax.f32 %v1910_v27, %v416_v31 }
 0x12a   :  { %955 = vst.msk [vmem:[#allocation2 + $0x20] sm:$0xff] %vm126_vm0, %v1913_v32  ;;  %531 = vperm.xlu0 %1484, %v1913_v32   ;;  %516 = vperm.xlu2 %1486, %v1916_v33   ;;  %v462_v22 = vsub.f32 %v1910_v27, %v1916_v33  ;;  %v465_v21 = vsub.f32 %v1908_v26, %v1913_v32 }
 0x12b   :  { %952 = vst.msk [vmem:[#allocation2 + $0x8] sm:$0xff] %vm126_vm0, %v1916_v33 }
 0x12c   :  { %v479_v30 = vmul.f32 1.442695, %v462_v22  ;;  %v2016_v27 = vpop.eup %1488  ;;  %v1452_v22 = vld [vmem:[%s1726_s18 + $0x20] sm:$0xff] }
 0x12e   :  { %1492 = vpow2.f32 %v479_v30  ;;  %v1450_v30 = vld [vmem:[%s1726_s18 + $0x10] sm:$0xff] }
 0x12f   :  { %v428_v39 = vpop.xlane.xlu1 %427  ;;  %v420_v40 = vpop.xlane.xlu2 %419 }
 0x130   :  { %v1931_v41 = vmax.f32 %v1924_v34, %v428_v39  ;;  %v1934_v42 = vmax.f32 %v1926_v35, %v420_v40  ;;  %v426_v43 = vpop.xlane.xlu0 %425  ;;  %v485_v39 = vmul.f32 1.442695, %v465_v21 }
 0x131   :  { %v1937_v44 = vmax.f32 %v1928_v37, %v426_v43 }
 0x132   :  { %958 = vst.msk [vmem:[#allocation2 + $0x38] sm:$0xff] %vm126_vm0, %v1931_v41  ;;  %546 = vperm.xlu0 %1484, %v1931_v41   ;;  %526 = vperm.xlu1 %1485, %v1934_v42   ;;  %v464_v33 = vsub.f32 %v1926_v35, %v1934_v42  ;;  %1494 = vpow2.f32 %v485_v39  ;;  %v468_v32 = vsub.f32 %v1924_v34, %v1931_v41  ;;  %v1448_v39 = vld [vmem:[%s1726_s18] sm:$0xff] }
 0x133   :  { %954 = vst.msk [vmem:[#allocation2 + $0x18] sm:$0xff] %vm126_vm0, %v1934_v42 }
 0x134   :  { %957 = vst.msk [vmem:[#allocation2 + $0x30] sm:$0xff] %vm126_vm0, %v1937_v44  ;;  %v483_v35 = vmul.f32 1.442695, %v464_v33 }
 0x136   :  { %1496 = vpow2.f32 %v483_v35 }
 0x137   :  { %v434_v51 = vpop.xlane.xlu1 %433  ;;  %v424_v52 = vpop.xlane.xlu2 %423 }
 0x138   :  { %v1954_v53 = vmax.f32 %v1947_v45, %v434_v51  ;;  %v450_v54 = vmax.f32 %v1949_v46, %v424_v52  ;;  %v432_v55 = vpop.xlane.xlu0 %431  ;;  %v2030_v51 = vpop.eup %1490  ;;  %v491_v52 = vmul.f32 1.442695, %v468_v32 }
 0x139   :  { %v1958_v56 = vmax.f32 %v1951_v47, %v432_v55  ;;  %v2032_v55 = vpop.eup %1492 }
 0x13a   :  { %961 = vst.msk [vmem:[#allocation2 + $0x50] sm:$0xff] %vm126_vm0, %v1954_v53  ;;  %536 = vperm.xlu2 %1486, %v450_v54   ;;  %541 = vperm.xlu1 %1485, %v1937_v44   ;;  %v466_v26 = vsub.f32 %v1949_v46, %v450_v54  ;;  %v471_v41 = vsub.f32 %v1947_v45, %v1954_v53 }
 0x13b   :  { %956 = vst.msk [vmem:[#allocation2 + $0x28] sm:$0xff] %vm126_vm0, %v450_v54 }
 0x13c   :  { %960 = vst.msk [vmem:[#allocation2 + $0x48] sm:$0xff] %vm126_vm0, %v1958_v56  ;;  %v487_v42 = vmul.f32 1.442695, %v466_v26  ;;  %v497_v6 = vmul.f32 1.442695, %v471_v41  ;;  %v2088_v41 = vld [vmem:[%s1720_s15] sm:$0xff] }
 0x13e   :  { %1498 = vpow2.f32 %v487_v42 }
 0x13f   :  { %v440_v63 = vpop.xlane.xlu1 %439  ;;  %v430_v0 = vpop.xlane.xlu2 %429  ;;  %1500 = vpow2.f32 %v491_v52 }
 0x140   :  { %v1973_v1 = vmax.f32 %v1966_v57, %v440_v63  ;;  %v453_v2 = vmax.f32 %v1968_v58, %v430_v0  ;;  %v438_v3 = vpop.xlane.xlu0 %437  ;;  %v2034_v63 = vpop.eup %1494  ;;  %v467_v0 = vsub.f32 %v1928_v37, %v1937_v44 }
 0x141   :  { %v1977_v4 = vmax.f32 %v1970_v62, %v438_v3  ;;  %v2044_v3 = vpop.eup %1496 }
 0x142   :  { %v474_v5 = vsub.f32 %v1966_v57, %v1973_v1  ;;  %964 = vst.msk [vmem:[#allocation2 + $0x68] sm:$0xff] %vm126_vm0, %v1973_v1  ;;  %551 = vperm.xlu2 %1486, %v453_v2   ;;  %556 = vperm.xlu1 %1485, %v1958_v56   ;;  %v469_v34 = vsub.f32 %v1968_v58, %v453_v2  ;;  %v489_v46 = vmul.f32 1.442695, %v467_v0 }
 0x143   :  { %959 = vst.msk [vmem:[#allocation2 + $0x40] sm:$0xff] %vm126_vm0, %v453_v2  ;;  %571 = vperm.xlu0 %1484, %v1977_v4   ;;  %v470_v58 = vsub.f32 %v1951_v47, %v1958_v56  ;;  %v1454_v56 = vld [vmem:[%s1726_s18 + $0x30] sm:$0xff] }
 0x144   :  { %963 = vst.msk [vmem:[#allocation2 + $0x60] sm:$0xff] %vm126_vm0, %v1977_v4  ;;  %v493_v54 = vmul.f32 1.442695, %v469_v34  ;;  %v2046_v37 = vpop.eup %1498  ;;  %1502 = vpow2.f32 %v489_v46 }
 0x145   :  { %v2048_v44 = vpop.eup %1500  ;;  %v495_v2 = vmul.f32 1.442695, %v470_v58  ;;  %v187_v58 = vunpack.c.2.s8 %v2088_v41 }
 0x146   :  { %1504 = vpow2.f32 %v493_v54 }
 0x147   :  { %v436_v12 = vpop.xlane.xlu2 %435  ;;  %1506 = vpow2.f32 %v497_v6 }
 0x148   :  { %v456_v14 = vmax.f32 %v1990_v10, %v436_v12  ;;  %v444_v15 = vpop.xlane.xlu0 %443  ;;  %1508 = vpow2.f32 %v495_v2 }
 0x149   :  { %v1996_v18 = vmax.f32 %v1992_v11, %v444_v15 }
 0x14a   :  { %962 = vst.msk [vmem:[#allocation2 + $0x58] sm:$0xff] %vm126_vm0, %v456_v14  ;;  %576 = vperm.xlu2 %1486, %v1973_v1   ;;  %561 = vperm.xlu1 %1485, %v1954_v53   ;;  %v472_v45 = vsub.f32 %v1990_v10, %v456_v14  ;;  %v1455_v53 = vld [vmem:[%s1726_s18 + $0x38] sm:$0xff]  ;;  %v2057_v13 = vpop.eup %1502  ;;  %v473_v10 = vsub.f32 %v1970_v62, %v1977_v4 }
 0x14b   :  { %v476_v24 = vsub.f32 %v1992_v11, %v1996_v18  ;;  %966 = vst.msk [vmem:[#allocation2 + $0x78] sm:$0xff] %vm126_vm0, %v1996_v18  ;;  %566 = vperm.xlu0 %1484, %v456_v14   ;;  %885 = vmatpush.bf16.msra.mxu0 %v1455_v53  ;;  %v1453_v14 = vld [vmem:[%s1726_s18 + $0x28] sm:$0xff]  ;;  %v1451_v62 = vld [vmem:[%s1726_s18 + $0x18] sm:$0xff] }
 0x14c   :  { %v499_v12 = vmul.f32 1.442695, %v472_v45  ;;  %1456 = vmatpush.bf16.msra.mxu1 %v1455_v53  ;;  %1457 = vmatpush.bf16.msra.mxu2 %v1455_v53  ;;  %v2059_v47 = vpop.eup %1504  ;;  %v501_v23 = vmul.f32 1.442695, %v473_v10  ;;  %v185_v45 = vunpack.c.0.s8 %v2088_v41  ;;  %v2096_v10 = vld [vmem:[%s1720_s15 + $0x8] sm:$0xff] }
 0x14d   :  { %1458 = vmatpush.bf16.msra.mxu3 %v1455_v53  ;;  %v2062_v15 = vpop.eup %1506 }
 0x14e   :  { %1510 = vpow2.f32 %v499_v12  ;;  %v2071_v21 = vpop.eup %1508 }
 0x14f   :  { %v442_v31 = vpop.xlane.xlu2 %441  ;;  %886 = vmatpush.bf16.msra.mxu0 %v1454_v56  ;;  %1512 = vpow2.f32 %v501_v23 }
 0x150   :  { %v2014_v40 = vmax.f32 %v2011_v19, %v442_v31  ;;  %1459 = vmatpush.bf16.msra.mxu1 %v1454_v56  ;;  %1460 = vmatpush.bf16.msra.mxu2 %v1454_v56  ;;  %v1449_v31 = vld [vmem:[%s1726_s18 + $0x8] sm:$0xff] }
 0x151   :  { %1461 = vmatpush.bf16.msra.mxu3 %v1454_v56 }
 0x152   :  { %v475_v43 = vsub.f32 %v2011_v19, %v2014_v40  ;;  %965 = vst.msk [vmem:[#allocation2 + $0x70] sm:$0xff] %vm126_vm0, %v2014_v40  ;;  %581 = vperm.xlu2 %1486, %v2014_v40   ;;  %586 = vperm.xlu1 %1485, %v1996_v18  }
 0x153   :  { %729 = vperm.xlu0 %1484, %v2016_v27   ;;  %887 = vmatpush.bf16.msra.mxu0 %v1453_v14 }
 0x154   :  { %1462 = vmatpush.bf16.msra.mxu1 %v1453_v14  ;;  %1463 = vmatpush.bf16.msra.mxu2 %v1453_v14  ;;  %v2073_v25 = vpop.eup %1510 }
 0x155   :  { %1464 = vmatpush.bf16.msra.mxu3 %v1453_v14  ;;  %v2078_v4 = vpop.eup %1512  ;;  %v201_v14 = vcvt.s32.f32 %v185_v45 }
 0x157   :  { %888 = vmatpush.bf16.msra.mxu0 %v1452_v22 }
 0x158   :  { %1465 = vmatpush.bf16.msra.mxu1 %v1452_v22  ;;  %1466 = vmatpush.bf16.msra.mxu2 %v1452_v22 }
 0x159   :  { %1467 = vmatpush.bf16.msra.mxu3 %v1452_v22 }
 0x15a   :  { %724 = vperm.xlu1 %1485, %v2032_v55   ;;  %719 = vperm.xlu2 %1486, %v2030_v51  }
 0x15b   :  { %739 = vperm.xlu0 %1484, %v2034_v63   ;;  %889 = vmatpush.bf16.msra.mxu0 %v1451_v62 }
 0x15c   :  { %1468 = vmatpush.bf16.msra.mxu1 %v1451_v62  ;;  %1469 = vmatpush.bf16.msra.mxu2 %v1451_v62 }
 0x15d   :  { %1470 = vmatpush.bf16.msra.mxu3 %v1451_v62 }
 0x15f   :  { %890 = vmatpush.bf16.msra.mxu0 %v1450_v30 }
 0x160   :  { %1471 = vmatpush.bf16.msra.mxu1 %v1450_v30  ;;  %1472 = vmatpush.bf16.msra.mxu2 %v1450_v30 }
 0x161   :  { %1473 = vmatpush.bf16.msra.mxu3 %v1450_v30 }
 0x162   :  { %744 = vperm.xlu1 %1485, %v2046_v37   ;;  %734 = vperm.xlu2 %1486, %v2044_v3  }
 0x163   :  { %754 = vperm.xlu0 %1484, %v2048_v44   ;;  %891 = vmatpush.bf16.msra.mxu0 %v1449_v31 }
 0x164   :  { %1474 = vmatpush.bf16.msra.mxu1 %v1449_v31  ;;  %1475 = vmatpush.bf16.msra.mxu2 %v1449_v31 }
 0x165   :  { %1476 = vmatpush.bf16.msra.mxu3 %v1449_v31  ;;  %v190_v31 = vunpack.c.1.s8 %v2096_v10 }
 0x167   :  { %892 = vmatpush.bf16.msra.mxu0 %v1448_v39 }
 0x168   :  { %1477 = vmatpush.bf16.msra.mxu1 %v1448_v39  ;;  %1478 = vmatpush.bf16.msra.mxu2 %v1448_v39 }
 0x169   :  { %1479 = vmatpush.bf16.msra.mxu3 %v1448_v39  ;;  %v189_v39 = vunpack.c.0.s8 %v2096_v10 }
 0x16a   :  { %759 = vperm.xlu1 %1485, %v2059_v47   ;;  %749 = vperm.xlu2 %1486, %v2057_v13  }
 0x16b   :  { %769 = vperm.xlu0 %1484, %v2062_v15  }
 0x172   :  { %774 = vperm.xlu1 %1485, %v2073_v25   ;;  %764 = vperm.xlu2 %1486, %v2071_v21  }
 0x17a   :  { %779 = vperm.xlu2 %1486, %v2078_v4  }
 0x184   :  { %v517_v33 = vpop.permute.xlu2 %516 }
 0x185   :  { %v590_v26 = vsub.f32 %v1841_v38, %v517_v33  ;;  %v186_v38 = vunpack.c.1.s8 %v2088_v41 }
 0x187   :  { %v607_v32 = vmul.f32 1.442695, %v590_v26  ;;  %v202_v56 = vcvt.s32.f32 %v186_v38 }
 0x189   :  { %1514 = vpow2.f32 %v607_v32 }
 0x194   :  { %v522_v35 = vpop.permute.xlu0 %521  ;;  %v537_v42 = vpop.permute.xlu2 %536 }
 0x195   :  { %v591_v52 = vsub.f32 %v1831_v28, %v522_v35  ;;  %v512_v0 = vpop.permute.xlu1 %511  ;;  %v594_v54 = vsub.f32 %v1862_v60, %v537_v42  ;;  %v1515_v60 = vpop.eup %1514 }
 0x196   :  { %v589_v34 = vsub.f32 %v1833_v29, %v512_v0  ;;  %v203_v29 = vcvt.s32.f32 %v187_v58  ;;  %v638_v26 = vmul.f32 %v1515_v60, %v202_v56  ;;  %v205_v0 = vcvt.s32.f32 %v189_v39 }
 0x197   :  { %v609_v46 = vmul.f32 1.442695, %v591_v52  ;;  %v615_v53 = vmul.f32 1.442695, %v594_v54  ;;  %v206_v52 = vcvt.s32.f32 %v190_v31  ;;  %v188_v56 = vunpack.c.3.s8 %v2088_v41 }
 0x198   :  { %v605_v6 = vmul.f32 1.442695, %v589_v34  ;;  %v2102_v34 = vld [vmem:[%s1720_s15 + $0x10] sm:$0xff]  ;;  %v191_v41 = vunpack.c.2.s8 %v2096_v10 }
 0x199   :  { %1516 = vpow2.f32 %v609_v46  ;;  %v193_v45 = vunpack.c.0.s8 %v2102_v34 }
 0x19a   :  { %1518 = vpow2.f32 %v605_v6 }
 0x19b   :  { %1520 = vpow2.f32 %v615_v53 }
 0x19c   :  { %v532_v28 = vpop.permute.xlu0 %531  ;;  %v552_v2 = vpop.permute.xlu2 %551 }
 0x19d   :  { %v593_v12 = vsub.f32 %v1838_v36, %v532_v28  ;;  %v597_v62 = vsub.f32 %v1874_v8, %v552_v2 }
 0x19f   :  { %v1517_v23 = vpop.eup %1516  ;;  %v613_v22 = vmul.f32 1.442695, %v593_v12  ;;  %v621_v32 = vmul.f32 1.442695, %v597_v62  ;;  %v204_v62 = vcvt.s32.f32 %v188_v56 }
 0x1a0   :  { %v639_v30 = vmul.f32 %v1517_v23, %v203_v29  ;;  %v1519_v33 = vpop.eup %1518  ;;  %v192_v29 = vunpack.c.3.s8 %v2096_v10 }
 0x1a1   :  { %1522 = vpow2.f32 %v613_v22  ;;  %v637_v36 = vmul.f32 %v1519_v33, %v201_v14  ;;  %v1521_v8 = vpop.eup %1520 }
 0x1a2   :  { %673 = vadd.xlane.f32.xlu1 %v639_v30  ;;  %1524 = vpow2.f32 %v621_v32  ;;  %v642_v28 = vmul.f32 %v1521_v8, %v206_v52  ;;  %v207_v8 = vcvt.s32.f32 %v191_v41  ;;  %v195_v41 = vunpack.c.2.s8 %v2102_v34 }
 0x1a3   :  { %671 = vadd.xlane.f32.xlu2 %v638_v26  ;;  %669 = vadd.xlane.f32.xlu0 %v637_v36  ;;  %v813_v42 = vpack.c.bf16 %v638_v26, %v637_v36 }
 0x1a4   :  { %v547_v35 = vpop.permute.xlu0 %546  ;;  %v527_v54 = vpop.permute.xlu1 %526 }
 0x1a5   :  { %v596_v46 = vsub.f32 %v1848_v48, %v547_v35  ;;  %v592_v6 = vsub.f32 %v1850_v49, %v527_v54  ;;  %893 = vmatmul.bf16.vlgmr.msra.gmra.mxu0 %v813_v42  ;;  %v209_v48 = vcvt.s32.f32 %v193_v45  ;;  %v208_v49 = vcvt.s32.f32 %v192_v29  ;;  %v577_v14 = vpop.permute.xlu2 %576  ;;  %v184_v54 = vld [vmem:[%s1720_s15 + $0x18] sm:$0xff] }
 0x1a6   :  { %v602_v39 = vsub.f32 %v1872_v7, %v577_v14  ;;  %v197_v45 = vunpack.c.0.s8 %v184_v54 }
 0x1a7   :  { %v1523_v58 = vpop.eup %1522  ;;  %v619_v38 = vmul.f32 1.442695, %v596_v46  ;;  %v611_v53 = vmul.f32 1.442695, %v592_v6 }
 0x1a8   :  { %v641_v2 = vmul.f32 %v1523_v58, %v205_v0  ;;  %v1525_v60 = vpop.eup %1524  ;;  %v631_v42 = vmul.f32 1.442695, %v602_v39 }
 0x1a9   :  { %1526 = vpow2.f32 %v619_v38  ;;  %v645_v26 = vmul.f32 %v1525_v60, %v209_v48 }
 0x1aa   :  { %679 = vadd.xlane.f32.xlu1 %v642_v28  ;;  %v815_v12 = vpack.c.bf16 %v642_v28, %v641_v2  ;;  %1528 = vpow2.f32 %v611_v53  ;;  %v198_v53 = vunpack.c.1.s8 %v184_v54  ;;  %v194_v28 = vunpack.c.1.s8 %v2102_v34 }
 0x1ab   :  { %677 = vadd.xlane.f32.xlu2 %v641_v2 }
 0x1ac   :  { %903 = vmatmul.bf16.vlgmr.msra.gmra.mxu1 %v815_v12  ;;  %v542_v23 = vpop.permute.xlu1 %541  ;;  %v214_v12 = vcvt.s32.f32 %v198_v53  ;;  %v210_v60 = vcvt.s32.f32 %v194_v28 }
 0x1ad   :  { %v595_v22 = vsub.f32 %v1852_v50, %v542_v23  ;;  %v582_v2 = vpop.permute.xlu2 %581 }
 0x1ae   :  { %v603_v23 = vsub.f32 %v1889_v20, %v582_v2  ;;  %v507_v2 = vmul.f32 1.442695, %v476_v24 }
 0x1af   :  { %v1527_v31 = vpop.eup %1526  ;;  %v617_v33 = vmul.f32 1.442695, %v595_v22 }
 0x1b0   :  { %v644_v36 = vmul.f32 %v1527_v31, %v208_v49  ;;  %v1529_v32 = vpop.eup %1528 }
 0x1b1   :  { %1530 = vpow2.f32 %v617_v33  ;;  %v640_v35 = vmul.f32 %v1529_v32, %v204_v62 }
 0x1b2   :  { %685 = vadd.xlane.f32.xlu1 %v645_v26  ;;  %1532 = vpow2.f32 %v631_v42 }
 0x1b3   :  { %683 = vadd.xlane.f32.xlu2 %v644_v36  ;;  %675 = vadd.xlane.f32.xlu0 %v640_v35  ;;  %v814_v52 = vpack.c.bf16 %v640_v35, %v639_v30 }
 0x1b4   :  { %v557_v50 = vpop.permute.xlu1 %556 }
 0x1b5   :  { %v572_v0 = vpop.permute.xlu0 %571  ;;  %v598_v7 = vsub.f32 %v1864_v61, %v557_v50  ;;  %898 = vmatmul.bf16.gmra.mxu0 %v814_v52  ;;  %v213_v61 = vcvt.s32.f32 %v197_v45 }
 0x1b6   :  { %v601_v46 = vsub.f32 %v1876_v9, %v572_v0  ;;  %v211_v0 = vcvt.s32.f32 %v195_v41 }
 0x1b7   :  { %v1531_v6 = vpop.eup %1530  ;;  %v623_v10 = vmul.f32 1.442695, %v598_v7 }
 0x1b8   :  { %v629_v58 = vmul.f32 1.442695, %v601_v46  ;;  %v643_v38 = vmul.f32 %v1531_v6, %v207_v8  ;;  %v1533_v56 = vpop.eup %1532  ;;  %v199_v6 = vunpack.c.2.s8 %v184_v54 }
 0x1b9   :  { %v650_v33 = vmul.f32 %v1533_v56, %v214_v12 }
 0x1ba   :  { %1534 = vpow2.f32 %v629_v58  ;;  %v816_v30 = vpack.c.bf16 %v644_v36, %v643_v38  ;;  %v196_v36 = vunpack.c.3.s8 %v2102_v34  ;;  %v200_v58 = vunpack.c.3.s8 %v184_v54 }
 0x1bb   :  { %1536 = vpow2.f32 %v623_v10  ;;  %681 = vadd.xlane.f32.xlu0 %v643_v38  ;;  %v503_v54 = vmul.f32 1.442695, %v474_v5 }
 0x1bc   :  { %v562_v9 = vpop.permute.xlu1 %561  ;;  %908 = vmatmul.bf16.gmra.mxu1 %v816_v30  ;;  %v212_v52 = vcvt.s32.f32 %v196_v36  ;;  %v216_v10 = vcvt.s32.f32 %v200_v58  ;;  %v236_v58 = vld [vmem:[#allocation3 + $0x18] sm:$0xff] }
 0x1bd   :  { %v567_v29 = vpop.permute.xlu0 %566  ;;  %v599_v49 = vsub.f32 %v1860_v59, %v562_v9  ;;  %v720_v9 = vpop.permute.xlu2 %719 }
 0x1be   :  { %v600_v48 = vsub.f32 %v1883_v16, %v567_v29  ;;  %v633_v16 = vmul.f32 1.442695, %v603_v23  ;;  %v505_v29 = vmul.f32 1.442695, %v475_v43  ;;  %v234_v23 = vld [vmem:[#allocation3 + $0x8] sm:$0xff] }
 0x1bf   :  { %v625_v62 = vmul.f32 1.442695, %v599_v49 }
 0x1c0   :  { %v1535_v14 = vpop.eup %1534  ;;  %v627_v22 = vmul.f32 1.442695, %v600_v48 }
 0x1c1   :  { %v1537_v31 = vpop.eup %1536  ;;  %v649_v39 = vmul.f32 %v1535_v14, %v213_v61  ;;  %v235_v14 = vld [vmem:[#allocation3 + $0x10] sm:$0xff] }
 0x1c2   :  { %1538 = vpow2.f32 %v627_v22  ;;  %v646_v32 = vmul.f32 %v1537_v31, %v210_v60  ;;  %v233_v22 = vld [vmem:[#allocation3] sm:$0xff] }
 0x1c3   :  { %1540 = vpow2.f32 %v625_v62  ;;  %v819_v35 = vpack.c.bf16 %v650_v33, %v649_v39  ;;  %v655_v62 = vmul.f32 %v2016_v27, %v235_v14  ;;  %v653_v36 = vmul.f32 %v2030_v51, %v233_v22  ;;  %v249_v51 = vld [vmem:[#allocation4] sm:$0xff]  ;;  %v239_v14 = vld [vmem:[#allocation3 + $0x30] sm:$0xff] }
 0x1c4   :  { %687 = vadd.xlane.f32.xlu0 %v646_v32  ;;  %v817_v59 = vpack.c.bf16 %v646_v32, %v645_v26  ;;  %v587_v42 = vpop.permute.xlu1 %586  ;;  %1542 = vpow2.f32 %v633_v16  ;;  %v215_v26 = vcvt.s32.f32 %v199_v6  ;;  %v251_v22 = vld [vmem:[#allocation4 + $0x10] sm:$0xff] }
 0x1c5   :  { %923 = vmatmul.bf16.vlgmr.msra.gmra.mxu3 %v819_v35  ;;  %v604_v20 = vsub.f32 %v1885_v17, %v587_v42  ;;  %v2140_v5 = vpop.permute.xlu2 %734  ;;  %v2142_v11 = vpop.permute.xlu0 %729  ;;  %v237_v42 = vld [vmem:[#allocation3 + $0x20] sm:$0xff] }
 0x1c6   :  { %913 = vmatmul.bf16.vlgmr.msra.gmra.mxu2 %v817_v59  ;;  %v238_v59 = vld [vmem:[#allocation3 + $0x28] sm:$0xff] }
 0x1c7   :  { %v635_v8 = vmul.f32 1.442695, %v604_v20  ;;  %v658_v27 = vmul.f32 %v2046_v37, %v238_v59  ;;  %v253_v37 = vld [vmem:[#allocation4 + $0x20] sm:$0xff]  ;;  %v252_v59 = vld [vmem:[#allocation4 + $0x18] sm:$0xff] }
 0x1c8   :  { %v1539_v50 = vpop.eup %1538 }
 0x1c9   :  { %v1541_v46 = vpop.eup %1540  ;;  %v648_v7 = vmul.f32 %v1539_v50, %v212_v52  ;;  %1544 = vpow2.f32 %v635_v8  ;;  %v241_v8 = vld [vmem:[#allocation3 + $0x40] sm:$0xff] }
 0x1ca   :  { %v647_v34 = vmul.f32 %v1541_v46, %v211_v0  ;;  %v1543_v38 = vpop.eup %1542  ;;  %1546 = vpow2.f32 %v503_v54  ;;  %v797_v46 = vmul.f32 %v720_v9, %v249_v51  ;;  %v243_v51 = vld [vmem:[#allocation3 + $0x50] sm:$0xff] }
 0x1cb   :  { %691 = vadd.xlane.f32.xlu1 %v648_v7  ;;  %v651_v53 = vmul.f32 %v1543_v38, %v215_v26  ;;  %1548 = vpow2.f32 %v507_v2  ;;  %v661_v26 = vmul.f32 %v2059_v47, %v241_v8 }
 0x1cc   :  { %689 = vadd.xlane.f32.xlu2 %v647_v34  ;;  %693 = vadd.xlane.f32.xlu0 %v649_v39  ;;  %v818_v30 = vpack.c.bf16 %v648_v7, %v647_v34  ;;  %1550 = vpow2.f32 %v505_v29  ;;  %v725_v1 = vpop.permute.xlu1 %724  ;;  %v654_v39 = vmul.f32 %v2032_v55, %v234_v23  ;;  %v657_v55 = vmul.f32 %v2034_v63, %v237_v42  ;;  %v240_v7 = vld [vmem:[#allocation3 + $0x38] sm:$0xff] }
 0x1cd   :  { %v2146_v24 = vpop.permute.xlu2 %749  ;;  %v740_v19 = vpop.permute.xlu0 %739  ;;  %v660_v63 = vmul.f32 %v2048_v44, %v240_v7 }
 0x1ce   :  { %v801_v54 = vmul.f32 %v740_v19, %v253_v37  ;;  %v659_v19 = vmul.f32 %v2057_v13, %v239_v14 }
 0x1cf   :  { %v1545_v45 = vpop.eup %1544 }
 0x1d0   :  { %v652_v17 = vmul.f32 %v1545_v45, %v216_v10  ;;  %v2131_v61 = vpop.eup %1546  ;;  %v656_v45 = vmul.f32 %v2044_v3, %v236_v58  ;;  %v254_v3 = vld [vmem:[#allocation4 + $0x28] sm:$0xff] }
 0x1d1   :  { %v2134_v12 = vpop.eup %1548 }
 0x1d2   :  { %v820_v28 = vpack.c.bf16 %v652_v17, %v651_v53  ;;  %v2136_v57 = vpop.eup %1550 }
 0x1d3   :  { %697 = vadd.xlane.f32.xlu1 %v651_v53 }
 0x1d4   :  { %695 = vadd.xlane.f32.xlu2 %v650_v33  ;;  %699 = vadd.xlane.f32.xlu0 %v652_v17  ;;  %v2144_v18 = vpop.permute.xlu1 %744  ;;  %v250_v17 = vld [vmem:[#allocation4 + $0x8] sm:$0xff] }
 0x1d5   :  { %928 = vmatmul.bf16.gmra.mxu3 %v820_v28  ;;  %v2150_v43 = vpop.permute.xlu2 %764  ;;  %v2152_v56 = vpop.permute.xlu0 %754  ;;  %v798_v29 = vmul.f32 %v725_v1, %v250_v17  ;;  %v799_v1 = vmul.f32 %v2142_v11, %v251_v22  ;;  %v800_v11 = vmul.f32 %v2140_v5, %v252_v59 }
 0x1d6   :  { %918 = vmatmul.bf16.gmra.mxu2 %v818_v30 }
 0x1dc   :  { %v2148_v40 = vpop.permute.xlu1 %759 }
 0x1dd   :  { %v2156_v49 = vpop.permute.xlu2 %779  ;;  %v2158_v60 = vpop.permute.xlu0 %769 }
 0x1e4   :  { %v2154_v48 = vpop.permute.xlu1 %774 }
 0x1e8   :  { %784 = vperm.xlu0 %1484, %v2131_v61  }
 0x1ec   :  { %794 = vperm.xlu2 %1486, %v2134_v12   ;;  %789 = vperm.xlu1 %1485, %v2136_v57  }
 0x215   :  { %v674_v31 = vpop.xlane.xlu1 %673 }
 0x216   :  { %v703_v33 = vadd.f32 %v674_v31, %v655_v62  ;;  %v672_v32 = vpop.xlane.xlu2 %671  ;;  %v670_v41 = vpop.xlane.xlu0 %669  ;;  %v802_v31 = vmul.f32 %v2144_v18, %v254_v3 }
 0x217   :  { %v702_v35 = vadd.f32 %v672_v32, %v654_v39  ;;  %v701_v16 = vadd.f32 %v670_v41, %v653_v36  ;;  %v242_v41 = vld [vmem:[#allocation3 + $0x48] sm:$0xff] }
 0x218   :  { %969 = vst.msk [vmem:[#allocation3 + $0x10] sm:$0xff] %vm126_vm0, %v703_v33  ;;  %v662_v13 = vmul.f32 %v2071_v21, %v242_v41 }
 0x219   :  { %968 = vst.msk [vmem:[#allocation3 + $0x8] sm:$0xff] %vm126_vm0, %v702_v35 }
 0x21a   :  { %967 = vst.msk [vmem:[#allocation3] sm:$0xff] %vm126_vm0, %v701_v16  ;;  %v255_v16 = vld [vmem:[#allocation4 + $0x30] sm:$0xff] }
 0x21d   :  { %v680_v52 = vpop.xlane.xlu1 %679 }
 0x21e   :  { %v706_v20 = vadd.f32 %v680_v52, %v658_v27  ;;  %v678_v0 = vpop.xlane.xlu2 %677  ;;  %v803_v27 = vmul.f32 %v2146_v24, %v255_v16  ;;  %v663_v24 = vmul.f32 %v2062_v15, %v243_v51  ;;  %v248_v15 = vld [vmem:[#allocation3 + $0x78] sm:$0xff] }
 0x21f   :  { %v705_v50 = vadd.f32 %v678_v0, %v657_v55  ;;  %v244_v55 = vld [vmem:[#allocation3 + $0x58] sm:$0xff] }
 0x220   :  { %972 = vst.msk [vmem:[#allocation3 + $0x28] sm:$0xff] %vm126_vm0, %v706_v20  ;;  %v664_v21 = vmul.f32 %v2073_v25, %v244_v55 }
 0x221   :  { %971 = vst.msk [vmem:[#allocation3 + $0x20] sm:$0xff] %vm126_vm0, %v705_v50  ;;  %v245_v50 = vld [vmem:[#allocation3 + $0x60] sm:$0xff] }
 0x222   :  { %v894_v6 = vpop.f32.mrf.mxu0  ;;  %v665_v5 = vmul.f32 %v2078_v4, %v245_v50  ;;  %v257_v4 = vld [vmem:[#allocation4 + $0x40] sm:$0xff] }
 0x223   :  { %v934_v34 = vadd.f32 %v894_v6, %v797_v46  ;;  %v256_v46 = vld [vmem:[#allocation4 + $0x38] sm:$0xff] }
 0x225   :  { %v686_v10 = vpop.xlane.xlu1 %685  ;;  %984 = vst.msk [vmem:[#allocation4] sm:$0xff] %vm159_vm1, %v934_v34 }
 0x226   :  { %v709_v38 = vadd.f32 %v686_v10, %v661_v26  ;;  %v684_v53 = vpop.xlane.xlu2 %683  ;;  %v676_v28 = vpop.xlane.xlu0 %675  ;;  %v804_v10 = vmul.f32 %v2152_v56, %v256_v46 }
 0x227   :  { %v708_v30 = vadd.f32 %v684_v53, %v660_v63  ;;  %v704_v2 = vadd.f32 %v676_v28, %v656_v45  ;;  %v247_v63 = vld [vmem:[#allocation3 + $0x70] sm:$0xff]  ;;  %v246_v45 = vld [vmem:[#allocation3 + $0x68] sm:$0xff]  ;;  %v261_v53 = vld [vmem:[#allocation4 + $0x60] sm:$0xff] }
 0x228   :  { %975 = vst.msk [vmem:[#allocation3 + $0x40] sm:$0xff] %vm126_vm0, %v709_v38  ;;  %v667_v17 = vmul.f32 %v2136_v57, %v247_v63  ;;  %v666_v56 = vmul.f32 %v2131_v61, %v246_v45  ;;  %v258_v61 = vld [vmem:[#allocation4 + $0x48] sm:$0xff] }
 0x229   :  { %974 = vst.msk [vmem:[#allocation3 + $0x38] sm:$0xff] %vm126_vm0, %v708_v30  ;;  %v904_v47 = vpop.f32.mrf.mxu1  ;;  %v668_v30 = vmul.f32 %v2134_v12, %v248_v15  ;;  %v806_v12 = vmul.f32 %v2150_v43, %v258_v61  ;;  %v260_v43 = vld [vmem:[#allocation4 + $0x58] sm:$0xff] }
 0x22a   :  { %970 = vst.msk [vmem:[#allocation3 + $0x18] sm:$0xff] %vm126_vm0, %v704_v2  ;;  %v938_v44 = vadd.f32 %v904_v47, %v801_v54  ;;  %v896_v9 = vpop.f32.mrf.mxu0  ;;  %v809_v54 = vmul.f32 %v2156_v49, %v261_v53 }
 0x22b   :  { %v935_v23 = vadd.f32 %v896_v9, %v798_v29 }
 0x22c   :  { %988 = vst.msk [vmem:[#allocation4 + $0x20] sm:$0xff] %vm159_vm1, %v938_v44  ;;  %v805_v44 = vmul.f32 %v2148_v40, %v257_v4 }
 0x22d   :  { %985 = vst.msk [vmem:[#allocation4 + $0x8] sm:$0xff] %vm159_vm1, %v935_v23 }
 0x22e   :  { %v682_v62 = vpop.xlane.xlu0 %681 }
 0x22f   :  { %v707_v39 = vadd.f32 %v682_v62, %v659_v19  ;;  %v259_v62 = vld [vmem:[#allocation4 + $0x50] sm:$0xff] }
 0x231   :  { %v906_v33 = vpop.f32.mrf.mxu1  ;;  %973 = vst.msk [vmem:[#allocation3 + $0x30] sm:$0xff] %vm126_vm0, %v707_v39 }
 0x232   :  { %v939_v36 = vadd.f32 %v906_v33, %v802_v31  ;;  %v899_v32 = vpop.f32.mrf.mxu0  ;;  %v807_v31 = vmul.f32 %v2158_v60, %v259_v62  ;;  %v262_v33 = vld [vmem:[#allocation4 + $0x68] sm:$0xff]  ;;  %v808_v60 = vmul.f32 %v2154_v48, %v260_v43 }
 0x233   :  { %v936_v35 = vadd.f32 %v899_v32, %v799_v1 }
 0x234   :  { %989 = vst.msk [vmem:[#allocation4 + $0x28] sm:$0xff] %vm159_vm1, %v939_v36 }
 0x235   :  { %986 = vst.msk [vmem:[#allocation4 + $0x10] sm:$0xff] %vm159_vm1, %v936_v35  ;;  %v264_v35 = vld [vmem:[#allocation4 + $0x78] sm:$0xff] }
 0x237   :  { %v688_v42 = vpop.xlane.xlu0 %687 }
 0x238   :  { %v710_v18 = vadd.f32 %v688_v42, %v662_v13  ;;  %v263_v13 = vld [vmem:[#allocation4 + $0x70] sm:$0xff] }
 0x239   :  { %v909_v52 = vpop.f32.mrf.mxu1 }
 0x23a   :  { %976 = vst.msk [vmem:[#allocation3 + $0x48] sm:$0xff] %vm126_vm0, %v710_v18  ;;  %v901_v20 = vpop.f32.mrf.mxu0  ;;  %v940_v0 = vadd.f32 %v909_v52, %v803_v27 }
 0x23b   :  { %v937_v8 = vadd.f32 %v901_v20, %v800_v11 }
 0x23c   :  { %990 = vst.msk [vmem:[#allocation4 + $0x30] sm:$0xff] %vm159_vm1, %v940_v0 }
 0x23d   :  { %987 = vst.msk [vmem:[#allocation4 + $0x18] sm:$0xff] %vm159_vm1, %v937_v8 }
 0x23e   :  { %v692_v7 = vpop.xlane.xlu1 %691 }
 0x23f   :  { %v712_v6 = vadd.f32 %v692_v7, %v664_v21  ;;  %v690_v58 = vpop.xlane.xlu2 %689  ;;  %v694_v34 = vpop.xlane.xlu0 %693 }
 0x240   :  { %v711_v26 = vadd.f32 %v690_v58, %v663_v24  ;;  %v713_v37 = vadd.f32 %v694_v34, %v665_v5 }
 0x241   :  { %978 = vst.msk [vmem:[#allocation3 + $0x58] sm:$0xff] %vm126_vm0, %v712_v6  ;;  %v911_v25 = vpop.f32.mrf.mxu1 }
 0x242   :  { %977 = vst.msk [vmem:[#allocation3 + $0x50] sm:$0xff] %vm126_vm0, %v711_v26  ;;  %v941_v38 = vadd.f32 %v911_v25, %v804_v10 }
 0x243   :  { %979 = vst.msk [vmem:[#allocation3 + $0x60] sm:$0xff] %vm126_vm0, %v713_v37 }
 0x244   :  { %991 = vst.msk [vmem:[#allocation4 + $0x38] sm:$0xff] %vm159_vm1, %v941_v38 }
 0x246   :  { %v698_v28 = vpop.xlane.xlu1 %697 }
 0x247   :  { %v715_v2 = vadd.f32 %v698_v28, %v667_v17  ;;  %v696_v47 = vpop.xlane.xlu2 %695  ;;  %v700_v29 = vpop.xlane.xlu0 %699 }
 0x248   :  { %v714_v9 = vadd.f32 %v696_v47, %v666_v56  ;;  %v716_v14 = vadd.f32 %v700_v29, %v668_v30  ;;  %v924_v23 = vpop.f32.mrf.mxu3 }
 0x249   :  { %981 = vst.msk [vmem:[#allocation3 + $0x70] sm:$0xff] %vm126_vm0, %v715_v2  ;;  %v914_v3 = vpop.f32.mrf.mxu2  ;;  %v946_v19 = vadd.f32 %v924_v23, %v809_v54 }
 0x24a   :  { %980 = vst.msk [vmem:[#allocation3 + $0x68] sm:$0xff] %vm126_vm0, %v714_v9  ;;  %v942_v57 = vadd.f32 %v914_v3, %v805_v44 }
 0x24b   :  { %982 = vst.msk [vmem:[#allocation3 + $0x78] sm:$0xff] %vm126_vm0, %v716_v14 }
 0x24c   :  { %992 = vst.msk [vmem:[#allocation4 + $0x40] sm:$0xff] %vm159_vm1, %v942_v57 }
 0x24d   :  { %996 = vst.msk [vmem:[#allocation4 + $0x60] sm:$0xff] %vm159_vm1, %v946_v19 }
 0x24f   :  { %v795_v16 = vpop.permute.xlu2 %794 }
 0x250   :  { %v926_v40 = vpop.f32.mrf.mxu3  ;;  %v812_v18 = vmul.f32 %v795_v16, %v264_v35 }
 0x251   :  { %v916_v49 = vpop.f32.mrf.mxu2 }
 0x252   :  { %v943_v22 = vadd.f32 %v916_v49, %v806_v12 }
 0x254   :  { %993 = vst.msk [vmem:[#allocation4 + $0x48] sm:$0xff] %vm159_vm1, %v943_v22 }
 0x258   :  { %v929_v39 = vpop.f32.mrf.mxu3 }
 0x259   :  { %v919_v1 = vpop.f32.mrf.mxu2 }
 0x25a   :  { %v944_v36 = vadd.f32 %v919_v1, %v807_v31  ;;  %v785_v32 = vpop.permute.xlu0 %784 }
 0x25b   :  { %v810_v41 = vmul.f32 %v785_v32, %v262_v33 }
 0x25c   :  { %994 = vst.msk [vmem:[#allocation4 + $0x50] sm:$0xff] %vm159_vm1, %v944_v36 }
 0x25d   :  { %v947_v59 = vadd.f32 %v926_v40, %v810_v41 }
 0x25e   :  { %v790_v42 = vpop.permute.xlu1 %789 }
 0x25f   :  { %997 = vst.msk [vmem:[#allocation4 + $0x68] sm:$0xff] %vm159_vm1, %v947_v59  ;;  %v811_v27 = vmul.f32 %v790_v42, %v263_v13 }
 0x260   :  { %v931_v11 = vpop.f32.mrf.mxu3 }
 0x261   :  { %v948_v52 = vadd.f32 %v929_v39, %v811_v27  ;;  %v921_v55 = vpop.f32.mrf.mxu2  ;;  %v949_v20 = vadd.f32 %v931_v11, %v812_v18 }
 0x262   :  { %v945_v0 = vadd.f32 %v921_v55, %v808_v60 }
 0x263   :  { %998 = vst.msk [vmem:[#allocation4 + $0x70] sm:$0xff] %vm159_vm1, %v948_v52 }
 0x264   :  { %995 = vst.msk [vmem:[#allocation4 + $0x58] sm:$0xff] %vm159_vm1, %v945_v0 }
 0x265   :  { %999 = vst.msk [vmem:[#allocation4 + $0x78] sm:$0xff] %vm159_vm1, %v949_v20 }
 0x266 PF:  { %v1005_v51 = vld [vmem:[#allocation3 + $0x10] sm:$0xff]  ;;  %v1003_v50 = vld [vmem:[#allocation3] sm:$0xff]  ;;  %v1655_v21 = vmov 0   ;;  %v1006_v24 = vld [vmem:[#allocation3 + $0x18] sm:$0xff] }
 0x267   :  { %v1007_v8 = vld [vmem:[#allocation3 + $0x20] sm:$0xff]  ;;  %1553 = vset.pattern.permute.xlu1 %v1655_v21  ;;  %1552 = vset.pattern.permute.xlu0 %v1655_v21  ;;  %v1021_v46 = vmax.f32 %v1005_v51, 1e-09  ;;  %v1019_v48 = vmax.f32 %v1003_v50, 1e-09  ;;  %v1004_v5 = vld [vmem:[#allocation3 + $0x8] sm:$0xff] }
 0x268   :  { %v1023_v7 = vmax.f32 %v1007_v8, 1e-09  ;;  %1554 = vset.pattern.permute.xlu2 %v1655_v21  ;;  %v1008_v6 = vld [vmem:[#allocation3 + $0x28] sm:$0xff]  ;;  %v1022_v58 = vmax.f32 %v1006_v24, 1e-09  ;;  %v1010_v25 = vld [vmem:[#allocation3 + $0x38] sm:$0xff] }
 0x269   :  { %1556 = vrcp.f32 %v1021_v46  ;;  %v1020_v34 = vmax.f32 %v1004_v5, 1e-09  ;;  %v1024_v26 = vmax.f32 %v1008_v6, 1e-09  ;;  %v1009_v38 = vld [vmem:[#allocation3 + $0x30] sm:$0xff]  ;;  %v1011_v45 = vld [vmem:[#allocation3 + $0x40] sm:$0xff] }
 0x26a   :  { %1558 = vrcp.f32 %v1019_v48  ;;  %v1026_v15 = vmax.f32 %v1010_v25, 1e-09  ;;  %v1025_v53 = vmax.f32 %v1009_v38, 1e-09  ;;  %v1027_v17 = vmax.f32 %v1011_v45, 1e-09 }
 0x26b   :  { %1560 = vrcp.f32 %v1023_v7  ;;  %v1013_v30 = vld [vmem:[#allocation3 + $0x50] sm:$0xff]  ;;  %v1012_v54 = vld [vmem:[#allocation3 + $0x48] sm:$0xff]  ;;  %v1014_v2 = vld [vmem:[#allocation3 + $0x58] sm:$0xff] }
 0x26c   :  { %1562 = vrcp.f32 %v1022_v58  ;;  %v1029_v47 = vmax.f32 %v1013_v30, 1e-09  ;;  %v1028_v29 = vmax.f32 %v1012_v54, 1e-09  ;;  %v1030_v9 = vmax.f32 %v1014_v2, 1e-09 }
 0x26d   :  { %1564 = vrcp.f32 %v1020_v34  ;;  %v1016_v3 = vld [vmem:[#allocation3 + $0x68] sm:$0xff]  ;;  %v1015_v19 = vld [vmem:[#allocation3 + $0x60] sm:$0xff]  ;;  %v1017_v57 = vld [vmem:[#allocation3 + $0x70] sm:$0xff] }
 0x26e   :  { %1566 = vrcp.f32 %v1024_v26  ;;  %v1032_v61 = vmax.f32 %v1016_v3, 1e-09  ;;  %v1031_v12 = vmax.f32 %v1015_v19, 1e-09  ;;  %v1033_v49 = vmax.f32 %v1017_v57, 1e-09 }
 0x26f   :  { %v1557_v37 = vpop.eup %1556  ;;  %1568 = vrcp.f32 %v1026_v15  ;;  %v1018_v31 = vld [vmem:[#allocation3 + $0x78] sm:$0xff]  ;;  %v1053_v41 = vld [vmem:[#allocation4 + $0x10] sm:$0xff]  ;;  %v1051_v35 = vld [vmem:[#allocation4] sm:$0xff] }
 0x270   :  { %v1559_v10 = vpop.eup %1558  ;;  %1079 = vperm.xlu1 %1553, %v1557_v37   ;;  %1570 = vrcp.f32 %v1025_v53  ;;  %v1034_v39 = vmax.f32 %v1018_v31, 1e-09  ;;  %v2221_v16 = vld [vmem:[%s2466_s6] ss:$0 sm:$0xff]  ;;  %v1052_v0 = vld [vmem:[#allocation4 + $0x8] sm:$0xff]  ;;  %v1054_v46 = vld [vmem:[#allocation4 + $0x18] sm:$0xff] }
 0x271   :  { %v1561_v63 = vpop.eup %1560  ;;  %1069 = vperm.xlu0 %1552, %v1559_v10   ;;  %1572 = vrcp.f32 %v1027_v17  ;;  %v1055_v43 = vld [vmem:[#allocation4 + $0x20] sm:$0xff]  ;;  %v1058_v58 = vld [vmem:[#allocation4 + $0x38] sm:$0xff]  ;;  %v1057_v34 = vld [vmem:[#allocation4 + $0x30] sm:$0xff] }
 0x272   :  { %1089 = vperm.xlu2 %1554, %v1561_v63   ;;  %v1563_v4 = vpop.eup %1562  ;;  %1574 = vrcp.f32 %v1029_v47  ;;  %v1056_v38 = vld [vmem:[#allocation4 + $0x28] sm:$0xff] }
 0x273   :  { %v1565_v28 = vpop.eup %1564  ;;  %1576 = vrcp.f32 %v1028_v29  ;;  %v1060_v54 = vld [vmem:[#allocation4 + $0x48] sm:$0xff] }
 0x274   :  { %v1567_v56 = vpop.eup %1566  ;;  %1578 = vrcp.f32 %v1030_v9 }
 0x275   :  { %v1569_v44 = vpop.eup %1568  ;;  %1580 = vrcp.f32 %v1032_v61 }
 0x276   :  { %v1571_v14 = vpop.eup %1570  ;;  %1582 = vrcp.f32 %v1031_v12 }
 0x277   :  { %v1573_v23 = vpop.eup %1572  ;;  %1584 = vrcp.f32 %v1033_v49  ;;  %v1063_v49 = vld [vmem:[#allocation4 + $0x60] sm:$0xff] }
 0x278   :  { %1084 = vperm.xlu1 %1553, %v1563_v4   ;;  %v1575_v40 = vpop.eup %1574  ;;  %1586 = vrcp.f32 %v1034_v39 }
 0x279   :  { %1074 = vperm.xlu0 %1552, %v1565_v28   ;;  %v1577_v22 = vpop.eup %1576 }
 0x27a   :  { %1094 = vperm.xlu2 %1554, %v1567_v56   ;;  %v1579_v62 = vpop.eup %1578  ;;  %v1061_v56 = vld [vmem:[#allocation4 + $0x50] sm:$0xff] }
 0x27b   :  { %v1581_v33 = vpop.eup %1580 }
 0x27c   :  { %v1583_v1 = vpop.eup %1582 }
 0x27d   :  { %v1585_v36 = vpop.eup %1584 }
 0x27e   :  { %v1587_v32 = vpop.eup %1586 }
 0x280   :  { %1104 = vperm.xlu1 %1553, %v1569_v44  }
 0x281   :  { %1099 = vperm.xlu0 %1552, %v1571_v14   ;;  %v1059_v14 = vld [vmem:[#allocation4 + $0x40] sm:$0xff] }
 0x282   :  { %1109 = vperm.xlu2 %1554, %v1573_v23  }
 0x288   :  { %1119 = vperm.xlu1 %1553, %v1575_v40   ;;  %v1064_v40 = vld [vmem:[#allocation4 + $0x68] sm:$0xff] }
 0x289   :  { %1114 = vperm.xlu0 %1552, %v1577_v22  }
 0x28a   :  { %1124 = vperm.xlu2 %1554, %v1579_v62  }
 0x290   :  { %1134 = vperm.xlu1 %1553, %v1581_v33  }
 0x291   :  { %1129 = vperm.xlu0 %1552, %v1583_v1  }
 0x292   :  { %1139 = vperm.xlu2 %1554, %v1585_v36   ;;  %v1062_v36 = vld [vmem:[#allocation4 + $0x58] sm:$0xff] }
 0x299   :  { %1144 = vperm.xlu0 %1552, %v1587_v32  }
 0x2cc   :  { %v1090_v27 = vpop.permute.xlu2 %1089 }
 0x2cd   :  { %v1151_v11 = vmul.f32 %v1090_v27, %v1055_v43 }
 0x2cf   :  { %v2234_v50 = vadd.f32 %v2221_v16, %v1151_v11 }
 0x2d1   :  { %v1196_v48 = vsel %vm159_vm1, %v2234_v50, -inf }
 0x2d4   :  { %v1095_v24 = vpop.permute.xlu2 %1094 }
 0x2d5   :  { %v1152_v4 = vmul.f32 %v1095_v24, %v1056_v38 }
 0x2d7   :  { %v2259_v9 = vadd.f32 %v2221_v16, %v1152_v4 }
 0x2d9   :  { %v1199_v61 = vsel %vm159_vm1, %v2259_v9, -inf }
 0x2dc   :  { %v1110_v30 = vpop.permute.xlu2 %1109 }
 0x2dd   :  { %v1155_v57 = vmul.f32 %v1110_v30, %v1059_v14 }
 0x2df   :  { %v2274_v1 = vadd.f32 %v2221_v16, %v1155_v57 }
 0x2e1   :  { %v1208_v43 = vsel %vm159_vm1, %v2274_v1, -inf }
 0x2e2   :  { %v1080_v13 = vpop.permute.xlu1 %1079 }
 0x2e3   :  { %v1149_v59 = vmul.f32 %v1080_v13, %v1053_v41  ;;  %v1070_v42 = vpop.permute.xlu0 %1069 }
 0x2e4   :  { %v1147_v18 = vmul.f32 %v1070_v42, %v1051_v35  ;;  %v1125_v62 = vpop.permute.xlu2 %1124  ;;  %v1066_v42 = vld [vmem:[#allocation4 + $0x78] sm:$0xff] }
 0x2e5   :  { %v2224_v60 = vadd.f32 %v2221_v16, %v1149_v59  ;;  %v1158_v13 = vmul.f32 %v1125_v62, %v1062_v36 }
 0x2e6   :  { %v2227_v52 = vadd.f32 %v2221_v16, %v1147_v18 }
 0x2e7   :  { %v1190_v55 = vsel %vm159_vm1, %v2224_v60, -inf  ;;  %v2289_v11 = vadd.f32 %v2221_v16, %v1158_v13 }
 0x2e8   :  { %1191 = vmax.xlane.f32.xlu0 %v1190_v55  ;;  %v1184_v20 = vsel %vm159_vm1, %v2227_v52, -inf  ;;  %v1065_v55 = vld [vmem:[#allocation4 + $0x70] sm:$0xff] }
 0x2e9   :  { %1185 = vmax.xlane.f32.xlu1 %v1184_v20 }
 0x2ea   :  { %v1085_v51 = vpop.permute.xlu1 %1084 }
 0x2eb   :  { %v1075_v8 = vpop.permute.xlu0 %1074  ;;  %v1150_v5 = vmul.f32 %v1085_v51, %v1054_v46 }
 0x2ec   :  { %v1148_v21 = vmul.f32 %v1075_v8, %v1052_v0  ;;  %v1140_v20 = vpop.permute.xlu2 %1139  ;;  %v1217_v8 = vsel %vm159_vm1, %v2289_v11, -inf }
 0x2ed   :  { %v2244_v63 = vadd.f32 %v2221_v16, %v1150_v5  ;;  %v1161_v51 = vmul.f32 %v1140_v20, %v1065_v55 }
 0x2ee   :  { %v2239_v7 = vadd.f32 %v2221_v16, %v1148_v21 }
 0x2ef   :  { %v1193_v17 = vsel %vm159_vm1, %v2244_v63, -inf  ;;  %v2299_v46 = vadd.f32 %v2221_v16, %v1161_v51 }
 0x2f0   :  { %v1187_v6 = vsel %vm159_vm1, %v2239_v7, -inf }
 0x2f1   :  { %1197 = vmax.xlane.f32.xlu1 %v1196_v48  ;;  %1188 = vmax.xlane.f32.xlu2 %v1187_v6  ;;  %v1226_v48 = vsel %vm159_vm1, %v2299_v46, -inf }
 0x2f2   :  { %v1105_v26 = vpop.permute.xlu1 %1104 }
 0x2f3   :  { %v1154_v37 = vmul.f32 %v1105_v26, %v1058_v58  ;;  %v1100_v10 = vpop.permute.xlu0 %1099 }
 0x2f4   :  { %v1153_v25 = vmul.f32 %v1100_v10, %v1057_v34 }
 0x2f5   :  { %v2247_v45 = vadd.f32 %v2221_v16, %v1154_v37 }
 0x2f6   :  { %v2250_v15 = vadd.f32 %v2221_v16, %v1153_v25 }
 0x2f7   :  { %v1205_v53 = vsel %vm159_vm1, %v2247_v45, -inf }
 0x2f8   :  { %v1202_v28 = vsel %vm159_vm1, %v2250_v15, -inf }
 0x2f9   :  { %1206 = vmax.xlane.f32.xlu1 %v1205_v53  ;;  %1194 = vmax.xlane.f32.xlu2 %v1193_v17 }
 0x2fa   :  { %1203 = vmax.xlane.f32.xlu0 %v1202_v28  ;;  %v1120_v2 = vpop.permute.xlu1 %1119 }
 0x2fb   :  { %v1157_v47 = vmul.f32 %v1120_v2, %v1061_v56  ;;  %v1115_v29 = vpop.permute.xlu0 %1114 }
 0x2fc   :  { %v1156_v44 = vmul.f32 %v1115_v29, %v1060_v54 }
 0x2fd   :  { %v2262_v23 = vadd.f32 %v2221_v16, %v1157_v47 }
 0x2fe   :  { %v2265_v3 = vadd.f32 %v2221_v16, %v1156_v44 }
 0x2ff   :  { %v1214_v19 = vsel %vm159_vm1, %v2262_v23, -inf }
 0x300   :  { %v1211_v12 = vsel %vm159_vm1, %v2265_v3, -inf }
 0x301   :  { %1215 = vmax.xlane.f32.xlu1 %v1214_v19  ;;  %1200 = vmax.xlane.f32.xlu2 %v1199_v61 }
 0x302   :  { %1212 = vmax.xlane.f32.xlu0 %v1211_v12  ;;  %v1135_v22 = vpop.permute.xlu1 %1134 }
 0x303   :  { %v1160_v31 = vmul.f32 %v1135_v22, %v1064_v40  ;;  %v1130_v39 = vpop.permute.xlu0 %1129 }
 0x304   :  { %v1159_v33 = vmul.f32 %v1130_v39, %v1063_v49 }
 0x305   :  { %v2277_v32 = vadd.f32 %v2221_v16, %v1160_v31 }
 0x306   :  { %v2280_v41 = vadd.f32 %v2221_v16, %v1159_v33 }
 0x307   :  { %v1223_v35 = vsel %vm159_vm1, %v2277_v32, -inf }
 0x308   :  { %v1220_v59 = vsel %vm159_vm1, %v2280_v41, -inf }
 0x309   :  { %1224 = vmax.xlane.f32.xlu1 %v1223_v35  ;;  %1209 = vmax.xlane.f32.xlu2 %v1208_v43 }
 0x30a   :  { %1221 = vmax.xlane.f32.xlu0 %v1220_v59 }
 0x30b   :  { %v1145_v18 = vpop.permute.xlu0 %1144 }
 0x30c   :  { %v1162_v27 = vmul.f32 %v1145_v18, %v1066_v42 }
 0x30e   :  { %v2292_v0 = vadd.f32 %v2221_v16, %v1162_v27 }
 0x310   :  { %v1229_v21 = vsel %vm159_vm1, %v2292_v0, -inf }
 0x311   :  { %1218 = vmax.xlane.f32.xlu2 %v1217_v8 }
 0x312   :  { %1230 = vmax.xlane.f32.xlu0 %v1229_v21 }
 0x319   :  { %1227 = vmax.xlane.f32.xlu2 %v1226_v48 }
 0x35b   :  { %v1192_v24 = vpop.xlane.xlu0 %1191 }
 0x35c   :  { %v1186_v5 = vpop.xlane.xlu1 %1185  ;;  %v2304_v6 = vsub.f32 %v2224_v60, %v1192_v24 }
 0x35d   :  { %v2307_v58 = vsub.f32 %v2227_v52, %v1186_v5 }
 0x35e   :  { %v1252_v34 = vmul.f32 1.442695, %v2304_v6 }
 0x35f   :  { %v1248_v26 = vmul.f32 1.442695, %v2307_v58 }
 0x360   :  { %1588 = vpow2.f32 %v1252_v34 }
 0x361   :  { %1590 = vpow2.f32 %v1248_v26 }
 0x364   :  { %v1198_v16 = vpop.xlane.xlu1 %1197  ;;  %v1189_v37 = vpop.xlane.xlu2 %1188 }
 0x365   :  { %v2312_v10 = vsub.f32 %v2239_v7, %v1189_v37  ;;  %v2315_v53 = vsub.f32 %v2234_v50, %v1198_v16 }
 0x366   :  { %v1589_v25 = vpop.eup %1588 }
 0x367   :  { %v1591_v38 = vpop.eup %1590  ;;  %v1250_v60 = vmul.f32 1.442695, %v2312_v10  ;;  %v1286_v52 = vsel %vm159_vm1, %v1589_v25, 0.0  ;;  %v1256_v17 = vmul.f32 1.442695, %v2315_v53 }
 0x368   :  { %v1280_v4 = vsel %vm159_vm1, %v1591_v38, 0.0  ;;  %1287 = vadd.xlane.f32.xlu0 %v1286_v52 }
 0x369   :  { %1281 = vadd.xlane.f32.xlu1 %v1280_v4  ;;  %1592 = vpow2.f32 %v1250_v60 }
 0x36a   :  { %1594 = vpow2.f32 %v1256_v17 }
 0x36c   :  { %v1207_v28 = vpop.xlane.xlu1 %1206  ;;  %v1195_v56 = vpop.xlane.xlu2 %1194 }
 0x36d   :  { %v2322_v7 = vsub.f32 %v2244_v63, %v1195_v56  ;;  %v1204_v30 = vpop.xlane.xlu0 %1203  ;;  %v2325_v50 = vsub.f32 %v2247_v45, %v1207_v28 }
 0x36e   :  { %v2329_v47 = vsub.f32 %v2250_v15, %v1204_v30 }
 0x36f   :  { %v1593_v54 = vpop.eup %1592  ;;  %v1254_v2 = vmul.f32 1.442695, %v2322_v7  ;;  %v1262_v44 = vmul.f32 1.442695, %v2325_v50 }
 0x370   :  { %v1283_v29 = vsel %vm159_vm1, %v1593_v54, 0.0  ;;  %v1260_v63 = vmul.f32 1.442695, %v2329_v47  ;;  %v1595_v57 = vpop.eup %1594 }
 0x371   :  { %1284 = vadd.xlane.f32.xlu2 %v1283_v29  ;;  %1596 = vpow2.f32 %v1254_v2  ;;  %v1292_v22 = vsel %vm159_vm1, %v1595_v57, 0.0 }
 0x372   :  { %1598 = vpow2.f32 %v1262_v44 }
 0x373   :  { %1600 = vpow2.f32 %v1260_v63 }
 0x374   :  { %v1216_v14 = vpop.xlane.xlu1 %1215  ;;  %v1201_v19 = vpop.xlane.xlu2 %1200 }
 0x375   :  { %v2335_v45 = vsub.f32 %v2259_v9, %v1201_v19  ;;  %v1213_v61 = vpop.xlane.xlu0 %1212  ;;  %v2338_v40 = vsub.f32 %v2262_v23, %v1216_v14 }
 0x376   :  { %v2342_v49 = vsub.f32 %v2265_v3, %v1213_v61 }
 0x377   :  { %v1597_v12 = vpop.eup %1596  ;;  %v1258_v15 = vmul.f32 1.442695, %v2335_v45  ;;  %v1268_v9 = vmul.f32 1.442695, %v2338_v40 }
 0x378   :  { %v1289_v62 = vsel %vm159_vm1, %v1597_v12, 0.0  ;;  %v1266_v31 = vmul.f32 1.442695, %v2342_v49  ;;  %v1599_v33 = vpop.eup %1598 }
 0x379   :  { %1293 = vadd.xlane.f32.xlu2 %v1292_v22  ;;  %1290 = vadd.xlane.f32.xlu1 %v1289_v62  ;;  %1602 = vpow2.f32 %v1258_v15  ;;  %v1601_v35 = vpop.eup %1600  ;;  %v1301_v18 = vsel %vm159_vm1, %v1599_v33, 0.0 }
 0x37a   :  { %1604 = vpow2.f32 %v1268_v9 }
 0x37b   :  { %1606 = vpow2.f32 %v1266_v31 }
 0x37c   :  { %v1225_v23 = vpop.xlane.xlu1 %1224  ;;  %v1210_v39 = vpop.xlane.xlu2 %1209 }
 0x37d   :  { %v2349_v36 = vsub.f32 %v2274_v1, %v1210_v39  ;;  %v1222_v3 = vpop.xlane.xlu0 %1221  ;;  %v2352_v43 = vsub.f32 %v2277_v32, %v1225_v23  ;;  %v1298_v1 = vsel %vm159_vm1, %v1601_v35, 0.0 }
 0x37e   :  { %v2356_v42 = vsub.f32 %v2280_v41, %v1222_v3 }
 0x37f   :  { %v1603_v13 = vpop.eup %1602  ;;  %v1264_v59 = vmul.f32 1.442695, %v2349_v36  ;;  %v1274_v32 = vmul.f32 1.442695, %v2352_v43 }
 0x380   :  { %v1295_v27 = vsel %vm159_vm1, %v1603_v13, 0.0  ;;  %v1272_v55 = vmul.f32 1.442695, %v2356_v42  ;;  %v1605_v51 = vpop.eup %1604 }
 0x381   :  { %1302 = vadd.xlane.f32.xlu2 %v1301_v18  ;;  %1296 = vadd.xlane.f32.xlu0 %v1295_v27  ;;  %1608 = vpow2.f32 %v1264_v59  ;;  %v1607_v21 = vpop.eup %1606  ;;  %v1310_v34 = vsel %vm159_vm1, %v1605_v51, 0.0 }
 0x382   :  { %1299 = vadd.xlane.f32.xlu1 %v1298_v1  ;;  %1610 = vpow2.f32 %v1274_v32  ;;  %v1307_v16 = vsel %vm159_vm1, %v1607_v21, 0.0 }
 0x383   :  { %1612 = vpow2.f32 %v1272_v55 }
 0x384   :  { %v1219_v20 = vpop.xlane.xlu2 %1218 }
 0x385   :  { %v2364_v41 = vsub.f32 %v2289_v11, %v1219_v20  ;;  %v1231_v8 = vpop.xlane.xlu0 %1230 }
 0x386   :  { %v2368_v5 = vsub.f32 %v2292_v0, %v1231_v8 }
 0x387   :  { %v1609_v48 = vpop.eup %1608  ;;  %v1270_v24 = vmul.f32 1.442695, %v2364_v41 }
 0x388   :  { %v1304_v26 = vsel %vm159_vm1, %v1609_v48, 0.0  ;;  %v1278_v11 = vmul.f32 1.442695, %v2368_v5  ;;  %v1611_v25 = vpop.eup %1610 }
 0x389   :  { %1311 = vadd.xlane.f32.xlu2 %v1310_v34  ;;  %1305 = vadd.xlane.f32.xlu0 %v1304_v26  ;;  %1614 = vpow2.f32 %v1270_v24  ;;  %v1613_v0 = vpop.eup %1612  ;;  %v1319_v4 = vsel %vm159_vm1, %v1611_v25, 0.0 }
 0x38a   :  { %1308 = vadd.xlane.f32.xlu1 %v1307_v16  ;;  %1616 = vpow2.f32 %v1278_v11  ;;  %v1316_v28 = vsel %vm159_vm1, %v1613_v0, 0.0 }
 0x38c   :  { %v1228_v37 = vpop.xlane.xlu2 %1227 }
 0x38d   :  { %v2375_v38 = vsub.f32 %v2299_v46, %v1228_v37 }
 0x38f   :  { %v1615_v60 = vpop.eup %1614  ;;  %v1276_v52 = vmul.f32 1.442695, %v2375_v38 }
 0x390   :  { %v1313_v17 = vsel %vm159_vm1, %v1615_v60, 0.0  ;;  %v1617_v56 = vpop.eup %1616 }
 0x391   :  { %1320 = vadd.xlane.f32.xlu2 %v1319_v4  ;;  %1314 = vadd.xlane.f32.xlu0 %v1313_v17  ;;  %1618 = vpow2.f32 %v1276_v52  ;;  %v1325_v54 = vsel %vm159_vm1, %v1617_v56, 0.0 }
 0x392   :  { %1317 = vadd.xlane.f32.xlu1 %v1316_v28 }
 0x397   :  { %v1619_v30 = vpop.eup %1618 }
 0x398   :  { %v1322_v46 = vsel %vm159_vm1, %v1619_v30, 0.0 }
 0x399   :  { %1323 = vadd.xlane.f32.xlu0 %v1322_v46 }
 0x39a   :  { %1326 = vadd.xlane.f32.xlu1 %v1325_v54 }
 0x3db   :  { %v1288_v2 = vpop.xlane.xlu0 %1287 }
 0x3dc   :  { %v1282_v29 = vpop.xlane.xlu1 %1281  ;;  %1620 = vlog2.f32 %v1288_v2 }
 0x3dd   :  { %1622 = vlog2.f32 %v1282_v29 }
 0x3e2   :  { %v1621_v44 = vpop.eup %1620 }
 0x3e3   :  { %v1623_v63 = vpop.eup %1622  ;;  %v1333_v14 = vmul.f32 0.6931472, %v1621_v44 }
 0x3e4   :  { %v1329_v19 = vmul.f32 0.6931472, %v1623_v63  ;;  %v1285_v57 = vpop.xlane.xlu2 %1284 }
 0x3e5   :  { %v1362_v61 = vsub.f32 %v2304_v6, %v1333_v14  ;;  %1624 = vlog2.f32 %v1285_v57 }
 0x3e6   :  { %v1360_v12 = vsub.f32 %v2307_v58, %v1329_v19 }
 0x3e7   :  { %1378 = vst.msk [vmem:[%s2467_s7 + $0x10] sm:$0xff] %vm159_vm1, %v1362_v61 }
 0x3e8   :  { %1376 = vst.msk [vmem:[%s2467_s7] sm:$0xff] %vm159_vm1, %v1360_v12 }
 0x3eb   :  { %v1625_v15 = vpop.eup %1624 }
 0x3ec   :  { %v1331_v22 = vmul.f32 0.6931472, %v1625_v15  ;;  %v1291_v62 = vpop.xlane.xlu1 %1290  ;;  %v1294_v9 = vpop.xlane.xlu2 %1293 }
 0x3ed   :  { %1626 = vlog2.f32 %v1291_v62 }
 0x3ee   :  { %v1361_v6 = vsub.f32 %v2312_v10, %v1331_v22  ;;  %1628 = vlog2.f32 %v1294_v9 }
 0x3f0   :  { %1377 = vst.msk [vmem:[%s2467_s7 + $0x8] sm:$0xff] %vm159_vm1, %v1361_v6 }
 0x3f3   :  { %v1627_v58 = vpop.eup %1626 }
 0x3f4   :  { %v1629_v31 = vpop.eup %1628  ;;  %v1335_v23 = vmul.f32 0.6931472, %v1627_v58  ;;  %v1303_v39 = vpop.xlane.xlu2 %1302 }
 0x3f5   :  { %v1297_v33 = vpop.xlane.xlu0 %1296  ;;  %v1337_v3 = vmul.f32 0.6931472, %v1629_v31  ;;  %1630 = vlog2.f32 %v1303_v39  ;;  %v1300_v35 = vpop.xlane.xlu1 %1299 }
 0x3f6   :  { %v1363_v13 = vsub.f32 %v2322_v7, %v1335_v23  ;;  %1632 = vlog2.f32 %v1300_v35 }
 0x3f7   :  { %v1364_v59 = vsub.f32 %v2315_v53, %v1337_v3  ;;  %1634 = vlog2.f32 %v1297_v33 }
 0x3f8   :  { %1379 = vst.msk [vmem:[%s2467_s7 + $0x18] sm:$0xff] %vm159_vm1, %v1363_v13 }
 0x3f9   :  { %1380 = vst.msk [vmem:[%s2467_s7 + $0x20] sm:$0xff] %vm159_vm1, %v1364_v59 }
 0x3fb   :  { %v1631_v10 = vpop.eup %1630 }
 0x3fc   :  { %v1633_v18 = vpop.eup %1632  ;;  %v1343_v27 = vmul.f32 0.6931472, %v1631_v10  ;;  %v1312_v1 = vpop.xlane.xlu2 %1311 }
 0x3fd   :  { %v1306_v32 = vpop.xlane.xlu0 %1305  ;;  %v1635_v7 = vpop.eup %1634  ;;  %v1341_v55 = vmul.f32 0.6931472, %v1633_v18  ;;  %1636 = vlog2.f32 %v1312_v1 }
 0x3fe   :  { %v1309_v53 = vpop.xlane.xlu1 %1308  ;;  %v1367_v20 = vsub.f32 %v2325_v50, %v1343_v27  ;;  %v1339_v51 = vmul.f32 0.6931472, %v1635_v7 }
 0x3ff   :  { %1638 = vlog2.f32 %v1309_v53  ;;  %v1366_v8 = vsub.f32 %v2329_v47, %v1341_v55 }
 0x400   :  { %1640 = vlog2.f32 %v1306_v32  ;;  %1383 = vst.msk [vmem:[%s2467_s7 + $0x38] sm:$0xff] %vm159_vm1, %v1367_v20  ;;  %v1365_v21 = vsub.f32 %v2335_v45, %v1339_v51 }
 0x401   :  { %1382 = vst.msk [vmem:[%s2467_s7 + $0x30] sm:$0xff] %vm159_vm1, %v1366_v8 }
 0x402   :  { %1381 = vst.msk [vmem:[%s2467_s7 + $0x28] sm:$0xff] %vm159_vm1, %v1365_v21 }
 0x403   :  { %v1637_v50 = vpop.eup %1636 }
 0x404   :  { %v1349_v48 = vmul.f32 0.6931472, %v1637_v50  ;;  %v1321_v24 = vpop.xlane.xlu2 %1320 }
 0x405   :  { %v1639_v47 = vpop.eup %1638  ;;  %v1315_v34 = vpop.xlane.xlu0 %1314  ;;  %1642 = vlog2.f32 %v1321_v24 }
 0x406   :  { %v1641_v26 = vpop.eup %1640  ;;  %v1347_v16 = vmul.f32 0.6931472, %v1639_v47  ;;  %v1318_v11 = vpop.xlane.xlu1 %1317  ;;  %v1370_v45 = vsub.f32 %v2338_v40, %v1349_v48 }
 0x407   :  { %v1345_v37 = vmul.f32 0.6931472, %v1641_v26  ;;  %1644 = vlog2.f32 %v1318_v11 }
 0x408   :  { %v1369_v25 = vsub.f32 %v2342_v49, %v1347_v16  ;;  %1646 = vlog2.f32 %v1315_v34  ;;  %1386 = vst.msk [vmem:[%s2467_s7 + $0x50] sm:$0xff] %vm159_vm1, %v1370_v45 }
 0x409   :  { %v1368_v0 = vsub.f32 %v2349_v36, %v1345_v37 }
 0x40a   :  { %1385 = vst.msk [vmem:[%s2467_s7 + $0x48] sm:$0xff] %vm159_vm1, %v1369_v25 }
 0x40b   :  { %1384 = vst.msk [vmem:[%s2467_s7 + $0x40] sm:$0xff] %vm159_vm1, %v1368_v0  ;;  %v1643_v40 = vpop.eup %1642 }
 0x40c   :  { %v1355_v60 = vmul.f32 0.6931472, %v1643_v40 }
 0x40d   :  { %v1645_v49 = vpop.eup %1644  ;;  %v1324_v52 = vpop.xlane.xlu0 %1323 }
 0x40e   :  { %v1647_v4 = vpop.eup %1646  ;;  %v1353_v17 = vmul.f32 0.6931472, %v1645_v49  ;;  %v1327_v28 = vpop.xlane.xlu1 %1326  ;;  %1648 = vlog2.f32 %v1324_v52  ;;  %v1373_v36 = vsub.f32 %v2352_v43, %v1355_v60 }
 0x40f   :  { %v1351_v56 = vmul.f32 0.6931472, %v1647_v4  ;;  %1650 = vlog2.f32 %v1327_v28 }
 0x410   :  { %v1372_v30 = vsub.f32 %v2356_v42, %v1353_v17  ;;  %1389 = vst.msk [vmem:[%s2467_s7 + $0x68] sm:$0xff] %vm159_vm1, %v1373_v36 }
 0x411   :  { %v1371_v46 = vsub.f32 %v2364_v41, %v1351_v56 }
 0x412   :  { %1388 = vst.msk [vmem:[%s2467_s7 + $0x60] sm:$0xff] %vm159_vm1, %v1372_v30 }
 0x413   :  { %1387 = vst.msk [vmem:[%s2467_s7 + $0x58] sm:$0xff] %vm159_vm1, %v1371_v46 }
 0x414   :  { %v1649_v43 = vpop.eup %1648 }
 0x415   :  { %v1651_v54 = vpop.eup %1650  ;;  %v1357_v42 = vmul.f32 0.6931472, %v1649_v43 }
 0x416   :  { %v1359_v2 = vmul.f32 0.6931472, %v1651_v54 }
 0x417   :  { %v1374_v29 = vsub.f32 %v2375_v38, %v1357_v42 }
 0x418   :  { %v1375_v44 = vsub.f32 %v2368_v5, %v1359_v2 }
 0x419   :  { %1390 = vst.msk [vmem:[%s2467_s7 + $0x70] sm:$0xff] %vm159_vm1, %v1374_v29 }
 0x41a   :  { %1391 = vst.msk [vmem:[%s2467_s7 + $0x78] sm:$0xff] %vm159_vm1, %v1375_v44 }

// kernel: net_forward.4
= control target key start
LH: loop header
LB: loop body
LE: loop exit
PB: predicated region body
PF: predicated region fallthrough
CT: control target
= control target key end

     0   :  { %vm135_vm0 = vcmask 31744   ;;  %v4549_v0 = vmov -1e+30   ;;  %v4550_v1 = vmov 0.0   ;;  %vm168_vm1 = vcmask 261120   ;;  %s7691_s0 = inlined_call_operand.<no memory space> [shape: s32[1], index: 0, kind: input, shape index: {}]   ;;  %s7692_s1 = inlined_call_operand.<no memory space> [shape: s32[1,1], index: 1, kind: input, shape index: {}]   ;;  %s7693_s4 = inlined_call_operand.vmem [shape: f32[128,4], index: 4, kind: input, shape index: {}]   ;;  %s7694_s6 = inlined_call_operand.vmem [shape: f32[1,32], index: 6, kind: input, shape index: {}]   ;;  %s7695_s7 = inlined_call_operand.vmem [shape: bf16[32,10], index: 7, kind: input, shape index: {}]   ;;  %s7696_s8 = inlined_call_operand.vmem [shape: bf16[128,8], index: 8, kind: output, shape index: {0}]   ;;  %s7697_s9 = inlined_call_operand.vmem [shape: f32[128,2], index: 9, kind: output, shape index: {1}]   ;;  %s7698_s3 = inlined_call_operand.vmem [shape: f32[4,128], index: 3, kind: input, shape index: {}]   ;;  %s7699_s2 = inlined_call_operand.vmem [shape: bf16[128,32], index: 2, kind: input, shape index: {}]   ;;  %s7700_s5 = inlined_call_operand.vmem [shape: s8[128,128], index: 5, kind: input, shape index: {}]  }
   0x1   :  { %s3990_s11 = sshll.u32 %s7692_s1, 4  ;;  %p110_p0 = scmp.lt.s32.totalorder %s7692_s1, 0  ;;  %136 = vst.msk [vmem:[#allocation2] sm:$0xff] %vm135_vm0, %v4549_v0 }
   0x2   :  { %p97_p1 = scmp.lt.s32.totalorder %s3990_s11, 15  ;;  %137 = vst.msk [vmem:[#allocation2 + $0x8] sm:$0xff] %vm135_vm0, %v4549_v0  ;;  %p3995_p2 = scmp.le.s32.totalorder %s7691_s0, 0 }
   0x3   :  { %s8272_s1 = smov (!%p110_p0, %s7692_s1), 0  ;;  %138 = vst.msk [vmem:[#allocation2 + $0x10] sm:$0xff] %vm135_vm0, %v4549_v0 }
   0x4   :  { %s8274_s11 = smov (!%p97_p1, %s3990_s11), 15  ;;  %139 = vst.msk [vmem:[#allocation2 + $0x18] sm:$0xff] %vm135_vm0, %v4549_v0  ;;  %s3992_s16 = sshll.u32 %s8272_s1, 2 }
   0x5   :  { %s3993_s17 = sshll.u32 %s8272_s1, 3  ;;  %140 = vst.msk [vmem:[#allocation2 + $0x20] sm:$0xff] %vm135_vm0, %v4549_v0  ;;  %s3991_s18 = sshll.u32 %s8274_s11, 2 }
   0x6   :  { %s4633_s21 = scalar_lea.vmem %s7698_s3, %s3992_s16  ;;  %141 = vst.msk [vmem:[#allocation2 + $0x28] sm:$0xff] %vm135_vm0, %v4549_v0  ;;  %s4639_s24 = scalar_lea.vmem %s7699_s2, %s3991_s18 }
   0x7   :  { %s4644_s27 = scalar_lea.vmem %s7700_s5, %s3993_s17  ;;  %142 = vst.msk [vmem:[#allocation2 + $0x30] sm:$0xff] %vm135_vm0, %v4549_v0 }
   0x8   :  { %143 = vst.msk [vmem:[#allocation2 + $0x38] sm:$0xff] %vm135_vm0, %v4549_v0 }
   0x9   :  { %144 = vst.msk [vmem:[#allocation2 + $0x40] sm:$0xff] %vm135_vm0, %v4549_v0 }
   0xa   :  { %145 = vst.msk [vmem:[#allocation2 + $0x48] sm:$0xff] %vm135_vm0, %v4549_v0 }
   0xb   :  { %146 = vst.msk [vmem:[#allocation2 + $0x50] sm:$0xff] %vm135_vm0, %v4549_v0 }
   0xc   :  { %147 = vst.msk [vmem:[#allocation2 + $0x58] sm:$0xff] %vm135_vm0, %v4549_v0 }
   0xd   :  { %148 = vst.msk [vmem:[#allocation2 + $0x60] sm:$0xff] %vm135_vm0, %v4549_v0 }
   0xe   :  { %149 = vst.msk [vmem:[#allocation2 + $0x68] sm:$0xff] %vm135_vm0, %v4549_v0 }
   0xf   :  { %150 = vst.msk [vmem:[#allocation2 + $0x70] sm:$0xff] %vm135_vm0, %v4549_v0 }
  0x10   :  { %151 = vst.msk [vmem:[#allocation2 + $0x78] sm:$0xff] %vm135_vm0, %v4549_v0 }
  0x11   :  { %152 = vst.msk [vmem:[#allocation3] sm:$0xff] %vm135_vm0, %v4550_v1 }
  0x12   :  { %153 = vst.msk [vmem:[#allocation3 + $0x8] sm:$0xff] %vm135_vm0, %v4550_v1 }
  0x13   :  { %154 = vst.msk [vmem:[#allocation3 + $0x10] sm:$0xff] %vm135_vm0, %v4550_v1 }
  0x14   :  { %155 = vst.msk [vmem:[#allocation3 + $0x18] sm:$0xff] %vm135_vm0, %v4550_v1 }
  0x15   :  { %156 = vst.msk [vmem:[#allocation3 + $0x20] sm:$0xff] %vm135_vm0, %v4550_v1 }
  0x16   :  { %157 = vst.msk [vmem:[#allocation3 + $0x28] sm:$0xff] %vm135_vm0, %v4550_v1 }
  0x17   :  { %158 = vst.msk [vmem:[#allocation3 + $0x30] sm:$0xff] %vm135_vm0, %v4550_v1 }
  0x18   :  { %159 = vst.msk [vmem:[#allocation3 + $0x38] sm:$0xff] %vm135_vm0, %v4550_v1 }
  0x19   :  { %160 = vst.msk [vmem:[#allocation3 + $0x40] sm:$0xff] %vm135_vm0, %v4550_v1 }
  0x1a   :  { %161 = vst.msk [vmem:[#allocation3 + $0x48] sm:$0xff] %vm135_vm0, %v4550_v1 }
  0x1b   :  { %162 = vst.msk [vmem:[#allocation3 + $0x50] sm:$0xff] %vm135_vm0, %v4550_v1 }
  0x1c   :  { %163 = vst.msk [vmem:[#allocation3 + $0x58] sm:$0xff] %vm135_vm0, %v4550_v1 }
  0x1d   :  { %164 = vst.msk [vmem:[#allocation3 + $0x60] sm:$0xff] %vm135_vm0, %v4550_v1 }
  0x1e   :  { %165 = vst.msk [vmem:[#allocation3 + $0x68] sm:$0xff] %vm135_vm0, %v4550_v1 }
  0x1f   :  { %166 = vst.msk [vmem:[#allocation3 + $0x70] sm:$0xff] %vm135_vm0, %v4550_v1 }
  0x20   :  { %167 = vst.msk [vmem:[#allocation3 + $0x78] sm:$0xff] %vm135_vm0, %v4550_v1 }
  0x21   :  { %169 = vst.msk [vmem:[#allocation4] sm:$0xff] %vm168_vm1, %v4550_v1 }
  0x22   :  { %170 = vst.msk [vmem:[#allocation4 + $0x8] sm:$0xff] %vm168_vm1, %v4550_v1 }
  0x23   :  { %171 = vst.msk [vmem:[#allocation4 + $0x10] sm:$0xff] %vm168_vm1, %v4550_v1 }
  0x24   :  { %172 = vst.msk [vmem:[#allocation4 + $0x18] sm:$0xff] %vm168_vm1, %v4550_v1 }
  0x25   :  { %173 = vst.msk [vmem:[#allocation4 + $0x20] sm:$0xff] %vm168_vm1, %v4550_v1 }
  0x26   :  { %174 = vst.msk [vmem:[#allocation4 + $0x28] sm:$0xff] %vm168_vm1, %v4550_v1 }
  0x27   :  { %175 = vst.msk [vmem:[#allocation4 + $0x30] sm:$0xff] %vm168_vm1, %v4550_v1 }
  0x28   :  { %176 = vst.msk [vmem:[#allocation4 + $0x38] sm:$0xff] %vm168_vm1, %v4550_v1 }
  0x29   :  { %177 = vst.msk [vmem:[#allocation4 + $0x40] sm:$0xff] %vm168_vm1, %v4550_v1 }
  0x2a   :  { %178 = vst.msk [vmem:[#allocation4 + $0x48] sm:$0xff] %vm168_vm1, %v4550_v1 }
  0x2b   :  { %179 = vst.msk [vmem:[#allocation4 + $0x50] sm:$0xff] %vm168_vm1, %v4550_v1 }
  0x2c   :  { %180 = vst.msk [vmem:[#allocation4 + $0x58] sm:$0xff] %vm168_vm1, %v4550_v1  ;;  %189 = sbr.rel (%p3995_p2) target bundleno = 3995 (0xf9b), region = 33 }
  0x2d   :  { %181 = vst.msk [vmem:[#allocation4 + $0x60] sm:$0xff] %vm168_vm1, %v4550_v1 }
  0x2e   :  { %182 = vst.msk [vmem:[#allocation4 + $0x68] sm:$0xff] %vm168_vm1, %v4550_v1 }
  0x2f   :  { %183 = vst.msk [vmem:[#allocation4 + $0x70] sm:$0xff] %vm168_vm1, %v4550_v1 }
  0x30   :  { %184 = vst.msk [vmem:[#allocation4 + $0x78] sm:$0xff] %vm168_vm1, %v4550_v1 }
  0x31   :  { %v4694_v2 = vld [vmem:[%s7693_s4 + $0x10] sm:$0xff]  ;;  %v4699_v3 = vld [vmem:[%s7693_s4] sm:$0xff]  ;;  %v4551_v4 = vmov 0   ;;  %v4715_v6 = vld [vmem:[%s7693_s4 + $0x18] sm:$0xff]  ;;  %v7701_v53 = vmov 1   ;;  %s4553_s16 = smov 120  }
  0x32   :  { %4094 = vset.pattern.permute.xlu1 %v4551_v4  ;;  %4093 = vset.pattern.permute.xlu0 %v4551_v4  ;;  %v4706_v5 = vld [vmem:[%s7693_s4 + $0x20] sm:$0xff]  ;;  %v4720_v7 = vld [vmem:[%s7693_s4 + $0x8] sm:$0xff]  ;;  %v4733_v9 = vld [vmem:[%s7693_s4 + $0x38] sm:$0xff]  ;;  %s4554_s17 = smov 8   ;;  %vm2999_vm2 = vcmask 15360   ;;  %vm2982_vm3 = vcmask 7168  }
  0x33   :  { %303 = vperm.xlu1 %4094, %v4694_v2   ;;  %293 = vperm.xlu0 %4093, %v4699_v3   ;;  %v4725_v8 = vld [vmem:[%s7693_s4 + $0x28] sm:$0xff]  ;;  %v4738_v10 = vld [vmem:[%s7693_s4 + $0x30] sm:$0xff]  ;;  %v4743_v11 = vld [vmem:[%s7693_s4 + $0x40] sm:$0xff]  ;;  %s4556_s23 = smov 112   ;;  %s4557_s25 = smov 16   ;;  %vm3114_vm4 = vcmask 64512  }
  0x34   :  { %4095 = vset.pattern.permute.xlu2 %v4551_v4  ;;  %v4751_v12 = vld [vmem:[%s7693_s4 + $0x50] sm:$0xff]  ;;  %v4756_v13 = vld [vmem:[%s7693_s4 + $0x48] sm:$0xff]  ;;  %v4761_v14 = vld [vmem:[%s7693_s4 + $0x58] sm:$0xff]  ;;  %vm3131_vm5 = vcmask 130048   ;;  %s4559_s3 = smov 104   ;;  %vm3016_vm6 = vcmask 23552  }
  0x35   :  { %313 = vperm.xlu2 %4095, %v4706_v5   ;;  %v4769_v15 = vld [vmem:[%s7693_s4 + $0x68] sm:$0xff]  ;;  %v4774_v16 = vld [vmem:[%s7693_s4 + $0x60] sm:$0xff]  ;;  %v288_v17 = vld [vmem:[%s7693_s4 + $0x70] sm:$0xff]  ;;  %vm3148_vm7 = vcmask 195584  }
  0x36   :  { %v289_v18 = vld [vmem:[%s7693_s4 + $0x78] sm:$0xff]  ;;  %v4785_v19 = vld [vmem:[%s4633_s21] ss:$0 sm:$0xff] }
  0x3b   :  { %308 = vperm.xlu1 %4094, %v4715_v6   ;;  %298 = vperm.xlu0 %4093, %v4720_v7  }
  0x3d   :  { %318 = vperm.xlu2 %4095, %v4725_v8  }
  0x43   :  { %328 = vperm.xlu1 %4094, %v4733_v9   ;;  %323 = vperm.xlu0 %4093, %v4738_v10  }
  0x45   :  { %333 = vperm.xlu2 %4095, %v4743_v11  }
  0x4b   :  { %343 = vperm.xlu1 %4094, %v4751_v12   ;;  %338 = vperm.xlu0 %4093, %v4756_v13  }
  0x4d   :  { %348 = vperm.xlu2 %4095, %v4761_v14  }
  0x53   :  { %358 = vperm.xlu1 %4094, %v4769_v15   ;;  %353 = vperm.xlu0 %4093, %v4774_v16  }
  0x55   :  { %363 = vperm.xlu2 %4095, %v288_v17  }
  0x5b   :  { %368 = vperm.xlu0 %4093, %v289_v18   ;;  %4097 = vset.pattern.permute.xlu1 %v7701_v53 }
  0x5d   :  { %4098 = vset.pattern.permute.xlu2 %v7701_v53 }
  0x63   :  { %4096 = vset.pattern.permute.xlu0 %v7701_v53 }
  0x8f   :  { %v314_v22 = vpop.permute.xlu2 %313 }
  0x90   :  { %v376_v25 = vadd.f32 %v4785_v19, %v314_v22 }
  0x92   :  { %v392_v30 = vmul.f32 0.2, %v376_v25 }
  0x94   :  { %v4797_v35 = vmax.f32 %v376_v25, %v392_v30 }
  0x97   :  { %v319_v34 = vpop.permute.xlu2 %318 }
  0x98   :  { %v377_v46 = vadd.f32 %v4785_v19, %v319_v34 }
  0x9a   :  { %v393_v56 = vmul.f32 0.2, %v377_v46 }
  0x9c   :  { %v4824_v61 = vmax.f32 %v377_v46, %v393_v56  ;;  %v4902_v56 = vld [vmem:[#allocation2 + $0x28] sm:$0xff] }
  0x9f   :  { %v334_v47 = vpop.permute.xlu2 %333 }
  0xa0   :  { %v380_v59 = vadd.f32 %v4785_v19, %v334_v47 }
  0xa5   :  { %v304_v20 = vpop.permute.xlu1 %303  ;;  %v294_v21 = vpop.permute.xlu0 %293 }
  0xa6   :  { %v374_v23 = vadd.f32 %v4785_v19, %v304_v20  ;;  %v372_v24 = vadd.f32 %v4785_v19, %v294_v21  ;;  %v396_v20 = vmul.f32 0.2, %v380_v59 }
  0xa7   :  { %v349_v63 = vpop.permute.xlu2 %348 }
  0xa8   :  { %v390_v26 = vmul.f32 0.2, %v374_v23  ;;  %v388_v27 = vmul.f32 0.2, %v372_v24  ;;  %v4836_v25 = vmax.f32 %v380_v59, %v396_v20  ;;  %v4920_v20 = vld [vmem:[#allocation2 + $0x68] sm:$0xff] }
  0xaa   :  { %v4790_v28 = vmax.f32 %v374_v23, %v390_v26  ;;  %v4792_v29 = vmax.f32 %v372_v24, %v388_v27  ;;  %v383_v23 = vadd.f32 %v4785_v19, %v349_v63 }
  0xac   :  { %424 = vmax.xlane.f32.xlu0 %v4790_v28  ;;  %420 = vmax.xlane.f32.xlu1 %v4792_v29 }
  0xad   :  { %v309_v31 = vpop.permute.xlu1 %308  ;;  %v299_v32 = vpop.permute.xlu0 %298 }
  0xae   :  { %v373_v33 = vadd.f32 %v4785_v19, %v299_v32  ;;  %v375_v37 = vadd.f32 %v4785_v19, %v309_v31  ;;  %v399_v31 = vmul.f32 0.2, %v383_v23 }
  0xaf   :  { %v364_v32 = vpop.permute.xlu2 %363 }
  0xb0   :  { %v389_v36 = vmul.f32 0.2, %v373_v33  ;;  %v391_v43 = vmul.f32 0.2, %v375_v37  ;;  %v386_v34 = vadd.f32 %v4785_v19, %v364_v32 }
  0xb2   :  { %v4800_v38 = vmax.f32 %v373_v33, %v389_v36  ;;  %v4809_v49 = vmax.f32 %v375_v37, %v391_v43  ;;  %v4845_v36 = vmax.f32 %v383_v23, %v399_v31 }
  0xb4   :  { %428 = vmax.xlane.f32.xlu1 %v4797_v35  ;;  %422 = vmax.xlane.f32.xlu2 %v4800_v38 }
  0xb5   :  { %v329_v39 = vpop.permute.xlu1 %328  ;;  %v324_v40 = vpop.permute.xlu0 %323 }
  0xb6   :  { %v379_v41 = vadd.f32 %v4785_v19, %v329_v39  ;;  %v378_v42 = vadd.f32 %v4785_v19, %v324_v40  ;;  %v402_v39 = vmul.f32 0.2, %v386_v34 }
  0xb8   :  { %v395_v44 = vmul.f32 0.2, %v379_v41  ;;  %v394_v45 = vmul.f32 0.2, %v378_v42  ;;  %v4851_v40 = vmax.f32 %v386_v34, %v402_v39 }
  0xba   :  { %v4807_v48 = vmax.f32 %v379_v41, %v395_v44  ;;  %v4811_v50 = vmax.f32 %v378_v42, %v394_v45  ;;  %v4888_v44 = vld [vmem:[#allocation2 + $0x38] sm:$0xff] }
  0xbb   :  { %v4890_v45 = vld [vmem:[#allocation2 + $0x18] sm:$0xff] }
  0xbc   :  { %434 = vmax.xlane.f32.xlu1 %v4807_v48  ;;  %426 = vmax.xlane.f32.xlu2 %v4809_v49 }
  0xbd   :  { %432 = vmax.xlane.f32.xlu0 %v4811_v50  ;;  %v344_v51 = vpop.permute.xlu1 %343  ;;  %v339_v52 = vpop.permute.xlu0 %338 }
  0xbe   :  { %v382_v54 = vadd.f32 %v4785_v19, %v344_v51  ;;  %v381_v55 = vadd.f32 %v4785_v19, %v339_v52 }
  0xc0   :  { %v398_v57 = vmul.f32 0.2, %v382_v54  ;;  %v397_v58 = vmul.f32 0.2, %v381_v55 }
  0xc2   :  { %v4822_v60 = vmax.f32 %v382_v54, %v398_v57  ;;  %v4826_v62 = vmax.f32 %v381_v55, %v397_v58  ;;  %v4900_v55 = vld [vmem:[#allocation2 + $0x50] sm:$0xff] }
  0xc3   :  { %v4904_v57 = vld [vmem:[#allocation2 + $0x30] sm:$0xff] }
  0xc4   :  { %440 = vmax.xlane.f32.xlu1 %v4822_v60  ;;  %430 = vmax.xlane.f32.xlu2 %v4824_v61 }
  0xc5   :  { %438 = vmax.xlane.f32.xlu0 %v4826_v62  ;;  %v359_v0 = vpop.permute.xlu1 %358  ;;  %v354_v1 = vpop.permute.xlu0 %353 }
  0xc6   :  { %v385_v17 = vadd.f32 %v4785_v19, %v359_v0  ;;  %v384_v18 = vadd.f32 %v4785_v19, %v354_v1 }
  0xc8   :  { %v401_v21 = vmul.f32 0.2, %v385_v17  ;;  %v400_v22 = vmul.f32 0.2, %v384_v18 }
  0xca   :  { %v4834_v24 = vmax.f32 %v385_v17, %v401_v21  ;;  %v4838_v26 = vmax.f32 %v384_v18, %v400_v22  ;;  %v4922_v21 = vld [vmem:[#allocation2 + $0x40] sm:$0xff]  ;;  %v4924_v22 = vld [vmem:[#allocation2 + $0x48] sm:$0xff] }
  0xcc   :  { %446 = vmax.xlane.f32.xlu1 %v4834_v24  ;;  %436 = vmax.xlane.f32.xlu2 %v4836_v25 }
  0xcd   :  { %444 = vmax.xlane.f32.xlu0 %v4838_v26  ;;  %v369_v27 = vpop.permute.xlu0 %368 }
  0xce   :  { %v387_v30 = vadd.f32 %v4785_v19, %v369_v27  ;;  %v4864_v19 = vld [vmem:[#allocation2] sm:$0xff] }
  0xd0   :  { %v403_v33 = vmul.f32 0.2, %v387_v30 }
  0xd2   :  { %v4847_v37 = vmax.f32 %v387_v30, %v403_v33 }
  0xd4   :  { %442 = vmax.xlane.f32.xlu2 %v4845_v36 }
  0xd5   :  { %450 = vmax.xlane.f32.xlu0 %v4847_v37 }
  0xdc   :  { %448 = vmax.xlane.f32.xlu2 %v4851_v40 }
  0xe5   :  { %963 = vperm.xlu1 %4097, %v4720_v7   ;;  %v4866_v7 = vld [vmem:[#allocation2 + $0x10] sm:$0xff] }
  0xe9   :  { %959 = vperm.xlu0 %4096, %v4699_v3  }
  0xed   :  { %971 = vperm.xlu1 %4097, %v4715_v6  }
  0xf1   :  { %979 = vperm.xlu0 %4096, %v4725_v8  }
  0xf4   :  { %967 = vperm.xlu2 %4098, %v4694_v2  }
  0xf5   :  { %983 = vperm.xlu1 %4097, %v4738_v10   ;;  %v4878_v10 = vld [vmem:[#allocation2 + $0x8] sm:$0xff] }
  0xf9   :  { %4101 = vset.pattern.permute.xlu0 %v4551_v4 }
  0xfc   :  { %975 = vperm.xlu2 %4098, %v4706_v5   ;;  %v4876_v5 = vld [vmem:[#allocation2 + $0x20] sm:$0xff] }
  0xfd   :  { %4099 = vset.pattern.permute.xlu1 %v4551_v4 }
 0x104   :  { %4100 = vset.pattern.permute.xlu2 %v4551_v4 }
 0x11f   :  { %v421_v3 = vpop.xlane.xlu1 %420  ;;  %v425_v6 = vpop.xlane.xlu0 %424 }
 0x120   :  { %v4869_v8 = vmax.f32 %v4864_v19, %v421_v3  ;;  %v4872_v2 = vmax.f32 %v4866_v7, %v425_v6  ;;  %v4940_v3 = vld [vmem:[#allocation2 + $0x58] sm:$0xff]  ;;  %v4942_v6 = vld [vmem:[#allocation2 + $0x60] sm:$0xff] }
 0x122   :  { %7813 = vst [vmem:[#allocation8_spill] sm:$0xff] %v4869_v8  ;;  %528 = vperm.xlu0 %4101, %v4872_v2   ;;  %518 = vperm.xlu1 %4099, %v4869_v8   ;;  %v470_v18 = vsub.f32 %v4866_v7, %v4872_v2 }
 0x123   :  { %7814 = vst [vmem:[#allocation9_spill] sm:$0xff] %v4872_v2 }
 0x124   :  { %v488_v23 = vmul.f32 1.442695, %v470_v18  ;;  %v4961_v18 = vld [vmem:[#allocation2 + $0x70] sm:$0xff] }
 0x126   :  { %4115 = vpow2.f32 %v488_v23 }
 0x127   :  { %v429_v4 = vpop.xlane.xlu1 %428  ;;  %v423_v41 = vpop.xlane.xlu2 %422 }
 0x128   :  { %v4881_v42 = vmax.f32 %v4876_v5, %v429_v4  ;;  %v4884_v43 = vmax.f32 %v4878_v10, %v423_v41 }
 0x12a   :  { %7815 = vst [vmem:[#allocation10_spill] sm:$0xff] %v4881_v42  ;;  %538 = vperm.xlu0 %4101, %v4881_v42   ;;  %523 = vperm.xlu2 %4100, %v4884_v43   ;;  %v472_v34 = vsub.f32 %v4876_v5, %v4881_v42 }
 0x12b   :  { %7816 = vst [vmem:[#allocation11_spill] sm:$0xff] %v4884_v43 }
 0x12c   :  { %v492_v4 = vmul.f32 1.442695, %v472_v34 }
 0x12e   :  { %4117 = vpow2.f32 %v492_v4 }
 0x12f   :  { %v435_v46 = vpop.xlane.xlu1 %434  ;;  %v427_v47 = vpop.xlane.xlu2 %426 }
 0x130   :  { %v4893_v51 = vmax.f32 %v4888_v44, %v435_v46  ;;  %v4896_v52 = vmax.f32 %v4890_v45, %v427_v47  ;;  %v433_v54 = vpop.xlane.xlu0 %432  ;;  %v4947_v47 = vpop.eup %4115 }
 0x131   :  { %v4913_v1 = vmax.f32 %v4904_v57, %v433_v54  ;;  %7826 = vst [vmem:[#allocation21_spill] sm:$0xff] %v4947_v47 }
 0x132   :  { %7817 = vst [vmem:[#allocation12_spill] sm:$0xff] %v4893_v51  ;;  %553 = vperm.xlu0 %4101, %v4893_v51   ;;  %533 = vperm.xlu1 %4099, %v4896_v52  }
 0x133   :  { %7818 = vst [vmem:[#allocation13_spill] sm:$0xff] %v4896_v52 }
 0x134   :  { %7821 = vst [vmem:[#allocation16_spill] sm:$0xff] %v4913_v1  ;;  %v4968_v4 = vpop.eup %4117 }
 0x135   :  { %7829 = vst [vmem:[#allocation24_spill] sm:$0xff] %v4968_v4 }
 0x137   :  { %v441_v58 = vpop.xlane.xlu1 %440  ;;  %v431_v59 = vpop.xlane.xlu2 %430 }
 0x138   :  { %v4907_v63 = vmax.f32 %v4900_v55, %v441_v58  ;;  %v4910_v0 = vmax.f32 %v4902_v56, %v431_v59  ;;  %v439_v17 = vpop.xlane.xlu0 %438  ;;  %v468_v58 = vsub.f32 %v4864_v19, %v4869_v8  ;;  %v475_v59 = vsub.f32 %v4888_v44, %v4893_v51 }
 0x139   :  { %v4933_v33 = vmax.f32 %v4924_v22, %v439_v17  ;;  %v469_v17 = vsub.f32 %v4878_v10, %v4884_v43  ;;  %v471_v51 = vsub.f32 %v4890_v45, %v4896_v52 }
 0x13a   :  { %7819 = vst [vmem:[#allocation14_spill] sm:$0xff] %v4907_v63  ;;  %568 = vperm.xlu0 %4101, %v4907_v63   ;;  %543 = vperm.xlu2 %4100, %v4910_v0   ;;  %v484_v23 = vmul.f32 1.442695, %v468_v58  ;;  %v498_v34 = vmul.f32 1.442695, %v475_v59  ;;  %v478_v58 = vsub.f32 %v4900_v55, %v4907_v63  ;;  %v473_v59 = vsub.f32 %v4902_v56, %v4910_v0 }
 0x13b   :  { %7820 = vst [vmem:[#allocation15_spill] sm:$0xff] %v4910_v0  ;;  %548 = vperm.xlu1 %4099, %v4913_v1  }
 0x13c   :  { %7824 = vst [vmem:[#allocation19_spill] sm:$0xff] %v4933_v33  ;;  %4119 = vpow2.f32 %v484_v23 }
 0x13d   :  { %4121 = vpow2.f32 %v498_v34  ;;  %v474_v34 = vsub.f32 %v4904_v57, %v4913_v1 }
 0x13f   :  { %v447_v27 = vpop.xlane.xlu1 %446  ;;  %v437_v30 = vpop.xlane.xlu2 %436 }
 0x140   :  { %v4927_v31 = vmax.f32 %v4920_v20, %v447_v27  ;;  %v4930_v32 = vmax.f32 %v4922_v21, %v437_v30  ;;  %v445_v39 = vpop.xlane.xlu0 %444  ;;  %v4963_v30 = vld [vmem:[#allocation2 + $0x78] sm:$0xff] }
 0x141   :  { %v4950_v54 = vmax.f32 %v4942_v6, %v445_v39 }
 0x142   :  { %7822 = vst [vmem:[#allocation17_spill] sm:$0xff] %v4927_v31  ;;  %583 = vperm.xlu0 %4101, %v4927_v31   ;;  %558 = vperm.xlu2 %4100, %v4930_v32   ;;  %v4982_v23 = vpop.eup %4119 }
 0x143   :  { %7823 = vst [vmem:[#allocation18_spill] sm:$0xff] %v4930_v32  ;;  %563 = vperm.xlu1 %4099, %v4933_v33   ;;  %v4984_v2 = vpop.eup %4121 }
 0x144   :  { %7827 = vst [vmem:[#allocation22_spill] sm:$0xff] %v4950_v54 }
 0x145   :  { %7831 = vst [vmem:[#allocation26_spill] sm:$0xff] %v4982_v23 }
 0x146   :  { %7832 = vst [vmem:[#allocation27_spill] sm:$0xff] %v4984_v2 }
 0x147   :  { %v443_v41 = vpop.xlane.xlu2 %442 }
 0x148   :  { %v4945_v46 = vmax.f32 %v4940_v3, %v443_v41  ;;  %v451_v27 = vpop.xlane.xlu0 %450  ;;  %v486_v41 = vmul.f32 1.442695, %v469_v17  ;;  %v490_v17 = vmul.f32 1.442695, %v471_v51  ;;  %v481_v51 = vsub.f32 %v4920_v20, %v4927_v31 }
 0x14a   :  { %7825 = vst [vmem:[#allocation20_spill] sm:$0xff] %v4945_v46  ;;  %736 = vperm.xlu0 %4101, %v4947_v47   ;;  %573 = vperm.xlu2 %4100, %v4945_v46   ;;  %v4971_v47 = vmax.f32 %v4963_v30, %v451_v27  ;;  %4123 = vpow2.f32 %v486_v41  ;;  %v504_v27 = vmul.f32 1.442695, %v478_v58  ;;  %v476_v41 = vsub.f32 %v4922_v21, %v4930_v32 }
 0x14b   :  { %578 = vperm.xlu1 %4099, %v4950_v54   ;;  %4125 = vpow2.f32 %v490_v17  ;;  %v496_v58 = vmul.f32 1.442695, %v474_v34  ;;  %v4067_v34 = vld [vmem:[%s4639_s24 + $0x38] sm:$0xff] }
 0x14c   :  { %7830 = vst [vmem:[#allocation25_spill] sm:$0xff] %v4971_v47  ;;  %4127 = vpow2.f32 %v504_v27  ;;  %v500_v63 = vmul.f32 1.442695, %v476_v41  ;;  %v477_v27 = vsub.f32 %v4924_v22, %v4933_v33  ;;  %892 = vmatpush.bf16.msra.mxu0 %v4067_v34 }
 0x14f   :  { %v449_v39 = vpop.xlane.xlu2 %448 }
 0x150   :  { %v4966_v53 = vmax.f32 %v4961_v18, %v449_v39  ;;  %v494_v39 = vmul.f32 1.442695, %v473_v59  ;;  %v510_v59 = vmul.f32 1.442695, %v481_v51  ;;  %v502_v51 = vmul.f32 1.442695, %v477_v27 }
 0x151   :  { %v4065_v27 = vld [vmem:[%s4639_s24 + $0x28] sm:$0xff] }
 0x152   :  { %7828 = vst [vmem:[#allocation23_spill] sm:$0xff] %v4966_v53  ;;  %746 = vperm.xlu0 %4101, %v4968_v4   ;;  %588 = vperm.xlu2 %4100, %v4966_v53   ;;  %v4986_v4 = vpop.eup %4123  ;;  %4129 = vpow2.f32 %v494_v39  ;;  %v479_v39 = vsub.f32 %v4940_v3, %v4945_v46 }
 0x153   :  { %593 = vperm.xlu1 %4099, %v4971_v47   ;;  %7833 = vst [vmem:[#allocation28_spill] sm:$0xff] %v4986_v4  ;;  %v4997_v17 = vpop.eup %4125  ;;  %4131 = vpow2.f32 %v496_v58 }
 0x154   :  { %7834 = vst [vmem:[#allocation29_spill] sm:$0xff] %v4997_v17  ;;  %v4999_v1 = vpop.eup %4127  ;;  %4133 = vpow2.f32 %v510_v59  ;;  %v506_v58 = vmul.f32 1.442695, %v479_v39  ;;  %v482_v59 = vsub.f32 %v4961_v18, %v4966_v53 }
 0x155   :  { %7835 = vst [vmem:[#allocation30_spill] sm:$0xff] %v4999_v1  ;;  %4135 = vpow2.f32 %v500_v63  ;;  %v480_v63 = vsub.f32 %v4942_v6, %v4950_v54 }
 0x156   :  { %4137 = vpow2.f32 %v502_v51  ;;  %v512_v34 = vmul.f32 1.442695, %v482_v59 }
 0x157   :  { %4139 = vpow2.f32 %v506_v58  ;;  %v508_v39 = vmul.f32 1.442695, %v480_v63  ;;  %v4063_v58 = vld [vmem:[%s4639_s24 + $0x18] sm:$0xff] }
 0x159   :  { %4141 = vpow2.f32 %v508_v39 }
 0x15a   :  { %761 = vperm.xlu0 %4101, %v4984_v2   ;;  %726 = vperm.xlu2 %4100, %v4982_v23   ;;  %v5001_v23 = vpop.eup %4129  ;;  %4143 = vpow2.f32 %v512_v34 }
 0x15b   :  { %731 = vperm.xlu1 %4099, %v4986_v4   ;;  %7836 = vst [vmem:[#allocation31_spill] sm:$0xff] %v5001_v23  ;;  %v5011_v41 = vpop.eup %4131  ;;  %v5059_v34 = vpop.permute.xlu0 %959 }
 0x15c   :  { %7837 = vst [vmem:[#allocation32_spill] sm:$0xff] %v5011_v41 }
 0x162   :  { %776 = vperm.xlu0 %4101, %v4999_v1   ;;  %741 = vperm.xlu2 %4100, %v4997_v17   ;;  %v5013_v1 = vpop.eup %4133  ;;  %v4066_v17 = vld [vmem:[%s4639_s24 + $0x30] sm:$0xff] }
 0x163   :  { %751 = vperm.xlu1 %4099, %v5001_v23   ;;  %7838 = vst [vmem:[#allocation33_spill] sm:$0xff] %v5013_v1  ;;  %v5016_v2 = vpop.eup %4135  ;;  %893 = vmatpush.bf16.msra.mxu0 %v4066_v17  ;;  %v4064_v23 = vld [vmem:[%s4639_s24 + $0x20] sm:$0xff]  ;;  %v483_v17 = vsub.f32 %v4963_v30, %v4971_v47 }
 0x164   :  { %7839 = vst [vmem:[#allocation34_spill] sm:$0xff] %v5016_v2 }
 0x165   :  { %v514_v63 = vmul.f32 1.442695, %v483_v17 }
 0x167   :  { %894 = vmatpush.bf16.msra.mxu0 %v4065_v27  ;;  %v5040_v27 = vpop.permute.xlu1 %963  ;;  %4145 = vpow2.f32 %v514_v63 }
 0x16a   :  { %791 = vperm.xlu0 %4101, %v5013_v1   ;;  %756 = vperm.xlu2 %4100, %v5011_v41   ;;  %v5027_v1 = vpop.eup %4137  ;;  %v7842_v41 = vmov 1  }
 0x16b   :  { %766 = vperm.xlu1 %4099, %v5016_v2   ;;  %7840 = vst [vmem:[#allocation35_spill] sm:$0xff] %v5027_v1  ;;  %v5029_v51 = vpop.eup %4139  ;;  %895 = vmatpush.bf16.msra.mxu0 %v4064_v23  ;;  %v4062_v2 = vld [vmem:[%s4639_s24 + $0x10] sm:$0xff]  ;;  %v5057_v23 = vld [vmem:[%s4639_s24] sm:$0xff] }
 0x16c   :  { %7841 = vst [vmem:[#allocation36_spill] sm:$0xff] %v5029_v51  ;;  %v5038_v59 = vpop.eup %4141 }
 0x16d   :  { %7843 = vst [vmem:[#allocation37_spill] sm:$0xff] %v5038_v59  ;;  %v5043_v39 = vpop.eup %4143 }
 0x16e   :  { %7844 = vst [vmem:[#allocation38_spill] sm:$0xff] %v5043_v39  ;;  %v5054_v30 = vpop.eup %4145 }
 0x16f   :  { %896 = vmatpush.bf16.msra.mxu0 %v4063_v58  ;;  %7845 = vst [vmem:[#allocation39_spill] sm:$0xff] %v5054_v30  ;;  %v5062_v17 = vpop.permute.xlu1 %971 }
 0x172   :  { %4103 = vset.pattern.permute.xlu0 %v7842_v41  ;;  %771 = vperm.xlu2 %4100, %v5027_v1   ;;  %v5045_v1 = vpop.permute.xlu2 %967 }
 0x173   :  { %781 = vperm.xlu1 %4099, %v5029_v51   ;;  %991 = vperm.xlu0 %4103, %v4743_v11   ;;  %v5051_v11 = vld [vmem:[%s4639_s24 + $0x8] sm:$0xff] }
 0x174   :  { %897 = vmatpush.bf16.msra.mxu0 %v4062_v2  ;;  %v5071_v2 = vpop.permute.xlu0 %979 }
 0x177   :  { %v5074_v63 = vpop.permute.xlu1 %983 }
 0x178   :  { %898 = vmatpush.bf16.msra.mxu0 %v5051_v11 }
 0x17a   :  { %786 = vperm.xlu2 %4100, %v5038_v59   ;;  %v5065_v58 = vpop.permute.xlu2 %975 }
 0x17b   :  { %796 = vperm.xlu1 %4099, %v5043_v39   ;;  %1003 = vperm.xlu0 %4103, %v4761_v14  }
 0x17c   :  { %899 = vmatpush.bf16.msra.mxu0 %v5057_v23 }
 0x182   :  { %801 = vperm.xlu2 %4100, %v5054_v30  }
 0x183   :  { %4104 = vset.pattern.permute.xlu1 %v7842_v41 }
 0x184   :  { %995 = vperm.xlu1 %4104, %v4756_v13   ;;  %v524_v14 = vpop.permute.xlu2 %523 }
 0x185   :  { %v597_v39 = vsub.f32 %v4800_v38, %v524_v14 }
 0x187   :  { %v614_v13 = vmul.f32 1.442695, %v597_v39 }
 0x189   :  { %4147 = vpow2.f32 %v614_v13 }
 0x18a   :  { %4102 = vset.pattern.permute.xlu2 %v7842_v41  ;;  %v190_v41 = vld [vmem:[%s4644_s27] sm:$0xff] }
 0x18b   :  { %987 = vperm.xlu2 %4102, %v4733_v9   ;;  %v194_v9 = vunpack.c.0.s8 %v190_v41  ;;  %v195_v31 = vunpack.c.1.s8 %v190_v41 }
 0x18c   :  { %1007 = vperm.xlu1 %4104, %v4774_v16  }
 0x18d   :  { %v5081_v32 = vcvt.s32.f32 %v194_v9  ;;  %v5083_v38 = vcvt.s32.f32 %v195_v31 }
 0x18f   :  { %7846 = vst [vmem:[#allocation40_spill] sm:$0xff] %v5081_v32 }
 0x193   :  { %999 = vperm.xlu2 %4102, %v4751_v12   ;;  %v4148_v12 = vpop.eup %4147 }
 0x194   :  { %v529_v51 = vpop.permute.xlu0 %528  ;;  %v544_v59 = vpop.permute.xlu2 %543 }
 0x195   :  { %v519_v4 = vpop.permute.xlu1 %518  ;;  %v598_v39 = vsub.f32 %v4790_v28, %v529_v51  ;;  %v601_v28 = vsub.f32 %v4824_v61, %v544_v59  ;;  %v197_v51 = vunpack.c.3.s8 %v190_v41  ;;  %v5108_v59 = vld [vmem:[%s4644_s27 + $0x8] sm:$0xff] }
 0x196   :  { %v596_v53 = vsub.f32 %v4792_v29, %v519_v4 }
 0x197   :  { %v616_v13 = vmul.f32 1.442695, %v598_v39  ;;  %v622_v42 = vmul.f32 1.442695, %v601_v28 }
 0x198   :  { %v612_v47 = vmul.f32 1.442695, %v596_v53  ;;  %v5088_v53 = vmul.f32 %v4148_v12, %v5083_v38  ;;  %v196_v12 = vunpack.c.2.s8 %v190_v41 }
 0x19a   :  { %4149 = vpow2.f32 %v612_v47 }
 0x19b   :  { %1011 = vperm.xlu2 %4102, %v4769_v15   ;;  %4151 = vpow2.f32 %v616_v13 }
 0x19c   :  { %v539_v16 = vpop.permute.xlu0 %538  ;;  %v559_v46 = vpop.permute.xlu2 %558 }
 0x19d   :  { %v600_v13 = vsub.f32 %v4797_v35, %v539_v16 }
 0x19f   :  { %v620_v28 = vmul.f32 1.442695, %v600_v13 }
 0x1a0   :  { %v4150_v14 = vpop.eup %4149 }
 0x1a1   :  { %v644_v29 = vmul.f32 %v4150_v14, %v5081_v32 }
 0x1a3   :  { %v820_v15 = vpack.c.bf16 %v5088_v53, %v644_v29 }
 0x1a4   :  { %v5090_v4 = vpop.permute.xlu0 %553  ;;  %v5092_v47 = vpop.permute.xlu2 %573 }
 0x1a5   :  { %v534_v9 = vpop.permute.xlu1 %533  ;;  %676 = vadd.xlane.f32.xlu0 %v644_v29  ;;  %900 = vmatmul.bf16.vlgmr.msra.gmra.mxu0 %v820_v15  ;;  %v5102_v29 = vcvt.s32.f32 %v197_v51  ;;  %v4152_v15 = vpop.eup %4151  ;;  %v199_v51 = vunpack.c.1.s8 %v5108_v59 }
 0x1a6   :  { %v599_v31 = vsub.f32 %v4809_v49, %v534_v9  ;;  %v5104_v49 = vcvt.s32.f32 %v196_v12 }
 0x1a7   :  { %7847 = vst [vmem:[#allocation41_spill] sm:$0xff] %v5102_v29  ;;  %v5122_v13 = vcvt.s32.f32 %v199_v51 }
 0x1a8   :  { %v618_v54 = vmul.f32 1.442695, %v599_v31  ;;  %v646_v41 = vmul.f32 %v4152_v15, %v5104_v49  ;;  %v200_v31 = vunpack.c.2.s8 %v5108_v59 }
 0x1aa   :  { %4153 = vpow2.f32 %v618_v54 }
 0x1ab   :  { %4155 = vpow2.f32 %v622_v42 }
 0x1ac   :  { %v5097_v14 = vpop.permute.xlu0 %568  ;;  %v5099_v33 = vpop.permute.xlu2 %588 }
 0x1ad   :  { %v549_v0 = vpop.permute.xlu1 %548 }
 0x1ae   :  { %v602_v39 = vsub.f32 %v4811_v50, %v549_v0  ;;  %v604_v50 = vsub.f32 %v4836_v25, %v559_v46 }
 0x1b0   :  { %v624_v9 = vmul.f32 1.442695, %v602_v39  ;;  %v4154_v61 = vpop.eup %4153  ;;  %v5120_v39 = vcvt.s32.f32 %v200_v31  ;;  %v628_v15 = vmul.f32 1.442695, %v604_v50 }
 0x1b1   :  { %v647_v54 = vmul.f32 %v4154_v61, %v5102_v29  ;;  %v4156_v25 = vpop.eup %4155  ;;  %v198_v61 = vunpack.c.0.s8 %v5108_v59 }
 0x1b2   :  { %4157 = vpow2.f32 %v624_v9  ;;  %v5125_v9 = vld [vmem:[%s4644_s27 + $0x10] sm:$0xff]  ;;  %v649_v50 = vmul.f32 %v4156_v25, %v5122_v13 }
 0x1b3   :  { %682 = vadd.xlane.f32.xlu0 %v647_v54  ;;  %v821_v16 = vpack.c.bf16 %v647_v54, %v646_v41  ;;  %4159 = vpow2.f32 %v620_v28  ;;  %v202_v51 = vunpack.c.0.s8 %v5125_v9 }
 0x1b4   :  { %v5114_v0 = vpop.permute.xlu0 %583  ;;  %v5116_v35 = vpop.permute.xlu2 %726 }
 0x1b5   :  { %7848 = vst [vmem:[#allocation42_spill] sm:$0xff] %v5116_v35  ;;  %v564_v42 = vpop.permute.xlu1 %563  ;;  %905 = vmatmul.bf16.gmra.mxu0 %v821_v16  ;;  %v203_v35 = vunpack.c.1.s8 %v5125_v9  ;;  %v5140_v16 = vcvt.s32.f32 %v198_v61  ;;  %v603_v61 = vsub.f32 %v4807_v48, %v5090_v4  ;;  %v205_v4 = vunpack.c.3.s8 %v5125_v9 }
 0x1b6   :  { %v605_v12 = vsub.f32 %v4826_v62, %v564_v42  ;;  %680 = vadd.xlane.f32.xlu1 %v646_v41  ;;  %v607_v41 = vsub.f32 %v4845_v36, %v5092_v47 }
 0x1b8   :  { %v630_v46 = vmul.f32 1.442695, %v605_v12  ;;  %v4158_v54 = vpop.eup %4157  ;;  %v634_v36 = vmul.f32 1.442695, %v607_v41 }
 0x1b9   :  { %v5130_v62 = vmul.f32 %v4158_v54, %v5120_v39  ;;  %v4160_v42 = vpop.eup %4159 }
 0x1ba   :  { %4161 = vpow2.f32 %v630_v46  ;;  %v5143_v46 = vcvt.s32.f32 %v203_v35  ;;  %v648_v43 = vmul.f32 %v4160_v42, %v5140_v16 }
 0x1bb   :  { %4163 = vpow2.f32 %v628_v15  ;;  %688 = vadd.xlane.f32.xlu0 %v5130_v62 }
 0x1bc   :  { %v5135_v31 = vpop.permute.xlu0 %736  ;;  %v5137_v28 = vpop.permute.xlu2 %741  ;;  %7851 = vst [vmem:[#allocation45_spill] sm:$0xff] %v5143_v46  ;;  %v822_v42 = vpack.c.bf16 %v649_v50, %v648_v43 }
 0x1bd   :  { %7849 = vst [vmem:[#allocation43_spill] sm:$0xff] %v5135_v31  ;;  %v579_v12 = vpop.permute.xlu1 %578  ;;  %v5147_v31 = vcvt.s32.f32 %v202_v51 }
 0x1be   :  { %7850 = vst [vmem:[#allocation44_spill] sm:$0xff] %v5137_v28  ;;  %v608_v15 = vsub.f32 %v4838_v26, %v579_v12  ;;  %686 = vadd.xlane.f32.xlu1 %v649_v50  ;;  %v5150_v28 = vld [vmem:[%s4644_s27 + $0x18] sm:$0xff]  ;;  %v610_v26 = vsub.f32 %v4851_v40, %v5099_v33  ;;  %v626_v12 = vmul.f32 1.442695, %v603_v61  ;;  %v606_v50 = vsub.f32 %v4822_v60, %v5097_v14 }
 0x1bf   :  { %7852 = vst [vmem:[#allocation46_spill] sm:$0xff] %v5147_v31  ;;  %v206_v35 = vunpack.c.0.s8 %v5150_v28  ;;  %v209_v61 = vunpack.c.3.s8 %v5150_v28  ;;  %v208_v60 = vunpack.c.2.s8 %v5150_v28 }
 0x1c0   :  { %v4162_v47 = vpop.eup %4161  ;;  %v636_v54 = vmul.f32 1.442695, %v608_v15  ;;  %v640_v33 = vmul.f32 1.442695, %v610_v26  ;;  %v632_v14 = vmul.f32 1.442695, %v606_v50 }
 0x1c1   :  { %v4164_v25 = vpop.eup %4163  ;;  %v5155_v30 = vmul.f32 %v4162_v47, %v5143_v46 }
 0x1c2   :  { %4165 = vpow2.f32 %v636_v54  ;;  %v5167_v48 = vmul.f32 %v4164_v25, %v5147_v31 }
 0x1c3   :  { %4167 = vpow2.f32 %v634_v36  ;;  %694 = vadd.xlane.f32.xlu0 %v5155_v30  ;;  %v5170_v36 = vcvt.s32.f32 %v206_v35 }
 0x1c4   :  { %v5161_v41 = vpop.permute.xlu0 %746  ;;  %v5163_v51 = vpop.permute.xlu2 %756  ;;  %678 = vadd.xlane.f32.xlu2 %v5088_v53  ;;  %4169 = vpow2.f32 %v626_v12  ;;  %v5194_v12 = vcvt.s32.f32 %v209_v61 }
 0x1c5   :  { %7853 = vst [vmem:[#allocation47_spill] sm:$0xff] %v5161_v41  ;;  %v594_v15 = vpop.permute.xlu1 %593  ;;  %910 = vmatmul.bf16.gmra.mxu0 %v822_v42  ;;  %v5174_v41 = vcvt.s32.f32 %v205_v4 }
 0x1c6   :  { %7854 = vst [vmem:[#allocation48_spill] sm:$0xff] %v5163_v51  ;;  %v611_v40 = vsub.f32 %v4847_v37, %v594_v15  ;;  %692 = vadd.xlane.f32.xlu1 %v5167_v48  ;;  %v201_v37 = vunpack.c.3.s8 %v5108_v59 }
 0x1c7   :  { %7855 = vst [vmem:[#allocation49_spill] sm:$0xff] %v5170_v36 }
 0x1c8   :  { %v4166_v47 = vpop.eup %4165  ;;  %v642_v54 = vmul.f32 1.442695, %v611_v40  ;;  %7856 = vst [vmem:[#allocation50_spill] sm:$0xff] %v5174_v41  ;;  %v5197_v59 = vcvt.s32.f32 %v201_v37  ;;  %v204_v37 = vunpack.c.2.s8 %v5125_v9 }
 0x1c9   :  { %v4168_v53 = vpop.eup %4167  ;;  %v5179_v25 = vmul.f32 %v4166_v47, %v5170_v36  ;;  %7860 = vst [vmem:[#allocation54_spill] sm:$0xff] %v5194_v12  ;;  %v5202_v47 = vcvt.s32.f32 %v208_v60 }
 0x1ca   :  { %4171 = vpow2.f32 %v642_v54  ;;  %v5189_v42 = vmul.f32 %v4168_v53, %v5174_v41  ;;  %v4170_v15 = vpop.eup %4169  ;;  %v609_v54 = vsub.f32 %v4834_v24, %v5114_v0 }
 0x1cb   :  { %4173 = vpow2.f32 %v640_v33  ;;  %700 = vadd.xlane.f32.xlu0 %v5179_v25  ;;  %v5200_v33 = vld [vmem:[%s4633_s21 + $0x1] ss:$0 sm:$0xff]  ;;  %7861 = vst [vmem:[#allocation55_spill] sm:$0xff] %v5202_v47  ;;  %v651_v61 = vmul.f32 %v4170_v15, %v5197_v59 }
 0x1cc   :  { %v5184_v35 = vpop.permute.xlu0 %761  ;;  %v5186_v26 = vpop.permute.xlu2 %771  ;;  %684 = vadd.xlane.f32.xlu2 %v648_v43  ;;  %4175 = vpow2.f32 %v632_v14  ;;  %v1024_v50 = vadd.f32 %v5200_v33, %v5040_v27  ;;  %v638_v27 = vmul.f32 1.442695, %v609_v54  ;;  %v1028_v54 = vadd.f32 %v5200_v33, %v5071_v2 }
 0x1cd   :  { %7857 = vst [vmem:[#allocation51_spill] sm:$0xff] %v5184_v35  ;;  %v5192_v4 = vpop.permute.xlu1 %731  ;;  %v823_v24 = vpack.c.bf16 %v651_v61, %v5130_v62  ;;  %v1023_v2 = vadd.f32 %v5200_v33, %v5059_v34 }
 0x1ce   :  { %7858 = vst [vmem:[#allocation52_spill] sm:$0xff] %v5186_v26  ;;  %698 = vadd.xlane.f32.xlu1 %v5189_v42  ;;  %v1025_v26 = vadd.f32 %v5200_v33, %v5045_v1  ;;  %v1040_v9 = vmul.f32 0.2, %v1024_v50  ;;  %v5227_v1 = vcvt.s32.f32 %v204_v37  ;;  %4177 = vpow2.f32 %v638_v27 }
 0x1cf   :  { %7859 = vst [vmem:[#allocation53_spill] sm:$0xff] %v5192_v4  ;;  %v1039_v34 = vmul.f32 0.2, %v1023_v2 }
 0x1d0   :  { %v4172_v40 = vpop.eup %4171  ;;  %7865 = vst [vmem:[#allocation59_spill] sm:$0xff] %v5227_v1  ;;  %v1041_v35 = vmul.f32 0.2, %v1025_v26 }
 0x1d1   :  { %v4174_v43 = vpop.eup %4173  ;;  %v5207_v53 = vmul.f32 %v4172_v40, %v5194_v12 }
 0x1d2   :  { %v5222_v0 = vmul.f32 %v4174_v43, %v5202_v47  ;;  %v4176_v15 = vpop.eup %4175  ;;  %v207_v43 = vunpack.c.1.s8 %v5150_v28 }
 0x1d3   :  { %706 = vadd.xlane.f32.xlu0 %v5207_v53  ;;  %v654_v62 = vmul.f32 %v4176_v15, %v5227_v1 }
 0x1d4   :  { %v5216_v60 = vpop.permute.xlu0 %776  ;;  %v5218_v14 = vpop.permute.xlu2 %786  ;;  %690 = vadd.xlane.f32.xlu2 %v651_v61 }
 0x1d5   :  { %7862 = vst [vmem:[#allocation56_spill] sm:$0xff] %v5216_v60  ;;  %v5224_v40 = vpop.permute.xlu1 %751  ;;  %915 = vmatmul.bf16.gmra.mxu0 %v823_v24  ;;  %v5231_v60 = vmax.f32 %v1024_v50, %v1040_v9  ;;  %v5242_v24 = vmax.f32 %v1025_v26, %v1041_v35  ;;  %v5247_v50 = vcvt.s32.f32 %v207_v43  ;;  %v4178_v28 = vpop.eup %4177  ;;  %v1044_v9 = vmul.f32 0.2, %v1028_v54 }
 0x1d6   :  { %7863 = vst [vmem:[#allocation57_spill] sm:$0xff] %v5218_v14  ;;  %704 = vadd.xlane.f32.xlu1 %v5222_v0  ;;  %v1027_v14 = vadd.f32 %v5200_v33, %v5065_v58  ;;  %v824_v35 = vpack.c.bf16 %v5155_v30, %v5167_v48  ;;  %v5266_v30 = vmax.f32 %v1023_v2, %v1039_v34 }
 0x1d7   :  { %7864 = vst [vmem:[#allocation58_spill] sm:$0xff] %v5224_v40  ;;  %v5257_v26 = vmax.f32 %v1028_v54, %v1044_v9  ;;  %v1026_v40 = vadd.f32 %v5200_v33, %v5062_v17  ;;  %v1029_v34 = vadd.f32 %v5200_v33, %v5074_v63 }
 0x1d8   :  { %v1043_v58 = vmul.f32 0.2, %v1027_v14  ;;  %7869 = vst [vmem:[#allocation63_spill] sm:$0xff] %v5247_v50 }
 0x1da   :  { %v5251_v15 = vmax.f32 %v1027_v14, %v1043_v58 }
 0x1db   :  { %1073 = vmax.xlane.f32.xlu0 %v5231_v60 }
 0x1dc   :  { %v5238_v61 = vpop.permute.xlu0 %791  ;;  %v5240_v37 = vpop.permute.xlu2 %801  ;;  %696 = vadd.xlane.f32.xlu2 %v654_v62 }
 0x1dd   :  { %7866 = vst [vmem:[#allocation60_spill] sm:$0xff] %v5238_v61  ;;  %v5244_v27 = vpop.permute.xlu1 %766  ;;  %v657_v61 = vmul.f32 %v4178_v28, %v5247_v50 }
 0x1de   :  { %7867 = vst [vmem:[#allocation61_spill] sm:$0xff] %v5240_v37  ;;  %1075 = vmax.xlane.f32.xlu1 %v5242_v24 }
 0x1df   :  { %7868 = vst [vmem:[#allocation62_spill] sm:$0xff] %v5244_v27 }
 0x1e3   :  { %1079 = vmax.xlane.f32.xlu0 %v5251_v15 }
 0x1e4   :  { %702 = vadd.xlane.f32.xlu2 %v657_v61 }
 0x1e5   :  { %v5259_v37 = vpop.permute.xlu1 %781  ;;  %v992_v43 = vpop.permute.xlu0 %991  ;;  %920 = vmatmul.bf16.gmra.mxu0 %v824_v35 }
 0x1e6   :  { %7870 = vst [vmem:[#allocation64_spill] sm:$0xff] %v5259_v37  ;;  %v1031_v27 = vadd.f32 %v5200_v33, %v992_v43  ;;  %v988_v51 = vpop.permute.xlu2 %987  ;;  %1081 = vmax.xlane.f32.xlu1 %v5257_v26  ;;  %v1042_v37 = vmul.f32 0.2, %v1026_v40 }
 0x1e7   :  { %v1030_v14 = vadd.f32 %v5200_v33, %v988_v51 }
 0x1e8   :  { %v1047_v58 = vmul.f32 0.2, %v1031_v27 }
 0x1e9   :  { %v1046_v28 = vmul.f32 0.2, %v1030_v14 }
 0x1ea   :  { %v5268_v48 = vmax.f32 %v1031_v27, %v1047_v58 }
 0x1eb   :  { %v5270_v54 = vmax.f32 %v1030_v14, %v1046_v28  ;;  %v5281_v14 = vmax.f32 %v1026_v40, %v1042_v37 }
 0x1ec   :  { %1071 = vmax.xlane.f32.xlu2 %v5266_v30 }
 0x1ed   :  { %1085 = vmax.xlane.f32.xlu0 %v5270_v54  ;;  %v1004_v9 = vpop.permute.xlu0 %1003  ;;  %v5274_v35 = vpop.permute.xlu1 %796 }
 0x1ee   :  { %7871 = vst [vmem:[#allocation65_spill] sm:$0xff] %v5274_v35  ;;  %v1034_v51 = vadd.f32 %v5200_v33, %v1004_v9  ;;  %v1000_v43 = vpop.permute.xlu2 %999  ;;  %1087 = vmax.xlane.f32.xlu1 %v5268_v48  ;;  %v825_v9 = vpack.c.bf16 %v5189_v42, %v654_v62 }
 0x1ef   :  { %v1033_v17 = vadd.f32 %v5200_v33, %v1000_v43  ;;  %v1045_v43 = vmul.f32 0.2, %v1029_v34 }
 0x1f0   :  { %v1050_v2 = vmul.f32 0.2, %v1034_v51 }
 0x1f1   :  { %v1049_v27 = vmul.f32 0.2, %v1033_v17 }
 0x1f2   :  { %v5283_v58 = vmax.f32 %v1034_v51, %v1050_v2  ;;  %v5293_v51 = vmax.f32 %v1029_v34, %v1045_v43  ;;  %v827_v43 = vpack.c.bf16 %v5207_v53, %v5222_v0 }
 0x1f3   :  { %v5285_v28 = vmax.f32 %v1033_v17, %v1049_v27 }
 0x1f4   :  { %1077 = vmax.xlane.f32.xlu2 %v5281_v14 }
 0x1f5   :  { %1091 = vmax.xlane.f32.xlu0 %v5285_v28  ;;  %925 = vmatmul.bf16.gmra.mxu0 %v825_v9  ;;  %v5310_v9 = vld [vmem:[%s7693_s4 + $0x70] sm:$0xff] }
 0x1f6   :  { %v1012_v35 = vpop.permute.xlu2 %1011  ;;  %1093 = vmax.xlane.f32.xlu1 %v5283_v58  ;;  %v996_v4 = vpop.permute.xlu1 %995 }
 0x1f7   :  { %v1036_v63 = vadd.f32 %v5200_v33, %v1012_v35  ;;  %v1032_v40 = vadd.f32 %v5200_v33, %v996_v4  ;;  %v826_v35 = vpack.c.bf16 %v657_v61, %v5179_v25 }
 0x1f9   :  { %v1052_v37 = vmul.f32 0.2, %v1036_v63  ;;  %v1048_v42 = vmul.f32 0.2, %v1032_v40 }
 0x1fb   :  { %v5295_v17 = vmax.f32 %v1036_v63, %v1052_v37  ;;  %v5299_v2 = vmax.f32 %v1032_v40, %v1048_v42 }
 0x1fc   :  { %1083 = vmax.xlane.f32.xlu2 %v5293_v51 }
 0x1fd   :  { %1097 = vmax.xlane.f32.xlu0 %v5295_v17 }
 0x1fe   :  { %v1008_v62 = vpop.permute.xlu1 %1007 }
 0x1ff   :  { %v1035_v27 = vadd.f32 %v5200_v33, %v1008_v62 }
 0x201   :  { %v1051_v4 = vmul.f32 0.2, %v1035_v27 }
 0x203   :  { %v5304_v34 = vmax.f32 %v1035_v27, %v1051_v4 }
 0x204   :  { %1089 = vmax.xlane.f32.xlu2 %v5299_v2 }
 0x205   :  { %930 = vmatmul.bf16.gmra.mxu0 %v826_v35 }
 0x20c   :  { %1095 = vmax.xlane.f32.xlu2 %v5304_v34 }
 0x211   :  { %1015 = vperm.xlu0 %4103, %v5310_v9  }
 0x215   :  { %935 = vmatmul.bf16.gmra.mxu0 %v827_v43 }
 0x218   :  { %v5315_v63 = vpop.xlane.xlu0 %676 }
 0x219   :  { %7872 = vst [vmem:[#allocation66_spill] sm:$0xff] %v5315_v63 }
 0x226   :  { %v5317_v25 = vpop.xlane.xlu0 %682 }
 0x227   :  { %7873 = vst [vmem:[#allocation67_spill] sm:$0xff] %v5317_v25 }
 0x229   :  { %v5319_v61 = vpop.xlane.xlu1 %680 }
 0x22a   :  { %7874 = vst [vmem:[#allocation68_spill] sm:$0xff] %v5319_v61 }
 0x22e   :  { %v5321_v40 = vpop.xlane.xlu0 %688 }
 0x22f   :  { %7875 = vst [vmem:[#allocation69_spill] sm:$0xff] %v5321_v40 }
 0x231   :  { %v5323_v37 = vpop.xlane.xlu1 %686 }
 0x232   :  { %7876 = vst [vmem:[#allocation70_spill] sm:$0xff] %v5323_v37 }
 0x236   :  { %v5325_v42 = vpop.xlane.xlu0 %694 }
 0x237   :  { %7877 = vst [vmem:[#allocation71_spill] sm:$0xff] %v5325_v42  ;;  %v5327_v62 = vpop.xlane.xlu2 %678 }
 0x238   :  { %7878 = vst [vmem:[#allocation72_spill] sm:$0xff] %v5327_v62 }
 0x239   :  { %v5331_v35 = vpop.xlane.xlu1 %692 }
 0x23a   :  { %7880 = vst [vmem:[#allocation74_spill] sm:$0xff] %v5331_v35 }
 0x23e   :  { %v5333_v53 = vpop.xlane.xlu0 %700 }
 0x23f   :  { %v5329_v27 = vpop.xlane.xlu2 %684  ;;  %7881 = vst [vmem:[#allocation75_spill] sm:$0xff] %v5333_v53 }
 0x240   :  { %7879 = vst [vmem:[#allocation73_spill] sm:$0xff] %v5329_v27 }
 0x241   :  { %v5337_v4 = vpop.xlane.xlu1 %698 }
 0x242   :  { %7883 = vst [vmem:[#allocation77_spill] sm:$0xff] %v5337_v4 }
 0x246   :  { %v5339_v43 = vpop.xlane.xlu0 %706 }
 0x247   :  { %v5335_v0 = vpop.xlane.xlu2 %690  ;;  %7884 = vst [vmem:[#allocation78_spill] sm:$0xff] %v5339_v43 }
 0x248   :  { %7882 = vst [vmem:[#allocation76_spill] sm:$0xff] %v5335_v0 }
 0x249   :  { %v5343_v63 = vpop.xlane.xlu1 %704 }
 0x24a   :  { %7886 = vst [vmem:[#allocation80_spill] sm:$0xff] %v5343_v63 }
 0x24e   :  { %v1074_v37 = vpop.xlane.xlu0 %1073 }
 0x24f   :  { %v5341_v25 = vpop.xlane.xlu2 %696 }
 0x250   :  { %7885 = vst [vmem:[#allocation79_spill] sm:$0xff] %v5341_v25 }
 0x251   :  { %v5347_v40 = vpop.xlane.xlu1 %1075 }
 0x256   :  { %v1080_v27 = vpop.xlane.xlu0 %1079 }
 0x257   :  { %v5345_v42 = vpop.xlane.xlu2 %702 }
 0x258   :  { %7887 = vst [vmem:[#allocation81_spill] sm:$0xff] %v5345_v42 }
 0x259   :  { %v1082_v25 = vpop.xlane.xlu1 %1081 }
 0x25a   :  { %v5358_v63 = vmax.f32 %v4902_v56, %v1082_v25 }
 0x25c   :  { %7888 = vst [vmem:[#allocation82_spill] sm:$0xff] %v5358_v63 }
 0x25f   :  { %v1072_v62 = vpop.xlane.xlu2 %1071 }
 0x260   :  { %v5350_v35 = vmax.f32 %v4864_v19, %v1072_v62  ;;  %v1086_v53 = vpop.xlane.xlu0 %1085 }
 0x261   :  { %v1088_v61 = vpop.xlane.xlu1 %1087 }
 0x262   :  { %1169 = vperm.xlu0 %4103, %v5350_v35   ;;  %v5362_v19 = vmax.f32 %v4922_v21, %v1088_v61  ;;  %v5376_v21 = vld [vmem:[%s7693_s4 + $0x78] sm:$0xff]  ;;  %v5380_v61 = vmax.f32 %v4878_v10, %v1074_v37 }
 0x264   :  { %7889 = vst [vmem:[#allocation83_spill] sm:$0xff] %v5362_v19 }
 0x265   :  { %7891 = vst [vmem:[#allocation85_spill] sm:$0xff] %v5380_v61 }
 0x267   :  { %v1078_v4 = vpop.xlane.xlu2 %1077 }
 0x268   :  { %v5354_v0 = vmax.f32 %v4890_v45, %v1078_v4  ;;  %v1092_v42 = vpop.xlane.xlu0 %1091 }
 0x269   :  { %v1094_v43 = vpop.xlane.xlu1 %1093 }
 0x26a   :  { %1184 = vperm.xlu0 %4103, %v5354_v0   ;;  %v5366_v45 = vmax.f32 %v4940_v3, %v1094_v43  ;;  %v5384_v43 = vmax.f32 %v4876_v5, %v1080_v27 }
 0x26c   :  { %7890 = vst [vmem:[#allocation84_spill] sm:$0xff] %v5366_v45 }
 0x26d   :  { %7892 = vst [vmem:[#allocation86_spill] sm:$0xff] %v5384_v43 }
 0x270   :  { %v1098_v62 = vpop.xlane.xlu0 %1097 }
 0x271   :  { %v5396_v10 = vmax.f32 %v4920_v20, %v1098_v62 }
 0x272   :  { %1194 = vperm.xlu0 %4103, %v5358_v63  }
 0x273   :  { %7895 = vst [vmem:[#allocation89_spill] sm:$0xff] %v5396_v10 }
 0x27a   :  { %1209 = vperm.xlu0 %4103, %v5362_v19  }
 0x282   :  { %1224 = vperm.xlu0 %4103, %v5366_v45  }
 0x283   :  { %v1016_v4 = vpop.permute.xlu0 %1015 }
 0x284   :  { %v1037_v56 = vadd.f32 %v5200_v33, %v1016_v4  ;;  %v5388_v4 = vmax.f32 %v4888_v44, %v1086_v53 }
 0x286   :  { %v1053_v25 = vmul.f32 0.2, %v1037_v56  ;;  %7893 = vst [vmem:[#allocation87_spill] sm:$0xff] %v5388_v4 }
 0x288   :  { %v5370_v52 = vmax.f32 %v1037_v56, %v1053_v25  ;;  %v5392_v56 = vmax.f32 %v4900_v55, %v1092_v42 }
 0x28a   :  { %1099 = vmax.xlane.f32.xlu1 %v5370_v52  ;;  %7894 = vst [vmem:[#allocation88_spill] sm:$0xff] %v5392_v56 }
 0x2a3   :  { %1019 = vperm.xlu1 %4104, %v5376_v21  }
 0x2ab   :  { %1174 = vperm.xlu1 %4104, %v5380_v61  }
 0x2b3   :  { %1189 = vperm.xlu1 %4104, %v5384_v43  }
 0x2bb   :  { %1204 = vperm.xlu1 %4104, %v5388_v4  }
 0x2c3   :  { %1219 = vperm.xlu1 %4104, %v5392_v56  }
 0x2cb   :  { %1234 = vperm.xlu1 %4104, %v5396_v10  }
 0x2d4   :  { %v1170_v37 = vpop.permute.xlu0 %1169 }
 0x2d5   :  { %v1247_v5 = vsub.f32 %v5266_v30, %v1170_v37 }
 0x2d7   :  { %v1263_v27 = vmul.f32 1.442695, %v1247_v5 }
 0x2d9   :  { %4179 = vpow2.f32 %v1263_v27 }
 0x2dc   :  { %v1185_v25 = vpop.permute.xlu0 %1184 }
 0x2dd   :  { %v1250_v44 = vsub.f32 %v5281_v14, %v1185_v25 }
 0x2df   :  { %v1269_v53 = vmul.f32 1.442695, %v1250_v44  ;;  %v4180_v8 = vpop.eup %4179 }
 0x2e0   :  { %v5402_v55 = vmul.f32 %v4180_v8, %v5081_v32 }
 0x2e1   :  { %4181 = vpow2.f32 %v1269_v53 }
 0x2e7   :  { %v4182_v20 = vpop.eup %4181 }
 0x2e8   :  { %v5406_v42 = vmul.f32 %v4182_v20, %v5102_v29 }
 0x2f5   :  { %1327 = vadd.xlane.f32.xlu1 %v5402_v55 }
 0x2fd   :  { %1333 = vadd.xlane.f32.xlu1 %v5406_v42  ;;  %v1100_v30 = vpop.xlane.xlu1 %1099 }
 0x315   :  { %v1020_v62 = vpop.permute.xlu1 %1019 }
 0x316   :  { %v1038_v37 = vadd.f32 %v5200_v33, %v1020_v62 }
 0x318   :  { %v1054_v5 = vmul.f32 0.2, %v1038_v37 }
 0x31a   :  { %v5410_v14 = vmax.f32 %v1038_v37, %v1054_v5 }
 0x31c   :  { %1101 = vmax.xlane.f32.xlu2 %v5410_v14 }
 0x31d   :  { %v1175_v27 = vpop.permute.xlu1 %1174 }
 0x31e   :  { %v1248_v8 = vsub.f32 %v5231_v60, %v1175_v27 }
 0x320   :  { %v1265_v25 = vmul.f32 1.442695, %v1248_v8  ;;  %v1084_v8 = vpop.xlane.xlu2 %1083 }
 0x322   :  { %4183 = vpow2.f32 %v1265_v25 }
 0x325   :  { %v1190_v44 = vpop.permute.xlu1 %1189 }
 0x326   :  { %v1251_v53 = vsub.f32 %v5251_v15, %v1190_v44  ;;  %v5427_v15 = vmax.f32 %v4866_v7, %v5347_v40 }
 0x328   :  { %v4184_v20 = vpop.eup %4183  ;;  %v1271_v29 = vmul.f32 1.442695, %v1251_v53  ;;  %7896 = vst [vmem:[#allocation90_spill] sm:$0xff] %v5427_v15  ;;  %v1090_v7 = vpop.xlane.xlu2 %1089 }
 0x329   :  { %v5416_v32 = vmul.f32 %v4184_v20, %v5083_v38  ;;  %v5436_v20 = vmax.f32 %v4904_v57, %v1084_v8 }
 0x32a   :  { %4185 = vpow2.f32 %v1271_v29 }
 0x32b   :  { %1329 = vadd.xlane.f32.xlu0 %v5416_v32  ;;  %7897 = vst [vmem:[#allocation91_spill] sm:$0xff] %v5436_v20 }
 0x32d   :  { %v1205_v62 = vpop.permute.xlu1 %1204 }
 0x32e   :  { %v1254_v37 = vsub.f32 %v5270_v54, %v1205_v62 }
 0x330   :  { %v4186_v60 = vpop.eup %4185  ;;  %v1277_v5 = vmul.f32 1.442695, %v1254_v37  ;;  %v1096_v57 = vpop.xlane.xlu2 %1095 }
 0x331   :  { %v5423_v27 = vmul.f32 %v4186_v60, %v5140_v16 }
 0x332   :  { %4187 = vpow2.f32 %v1277_v5  ;;  %v5445_v5 = vmax.f32 %v4924_v22, %v1090_v7  ;;  %v5465_v7 = vld [vmem:[#allocation2 + $0x18] sm:$0xff] }
 0x333   :  { %1335 = vadd.xlane.f32.xlu0 %v5423_v27 }
 0x334   :  { %1179 = vperm.xlu2 %4102, %v5427_v15   ;;  %7898 = vst [vmem:[#allocation92_spill] sm:$0xff] %v5445_v5 }
 0x335   :  { %v1220_v29 = vpop.permute.xlu1 %1219 }
 0x336   :  { %v1257_v25 = vsub.f32 %v5285_v28, %v1220_v29 }
 0x338   :  { %v4188_v44 = vpop.eup %4187  ;;  %v1283_v54 = vmul.f32 1.442695, %v1257_v25  ;;  %v5457_v25 = vld [vmem:[#allocation2] sm:$0xff] }
 0x339   :  { %v5433_v53 = vmul.f32 %v4188_v44, %v5197_v59  ;;  %v1119_v22 = vsub.f32 %v5457_v25, %v5350_v35 }
 0x33a   :  { %4189 = vpow2.f32 %v1283_v54  ;;  %v5462_v54 = vmax.f32 %v4961_v18, %v1100_v30 }
 0x33b   :  { %1341 = vadd.xlane.f32.xlu0 %v5433_v53  ;;  %v1135_v44 = vmul.f32 1.442695, %v1119_v22 }
 0x33c   :  { %1199 = vperm.xlu2 %4102, %v5436_v20   ;;  %7900 = vst [vmem:[#allocation94_spill] sm:$0xff] %v5462_v54 }
 0x33d   :  { %v1235_v40 = vpop.permute.xlu1 %1234 }
 0x33e   :  { %v1260_v62 = vsub.f32 %v5295_v17, %v1235_v40  ;;  %v5453_v17 = vmax.f32 %v4942_v6, %v1096_v57  ;;  %v1122_v6 = vsub.f32 %v5465_v7, %v5354_v0 }
 0x340   :  { %v4190_v37 = vpop.eup %4189  ;;  %v1289_v60 = vmul.f32 1.442695, %v1260_v62  ;;  %7899 = vst [vmem:[#allocation93_spill] sm:$0xff] %v5453_v17  ;;  %v1141_v40 = vmul.f32 1.442695, %v1122_v6 }
 0x341   :  { %v5442_v28 = vmul.f32 %v4190_v37, %v5227_v1  ;;  %v5472_v37 = vld [vmem:[#allocation2 + $0x28] sm:$0xff] }
 0x342   :  { %4191 = vpow2.f32 %v1289_v60  ;;  %v1124_v60 = vsub.f32 %v5472_v37, %v5358_v63 }
 0x343   :  { %1347 = vadd.xlane.f32.xlu0 %v5442_v28  ;;  %4193 = vpow2.f32 %v1135_v44 }
 0x344   :  { %1214 = vperm.xlu2 %4102, %v5445_v5   ;;  %4195 = vpow2.f32 %v1141_v40  ;;  %v1145_v30 = vmul.f32 1.442695, %v1124_v60  ;;  %v1130_v40 = vsub.f32 %v4940_v3, %v5366_v45 }
 0x346   :  { %4197 = vpow2.f32 %v1145_v30  ;;  %v1157_v60 = vmul.f32 1.442695, %v1130_v40  ;;  %v1133_v30 = vsub.f32 %v4961_v18, %v5462_v54 }
 0x348   :  { %v4192_v8 = vpop.eup %4191 }
 0x349   :  { %v5450_v29 = vmul.f32 %v4192_v8, %v5247_v50  ;;  %v5469_v62 = vpop.eup %4193  ;;  %v5479_v8 = vld [vmem:[#allocation2 + $0x40] sm:$0xff] }
 0x34a   :  { %7901 = vst [vmem:[#allocation95_spill] sm:$0xff] %v5469_v62  ;;  %v5476_v57 = vpop.eup %4195  ;;  %v1127_v22 = vsub.f32 %v5479_v8, %v5362_v19 }
 0x34b   :  { %1353 = vadd.xlane.f32.xlu0 %v5450_v29  ;;  %7902 = vst [vmem:[#allocation96_spill] sm:$0xff] %v5476_v57 }
 0x34c   :  { %1229 = vperm.xlu2 %4102, %v5453_v17   ;;  %v1151_v44 = vmul.f32 1.442695, %v1127_v22  ;;  %v5483_v6 = vpop.eup %4197 }
 0x34d   :  { %7903 = vst [vmem:[#allocation97_spill] sm:$0xff] %v5483_v6 }
 0x34e   :  { %4199 = vpow2.f32 %v1151_v44 }
 0x34f   :  { %4201 = vpow2.f32 %v1157_v60 }
 0x354   :  { %v5488_v33 = vpop.eup %4199 }
 0x355   :  { %7904 = vst [vmem:[#allocation98_spill] sm:$0xff] %v5488_v33  ;;  %v5493_v22 = vpop.eup %4201 }
 0x356   :  { %7905 = vst [vmem:[#allocation99_spill] sm:$0xff] %v5493_v22 }
 0x35f   :  { %1239 = vperm.xlu0 %4103, %v5462_v54  }
 0x367   :  { %1377 = vperm.xlu0 %4103, %v5469_v62   ;;  %v1195_v62 = vpop.permute.xlu0 %1194 }
 0x368   :  { %v1252_v18 = vsub.f32 %v5257_v26, %v1195_v62 }
 0x36a   :  { %v1273_v54 = vmul.f32 1.442695, %v1252_v18 }
 0x36f   :  { %1392 = vperm.xlu0 %4103, %v5476_v57   ;;  %v1163_v57 = vmul.f32 1.442695, %v1133_v30 }
 0x371   :  { %4203 = vpow2.f32 %v1163_v57 }
 0x377   :  { %1402 = vperm.xlu0 %4103, %v5483_v6   ;;  %v5496_v44 = vpop.eup %4203  ;;  %v1210_v6 = vpop.permute.xlu0 %1209 }
 0x378   :  { %7906 = vst [vmem:[#allocation100_spill] sm:$0xff] %v5496_v44  ;;  %v1255_v63 = vsub.f32 %v5268_v48, %v1210_v6 }
 0x37f   :  { %1417 = vperm.xlu0 %4103, %v5488_v33   ;;  %v1225_v33 = vpop.permute.xlu0 %1224 }
 0x387   :  { %1432 = vperm.xlu0 %4103, %v5493_v22  }
 0x38f   :  { %v5498_v3 = vpop.xlane.xlu2 %1101  ;;  %1447 = vperm.xlu0 %4103, %v5496_v44  }
 0x397   :  { %v1180_v40 = vpop.permute.xlu2 %1179  ;;  %1481 = vrot.lane.b32.xlu0 %v5051_v11, %s4553_s16 }
 0x398   :  { %v1249_v60 = vsub.f32 %v5242_v24, %v1180_v40  ;;  %v1279_v24 = vmul.f32 1.442695, %v1255_v63 }
 0x39a   :  { %v1267_v30 = vmul.f32 1.442695, %v1249_v60 }
 0x39c   :  { %4205 = vpow2.f32 %v1267_v30 }
 0x39d   :  { %4207 = vpow2.f32 %v1273_v54 }
 0x39e   :  { %v5504_v57 = vpop.xlane.xlu0 %1329 }
 0x39f   :  { %v1200_v45 = vpop.permute.xlu2 %1199  ;;  %7907 = vst [vmem:[#allocation101_spill] sm:$0xff] %v5504_v57 }
 0x3a0   :  { %v1253_v22 = vsub.f32 %v5293_v51, %v1200_v45  ;;  %v1258_v51 = vsub.f32 %v5283_v58, %v1225_v33 }
 0x3a2   :  { %v4206_v19 = vpop.eup %4205  ;;  %v1275_v1 = vmul.f32 1.442695, %v1253_v22 }
 0x3a3   :  { %v5508_v44 = vmul.f32 %v4206_v19, %v5104_v49  ;;  %v4208_v62 = vpop.eup %4207 }
 0x3a4   :  { %4209 = vpow2.f32 %v1275_v1  ;;  %v5519_v19 = vmul.f32 %v4208_v62, %v5122_v13  ;;  %v1285_v1 = vmul.f32 1.442695, %v1258_v51 }
 0x3a5   :  { %1331 = vadd.xlane.f32.xlu2 %v5508_v44  ;;  %4211 = vpow2.f32 %v1279_v24 }
 0x3a6   :  { %v5513_v54 = vpop.xlane.xlu0 %1335 }
 0x3a7   :  { %v1215_v26 = vpop.permute.xlu2 %1214  ;;  %7908 = vst [vmem:[#allocation102_spill] sm:$0xff] %v5513_v54 }
 0x3a8   :  { %v1256_v40 = vsub.f32 %v5299_v2, %v1215_v26 }
 0x3aa   :  { %v4210_v60 = vpop.eup %4209  ;;  %v1281_v45 = vmul.f32 1.442695, %v1256_v40 }
 0x3ab   :  { %v5516_v48 = vmul.f32 %v4210_v60, %v5120_v39  ;;  %v4212_v63 = vpop.eup %4211 }
 0x3ac   :  { %4213 = vpow2.f32 %v1281_v45  ;;  %v5528_v18 = vmul.f32 %v4212_v63, %v5147_v31 }
 0x3ad   :  { %1339 = vadd.xlane.f32.xlu1 %v5516_v48  ;;  %1337 = vadd.xlane.f32.xlu2 %v5519_v19  ;;  %4215 = vpow2.f32 %v1285_v1 }
 0x3ae   :  { %v5530_v30 = vpop.xlane.xlu0 %1341 }
 0x3af   :  { %v1230_v2 = vpop.permute.xlu2 %1229  ;;  %7909 = vst [vmem:[#allocation103_spill] sm:$0xff] %v5530_v30  ;;  %v5585_v30 = vld [vmem:[#allocation2 + $0x68] sm:$0xff] }
 0x3b0   :  { %v1259_v6 = vsub.f32 %v5304_v34, %v1230_v2 }
 0x3b2   :  { %v4214_v58 = vpop.eup %4213  ;;  %v1287_v33 = vmul.f32 1.442695, %v1259_v6 }
 0x3b3   :  { %v5525_v22 = vmul.f32 %v4214_v58, %v5143_v46  ;;  %v4216_v34 = vpop.eup %4215  ;;  %v5553_v58 = vld [vmem:[#allocation2 + $0x8] sm:$0xff] }
 0x3b4   :  { %4217 = vpow2.f32 %v1287_v33  ;;  %v5540_v40 = vmul.f32 %v4216_v34, %v5174_v41  ;;  %v1120_v33 = vsub.f32 %v5553_v58, %v5380_v61 }
 0x3b5   :  { %1345 = vadd.xlane.f32.xlu1 %v5525_v22  ;;  %1343 = vadd.xlane.f32.xlu2 %v5528_v18 }
 0x3b6   :  { %v5544_v60 = vpop.xlane.xlu0 %1347  ;;  %v1137_v34 = vmul.f32 1.442695, %v1120_v33 }
 0x3b7   :  { %7910 = vst [vmem:[#allocation104_spill] sm:$0xff] %v5544_v60 }
 0x3ba   :  { %v4218_v26 = vpop.eup %4217 }
 0x3bb   :  { %v5537_v62 = vmul.f32 %v4218_v26, %v5170_v36  ;;  %v5557_v26 = vld [vmem:[#allocation2 + $0x78] sm:$0xff] }
 0x3bc   :  { %v5561_v24 = vmax.f32 %v5557_v26, %v5498_v3 }
 0x3bd   :  { %1351 = vadd.xlane.f32.xlu1 %v5537_v62  ;;  %1349 = vadd.xlane.f32.xlu2 %v5540_v40 }
 0x3be   :  { %v5546_v51 = vpop.xlane.xlu0 %1353  ;;  %7912 = vst [vmem:[#allocation106_spill] sm:$0xff] %v5561_v24 }
 0x3bf   :  { %7911 = vst [vmem:[#allocation105_spill] sm:$0xff] %v5546_v51 }
 0x3d1   :  { %v1240_v45 = vpop.permute.xlu0 %1239 }
 0x3d2   :  { %v1261_v1 = vsub.f32 %v5370_v52, %v1240_v45  ;;  %v5564_v52 = vld [vmem:[#allocation2 + $0x20] sm:$0xff] }
 0x3d3   :  { %v1123_v45 = vsub.f32 %v5564_v52, %v5384_v43 }
 0x3d4   :  { %v1291_v2 = vmul.f32 1.442695, %v1261_v1 }
 0x3d5   :  { %v1143_v1 = vmul.f32 1.442695, %v1123_v45 }
 0x3d6   :  { %4219 = vpow2.f32 %v1291_v2 }
 0x3d7   :  { %4221 = vpow2.f32 %v1137_v34  ;;  %v5578_v34 = vld [vmem:[#allocation2 + $0x50] sm:$0xff] }
 0x3d8   :  { %4223 = vpow2.f32 %v1143_v1  ;;  %v1129_v45 = vsub.f32 %v5578_v34, %v5392_v56 }
 0x3da   :  { %v1155_v60 = vmul.f32 1.442695, %v1129_v45  ;;  %v4383_v45 = vld [vmem:[%s4639_s24 + $0x20] sm:$0xff] }
 0x3db   :  { %1487 = vrot.lane.b32.xlu0 %v4383_v45, %s4553_s16  ;;  %v5613_v45 = vld [vmem:[%s4639_s24 + $0x30] sm:$0xff] }
 0x3dc   :  { %v4220_v63 = vpop.eup %4219  ;;  %7921 = vst [vmem:[#allocation115_spill] sm:$0xff] %v5613_v45 }
 0x3dd   :  { %v5550_v6 = vmul.f32 %v4220_v63, %v5202_v47  ;;  %v5568_v2 = vpop.eup %4221  ;;  %v5571_v63 = vld [vmem:[#allocation2 + $0x38] sm:$0xff] }
 0x3de   :  { %7913 = vst [vmem:[#allocation107_spill] sm:$0xff] %v5568_v2  ;;  %v1126_v3 = vsub.f32 %v5571_v63, %v5388_v4  ;;  %v5575_v51 = vpop.eup %4223 }
 0x3df   :  { %1355 = vadd.xlane.f32.xlu2 %v5550_v6  ;;  %7914 = vst [vmem:[#allocation108_spill] sm:$0xff] %v5575_v51 }
 0x3e0   :  { %v1149_v33 = vmul.f32 1.442695, %v1126_v3  ;;  %v1132_v3 = vsub.f32 %v5585_v30, %v5396_v10 }
 0x3e2   :  { %4225 = vpow2.f32 %v1149_v33  ;;  %v1161_v33 = vmul.f32 1.442695, %v1132_v3  ;;  %v5606_v3 = vld [vmem:[%s4639_s24 + $0x18] sm:$0xff] }
 0x3e3   :  { %4227 = vpow2.f32 %v1155_v60  ;;  %7919 = vst [vmem:[#allocation113_spill] sm:$0xff] %v5606_v3 }
 0x3e4   :  { %4229 = vpow2.f32 %v1161_v33 }
 0x3e8   :  { %v5582_v1 = vpop.eup %4225 }
 0x3e9   :  { %7915 = vst [vmem:[#allocation109_spill] sm:$0xff] %v5582_v1  ;;  %v5591_v54 = vpop.eup %4227 }
 0x3ea   :  { %7916 = vst [vmem:[#allocation110_spill] sm:$0xff] %v5591_v54  ;;  %v5596_v60 = vpop.eup %4229 }
 0x3eb   :  { %7917 = vst [vmem:[#allocation111_spill] sm:$0xff] %v5596_v60 }
 0x3f7   :  { %1244 = vperm.xlu2 %4102, %v5561_v24  }
 0x3ff   :  { %1382 = vperm.xlu2 %4102, %v5568_v2  }
 0x407   :  { %1397 = vperm.xlu2 %4102, %v5575_v51  }
 0x40f   :  { %1412 = vperm.xlu2 %4102, %v5582_v1   ;;  %v4384_v1 = vld [vmem:[%s4639_s24 + $0x38] sm:$0xff] }
 0x410   :  { %1493 = vrot.lane.b32.xlu0 %v4384_v1, %s4553_s16 }
 0x417   :  { %1427 = vperm.xlu2 %4102, %v5591_v54  }
 0x418   :  { %v5603_v11 = vpop.xlane.xlu2 %1331 }
 0x419   :  { %7918 = vst [vmem:[#allocation112_spill] sm:$0xff] %v5603_v11 }
 0x41f   :  { %1442 = vperm.xlu2 %4102, %v5596_v60  }
 0x420   :  { %v5610_v33 = vpop.xlane.xlu2 %1337 }
 0x421   :  { %7920 = vst [vmem:[#allocation114_spill] sm:$0xff] %v5610_v33  ;;  %v5628_v33 = vld [vmem:[#allocation2 + $0x10] sm:$0xff] }
 0x427   :  { %1479 = vrot.lane.b32.xlu2 %v5057_v23, %s4553_s16 }
 0x428   :  { %v5617_v60 = vpop.xlane.xlu2 %1343 }
 0x429   :  { %7922 = vst [vmem:[#allocation116_spill] sm:$0xff] %v5617_v60  ;;  %v1121_v60 = vsub.f32 %v5628_v33, %v5427_v15 }
 0x42b   :  { %v1139_v10 = vmul.f32 1.442695, %v1121_v60 }
 0x42f   :  { %1485 = vrot.lane.b32.xlu2 %v5606_v3, %s4553_s16 }
 0x430   :  { %v5619_v1 = vpop.xlane.xlu2 %1349 }
 0x431   :  { %7923 = vst [vmem:[#allocation117_spill] sm:$0xff] %v5619_v1  ;;  %v5632_v1 = vld [vmem:[#allocation2 + $0x30] sm:$0xff] }
 0x437   :  { %1491 = vrot.lane.b32.xlu2 %v5613_v45, %s4553_s16 }
 0x452   :  { %v5621_v54 = vpop.xlane.xlu2 %1355 }
 0x453   :  { %7924 = vst [vmem:[#allocation118_spill] sm:$0xff] %v5621_v54 }
 0x45a   :  { %v1245_v23 = vpop.permute.xlu2 %1244 }
 0x45b   :  { %v1262_v51 = vsub.f32 %v5410_v14, %v1245_v23  ;;  %v1125_v14 = vsub.f32 %v5632_v1, %v5436_v20 }
 0x45d   :  { %v1293_v57 = vmul.f32 1.442695, %v1262_v51  ;;  %v1147_v51 = vmul.f32 1.442695, %v1125_v14 }
 0x45f   :  { %4231 = vpow2.f32 %v1293_v57 }
 0x460   :  { %4233 = vpow2.f32 %v1139_v10  ;;  %v5646_v10 = vld [vmem:[#allocation2 + $0x60] sm:$0xff] }
 0x461   :  { %4235 = vpow2.f32 %v1147_v51  ;;  %7927 = vst [vmem:[#allocation121_spill] sm:$0xff] %v5646_v10  ;;  %v1131_v60 = vsub.f32 %v5646_v10, %v5453_v17 }
 0x463   :  { %v1159_v14 = vmul.f32 1.442695, %v1131_v60  ;;  %v5667_v60 = vld [vmem:[%s4639_s24 + $0x28] sm:$0xff] }
 0x464   :  { %7932 = vst [vmem:[#allocation126_spill] sm:$0xff] %v5667_v60 }
 0x465   :  { %v4232_v2 = vpop.eup %4231 }
 0x466   :  { %v5625_v11 = vmul.f32 %v4232_v2, %v5194_v12  ;;  %v5636_v57 = vpop.eup %4233  ;;  %v5639_v2 = vld [vmem:[#allocation2 + $0x48] sm:$0xff] }
 0x467   :  { %7925 = vst [vmem:[#allocation119_spill] sm:$0xff] %v5636_v57  ;;  %v1128_v23 = vsub.f32 %v5639_v2, %v5445_v5  ;;  %v5643_v56 = vpop.eup %4235 }
 0x468   :  { %1357 = vadd.xlane.f32.xlu1 %v5625_v11  ;;  %7926 = vst [vmem:[#allocation120_spill] sm:$0xff] %v5643_v56 }
 0x469   :  { %v1153_v54 = vmul.f32 1.442695, %v1128_v23  ;;  %v1134_v23 = vsub.f32 %v5557_v26, %v5561_v24 }
 0x46b   :  { %4237 = vpow2.f32 %v1153_v54 }
 0x46c   :  { %4239 = vpow2.f32 %v1159_v14  ;;  %v5671_v14 = vpop.permute.xlu0 %1377 }
 0x46d   :  { %7933 = vst [vmem:[#allocation127_spill] sm:$0xff] %v5671_v14 }
 0x471   :  { %v5650_v51 = vpop.eup %4237 }
 0x472   :  { %7928 = vst [vmem:[#allocation122_spill] sm:$0xff] %v5650_v51  ;;  %v5655_v4 = vpop.eup %4239 }
 0x473   :  { %7929 = vst [vmem:[#allocation123_spill] sm:$0xff] %v5655_v4 }
 0x481   :  { %1387 = vperm.xlu1 %4104, %v5636_v57   ;;  %v1165_v57 = vmul.f32 1.442695, %v1134_v23  ;;  %v5673_v23 = vpop.permute.xlu0 %1392 }
 0x482   :  { %7934 = vst [vmem:[#allocation128_spill] sm:$0xff] %v5673_v23 }
 0x483   :  { %4241 = vpow2.f32 %v1165_v57  ;;  %v5677_v57 = vpop.xlane.xlu1 %1327 }
 0x484   :  { %7936 = vst [vmem:[#allocation130_spill] sm:$0xff] %v5677_v57 }
 0x489   :  { %1407 = vperm.xlu1 %4104, %v5643_v56   ;;  %v5658_v54 = vpop.eup %4241  ;;  %v5662_v56 = vld [vmem:[%s4639_s24 + $0x10] sm:$0xff] }
 0x48a   :  { %7930 = vst [vmem:[#allocation124_spill] sm:$0xff] %v5658_v54 }
 0x48b   :  { %7931 = vst [vmem:[#allocation125_spill] sm:$0xff] %v5662_v56  ;;  %v5683_v17 = vpop.xlane.xlu1 %1333 }
 0x48c   :  { %7939 = vst [vmem:[#allocation133_spill] sm:$0xff] %v5683_v17 }
 0x491   :  { %1422 = vperm.xlu1 %4104, %v5650_v51   ;;  %v5679_v51 = vpop.permute.xlu0 %1402 }
 0x492   :  { %7937 = vst [vmem:[#allocation131_spill] sm:$0xff] %v5679_v51 }
 0x493   :  { %v5685_v5 = vpop.xlane.xlu1 %1339 }
 0x494   :  { %7940 = vst [vmem:[#allocation134_spill] sm:$0xff] %v5685_v5 }
 0x499   :  { %1437 = vperm.xlu1 %4104, %v5655_v4   ;;  %v5675_v4 = vpop.permute.xlu2 %1382  ;;  %v5687_v20 = vpop.permute.xlu0 %1417 }
 0x49a   :  { %7935 = vst [vmem:[#allocation129_spill] sm:$0xff] %v5675_v4 }
 0x49b   :  { %7941 = vst [vmem:[#allocation135_spill] sm:$0xff] %v5687_v20  ;;  %v5691_v43 = vpop.xlane.xlu1 %1345 }
 0x49c   :  { %7943 = vst [vmem:[#allocation137_spill] sm:$0xff] %v5691_v43 }
 0x4a1   :  { %1452 = vperm.xlu1 %4104, %v5658_v54   ;;  %v5681_v24 = vpop.permute.xlu2 %1397  ;;  %v5693_v14 = vpop.permute.xlu0 %1432 }
 0x4a2   :  { %7938 = vst [vmem:[#allocation132_spill] sm:$0xff] %v5681_v24 }
 0x4a3   :  { %7944 = vst [vmem:[#allocation138_spill] sm:$0xff] %v5693_v14  ;;  %v5697_v23 = vpop.xlane.xlu1 %1351 }
 0x4a4   :  { %7946 = vst [vmem:[#allocation140_spill] sm:$0xff] %v5697_v23 }
 0x4a9   :  { %1483 = vrot.lane.b32.xlu1 %v5662_v56, %s4553_s16  ;;  %v5689_v15 = vpop.permute.xlu2 %1412  ;;  %v5699_v57 = vpop.permute.xlu0 %1447 }
 0x4aa   :  { %7942 = vst [vmem:[#allocation136_spill] sm:$0xff] %v5689_v15 }
 0x4ab   :  { %7947 = vst [vmem:[#allocation141_spill] sm:$0xff] %v5699_v57 }
 0x4b1   :  { %1489 = vrot.lane.b32.xlu1 %v5667_v60, %s4553_s16  ;;  %v5695_v61 = vpop.permute.xlu2 %1427  ;;  %v1482_v17 = vpop.permute.xlu0 %1481 }
 0x4b2   :  { %7945 = vst [vmem:[#allocation139_spill] sm:$0xff] %v5695_v61 }
 0x4b9   :  { %v5701_v51 = vpop.permute.xlu2 %1442  ;;  %v1488_v20 = vpop.permute.xlu0 %1487 }
 0x4ba   :  { %7948 = vst [vmem:[#allocation142_spill] sm:$0xff] %v5701_v51 }
 0x4c1   :  { %v1480_v5 = vpop.permute.xlu2 %1479  ;;  %v1494_v43 = vpop.permute.xlu0 %1493 }
 0x4c2   :  { %1503 = vmatpush.bf16.msra.mxu1 %v1494_v43  ;;  %v1472_v43 = vpack.c.bf16 %v5406_v42, %v5508_v44  ;;  %v1478_v42 = vpack.c.bf16 %v5625_v11, %v5550_v6 }
 0x4c9   :  { %v1486_v15 = vpop.permute.xlu2 %1485 }
 0x4d1   :  { %v1492_v14 = vpop.permute.xlu2 %1491 }
 0x4d2   :  { %1504 = vmatpush.bf16.msra.mxu1 %v1492_v14  ;;  %v1473_v14 = vpack.c.bf16 %v5519_v19, %v5423_v27 }
 0x4db   :  { %v5703_v24 = vpop.xlane.xlu1 %1357 }
 0x4dc   :  { %7949 = vst [vmem:[#allocation143_spill] sm:$0xff] %v5703_v24 }
 0x4f3   :  { %v5705_v4 = vpop.permute.xlu1 %1387 }
 0x4f4   :  { %7950 = vst [vmem:[#allocation144_spill] sm:$0xff] %v5705_v4 }
 0x4fb   :  { %v5707_v54 = vpop.permute.xlu1 %1407 }
 0x4fc   :  { %7951 = vst [vmem:[#allocation145_spill] sm:$0xff] %v5707_v54  ;;  %v7955_v54 = vpack.c.bf16 %v5416_v32, %v5402_v55  ;;  %v1476_v32 = vpack.c.bf16 %v5540_v40, %v5442_v28  ;;  %v1477_v55 = vpack.c.bf16 %v5450_v29, %v5537_v62 }
 0x503   :  { %v5709_v61 = vpop.permute.xlu1 %1422 }
 0x504   :  { %7952 = vst [vmem:[#allocation146_spill] sm:$0xff] %v5709_v61 }
 0x50b   :  { %v5711_v23 = vpop.permute.xlu1 %1437 }
 0x50c   :  { %7953 = vst [vmem:[#allocation147_spill] sm:$0xff] %v5711_v23 }
 0x513   :  { %v5713_v57 = vpop.permute.xlu1 %1452 }
 0x514   :  { %7954 = vst [vmem:[#allocation148_spill] sm:$0xff] %v5713_v57 }
 0x51b   :  { %v1484_v51 = vpop.permute.xlu1 %1483 }
 0x523   :  { %v1490_v24 = vpop.permute.xlu1 %1489 }
 0x524   :  { %1505 = vmatpush.bf16.msra.mxu1 %v1490_v24  ;;  %v1474_v24 = vpack.c.bf16 %v5433_v53, %v5516_v48 }
 0x528   :  { %1506 = vmatpush.bf16.msra.mxu1 %v1488_v20 }
 0x52c   :  { %1507 = vmatpush.bf16.msra.mxu1 %v1486_v15  ;;  %v7956_v15 = vpack.c.bf16 %v5525_v22, %v5528_v18  ;;  %v4555_v22 = vmov 2  }
 0x52d   :  { %4105 = vset.pattern.permute.xlu2 %v4555_v22  ;;  %4106 = vset.pattern.permute.xlu0 %v4555_v22 }
 0x52e   :  { %4107 = vset.pattern.permute.xlu1 %v4555_v22 }
 0x530   :  { %1508 = vmatpush.bf16.msra.mxu1 %v1484_v51  ;;  %v5750_v51 = vld [vmem:[%s7693_s4] sm:$0xff] }
 0x531   :  { %7957 = vst [vmem:[#allocation149_spill] sm:$0xff] %v5750_v51 }
 0x534   :  { %1509 = vmatpush.bf16.msra.mxu1 %v1482_v17 }
 0x538   :  { %1510 = vmatpush.bf16.msra.mxu1 %v1480_v5 }
 0x53b   :  { %1511 = vmatmul.bf16.vlgmr.msra.gmra.mxu1 %v7955_v54 }
 0x54b   :  { %1516 = vmatmul.bf16.gmra.mxu1 %v1472_v43  ;;  %v5757_v43 = vld [vmem:[%s7693_s4 + $0x18] sm:$0xff] }
 0x54c   :  { %7958 = vst [vmem:[#allocation150_spill] sm:$0xff] %v5757_v43 }
 0x55b   :  { %1521 = vmatmul.bf16.gmra.mxu1 %v1473_v14  ;;  %v5763_v14 = vld [vmem:[%s7693_s4 + $0x8] sm:$0xff] }
 0x55c   :  { %7959 = vst [vmem:[#allocation151_spill] sm:$0xff] %v5763_v14 }
 0x56b   :  { %1526 = vmatmul.bf16.gmra.mxu1 %v1474_v24  ;;  %v5770_v24 = vld [vmem:[%s7693_s4 + $0x28] sm:$0xff] }
 0x56c   :  { %7960 = vst [vmem:[#allocation152_spill] sm:$0xff] %v5770_v24 }
 0x57b   :  { %1531 = vmatmul.bf16.gmra.mxu1 %v7956_v15  ;;  %v4397_v15 = vld [vmem:[%s7693_s4 + $0x30] sm:$0xff] }
 0x58b   :  { %1536 = vmatmul.bf16.gmra.mxu1 %v1476_v32  ;;  %v5779_v32 = vld [vmem:[%s7693_s4 + $0x10] sm:$0xff] }
 0x58c   :  { %7961 = vst [vmem:[#allocation153_spill] sm:$0xff] %v5779_v32 }
 0x59b   :  { %1541 = vmatmul.bf16.gmra.mxu1 %v1477_v55  ;;  %v4399_v55 = vld [vmem:[%s7693_s4 + $0x40] sm:$0xff] }
 0x5ab   :  { %1546 = vmatmul.bf16.gmra.mxu1 %v1478_v42  ;;  %v4400_v42 = vld [vmem:[%s7693_s4 + $0x48] sm:$0xff] }
 0x5b8   :  { %v1512_v27 = vpop.f32.mrf.mxu1 }
 0x5b9   :  { %1568 = vrot.lane.b32.xlu1 %v1512_v27, %s4554_s17  ;;  %v5791_v27 = vld [vmem:[%s7693_s4 + $0x20] sm:$0xff] }
 0x5ba   :  { %7962 = vst [vmem:[#allocation154_spill] sm:$0xff] %v5791_v27 }
 0x5c0   :  { %v1514_v53 = vpop.f32.mrf.mxu1 }
 0x5c1   :  { %1570 = vrot.lane.b32.xlu2 %v1514_v53, %s4554_s17  ;;  %v4402_v53 = vld [vmem:[%s7693_s4 + $0x58] sm:$0xff] }
 0x5c8   :  { %v1517_v20 = vpop.f32.mrf.mxu1 }
 0x5c9   :  { %1572 = vrot.lane.b32.xlu0 %v1517_v20, %s4554_s17  ;;  %v4403_v20 = vld [vmem:[%s7693_s4 + $0x60] sm:$0xff] }
 0x5d0   :  { %v1519_v28 = vpop.f32.mrf.mxu1 }
 0x5d1   :  { %1574 = vrot.lane.b32.xlu1 %v1519_v28, %s4554_s17  ;;  %v4404_v28 = vld [vmem:[%s7693_s4 + $0x38] sm:$0xff] }
 0x5d8   :  { %v1522_v5 = vpop.f32.mrf.mxu1 }
 0x5d9   :  { %1576 = vrot.lane.b32.xlu2 %v1522_v5, %s4554_s17  ;;  %v4405_v5 = vld [vmem:[%s7693_s4 + $0x50] sm:$0xff] }
 0x5e0   :  { %v1524_v29 = vpop.f32.mrf.mxu1 }
 0x5e1   :  { %1578 = vrot.lane.b32.xlu0 %v1524_v29, %s4554_s17  ;;  %v4406_v29 = vld [vmem:[%s7693_s4 + $0x68] sm:$0xff] }
 0x5e8   :  { %v1527_v17 = vpop.f32.mrf.mxu1 }
 0x5e9   :  { %1580 = vrot.lane.b32.xlu1 %v1527_v17, %s4554_s17 }
 0x5f0   :  { %v1529_v44 = vpop.f32.mrf.mxu1 }
 0x5f1   :  { %1582 = vrot.lane.b32.xlu2 %v1529_v44, %s4554_s17 }
 0x5f8   :  { %v1532_v48 = vpop.f32.mrf.mxu1 }
 0x5f9   :  { %1584 = vrot.lane.b32.xlu0 %v1532_v48, %s4554_s17 }
 0x600   :  { %v1534_v19 = vpop.f32.mrf.mxu1 }
 0x601   :  { %1586 = vrot.lane.b32.xlu1 %v1534_v19, %s4554_s17 }
 0x608   :  { %v1537_v18 = vpop.f32.mrf.mxu1 }
 0x609   :  { %1588 = vrot.lane.b32.xlu2 %v1537_v18, %s4554_s17 }
 0x610   :  { %v1539_v62 = vpop.f32.mrf.mxu1 }
 0x611   :  { %1590 = vrot.lane.b32.xlu0 %v1539_v62, %s4554_s17  ;;  %v5825_v62 = vld [vmem:[%s4633_s21 + $0x2] ss:$0 sm:$0xff] }
 0x618   :  { %v1542_v40 = vpop.f32.mrf.mxu1 }
 0x619   :  { %1592 = vrot.lane.b32.xlu1 %v1542_v40, %s4554_s17 }
 0x61b   :  { %v5810_v17 = vpop.permute.xlu2 %1570 }
 0x61c   :  { %7963 = vst [vmem:[#allocation155_spill] sm:$0xff] %v5810_v17 }
 0x620   :  { %v1544_v6 = vpop.f32.mrf.mxu1 }
 0x621   :  { %1594 = vrot.lane.b32.xlu2 %v1544_v6, %s4554_s17 }
 0x628   :  { %v1547_v11 = vpop.f32.mrf.mxu1 }
 0x629   :  { %1634 = vperm.xlu2 %4105, %v5750_v51   ;;  %1596 = vrot.lane.b32.xlu0 %v1547_v11, %s4554_s17 }
 0x62b   :  { %v5822_v18 = vpop.permute.xlu1 %1568 }
 0x62c   :  { %7969 = vst [vmem:[#allocation161_spill] sm:$0xff] %v5822_v18 }
 0x630   :  { %v1549_v54 = vpop.f32.mrf.mxu1 }
 0x631   :  { %1646 = vperm.xlu2 %4105, %v5757_v43   ;;  %1638 = vperm.xlu0 %4106, %v5763_v14  }
 0x632   :  { %1598 = vrot.lane.b32.xlu1 %v1549_v54, %s4554_s17 }
 0x633   :  { %v5812_v44 = vpop.permute.xlu2 %1576 }
 0x634   :  { %7964 = vst [vmem:[#allocation156_spill] sm:$0xff] %v5812_v44 }
 0x639   :  { %1654 = vperm.xlu2 %4105, %v5770_v24   ;;  %1658 = vperm.xlu0 %4106, %v4397_v15  }
 0x63a   :  { %1642 = vperm.xlu1 %4107, %v5779_v32  }
 0x63b   :  { %v5818_v22 = vpop.permute.xlu0 %1572 }
 0x63c   :  { %7967 = vst [vmem:[#allocation159_spill] sm:$0xff] %v5818_v22 }
 0x641   :  { %1666 = vperm.xlu2 %4105, %v4399_v55   ;;  %1670 = vperm.xlu0 %4106, %v4400_v42  }
 0x642   :  { %1650 = vperm.xlu1 %4107, %v5791_v27  }
 0x643   :  { %v5829_v11 = vpop.permute.xlu1 %1574 }
 0x644   :  { %7971 = vst [vmem:[#allocation163_spill] sm:$0xff] %v5829_v11 }
 0x649   :  { %1678 = vperm.xlu2 %4105, %v4402_v53   ;;  %1682 = vperm.xlu0 %4106, %v4403_v20  }
 0x64a   :  { %1662 = vperm.xlu1 %4107, %v4404_v28  }
 0x64b   :  { %v5814_v48 = vpop.permute.xlu2 %1582 }
 0x64c   :  { %7965 = vst [vmem:[#allocation157_spill] sm:$0xff] %v5814_v48 }
 0x651   :  { %1690 = vperm.xlu2 %4105, %v5310_v9  }
 0x652   :  { %1674 = vperm.xlu1 %4107, %v4405_v5  }
 0x653   :  { %v5827_v40 = vpop.permute.xlu0 %1578 }
 0x654   :  { %7970 = vst [vmem:[#allocation162_spill] sm:$0xff] %v5827_v40 }
 0x65a   :  { %1686 = vperm.xlu1 %4107, %v4406_v29  }
 0x65b   :  { %v5837_v53 = vpop.permute.xlu1 %1580 }
 0x65c   :  { %7973 = vst [vmem:[#allocation165_spill] sm:$0xff] %v5837_v53 }
 0x663   :  { %v5816_v19 = vpop.permute.xlu2 %1588 }
 0x664   :  { %7966 = vst [vmem:[#allocation158_spill] sm:$0xff] %v5816_v19 }
 0x66b   :  { %v5835_v42 = vpop.permute.xlu0 %1584 }
 0x66c   :  { %7972 = vst [vmem:[#allocation164_spill] sm:$0xff] %v5835_v42 }
 0x673   :  { %v5841_v28 = vpop.permute.xlu1 %1586 }
 0x674   :  { %7975 = vst [vmem:[#allocation167_spill] sm:$0xff] %v5841_v28 }
 0x67b   :  { %v5820_v9 = vpop.permute.xlu2 %1594 }
 0x67c   :  { %7968 = vst [vmem:[#allocation160_spill] sm:$0xff] %v5820_v9 }
 0x683   :  { %v1635_v6 = vpop.permute.xlu2 %1634  ;;  %v5839_v20 = vpop.permute.xlu0 %1590 }
 0x684   :  { %v1698_v54 = vadd.f32 %v5825_v62, %v1635_v6  ;;  %7974 = vst [vmem:[#allocation166_spill] sm:$0xff] %v5839_v20 }
 0x686   :  { %v1714_v15 = vmul.f32 0.2, %v1698_v54 }
 0x688   :  { %v5832_v55 = vmax.f32 %v1698_v54, %v1714_v15 }
 0x68a   :  { %1746 = vmax.xlane.f32.xlu1 %v5832_v55 }
 0x68b   :  { %v5845_v29 = vpop.permute.xlu1 %1592  ;;  %v1647_v57 = vpop.permute.xlu2 %1646 }
 0x68c   :  { %7977 = vst [vmem:[#allocation169_spill] sm:$0xff] %v5845_v29  ;;  %v1701_v61 = vadd.f32 %v5825_v62, %v1647_v57 }
 0x68e   :  { %v1717_v28 = vmul.f32 0.2, %v1701_v61 }
 0x690   :  { %v5856_v20 = vmax.f32 %v1701_v61, %v1717_v28 }
 0x693   :  { %v1655_v9 = vpop.permute.xlu2 %1654 }
 0x69b   :  { %v5843_v5 = vpop.permute.xlu0 %1596  ;;  %v1667_v57 = vpop.permute.xlu2 %1666 }
 0x69c   :  { %7976 = vst [vmem:[#allocation168_spill] sm:$0xff] %v5843_v5 }
 0x6a3   :  { %v1639_v23 = vpop.permute.xlu0 %1638 }
 0x6a4   :  { %v1699_v6 = vadd.f32 %v5825_v62, %v1639_v23  ;;  %v5848_v54 = vpop.permute.xlu1 %1598  ;;  %v1703_v23 = vadd.f32 %v5825_v62, %v1655_v9  ;;  %v1706_v9 = vadd.f32 %v5825_v62, %v1667_v57 }
 0x6a5   :  { %7978 = vst [vmem:[#allocation170_spill] sm:$0xff] %v5848_v54 }
 0x6a6   :  { %v1715_v15 = vmul.f32 0.2, %v1699_v6  ;;  %v1719_v53 = vmul.f32 0.2, %v1703_v23 }
 0x6a8   :  { %v5851_v19 = vmax.f32 %v1699_v6, %v1715_v15  ;;  %v5867_v28 = vmax.f32 %v1703_v23, %v1719_v53 }
 0x6aa   :  { %1748 = vmax.xlane.f32.xlu2 %v5851_v19 }
 0x6ab   :  { %v1659_v48 = vpop.permute.xlu0 %1658 }
 0x6ac   :  { %v1643_v44 = vpop.permute.xlu1 %1642  ;;  %v1704_v29 = vadd.f32 %v5825_v62, %v1659_v48 }
 0x6ad   :  { %v1700_v5 = vadd.f32 %v5825_v62, %v1643_v44 }
 0x6ae   :  { %v1720_v42 = vmul.f32 0.2, %v1704_v29 }
 0x6af   :  { %v1716_v18 = vmul.f32 0.2, %v1700_v5 }
 0x6b0   :  { %v5864_v40 = vmax.f32 %v1704_v29, %v1720_v42  ;;  %v1722_v42 = vmul.f32 0.2, %v1706_v9 }
 0x6b1   :  { %v5859_v54 = vmax.f32 %v1700_v5, %v1716_v18  ;;  %v1679_v5 = vpop.permute.xlu2 %1678 }
 0x6b2   :  { %1752 = vmax.xlane.f32.xlu2 %v5856_v20  ;;  %v5879_v57 = vmax.f32 %v1706_v9, %v1722_v42 }
 0x6b3   :  { %1750 = vmax.xlane.f32.xlu0 %v5859_v54  ;;  %v1671_v6 = vpop.permute.xlu0 %1670 }
 0x6b4   :  { %v1651_v15 = vpop.permute.xlu1 %1650  ;;  %v1707_v61 = vadd.f32 %v5825_v62, %v1671_v6 }
 0x6b5   :  { %v1702_v44 = vadd.f32 %v5825_v62, %v1651_v15 }
 0x6b6   :  { %v1723_v11 = vmul.f32 0.2, %v1707_v61 }
 0x6b7   :  { %v1718_v48 = vmul.f32 0.2, %v1702_v44 }
 0x6b8   :  { %v5876_v53 = vmax.f32 %v1707_v61, %v1723_v11 }
 0x6b9   :  { %v5870_v18 = vmax.f32 %v1702_v44, %v1718_v48  ;;  %v1709_v44 = vadd.f32 %v5825_v62, %v1679_v5  ;;  %v1691_v61 = vpop.permute.xlu2 %1690 }
 0x6ba   :  { %1758 = vmax.xlane.f32.xlu2 %v5864_v40 }
 0x6bb   :  { %1756 = vmax.xlane.f32.xlu0 %v5867_v28  ;;  %1754 = vmax.xlane.f32.xlu1 %v5870_v18  ;;  %v1683_v29 = vpop.permute.xlu0 %1682 }
 0x6bc   :  { %v1663_v15 = vpop.permute.xlu1 %1662  ;;  %v1710_v23 = vadd.f32 %v5825_v62, %v1683_v29 }
 0x6bd   :  { %v1705_v32 = vadd.f32 %v5825_v62, %v1663_v15  ;;  %v1725_v15 = vmul.f32 0.2, %v1709_v44 }
 0x6be   :  { %v1726_v24 = vmul.f32 0.2, %v1710_v23 }
 0x6bf   :  { %v1721_v6 = vmul.f32 0.2, %v1705_v32  ;;  %v5890_v9 = vmax.f32 %v1709_v44, %v1725_v15  ;;  %v7979_v44 = vld [vmem:[#allocation8_spill] sm:$0xff] }
 0x6c0   :  { %v5888_v29 = vmax.f32 %v1710_v23, %v1726_v24  ;;  %v2983_v15 = vsel %vm2982_vm3, %v7979_v44, %v5350_v35 }
 0x6c1   :  { %v5882_v48 = vmax.f32 %v1705_v32, %v1721_v6  ;;  %v1712_v32 = vadd.f32 %v5825_v62, %v1691_v61 }
 0x6c2   :  { %1764 = vmax.xlane.f32.xlu2 %v5876_v53 }
 0x6c3   :  { %1762 = vmax.xlane.f32.xlu0 %v5879_v57  ;;  %1760 = vmax.xlane.f32.xlu1 %v5882_v48  ;;  %v1728_v6 = vmul.f32 0.2, %v1712_v32 }
 0x6c4   :  { %v1675_v27 = vpop.permute.xlu1 %1674 }
 0x6c5   :  { %v1708_v11 = vadd.f32 %v5825_v62, %v1675_v27  ;;  %v5899_v14 = vmax.f32 %v1712_v32, %v1728_v6 }
 0x6c7   :  { %v1724_v22 = vmul.f32 0.2, %v1708_v11 }
 0x6c9   :  { %v5893_v5 = vmax.f32 %v1708_v11, %v1724_v22 }
 0x6ca   :  { %1770 = vmax.xlane.f32.xlu2 %v5888_v29 }
 0x6cb   :  { %1768 = vmax.xlane.f32.xlu0 %v5890_v9  ;;  %1766 = vmax.xlane.f32.xlu1 %v5893_v5 }
 0x6cc   :  { %v1687_v42 = vpop.permute.xlu1 %1686 }
 0x6cd   :  { %v1711_v27 = vadd.f32 %v5825_v62, %v1687_v42  ;;  %v7981_v42 = vld [vmem:[#allocation13_spill] sm:$0xff] }
 0x6ce   :  { %v2986_v35 = vsel %vm2982_vm3, %v7981_v42, %v5354_v0 }
 0x6cf   :  { %v1727_v4 = vmul.f32 0.2, %v1711_v27 }
 0x6d1   :  { %v5901_v24 = vmax.f32 %v1711_v27, %v1727_v4 }
 0x6d3   :  { %1774 = vmax.xlane.f32.xlu0 %v5899_v14  ;;  %1772 = vmax.xlane.f32.xlu1 %v5901_v24 }
 0x6e7   :  { %1694 = vperm.xlu0 %4106, %v5376_v21  }
 0x6fd   :  { %v1747_v22 = vpop.xlane.xlu1 %1746 }
 0x6fe   :  { %v5907_v23 = vmax.f32 %v5457_v25, %v1747_v22 }
 0x700   :  { %v5914_v4 = vsel %vm2999_vm2, %v2983_v15, %v5907_v23  ;;  %1844 = vperm.xlu1 %4107, %v5907_v23  }
 0x701   :  { %7980 = vst [vmem:[#allocation8_spill] sm:$0xff] %v5914_v4 }
 0x71d   :  { %v1749_v11 = vpop.xlane.xlu2 %1748 }
 0x71e   :  { %v5918_v61 = vmax.f32 %v5553_v58, %v1749_v11 }
 0x720   :  { %1849 = vperm.xlu0 %4106, %v5918_v61  }
 0x725   :  { %v1753_v21 = vpop.xlane.xlu2 %1752 }
 0x726   :  { %v5922_v32 = vmax.f32 %v5465_v7, %v1753_v21  ;;  %v1751_v27 = vpop.xlane.xlu0 %1750 }
 0x728   :  { %v5929_v6 = vsel %vm2999_vm2, %v2986_v35, %v5922_v32  ;;  %1859 = vperm.xlu0 %4106, %v5922_v32  }
 0x729   :  { %7982 = vst [vmem:[#allocation13_spill] sm:$0xff] %v5929_v6 }
 0x72d   :  { %v1759_v22 = vpop.xlane.xlu2 %1758 }
 0x72e   :  { %v5933_v44 = vmax.f32 %v5632_v1, %v1759_v22  ;;  %v1755_v15 = vpop.xlane.xlu1 %1754  ;;  %v1757_v0 = vpop.xlane.xlu0 %1756 }
 0x72f   :  { %v5936_v11 = vmax.f32 %v5564_v52, %v1755_v15 }
 0x730   :  { %1874 = vperm.xlu0 %4106, %v5933_v44  }
 0x731   :  { %1864 = vperm.xlu1 %4107, %v5936_v11  }
 0x735   :  { %v1765_v7 = vpop.xlane.xlu2 %1764 }
 0x736   :  { %v5941_v21 = vmax.f32 %v5639_v2, %v1765_v7  ;;  %v1761_v42 = vpop.xlane.xlu1 %1760  ;;  %v1763_v22 = vpop.xlane.xlu0 %1762 }
 0x737   :  { %v5944_v35 = vmax.f32 %v5571_v63, %v1761_v42 }
 0x738   :  { %1889 = vperm.xlu0 %4106, %v5941_v21  }
 0x739   :  { %1879 = vperm.xlu1 %4107, %v5944_v35  }
 0x73d   :  { %v1771_v15 = vpop.xlane.xlu2 %1770 }
 0x73e   :  { %v5949_v6 = vmax.f32 %v5646_v10, %v1771_v15  ;;  %v1767_v4 = vpop.xlane.xlu1 %1766  ;;  %v1769_v42 = vpop.xlane.xlu0 %1768  ;;  %v5968_v10 = vmax.f32 %v5628_v33, %v1751_v27 }
 0x73f   :  { %v5952_v43 = vmax.f32 %v5578_v34, %v1767_v4 }
 0x740   :  { %7983 = vst [vmem:[#allocation171_spill] sm:$0xff] %v5949_v6  ;;  %1904 = vperm.xlu0 %4106, %v5949_v6   ;;  %v5972_v6 = vmax.f32 %v5472_v37, %v1757_v0 }
 0x741   :  { %1894 = vperm.xlu1 %4107, %v5952_v43  }
 0x746   :  { %v1773_v7 = vpop.xlane.xlu1 %1772  ;;  %v5960_v17 = vpop.xlane.xlu0 %1774 }
 0x747   :  { %v5957_v51 = vmax.f32 %v5585_v30, %v1773_v7 }
 0x749   :  { %7984 = vst [vmem:[#allocation172_spill] sm:$0xff] %v5957_v51  ;;  %1909 = vperm.xlu1 %4107, %v5957_v51  }
 0x759   :  { %v1695_v12 = vpop.permute.xlu0 %1694 }
 0x75a   :  { %v1713_v15 = vadd.f32 %v5825_v62, %v1695_v12  ;;  %v7985_v12 = vld [vmem:[#allocation40_spill] sm:$0xff] }
 0x75c   :  { %v1729_v45 = vmul.f32 0.2, %v1713_v15 }
 0x75e   :  { %v5963_v3 = vmax.f32 %v1713_v15, %v1729_v45  ;;  %v5980_v45 = vmax.f32 %v5479_v8, %v1763_v22 }
 0x760   :  { %1776 = vmax.xlane.f32.xlu2 %v5963_v3 }
 0x772   :  { %v1845_v4 = vpop.permute.xlu1 %1844 }
 0x773   :  { %v1922_v60 = vsub.f32 %v5832_v55, %v1845_v4 }
 0x775   :  { %v1938_v56 = vmul.f32 1.442695, %v1922_v60  ;;  %v5983_v60 = vld [vmem:[#allocation2 + $0x58] sm:$0xff] }
 0x776   :  { %7986 = vst [vmem:[#allocation173_spill] sm:$0xff] %v5983_v60 }
 0x777   :  { %4243 = vpow2.f32 %v1938_v56  ;;  %v5986_v56 = vmax.f32 %v5983_v60, %v1769_v42 }
 0x778   :  { %1854 = vperm.xlu2 %4105, %v5968_v10  }
 0x779   :  { %7987 = vst [vmem:[#allocation174_spill] sm:$0xff] %v5986_v56 }
 0x77d   :  { %v4244_v7 = vpop.eup %4243 }
 0x77e   :  { %v5975_v62 = vmul.f32 %v4244_v7, %v7985_v12 }
 0x780   :  { %1869 = vperm.xlu2 %4105, %v5972_v6   ;;  %2002 = vadd.xlane.f32.xlu1 %v5975_v62 }
 0x788   :  { %1884 = vperm.xlu2 %4105, %v5980_v45  }
 0x790   :  { %1899 = vperm.xlu2 %4105, %v5986_v56  }
 0x792   :  { %v1850_v37 = vpop.permute.xlu0 %1849 }
 0x793   :  { %v1923_v55 = vsub.f32 %v5851_v19, %v1850_v37  ;;  %v7988_v37 = vld [vmem:[#allocation41_spill] sm:$0xff] }
 0x795   :  { %v1940_v27 = vmul.f32 1.442695, %v1923_v55 }
 0x797   :  { %4245 = vpow2.f32 %v1940_v27 }
 0x79a   :  { %v1860_v0 = vpop.permute.xlu0 %1859 }
 0x79b   :  { %v1925_v15 = vsub.f32 %v5856_v20, %v1860_v0 }
 0x79d   :  { %v4246_v4 = vpop.eup %4245  ;;  %v1944_v8 = vmul.f32 1.442695, %v1925_v15 }
 0x79e   :  { %v5992_v22 = vmul.f32 %v4246_v4, %v5083_v38 }
 0x79f   :  { %4247 = vpow2.f32 %v1944_v8 }
 0x7a2   :  { %v1875_v7 = vpop.permute.xlu0 %1874 }
 0x7a3   :  { %v1928_v12 = vsub.f32 %v5864_v40, %v1875_v7  ;;  %v1865_v60 = vpop.permute.xlu1 %1864 }
 0x7a4   :  { %v1926_v42 = vsub.f32 %v5870_v18, %v1865_v60 }
 0x7a5   :  { %v4248_v56 = vpop.eup %4247  ;;  %v1950_v19 = vmul.f32 1.442695, %v1928_v12 }
 0x7a6   :  { %v5998_v55 = vmul.f32 %v4248_v56, %v7988_v37  ;;  %v1946_v12 = vmul.f32 1.442695, %v1926_v42 }
 0x7a7   :  { %4249 = vpow2.f32 %v1950_v19 }
 0x7a8   :  { %2008 = vadd.xlane.f32.xlu1 %v5998_v55 }
 0x7aa   :  { %v1890_v20 = vpop.permute.xlu0 %1889 }
 0x7ab   :  { %v1931_v27 = vsub.f32 %v5876_v53, %v1890_v20  ;;  %v1880_v0 = vpop.permute.xlu1 %1879 }
 0x7ac   :  { %v1929_v15 = vsub.f32 %v5882_v48, %v1880_v0 }
 0x7ad   :  { %v4250_v4 = vpop.eup %4249  ;;  %v1956_v8 = vmul.f32 1.442695, %v1931_v27 }
 0x7ae   :  { %v1952_v40 = vmul.f32 1.442695, %v1929_v15  ;;  %v6005_v7 = vmul.f32 %v4250_v4, %v5120_v39 }
 0x7af   :  { %4251 = vpow2.f32 %v1956_v8 }
 0x7b0   :  { %4253 = vpow2.f32 %v1952_v40  ;;  %2014 = vadd.xlane.f32.xlu1 %v6005_v7 }
 0x7b1   :  { %4255 = vpow2.f32 %v1946_v12 }
 0x7b2   :  { %v1905_v56 = vpop.permute.xlu0 %1904 }
 0x7b3   :  { %v1934_v19 = vsub.f32 %v5888_v29, %v1905_v56  ;;  %v1895_v53 = vpop.permute.xlu1 %1894 }
 0x7b4   :  { %v1932_v4 = vsub.f32 %v5893_v5, %v1895_v53  ;;  %v7989_v53 = vld [vmem:[#allocation59_spill] sm:$0xff] }
 0x7b5   :  { %v4252_v20 = vpop.eup %4251  ;;  %v1962_v37 = vmul.f32 1.442695, %v1934_v19 }
 0x7b6   :  { %v4254_v48 = vpop.eup %4253  ;;  %v6010_v27 = vmul.f32 %v4252_v20, %v5143_v46  ;;  %v1958_v12 = vmul.f32 1.442695, %v1932_v4 }
 0x7b7   :  { %4257 = vpow2.f32 %v1962_v37  ;;  %v6013_v18 = vmul.f32 %v4254_v48, %v5197_v59  ;;  %v4256_v42 = vpop.eup %4255 }
 0x7b8   :  { %2020 = vadd.xlane.f32.xlu1 %v6010_v27  ;;  %v6025_v40 = vmul.f32 %v4256_v42, %v5140_v16 }
 0x7b9   :  { %2004 = vadd.xlane.f32.xlu2 %v5992_v22 }
 0x7bb   :  { %v1910_v29 = vpop.permute.xlu1 %1909 }
 0x7bc   :  { %v1935_v0 = vsub.f32 %v5901_v24, %v1910_v29 }
 0x7bd   :  { %v4258_v15 = vpop.eup %4257 }
 0x7be   :  { %v1964_v8 = vmul.f32 1.442695, %v1935_v0  ;;  %v6022_v37 = vmul.f32 %v4258_v15, %v5170_v36 }
 0x7c0   :  { %4259 = vpow2.f32 %v1964_v8  ;;  %2026 = vadd.xlane.f32.xlu1 %v6022_v37 }
 0x7c1   :  { %2010 = vadd.xlane.f32.xlu2 %v6025_v40  ;;  %4261 = vpow2.f32 %v1958_v12 }
 0x7c6   :  { %v4260_v56 = vpop.eup %4259 }
 0x7c7   :  { %v6030_v24 = vmul.f32 %v4260_v56, %v5247_v50  ;;  %v4262_v19 = vpop.eup %4261 }
 0x7c8   :  { %v6036_v20 = vmul.f32 %v4262_v19, %v7989_v53  ;;  %v1794_v19 = vsub.f32 %v5457_v25, %v5907_v23  ;;  %v1795_v25 = vsub.f32 %v5553_v58, %v5918_v61  ;;  %v1800_v58 = vsub.f32 %v5632_v1, %v5933_v44 }
 0x7c9   :  { %2016 = vadd.xlane.f32.xlu2 %v6013_v18 }
 0x7d1   :  { %2022 = vadd.xlane.f32.xlu2 %v6036_v20 }
 0x7d3   :  { %v6039_v48 = vpop.xlane.xlu2 %1776 }
 0x7d9   :  { %2028 = vadd.xlane.f32.xlu2 %v6030_v24 }
 0x7db   :  { %v1855_v29 = vpop.permute.xlu2 %1854 }
 0x7dc   :  { %v1924_v42 = vsub.f32 %v5859_v54, %v1855_v29  ;;  %v1810_v29 = vmul.f32 1.442695, %v1794_v19 }
 0x7de   :  { %v1942_v0 = vmul.f32 1.442695, %v1924_v42 }
 0x7e0   :  { %4263 = vpow2.f32 %v1942_v0  ;;  %v6051_v0 = vld [vmem:[#allocation2 + $0x70] sm:$0xff] }
 0x7e3   :  { %v1870_v15 = vpop.permute.xlu2 %1869 }
 0x7e4   :  { %v1927_v4 = vsub.f32 %v5867_v28, %v1870_v15  ;;  %v6055_v28 = vmax.f32 %v6051_v0, %v5960_v17 }
 0x7e6   :  { %v4264_v8 = vpop.eup %4263  ;;  %v1948_v12 = vmul.f32 1.442695, %v1927_v4  ;;  %7990 = vst [vmem:[#allocation175_spill] sm:$0xff] %v6055_v28 }
 0x7e7   :  { %v6045_v56 = vmul.f32 %v4264_v8, %v5104_v49 }
 0x7e8   :  { %4265 = vpow2.f32 %v1948_v12 }
 0x7e9   :  { %2006 = vadd.xlane.f32.xlu0 %v6045_v56 }
 0x7eb   :  { %v1885_v5 = vpop.permute.xlu2 %1884 }
 0x7ec   :  { %v1930_v60 = vsub.f32 %v5879_v57, %v1885_v5  ;;  %v1798_v57 = vsub.f32 %v5564_v52, %v5936_v11  ;;  %v1801_v52 = vsub.f32 %v5571_v63, %v5944_v35 }
 0x7ee   :  { %v4266_v54 = vpop.eup %4265  ;;  %v1954_v42 = vmul.f32 1.442695, %v1930_v60  ;;  %v1818_v5 = vmul.f32 1.442695, %v1798_v57  ;;  %v1804_v57 = vsub.f32 %v5578_v34, %v5952_v43 }
 0x7ef   :  { %v6058_v15 = vmul.f32 %v4266_v54, %v5122_v13  ;;  %v1824_v54 = vmul.f32 1.442695, %v1801_v52 }
 0x7f0   :  { %4267 = vpow2.f32 %v1954_v42 }
 0x7f1   :  { %2012 = vadd.xlane.f32.xlu0 %v6058_v15  ;;  %1914 = vperm.xlu2 %4105, %v6055_v28   ;;  %4269 = vpow2.f32 %v1810_v29 }
 0x7f3   :  { %v1900_v23 = vpop.permute.xlu2 %1899 }
 0x7f4   :  { %v1933_v60 = vsub.f32 %v5890_v9, %v1900_v23  ;;  %v1830_v23 = vmul.f32 1.442695, %v1804_v57 }
 0x7f6   :  { %v4268_v17 = vpop.eup %4267  ;;  %v1960_v4 = vmul.f32 1.442695, %v1933_v60  ;;  %v1807_v60 = vsub.f32 %v5585_v30, %v5957_v51 }
 0x7f7   :  { %v6068_v8 = vmul.f32 %v4268_v17, %v5147_v31  ;;  %v6070_v12 = vpop.eup %4269 }
 0x7f8   :  { %7991 = vst [vmem:[#allocation176_spill] sm:$0xff] %v6070_v12  ;;  %4271 = vpow2.f32 %v1960_v4  ;;  %v1836_v17 = vmul.f32 1.442695, %v1807_v60 }
 0x7f9   :  { %2018 = vadd.xlane.f32.xlu0 %v6068_v8  ;;  %2052 = vperm.xlu2 %4105, %v6070_v12   ;;  %4273 = vpow2.f32 %v1818_v5  ;;  %v1812_v12 = vmul.f32 1.442695, %v1795_v25  ;;  %v1822_v25 = vmul.f32 1.442695, %v1800_v58 }
 0x7fa   :  { %4275 = vpow2.f32 %v1824_v54 }
 0x7fb   :  { %4277 = vpow2.f32 %v1830_v23 }
 0x7fc   :  { %4279 = vpow2.f32 %v1836_v17 }
 0x7fe   :  { %v4272_v19 = vpop.eup %4271 }
 0x7ff   :  { %v6077_v9 = vmul.f32 %v4272_v19, %v5174_v41  ;;  %v6079_v29 = vpop.eup %4273 }
 0x800   :  { %7992 = vst [vmem:[#allocation177_spill] sm:$0xff] %v6079_v29  ;;  %v6087_v63 = vpop.eup %4275 }
 0x801   :  { %2024 = vadd.xlane.f32.xlu0 %v6077_v9  ;;  %2072 = vperm.xlu2 %4105, %v6079_v29   ;;  %7993 = vst [vmem:[#allocation178_spill] sm:$0xff] %v6087_v63  ;;  %v6092_v5 = vpop.eup %4277  ;;  %v8032_v29 = vld [vmem:[#allocation39_spill] sm:$0xff] }
 0x802   :  { %7994 = vst [vmem:[#allocation179_spill] sm:$0xff] %v6092_v5  ;;  %v6095_v4 = vpop.eup %4279 }
 0x803   :  { %7995 = vst [vmem:[#allocation180_spill] sm:$0xff] %v6095_v4 }
 0x809   :  { %2087 = vperm.xlu2 %4105, %v6087_v63  }
 0x811   :  { %2102 = vperm.xlu2 %4105, %v6092_v5  }
 0x819   :  { %2117 = vperm.xlu2 %4105, %v6095_v4   ;;  %v6117_v4 = vmax.f32 %v5557_v26, %v6039_v48 }
 0x81b   :  { %8001 = vst [vmem:[#allocation186_spill] sm:$0xff] %v6117_v4 }
 0x82c   :  { %v6098_v34 = vpop.xlane.xlu2 %2004 }
 0x82d   :  { %7996 = vst [vmem:[#allocation181_spill] sm:$0xff] %v6098_v34 }
 0x834   :  { %v6100_v52 = vpop.xlane.xlu2 %2010 }
 0x835   :  { %7997 = vst [vmem:[#allocation182_spill] sm:$0xff] %v6100_v52 }
 0x83c   :  { %v6102_v19 = vpop.xlane.xlu2 %2016 }
 0x83d   :  { %7998 = vst [vmem:[#allocation183_spill] sm:$0xff] %v6102_v19 }
 0x844   :  { %v6104_v54 = vpop.xlane.xlu2 %2022 }
 0x845   :  { %7999 = vst [vmem:[#allocation184_spill] sm:$0xff] %v6104_v54 }
 0x84c   :  { %v6106_v57 = vpop.xlane.xlu2 %2028 }
 0x84d   :  { %8000 = vst [vmem:[#allocation185_spill] sm:$0xff] %v6106_v57 }
 0x854   :  { %v1915_v30 = vpop.permute.xlu2 %1914 }
 0x855   :  { %v1936_v23 = vsub.f32 %v5899_v14, %v1915_v30  ;;  %v6120_v14 = vld [vmem:[#allocation2 + $0x18] sm:$0xff] }
 0x856   :  { %v1797_v30 = vsub.f32 %v6120_v14, %v5922_v32 }
 0x857   :  { %v1966_v60 = vmul.f32 1.442695, %v1936_v23 }
 0x858   :  { %v1816_v23 = vmul.f32 1.442695, %v1797_v30  ;;  %v8005_v30 = vld [vmem:[#allocation171_spill] sm:$0xff] }
 0x859   :  { %4281 = vpow2.f32 %v1966_v60 }
 0x85a   :  { %4283 = vpow2.f32 %v1812_v12  ;;  %v1803_v12 = vsub.f32 %v5639_v2, %v5941_v21 }
 0x85b   :  { %4285 = vpow2.f32 %v1816_v23  ;;  %v8006_v23 = vld [vmem:[#allocation121_spill] sm:$0xff] }
 0x85c   :  { %4287 = vpow2.f32 %v1822_v25  ;;  %v1806_v57 = vsub.f32 %v8006_v23, %v8005_v30  ;;  %v1809_v25 = vsub.f32 %v5557_v26, %v6117_v4  ;;  %v8010_v26 = vld [vmem:[#allocation126_spill] sm:$0xff]  ;;  %v8011_v23 = vld [vmem:[#allocation113_spill] sm:$0xff] }
 0x85e   :  { %v1834_v1 = vmul.f32 1.442695, %v1806_v57  ;;  %v1840_v2 = vmul.f32 1.442695, %v1809_v25  ;;  %v8009_v57 = vld [vmem:[#allocation125_spill] sm:$0xff]  ;;  %v8013_v25 = vld [vmem:[#allocation115_spill] sm:$0xff] }
 0x85f   :  { %v4282_v17 = vpop.eup %4281 }
 0x860   :  { %v6110_v42 = vmul.f32 %v4282_v17, %v5202_v47  ;;  %v6124_v60 = vpop.eup %4283  ;;  %v1828_v17 = vmul.f32 1.442695, %v1803_v12 }
 0x861   :  { %8002 = vst [vmem:[#allocation187_spill] sm:$0xff] %v6124_v60  ;;  %v6129_v48 = vpop.eup %4285 }
 0x862   :  { %2030 = vadd.xlane.f32.xlu0 %v6110_v42  ;;  %8003 = vst [vmem:[#allocation188_spill] sm:$0xff] %v6129_v48  ;;  %v6134_v32 = vpop.eup %4287  ;;  %4289 = vpow2.f32 %v1828_v17  ;;  %v6153_v17 = vld [vmem:[%s4639_s24] sm:$0xff] }
 0x863   :  { %8004 = vst [vmem:[#allocation189_spill] sm:$0xff] %v6134_v32  ;;  %4291 = vpow2.f32 %v1834_v1  ;;  %2154 = vrot.lane.b32.xlu2 %v6153_v17, %s4556_s23  ;;  %v6161_v1 = vpop.xlane.xlu0 %2006 }
 0x864   :  { %4293 = vpow2.f32 %v1840_v2  ;;  %8012 = vst [vmem:[#allocation125_spill] sm:$0xff] %v6161_v1  ;;  %v8034_v1 = vld [vmem:[#allocation78_spill] sm:$0xff] }
 0x868   :  { %v6139_v58 = vpop.eup %4289 }
 0x869   :  { %8007 = vst [vmem:[#allocation171_spill] sm:$0xff] %v6139_v58  ;;  %v6144_v12 = vpop.eup %4291 }
 0x86a   :  { %8008 = vst [vmem:[#allocation121_spill] sm:$0xff] %v6144_v12 }
 0x86b   :  { %2160 = vrot.lane.b32.xlu2 %v8011_v23, %s4556_s23  ;;  %v6165_v2 = vpop.xlane.xlu0 %2012  ;;  %v8018_v23 = vld [vmem:[#allocation54_spill] sm:$0xff] }
 0x86c   :  { %8014 = vst [vmem:[#allocation126_spill] sm:$0xff] %v6165_v2 }
 0x873   :  { %2166 = vrot.lane.b32.xlu2 %v8013_v25, %s4556_s23  ;;  %v6167_v47 = vpop.xlane.xlu0 %2018  ;;  %v1796_v25 = vsub.f32 %v5628_v33, %v5968_v10 }
 0x874   :  { %8015 = vst [vmem:[#allocation113_spill] sm:$0xff] %v6167_v47  ;;  %v6180_v47 = vld [vmem:[#allocation2 + $0x28] sm:$0xff] }
 0x875   :  { %v1814_v2 = vmul.f32 1.442695, %v1796_v25 }
 0x876   :  { %1919 = vperm.xlu0 %4106, %v6117_v4  }
 0x87e   :  { %2057 = vperm.xlu0 %4106, %v6124_v60  }
 0x886   :  { %2067 = vperm.xlu0 %4106, %v6129_v48   ;;  %v6147_v48 = vpop.eup %4293 }
 0x88e   :  { %2082 = vperm.xlu0 %4106, %v6134_v32   ;;  %v8033_v32 = vld [vmem:[#allocation143_spill] sm:$0xff] }
 0x896   :  { %2097 = vperm.xlu0 %4106, %v6139_v58  }
 0x89e   :  { %2112 = vperm.xlu0 %4106, %v6144_v12  }
 0x8a6   :  { %2127 = vperm.xlu0 %4106, %v6147_v48  }
 0x8ae   :  { %2158 = vrot.lane.b32.xlu0 %v8009_v57, %s4556_s23  ;;  %v6169_v57 = vpop.xlane.xlu0 %2024 }
 0x8af   :  { %8016 = vst [vmem:[#allocation115_spill] sm:$0xff] %v6169_v57 }
 0x8b6   :  { %2164 = vrot.lane.b32.xlu0 %v8010_v26, %s4556_s23 }
 0x8d5   :  { %v6171_v54 = vpop.xlane.xlu0 %2030 }
 0x8d6   :  { %8017 = vst [vmem:[#allocation190_spill] sm:$0xff] %v6171_v54  ;;  %v1799_v54 = vsub.f32 %v6180_v47, %v5972_v6 }
 0x8d8   :  { %v1820_v57 = vmul.f32 1.442695, %v1799_v54 }
 0x8e8   :  { %v1920_v5 = vpop.permute.xlu0 %1919 }
 0x8e9   :  { %v1937_v19 = vsub.f32 %v5963_v3, %v1920_v5  ;;  %v6187_v5 = vld [vmem:[#allocation2 + $0x40] sm:$0xff] }
 0x8eb   :  { %v1968_v26 = vmul.f32 1.442695, %v1937_v19  ;;  %v1802_v19 = vsub.f32 %v6187_v5, %v5980_v45 }
 0x8ed   :  { %4295 = vpow2.f32 %v1968_v26  ;;  %v8022_v26 = vld [vmem:[#allocation173_spill] sm:$0xff] }
 0x8ee   :  { %4297 = vpow2.f32 %v1814_v2  ;;  %v8021_v2 = vld [vmem:[#allocation174_spill] sm:$0xff] }
 0x8ef   :  { %4299 = vpow2.f32 %v1820_v57  ;;  %v1805_v54 = vsub.f32 %v8022_v26, %v8021_v2  ;;  %v1808_v57 = vsub.f32 %v6051_v0, %v6055_v28  ;;  %v6208_v26 = vld [vmem:[%s4639_s24 + $0x8] sm:$0xff] }
 0x8f1   :  { %v1832_v25 = vmul.f32 1.442695, %v1805_v54  ;;  %v6212_v54 = vpop.xlane.xlu1 %2002 }
 0x8f2   :  { %8026 = vst [vmem:[#allocation194_spill] sm:$0xff] %v6212_v54 }
 0x8f3   :  { %v4296_v12 = vpop.eup %4295 }
 0x8f4   :  { %v6175_v63 = vmul.f32 %v4296_v12, %v8018_v23  ;;  %v6184_v3 = vpop.eup %4297  ;;  %v1826_v12 = vmul.f32 1.442695, %v1802_v19  ;;  %v1838_v19 = vmul.f32 1.442695, %v1808_v57  ;;  %v6222_v57 = vld [vmem:[%s4639_s24 + $0x38] sm:$0xff] }
 0x8f5   :  { %8019 = vst [vmem:[#allocation191_spill] sm:$0xff] %v6184_v3  ;;  %v6191_v33 = vpop.eup %4299 }
 0x8f6   :  { %2032 = vadd.xlane.f32.xlu1 %v6175_v63  ;;  %8020 = vst [vmem:[#allocation192_spill] sm:$0xff] %v6191_v33  ;;  %4301 = vpow2.f32 %v1826_v12 }
 0x8f7   :  { %4303 = vpow2.f32 %v1832_v25  ;;  %v6215_v25 = vld [vmem:[%s4639_s24 + $0x20] sm:$0xff] }
 0x8f8   :  { %4305 = vpow2.f32 %v1838_v19 }
 0x8f9   :  { %v6219_v0 = vpop.xlane.xlu1 %2008 }
 0x8fa   :  { %8027 = vst [vmem:[#allocation195_spill] sm:$0xff] %v6219_v0 }
 0x8fc   :  { %v6196_v52 = vpop.eup %4301 }
 0x8fd   :  { %8023 = vst [vmem:[#allocation174_spill] sm:$0xff] %v6196_v52  ;;  %v6201_v58 = vpop.eup %4303 }
 0x8fe   :  { %8024 = vst [vmem:[#allocation173_spill] sm:$0xff] %v6201_v58  ;;  %v6204_v12 = vpop.eup %4305 }
 0x8ff   :  { %8025 = vst [vmem:[#allocation193_spill] sm:$0xff] %v6204_v12 }
 0x901   :  { %v6226_v19 = vpop.xlane.xlu1 %2014 }
 0x902   :  { %8028 = vst [vmem:[#allocation196_spill] sm:$0xff] %v6226_v19 }
 0x90f   :  { %2062 = vperm.xlu1 %4107, %v6184_v3  }
 0x917   :  { %2077 = vperm.xlu1 %4107, %v6191_v33   ;;  %v8031_v33 = vld [vmem:[#allocation124_spill] sm:$0xff] }
 0x91f   :  { %2092 = vperm.xlu1 %4107, %v6196_v52   ;;  %v257_v52 = vld [vmem:[#allocation3 + $0x78] sm:$0xff] }
 0x920   :  { %v1326_v54 = vmul.f32 %v8031_v33, %v257_v52  ;;  %v675_v34 = vmul.f32 %v8032_v29, %v257_v52  ;;  %v2001_v0 = vmul.f32 %v6147_v48, %v257_v52 }
 0x922   :  { %v1374_v60 = vadd.f32 %v8033_v32, %v1326_v54  ;;  %v723_v3 = vadd.f32 %v8034_v1, %v675_v34 }
 0x924   :  { %v3065_v50 = vsel %vm2982_vm3, %v723_v3, %v1374_v60 }
 0x927   :  { %2107 = vperm.xlu1 %4107, %v6201_v58  }
 0x92f   :  { %2122 = vperm.xlu1 %4107, %v6204_v12   ;;  %v6228_v12 = vpop.xlane.xlu1 %2020 }
 0x930   :  { %8029 = vst [vmem:[#allocation197_spill] sm:$0xff] %v6228_v12  ;;  %v6241_v12 = vpop.permute.xlu2 %2052 }
 0x937   :  { %2156 = vrot.lane.b32.xlu1 %v6208_v26, %s4556_s23  ;;  %v6230_v58 = vpop.xlane.xlu1 %2026 }
 0x938   :  { %8030 = vst [vmem:[#allocation198_spill] sm:$0xff] %v6230_v58  ;;  %v6243_v58 = vpop.permute.xlu0 %2057  ;;  %v6245_v33 = vpop.permute.xlu2 %2072 }
 0x93f   :  { %2162 = vrot.lane.b32.xlu1 %v6215_v25, %s4556_s23 }
 0x940   :  { %v6249_v32 = vpop.permute.xlu0 %2067  ;;  %v6253_v34 = vpop.permute.xlu2 %2087 }
 0x947   :  { %2168 = vrot.lane.b32.xlu1 %v6222_v57, %s4556_s23 }
 0x948   :  { %v6255_v48 = vpop.permute.xlu0 %2082 }
 0x969   :  { %v2033_v23 = vpop.xlane.xlu1 %2032 }
 0x96a   :  { %v2049_v41 = vadd.f32 %v2033_v23, %v2001_v0 }
 0x96c   :  { %v6239_v19 = vsel %vm2999_vm2, %v3065_v50, %v2049_v41  ;;  %v6259_v41 = vpop.permute.xlu2 %2102  ;;  %v6261_v50 = vpop.permute.xlu0 %2097 }
 0x96d   :  { %8035 = vst [vmem:[#allocation124_spill] sm:$0xff] %v6239_v19 }
 0x974   :  { %v6265_v23 = vpop.permute.xlu2 %2117  ;;  %v6269_v54 = vpop.permute.xlu0 %2112 }
 0x975   :  { %8036 = vst [vmem:[#allocation39_spill] sm:$0xff] %v6265_v23  ;;  %v8038_v23 = vpack.c.bf16 %v5992_v22, %v5975_v62  ;;  %v8042_v62 = vpack.c.bf16 %v6030_v24, %v6022_v37  ;;  %v2153_v22 = vpack.c.bf16 %v6175_v63, %v6110_v42  ;;  %v259_v42 = vld [vmem:[#allocation4 + $0x8] sm:$0xff] }
 0x976   :  { %v8043_v63 = vld [vmem:[#allocation129_spill] sm:$0xff] }
 0x97c   :  { %v2155_v0 = vpop.permute.xlu2 %2154  ;;  %v6271_v28 = vpop.permute.xlu0 %2127 }
 0x97d   :  { %8037 = vst [vmem:[#allocation143_spill] sm:$0xff] %v6271_v28  ;;  %v2147_v28 = vpack.c.bf16 %v5998_v55, %v6045_v56 }
 0x981   :  { %v6247_v29 = vpop.permute.xlu1 %2062 }
 0x984   :  { %v2161_v36 = vpop.permute.xlu2 %2160  ;;  %v2159_v31 = vpop.permute.xlu0 %2158 }
 0x989   :  { %v6251_v52 = vpop.permute.xlu1 %2077 }
 0x98c   :  { %v2167_v4 = vpop.permute.xlu2 %2166  ;;  %v2165_v51 = vpop.permute.xlu0 %2164 }
 0x991   :  { %v6257_v60 = vpop.permute.xlu1 %2092 }
 0x999   :  { %v6263_v1 = vpop.permute.xlu1 %2107 }
 0x9a1   :  { %v6267_v3 = vpop.permute.xlu1 %2122 }
 0x9a9   :  { %v2157_v19 = vpop.permute.xlu1 %2156 }
 0x9b1   :  { %v2163_v53 = vpop.permute.xlu1 %2162 }
 0x9b9   :  { %v2169_v46 = vpop.permute.xlu1 %2168 }
 0x9ba   :  { %2178 = vmatpush.bf16.msra.mxu2 %v2169_v46  ;;  %v8039_v46 = vpack.c.bf16 %v6058_v15, %v6025_v40 }
 0x9be   :  { %2179 = vmatpush.bf16.msra.mxu2 %v2167_v4  ;;  %v1456_v4 = vmul.f32 %v8043_v63, %v259_v42  ;;  %v8049_v63 = vld [vmem:[#allocation151_spill] sm:$0xff] }
 0x9c2   :  { %2180 = vmatpush.bf16.msra.mxu2 %v2165_v51  ;;  %v8040_v51 = vpack.c.bf16 %v6013_v18, %v6005_v7 }
 0x9c6   :  { %2181 = vmatpush.bf16.msra.mxu2 %v2163_v53 }
 0x9ca   :  { %2182 = vmatpush.bf16.msra.mxu2 %v2161_v36  ;;  %v8041_v36 = vpack.c.bf16 %v6077_v9, %v6036_v20 }
 0x9ce   :  { %2183 = vmatpush.bf16.msra.mxu2 %v2159_v31  ;;  %v2150_v31 = vpack.c.bf16 %v6010_v27, %v6068_v8  ;;  %v6305_v8 = vpop.f32.mrf.mxu0 }
 0x9d2   :  { %2184 = vmatpush.bf16.msra.mxu2 %v2157_v19 }
 0x9d6   :  { %2185 = vmatpush.bf16.msra.mxu2 %v2155_v0  ;;  %v903_v19 = vpop.f32.mrf.mxu0  ;;  %v8044_v0 = vld [vmem:[#allocation53_spill] sm:$0xff] }
 0x9d9   :  { %2186 = vmatmul.bf16.vlgmr.msra.gmra.mxu2 %v8038_v23 }
 0x9e9   :  { %2191 = vmatmul.bf16.gmra.mxu2 %v2147_v28  ;;  %v4558_v28 = vmov 3  }
 0x9ea   :  { %4108 = vset.pattern.permute.xlu2 %v4558_v28  ;;  %4109 = vset.pattern.permute.xlu1 %v4558_v28 }
 0x9eb   :  { %4110 = vset.pattern.permute.xlu0 %v4558_v28 }
 0x9f9   :  { %2196 = vmatmul.bf16.gmra.mxu2 %v8039_v46  ;;  %v805_v46 = vmul.f32 %v8044_v0, %v259_v42  ;;  %v260_v0 = vld [vmem:[#allocation4 + $0x10] sm:$0xff] }
 0xa09   :  { %2201 = vmatmul.bf16.gmra.mxu2 %v8040_v51  ;;  %v8045_v51 = vld [vmem:[#allocation155_spill] sm:$0xff] }
 0xa19   :  { %2206 = vmatmul.bf16.gmra.mxu2 %v2150_v31  ;;  %v1617_v31 = vadd.f32 %v8045_v51, %v1456_v4  ;;  %v8052_v51 = vld [vmem:[#allocation43_spill] sm:$0xff] }
 0xa29   :  { %2211 = vmatmul.bf16.gmra.mxu2 %v8041_v36  ;;  %v2131_v36 = vmul.f32 %v6243_v58, %v259_v42  ;;  %v8048_v42 = vld [vmem:[#allocation150_spill] sm:$0xff] }
 0xa39   :  { %2216 = vmatmul.bf16.gmra.mxu2 %v8042_v62  ;;  %v942_v62 = vadd.f32 %v903_v19, %v805_v46  ;;  %v8051_v46 = vld [vmem:[#allocation144_spill] sm:$0xff] }
 0xa49   :  { %2221 = vmatmul.bf16.gmra.mxu2 %v2153_v22 }
 0xa5c   :  { %v2187_v55 = vpop.f32.mrf.mxu2 }
 0xa5d   :  { %2243 = vrot.lane.b32.xlu0 %v2187_v55, %s4557_s25 }
 0xa64   :  { %v2189_v7 = vpop.f32.mrf.mxu2 }
 0xa65   :  { %2245 = vrot.lane.b32.xlu2 %v2189_v7, %s4557_s25  ;;  %v3116_v7 = vsel %vm3114_vm4, %v942_v62, %v1617_v31  ;;  %v806_v31 = vmul.f32 %v8052_v51, %v260_v0 }
 0xa6c   :  { %v2192_v27 = vpop.f32.mrf.mxu2 }
 0xa6d   :  { %2247 = vrot.lane.b32.xlu1 %v2192_v27, %s4557_s25 }
 0xa74   :  { %v2194_v18 = vpop.f32.mrf.mxu2 }
 0xa75   :  { %2249 = vrot.lane.b32.xlu0 %v2194_v18, %s4557_s25 }
 0xa7c   :  { %v2197_v40 = vpop.f32.mrf.mxu2 }
 0xa7d   :  { %2251 = vrot.lane.b32.xlu2 %v2197_v40, %s4557_s25  ;;  %v906_v40 = vpop.f32.mrf.mxu0 }
 0xa84   :  { %v2199_v37 = vpop.f32.mrf.mxu2 }
 0xa85   :  { %2253 = vrot.lane.b32.xlu1 %v2199_v37, %s4557_s25  ;;  %v908_v28 = vpop.f32.mrf.mxu0 }
 0xa8c   :  { %v2202_v24 = vpop.f32.mrf.mxu2 }
 0xa8d   :  { %2255 = vrot.lane.b32.xlu0 %v2202_v24, %s4557_s25  ;;  %v258_v24 = vld [vmem:[#allocation4] sm:$0xff] }
 0xa8e   :  { %v2130_v58 = vmul.f32 %v6241_v12, %v258_v24  ;;  %v1457_v12 = vmul.f32 %v8051_v46, %v260_v0 }
 0xa94   :  { %v2204_v53 = vpop.f32.mrf.mxu2 }
 0xa95   :  { %2257 = vrot.lane.b32.xlu2 %v2204_v53, %s4557_s25  ;;  %v8047_v53 = vld [vmem:[#allocation149_spill] sm:$0xff] }
 0xa9c   :  { %v2207_v20 = vpop.f32.mrf.mxu2 }
 0xa9d   :  { %2259 = vrot.lane.b32.xlu1 %v2207_v20, %s4557_s25 }
 0xaa4   :  { %v2209_v56 = vpop.f32.mrf.mxu2 }
 0xaa5   :  { %2261 = vrot.lane.b32.xlu0 %v2209_v56, %s4557_s25 }
 0xaac   :  { %v2212_v15 = vpop.f32.mrf.mxu2 }
 0xaad   :  { %2263 = vrot.lane.b32.xlu2 %v2212_v15, %s4557_s25 }
 0xab4   :  { %v2214_v9 = vpop.f32.mrf.mxu2 }
 0xab5   :  { %2265 = vrot.lane.b32.xlu1 %v2214_v9, %s4557_s25  ;;  %v262_v9 = vld [vmem:[#allocation4 + $0x20] sm:$0xff] }
 0xab6   :  { %v2134_v4 = vmul.f32 %v6245_v33, %v262_v9  ;;  %v2132_v33 = vmul.f32 %v6247_v29, %v260_v0  ;;  %v8059_v9 = vld [vmem:[#allocation128_spill] sm:$0xff] }
 0xabc   :  { %v2217_v23 = vpop.f32.mrf.mxu2 }
 0xabd   :  { %2267 = vrot.lane.b32.xlu0 %v2217_v23, %s4557_s25 }
 0xabf   :  { %v2246_v22 = vpop.permute.xlu2 %2245 }
 0xac0   :  { %v2292_v55 = vadd.f32 %v2246_v22, %v2131_v36  ;;  %v8053_v36 = vld [vmem:[#allocation159_spill] sm:$0xff]  ;;  %v8054_v22 = vld [vmem:[#allocation154_spill] sm:$0xff] }
 0xac1   :  { %v1618_v62 = vadd.f32 %v8053_v36, %v1457_v12 }
 0xac2   :  { %v6315_v27 = vsel %vm3131_vm5, %v3116_v7, %v2292_v55  ;;  %v8055_v55 = vld [vmem:[#allocation152_spill] sm:$0xff]  ;;  %v6334_v7 = vpop.f32.mrf.mxu0 }
 0xac3   :  { %8046 = vst [vmem:[#allocation78_spill] sm:$0xff] %v6315_v27  ;;  %v6636_v27 = vld [vmem:[#allocation2 + $0x50] sm:$0xff] }
 0xac4   :  { %v2219_v18 = vpop.f32.mrf.mxu2  ;;  %8056 = vst [vmem:[#allocation53_spill] sm:$0xff] %v6334_v7 }
 0xac5   :  { %2269 = vrot.lane.b32.xlu2 %v2219_v18, %s4557_s25  ;;  %v8057_v18 = vld [vmem:[#allocation153_spill] sm:$0xff] }
 0xaca   :  { %v913_v51 = vpop.f32.mrf.mxu0 }
 0xacc   :  { %v2222_v37 = vpop.f32.mrf.mxu2 }
 0xacd   :  { %2309 = vperm.xlu2 %4108, %v8047_v53   ;;  %2271 = vrot.lane.b32.xlu1 %v2222_v37, %s4557_s25  ;;  %v943_v37 = vadd.f32 %v906_v40, %v806_v31 }
 0xacf   :  { %v2244_v20 = vpop.permute.xlu0 %2243 }
 0xad0   :  { %v6321_v56 = vadd.f32 %v2244_v20, %v2130_v58  ;;  %v3117_v58 = vsel %vm3114_vm4, %v943_v37, %v1618_v62  ;;  %v261_v20 = vld [vmem:[#allocation4 + $0x18] sm:$0xff] }
 0xad1   :  { %v2133_v12 = vmul.f32 %v6249_v32, %v261_v20  ;;  %v265_v62 = vld [vmem:[#allocation4 + $0x38] sm:$0xff]  ;;  %v8065_v32 = vld [vmem:[#allocation58_spill] sm:$0xff] }
 0xad2   :  { %v916_v37 = vpop.f32.mrf.mxu0 }
 0xad4   :  { %v2224_v15 = vpop.f32.mrf.mxu2 }
 0xad5   :  { %2321 = vperm.xlu2 %4108, %v8048_v42   ;;  %2313 = vperm.xlu1 %4109, %v8049_v63   ;;  %v1458_v42 = vmul.f32 %v8059_v9, %v261_v20  ;;  %v8060_v63 = vld [vmem:[#allocation44_spill] sm:$0xff] }
 0xad6   :  { %2273 = vrot.lane.b32.xlu0 %v2224_v15, %s4557_s25 }
 0xad7   :  { %v2252_v19 = vpop.permute.xlu2 %2251 }
 0xad8   :  { %v6327_v23 = vadd.f32 %v2252_v19, %v2134_v4  ;;  %v807_v4 = vmul.f32 %v8060_v63, %v261_v20  ;;  %v8061_v19 = vld [vmem:[#allocation163_spill] sm:$0xff] }
 0xad9   :  { %v1619_v46 = vadd.f32 %v8061_v19, %v1458_v42 }
 0xada   :  { %8050 = vst [vmem:[#allocation129_spill] sm:$0xff] %v6327_v23  ;;  %v944_v29 = vadd.f32 %v908_v28, %v807_v4  ;;  %v8109_v23 = vld [vmem:[#allocation40_spill] sm:$0xff] }
 0xadc   :  { %v3118_v31 = vsel %vm3114_vm4, %v944_v29, %v1619_v46  ;;  %v264_v46 = vld [vmem:[#allocation4 + $0x30] sm:$0xff] }
 0xadd   :  { %2325 = vperm.xlu1 %4109, %v8054_v22   ;;  %2329 = vperm.xlu2 %4108, %v8055_v55   ;;  %v2137_v22 = vmul.f32 %v6253_v34, %v265_v62  ;;  %v8071_v62 = vld [vmem:[#allocation165_spill] sm:$0xff] }
 0xade   :  { %2317 = vperm.xlu0 %4110, %v8057_v18   ;;  %v263_v18 = vld [vmem:[#allocation4 + $0x28] sm:$0xff] }
 0xadf   :  { %v2248_v24 = vpop.permute.xlu1 %2247  ;;  %v809_v28 = vmul.f32 %v8065_v32, %v263_v18  ;;  %v2135_v9 = vmul.f32 %v6251_v52, %v263_v18  ;;  %v268_v32 = vld [vmem:[#allocation4 + $0x50] sm:$0xff] }
 0xae0   :  { %v2293_v53 = vadd.f32 %v2248_v24, %v2132_v33  ;;  %v8064_v24 = vld [vmem:[#allocation131_spill] sm:$0xff] }
 0xae1   :  { %v946_v42 = vadd.f32 %v913_v51, %v809_v28 }
 0xae2   :  { %v6340_v15 = vsel %vm3131_vm5, %v3117_v58, %v2293_v53  ;;  %v1460_v53 = vmul.f32 %v8064_v24, %v263_v18  ;;  %v8066_v58 = vld [vmem:[#allocation162_spill] sm:$0xff] }
 0xae3   :  { %8058 = vst [vmem:[#allocation155_spill] sm:$0xff] %v6340_v15 }
 0xae4   :  { %v1621_v20 = vadd.f32 %v8066_v58, %v1460_v53  ;;  %v2140_v58 = vmul.f32 %v6259_v41, %v268_v32  ;;  %v269_v32 = vld [vmem:[#allocation4 + $0x58] sm:$0xff] }
 0xae6   :  { %v3120_v19 = vsel %vm3114_vm4, %v946_v42, %v1621_v20  ;;  %v266_v42 = vld [vmem:[#allocation4 + $0x40] sm:$0xff] }
 0xae7   :  { %v2250_v0 = vpop.permute.xlu0 %2249 }
 0xae8   :  { %v2294_v40 = vadd.f32 %v2250_v0, %v2133_v12  ;;  %v8068_v12 = vld [vmem:[#allocation145_spill] sm:$0xff]  ;;  %v6362_v0 = vpop.f32.mrf.mxu0 }
 0xae9   :  { %v1461_v29 = vmul.f32 %v8068_v12, %v264_v46  ;;  %8069 = vst [vmem:[#allocation144_spill] sm:$0xff] %v6362_v0  ;;  %v2138_v12 = vmul.f32 %v6257_v60, %v266_v42 }
 0xaea   :  { %v6348_v36 = vsel %vm3131_vm5, %v3118_v31, %v2294_v40  ;;  %v8070_v40 = vld [vmem:[#allocation48_spill] sm:$0xff] }
 0xaeb   :  { %8062 = vst [vmem:[#allocation149_spill] sm:$0xff] %v6348_v36  ;;  %v810_v31 = vmul.f32 %v8070_v40, %v264_v46  ;;  %v8106_v36 = vld [vmem:[#allocation14_spill] sm:$0xff] }
 0xaed   :  { %v947_v52 = vadd.f32 %v916_v37, %v810_v31  ;;  %v8076_v37 = vld [vmem:[#allocation164_spill] sm:$0xff] }
 0xaef   :  { %v2258_v55 = vpop.permute.xlu2 %2257 }
 0xaf0   :  { %v6351_v33 = vadd.f32 %v2258_v55, %v2137_v22  ;;  %v1622_v22 = vadd.f32 %v8071_v62, %v1461_v29  ;;  %v2136_v55 = vmul.f32 %v6255_v48, %v264_v46  ;;  %v921_v28 = vpop.f32.mrf.mxu0 }
 0xaf2   :  { %8063 = vst [vmem:[#allocation150_spill] sm:$0xff] %v6351_v33  ;;  %v3121_v24 = vsel %vm3114_vm4, %v947_v52, %v1622_v22 }
 0xaf7   :  { %v2254_v63 = vpop.permute.xlu1 %2253 }
 0xaf8   :  { %v2296_v4 = vadd.f32 %v2254_v63, %v2135_v9  ;;  %v8074_v63 = vld [vmem:[#allocation135_spill] sm:$0xff]  ;;  %v6378_v31 = vpop.f32.mrf.mxu0 }
 0xaf9   :  { %8077 = vst [vmem:[#allocation154_spill] sm:$0xff] %v6378_v31  ;;  %v8104_v31 = vld [vmem:[#allocation12_spill] sm:$0xff] }
 0xafa   :  { %v6359_v34 = vsel %vm3131_vm5, %v3120_v19, %v2296_v4  ;;  %v1463_v4 = vmul.f32 %v8074_v63, %v266_v42  ;;  %v8075_v19 = vld [vmem:[#allocation62_spill] sm:$0xff]  ;;  %v8083_v63 = vld [vmem:[#allocation64_spill] sm:$0xff] }
 0xafb   :  { %8067 = vst [vmem:[#allocation151_spill] sm:$0xff] %v6359_v34  ;;  %v812_v48 = vmul.f32 %v8075_v19, %v266_v42  ;;  %v6393_v42 = vld [vmem:[%s4633_s21 + $0x3] ss:$0 sm:$0xff]  ;;  %v8084_v19 = vld [vmem:[#allocation166_spill] sm:$0xff] }
 0xafc   :  { %v1624_v46 = vadd.f32 %v8076_v37, %v1463_v4  ;;  %v815_v4 = vmul.f32 %v8083_v63, %v269_v32  ;;  %v2141_v37 = vmul.f32 %v6263_v1, %v269_v32 }
 0xafd   :  { %v949_v29 = vadd.f32 %v921_v28, %v812_v48  ;;  %v8082_v28 = vld [vmem:[#allocation138_spill] sm:$0xff] }
 0xaff   :  { %v2256_v51 = vpop.permute.xlu0 %2255  ;;  %v3123_v41 = vsel %vm3114_vm4, %v949_v29, %v1624_v46 }
 0xb00   :  { %v2297_v18 = vadd.f32 %v2256_v51, %v2136_v55  ;;  %v267_v55 = vld [vmem:[#allocation4 + $0x48] sm:$0xff] }
 0xb01   :  { %v2139_v52 = vmul.f32 %v6261_v50, %v267_v55 }
 0xb02   :  { %v6369_v53 = vsel %vm3131_vm5, %v3121_v24, %v2297_v18  ;;  %v6387_v24 = vpop.f32.mrf.mxu0 }
 0xb03   :  { %8072 = vst [vmem:[#allocation43_spill] sm:$0xff] %v6369_v53  ;;  %v6597_v53 = vld [vmem:[#allocation2 + $0x38] sm:$0xff] }
 0xb04   :  { %8080 = vst [vmem:[#allocation128_spill] sm:$0xff] %v6387_v24  ;;  %v6649_v24 = vld [vmem:[#allocation2 + $0x60] sm:$0xff] }
 0xb07   :  { %v2264_v20 = vpop.permute.xlu2 %2263 }
 0xb08   :  { %v6372_v9 = vadd.f32 %v2264_v20, %v2140_v58  ;;  %v1466_v58 = vmul.f32 %v8082_v28, %v269_v32 }
 0xb0a   :  { %8073 = vst [vmem:[#allocation159_spill] sm:$0xff] %v6372_v9  ;;  %v928_v20 = vpop.f32.mrf.mxu0  ;;  %v1627_v48 = vadd.f32 %v8084_v19, %v1466_v58  ;;  %v272_v19 = vld [vmem:[#allocation4 + $0x70] sm:$0xff] }
 0xb0b   :  { %v952_v50 = vadd.f32 %v928_v20, %v815_v4 }
 0xb0f   :  { %v2260_v40 = vpop.permute.xlu1 %2259 }
 0xb10   :  { %v2299_v62 = vadd.f32 %v2260_v40, %v2138_v12 }
 0xb12   :  { %v6382_v22 = vsel %vm3131_vm5, %v3123_v41, %v2299_v62  ;;  %v3126_v62 = vsel %vm3114_vm4, %v952_v50, %v1627_v48  ;;  %v2144_v48 = vmul.f32 %v6267_v3, %v272_v19 }
 0xb13   :  { %8078 = vst [vmem:[#allocation152_spill] sm:$0xff] %v6382_v22  ;;  %v8096_v22 = vld [vmem:[#allocation9_spill] sm:$0xff] }
 0xb17   :  { %v2262_v51 = vpop.permute.xlu0 %2261 }
 0xb18   :  { %v6385_v18 = vadd.f32 %v2262_v51, %v2139_v52  ;;  %v270_v51 = vld [vmem:[#allocation4 + $0x60] sm:$0xff] }
 0xb19   :  { %v2142_v28 = vmul.f32 %v6269_v54, %v270_v51 }
 0xb1a   :  { %8079 = vst [vmem:[#allocation153_spill] sm:$0xff] %v6385_v18  ;;  %v8103_v18 = vld [vmem:[#allocation87_spill] sm:$0xff] }
 0xb1f   :  { %v6389_v60 = vpop.permute.xlu2 %2269 }
 0xb20   :  { %8081 = vst [vmem:[#allocation44_spill] sm:$0xff] %v6389_v60  ;;  %v8105_v60 = vld [vmem:[#allocation88_spill] sm:$0xff] }
 0xb27   :  { %v2266_v46 = vpop.permute.xlu1 %2265  ;;  %v2310_v12 = vpop.permute.xlu2 %2309 }
 0xb28   :  { %v2302_v29 = vadd.f32 %v2266_v46, %v2141_v37  ;;  %v2373_v40 = vadd.f32 %v6393_v42, %v2310_v12 }
 0xb2a   :  { %v6401_v41 = vsel %vm3131_vm5, %v3126_v62, %v2302_v29  ;;  %v2389_v55 = vmul.f32 0.2, %v2373_v40 }
 0xb2b   :  { %8085 = vst [vmem:[#allocation163_spill] sm:$0xff] %v6401_v41  ;;  %v6476_v41 = vld [vmem:[#allocation2 + $0x20] sm:$0xff] }
 0xb2c   :  { %v6403_v52 = vmax.f32 %v2373_v40, %v2389_v55 }
 0xb2e   :  { %2421 = vmax.xlane.f32.xlu0 %v6403_v52 }
 0xb2f   :  { %v2268_v1 = vpop.permute.xlu0 %2267  ;;  %v2322_v32 = vpop.permute.xlu2 %2321 }
 0xb30   :  { %v6407_v58 = vadd.f32 %v2268_v1, %v2142_v28  ;;  %v2376_v20 = vadd.f32 %v6393_v42, %v2322_v32 }
 0xb32   :  { %8086 = vst [vmem:[#allocation131_spill] sm:$0xff] %v6407_v58  ;;  %v2392_v63 = vmul.f32 0.2, %v2376_v20 }
 0xb34   :  { %v6410_v4 = vmax.f32 %v2376_v20, %v2392_v63 }
 0xb36   :  { %2427 = vmax.xlane.f32.xlu0 %v6410_v4 }
 0xb37   :  { %v2330_v3 = vpop.permute.xlu2 %2329 }
 0xb38   :  { %v2378_v63 = vadd.f32 %v6393_v42, %v2330_v3 }
 0xb3f   :  { %v2272_v37 = vpop.permute.xlu1 %2271 }
 0xb40   :  { %v6414_v50 = vadd.f32 %v2272_v37, %v2144_v48  ;;  %v2394_v48 = vmul.f32 0.2, %v2378_v63 }
 0xb42   :  { %8087 = vst [vmem:[#allocation58_spill] sm:$0xff] %v6414_v50  ;;  %v6431_v37 = vmax.f32 %v2378_v63, %v2394_v48 }
 0xb47   :  { %v2314_v54 = vpop.permute.xlu1 %2313 }
 0xb48   :  { %v2374_v46 = vadd.f32 %v6393_v42, %v2314_v54  ;;  %v6417_v12 = vpop.permute.xlu0 %2273  ;;  %v4416_v54 = vld [vmem:[%s7693_s4 + $0x30] sm:$0xff] }
 0xb49   :  { %8088 = vst [vmem:[#allocation162_spill] sm:$0xff] %v6417_v12  ;;  %v8094_v12 = vld [vmem:[#allocation10_spill] sm:$0xff] }
 0xb4a   :  { %v2390_v29 = vmul.f32 0.2, %v2374_v46 }
 0xb4c   :  { %v6419_v40 = vmax.f32 %v2374_v46, %v2390_v29  ;;  %v4417_v46 = vld [vmem:[%s7693_s4 + $0x48] sm:$0xff]  ;;  %v4418_v29 = vld [vmem:[%s4639_s24 + $0x10] sm:$0xff] }
 0xb4e   :  { %2423 = vmax.xlane.f32.xlu2 %v6419_v40 }
 0xb4f   :  { %v2326_v62 = vpop.permute.xlu1 %2325 }
 0xb50   :  { %v2377_v55 = vadd.f32 %v6393_v42, %v2326_v62  ;;  %v2318_v51 = vpop.permute.xlu0 %2317 }
 0xb51   :  { %v2375_v28 = vadd.f32 %v6393_v42, %v2318_v51 }
 0xb52   :  { %v2393_v1 = vmul.f32 0.2, %v2377_v55 }
 0xb53   :  { %v2391_v32 = vmul.f32 0.2, %v2375_v28 }
 0xb54   :  { %v6424_v20 = vmax.f32 %v2377_v55, %v2393_v1  ;;  %v6444_v55 = vld [vmem:[#allocation2] sm:$0xff] }
 0xb55   :  { %v6427_v19 = vmax.f32 %v2375_v28, %v2391_v32  ;;  %v8089_v28 = vld [vmem:[#allocation8_spill] sm:$0xff] }
 0xb56   :  { %2429 = vmax.xlane.f32.xlu2 %v6424_v20 }
 0xb57   :  { %2425 = vmax.xlane.f32.xlu1 %v6427_v19 }
 0xb5f   :  { %2431 = vmax.xlane.f32.xlu1 %v6431_v37 }
 0xb78   :  { %2333 = vperm.xlu1 %4109, %v4416_v54   ;;  %v8091_v54 = vld [vmem:[#allocation85_spill] sm:$0xff] }
 0xb80   :  { %2345 = vperm.xlu1 %4109, %v4417_v46   ;;  %v8092_v46 = vld [vmem:[#allocation11_spill] sm:$0xff] }
 0xb88   :  { %2843 = vrot.lane.b32.xlu1 %v6222_v57, %s4559_s3  ;;  %v8090_v57 = vld [vmem:[#allocation13_spill] sm:$0xff] }
 0xb90   :  { %2833 = vrot.lane.b32.xlu1 %v4418_v29, %s4559_s3  ;;  %v2984_v29 = vsel %vm2982_vm3, %v8092_v46, %v8091_v54  ;;  %v8095_v46 = vld [vmem:[#allocation90_spill] sm:$0xff] }
 0xba1   :  { %v2422_v62 = vpop.xlane.xlu0 %2421 }
 0xba2   :  { %v6447_v51 = vmax.f32 %v6444_v55, %v2422_v62  ;;  %v6463_v62 = vld [vmem:[#allocation2 + $0x8] sm:$0xff] }
 0xba4   :  { %v3017_v3 = vsel %vm3016_vm6, %v8089_v28, %v6447_v51 }
 0xba5   :  { %3034 = vst.msk [vmem:[#allocation2] sm:$0xff] %vm135_vm0, %v3017_v3  ;;  %v3001_v3 = vsel %vm2999_vm2, %v2984_v29, %v5918_v61  ;;  %v2985_v61 = vsel %vm2982_vm3, %v8096_v22, %v8095_v46 }
 0xba9   :  { %v2428_v1 = vpop.xlane.xlu0 %2427 }
 0xbaa   :  { %v6454_v32 = vmax.f32 %v6120_v14, %v2428_v1 }
 0xbac   :  { %v3020_v63 = vsel %vm3016_vm6, %v8090_v57, %v6454_v32 }
 0xbad   :  { %3037 = vst.msk [vmem:[#allocation2 + $0x18] sm:$0xff] %vm135_vm0, %v3020_v63  ;;  %v8093_v63 = vld [vmem:[#allocation86_spill] sm:$0xff] }
 0xbae   :  { %v2987_v50 = vsel %vm2982_vm3, %v8094_v12, %v8093_v63  ;;  %v3002_v12 = vsel %vm2999_vm2, %v2985_v61, %v5968_v10 }
 0xbaf   :  { %v3004_v29 = vsel %vm2999_vm2, %v2987_v50, %v5936_v11  ;;  %v8097_v11 = vld [vmem:[#allocation82_spill] sm:$0xff]  ;;  %v8098_v50 = vld [vmem:[#allocation15_spill] sm:$0xff] }
 0xbb0   :  { %v2988_v46 = vsel %vm2982_vm3, %v8098_v50, %v8097_v11 }
 0xbb1   :  { %v3005_v10 = vsel %vm2999_vm2, %v2988_v46, %v5972_v6  ;;  %v4423_v6 = vld [vmem:[%s7693_s4 + $0x38] sm:$0xff] }
 0xbc1   :  { %v2424_v48 = vpop.xlane.xlu2 %2423 }
 0xbc2   :  { %v6466_v28 = vmax.f32 %v6463_v62, %v2424_v48 }
 0xbc4   :  { %v3018_v1 = vsel %vm3016_vm6, %v3001_v3, %v6466_v28  ;;  %v6486_v3 = vld [vmem:[#allocation2 + $0x10] sm:$0xff] }
 0xbc5   :  { %3035 = vst.msk [vmem:[#allocation2 + $0x8] sm:$0xff] %vm135_vm0, %v3018_v1 }
 0xbc9   :  { %v2430_v57 = vpop.xlane.xlu2 %2429 }
 0xbca   :  { %v6479_v54 = vmax.f32 %v6476_v41, %v2430_v57  ;;  %v2426_v48 = vpop.xlane.xlu1 %2425 }
 0xbcb   :  { %v6489_v1 = vmax.f32 %v6486_v3, %v2426_v48 }
 0xbcc   :  { %v3021_v57 = vsel %vm3016_vm6, %v3004_v29, %v6479_v54 }
 0xbcd   :  { %3038 = vst.msk [vmem:[#allocation2 + $0x20] sm:$0xff] %vm135_vm0, %v3021_v57  ;;  %v3019_v63 = vsel %vm3016_vm6, %v3002_v12, %v6489_v1 }
 0xbce   :  { %3036 = vst.msk [vmem:[#allocation2 + $0x10] sm:$0xff] %vm135_vm0, %v3019_v63 }
 0xbd2   :  { %v2432_v22 = vpop.xlane.xlu1 %2431 }
 0xbd3   :  { %v6503_v48 = vmax.f32 %v6180_v47, %v2432_v22 }
 0xbd5   :  { %v3022_v61 = vsel %vm3016_vm6, %v3005_v10, %v6503_v48  ;;  %v4424_v10 = vld [vmem:[%s7693_s4 + $0x50] sm:$0xff] }
 0xbd6   :  { %3039 = vst.msk [vmem:[#allocation2 + $0x28] sm:$0xff] %vm135_vm0, %v3022_v61  ;;  %v4425_v61 = vld [vmem:[%s7693_s4 + $0x60] sm:$0xff] }
 0xbea   :  { %v2334_v29 = vpop.permute.xlu1 %2333 }
 0xbeb   :  { %v2379_v12 = vadd.f32 %v6393_v42, %v2334_v29  ;;  %v4426_v29 = vld [vmem:[%s7693_s4 + $0x68] sm:$0xff] }
 0xbed   :  { %v2395_v57 = vmul.f32 0.2, %v2379_v12 }
 0xbef   :  { %v6511_v63 = vmax.f32 %v2379_v12, %v2395_v57  ;;  %v4427_v12 = vld [vmem:[%s7693_s4 + $0x78] sm:$0xff]  ;;  %v4428_v57 = vld [vmem:[%s4639_s24 + $0x30] sm:$0xff] }
 0xbf1   :  { %2433 = vmax.xlane.f32.xlu0 %v6511_v63 }
 0xbf2   :  { %v2346_v11 = vpop.permute.xlu1 %2345 }
 0xbf3   :  { %v2382_v22 = vadd.f32 %v6393_v42, %v2346_v11  ;;  %v4429_v11 = vld [vmem:[%s4639_s24 + $0x18] sm:$0xff] }
 0xbf5   :  { %v2398_v50 = vmul.f32 0.2, %v2382_v22 }
 0xbf7   :  { %v6515_v34 = vmax.f32 %v2382_v22, %v2398_v50 }
 0xbf9   :  { %2439 = vmax.xlane.f32.xlu1 %v6515_v34 }
 0xbfa   :  { %v2844_v46 = vpop.permute.xlu1 %2843 }
 0xbfb   :  { %2853 = vmatpush.bf16.msra.mxu3 %v2844_v46  ;;  %v8100_v46 = vld [vmem:[#allocation16_spill] sm:$0xff] }
 0xc02   :  { %v6543_v22 = vpop.permute.xlu1 %2833 }
 0xc05   :  { %2337 = vperm.xlu0 %4110, %v4423_v6   ;;  %v8099_v6 = vld [vmem:[#allocation91_spill] sm:$0xff] }
 0xc0d   :  { %2349 = vperm.xlu0 %4110, %v4424_v10   ;;  %v2989_v10 = vsel %vm2982_vm3, %v8100_v46, %v8099_v6  ;;  %v6562_v46 = vld [vmem:[#allocation2 + $0x48] sm:$0xff] }
 0xc12   :  { %2357 = vperm.xlu1 %4109, %v4425_v61   ;;  %v6548_v61 = vld [vmem:[#allocation2 + $0x30] sm:$0xff] }
 0xc15   :  { %2361 = vperm.xlu0 %4110, %v4426_v29  }
 0xc1a   :  { %2369 = vperm.xlu1 %4109, %v4427_v12  }
 0xc1d   :  { %2841 = vrot.lane.b32.xlu0 %v4428_v57, %s4559_s3  ;;  %v8101_v57 = vld [vmem:[#allocation92_spill] sm:$0xff] }
 0xc22   :  { %2519 = vperm.xlu1 %4109, %v6447_v51  }
 0xc25   :  { %2837 = vrot.lane.b32.xlu0 %v6215_v25, %s4559_s3  ;;  %v3006_v25 = vsel %vm2999_vm2, %v2989_v10, %v5933_v44 }
 0xc2a   :  { %2529 = vperm.xlu1 %4109, %v6489_v1  }
 0xc2d   :  { %2835 = vrot.lane.b32.xlu0 %v4429_v11, %s4559_s3  ;;  %v8102_v11 = vld [vmem:[#allocation19_spill] sm:$0xff] }
 0xc2e   :  { %v2992_v6 = vsel %vm2982_vm3, %v8102_v11, %v8101_v57  ;;  %v4434_v57 = vld [vmem:[%s4639_s24 + $0x28] sm:$0xff] }
 0xc2f   :  { %v3009_v44 = vsel %vm2999_vm2, %v2992_v6, %v5941_v21  ;;  %v4433_v21 = vld [vmem:[%s7693_s4 + $0x58] sm:$0xff] }
 0xc35   :  { %2829 = vrot.lane.b32.xlu0 %v6153_v17, %s4559_s3 }
 0xc64   :  { %v2434_v50 = vpop.xlane.xlu0 %2433 }
 0xc65   :  { %v6551_v29 = vmax.f32 %v6548_v61, %v2434_v50 }
 0xc67   :  { %v3023_v12 = vsel %vm3016_vm6, %v3006_v25, %v6551_v29  ;;  %2549 = vperm.xlu1 %4109, %v6551_v29  }
 0xc68   :  { %3040 = vst.msk [vmem:[#allocation2 + $0x30] sm:$0xff] %vm135_vm0, %v3023_v12 }
 0xc6c   :  { %v2440_v17 = vpop.xlane.xlu1 %2439 }
 0xc6d   :  { %v6565_v50 = vmax.f32 %v6562_v46, %v2440_v17  ;;  %v4432_v17 = vld [vmem:[%s7693_s4 + $0x40] sm:$0xff] }
 0xc6f   :  { %v3026_v10 = vsel %vm3016_vm6, %v3009_v44, %v6565_v50 }
 0xc70   :  { %3043 = vst.msk [vmem:[#allocation2 + $0x48] sm:$0xff] %vm135_vm0, %v3026_v10 }
 0xc77   :  { %v2338_v25 = vpop.permute.xlu0 %2337 }
 0xc78   :  { %v2380_v12 = vadd.f32 %v6393_v42, %v2338_v25 }
 0xc7a   :  { %v2396_v15 = vmul.f32 0.2, %v2380_v12 }
 0xc7c   :  { %v6573_v58 = vmax.f32 %v2380_v12, %v2396_v15 }
 0xc7e   :  { %2435 = vmax.xlane.f32.xlu2 %v6573_v58 }
 0xc7f   :  { %v2350_v15 = vpop.permute.xlu0 %2349 }
 0xc80   :  { %v2383_v11 = vadd.f32 %v6393_v42, %v2350_v15  ;;  %v2990_v15 = vsel %vm2982_vm3, %v8104_v31, %v8103_v18 }
 0xc82   :  { %v2399_v6 = vmul.f32 0.2, %v2383_v11 }
 0xc84   :  { %v2358_v44 = vpop.permute.xlu1 %2357  ;;  %v6587_v10 = vmax.f32 %v2383_v11, %v2399_v6  ;;  %v3007_v6 = vsel %vm2999_vm2, %v2990_v15, %v5944_v35 }
 0xc85   :  { %v2385_v25 = vadd.f32 %v6393_v42, %v2358_v44 }
 0xc87   :  { %v2401_v12 = vmul.f32 0.2, %v2385_v25 }
 0xc96   :  { %2341 = vperm.xlu2 %4108, %v4432_v17   ;;  %v2362_v17 = vpop.permute.xlu0 %2361 }
 0xc9e   :  { %2353 = vperm.xlu2 %4108, %v4433_v21   ;;  %v6591_v21 = vmax.f32 %v2385_v25, %v2401_v12  ;;  %v4436_v25 = vld [vmem:[%s7693_s4 + $0x70] sm:$0xff]  ;;  %s4560_s4 = smov 24  }
 0xca6   :  { %2839 = vrot.lane.b32.xlu2 %v4434_v57, %s4559_s3  ;;  %v2842_v57 = vpop.permute.xlu0 %2841 }
 0xca7   :  { %2854 = vmatpush.bf16.msra.mxu3 %v2842_v57 }
 0xcae   :  { %2831 = vrot.lane.b32.xlu2 %v6208_v26, %s4559_s3 }
 0xcd7   :  { %2441 = vmax.xlane.f32.xlu2 %v6587_v10 }
 0xcdf   :  { %2445 = vmax.xlane.f32.xlu2 %v6591_v21 }
 0xcf1   :  { %v2436_v26 = vpop.xlane.xlu2 %2435 }
 0xcf2   :  { %v6600_v11 = vmax.f32 %v6597_v53, %v2436_v26 }
 0xcf4   :  { %v3024_v44 = vsel %vm3016_vm6, %v3007_v6, %v6600_v11  ;;  %v2838_v6 = vpop.permute.xlu0 %2837 }
 0xcf5   :  { %3041 = vst.msk [vmem:[#allocation2 + $0x38] sm:$0xff] %vm135_vm0, %v3024_v44 }
 0xcf7   :  { %2365 = vperm.xlu2 %4108, %v4436_v25  }
 0xcf9   :  { %v2342_v12 = vpop.permute.xlu2 %2341 }
 0xcfa   :  { %v2381_v31 = vadd.f32 %v6393_v42, %v2342_v12 }
 0xcfc   :  { %v2397_v18 = vmul.f32 0.2, %v2381_v31  ;;  %v2836_v12 = vpop.permute.xlu0 %2835 }
 0xcfe   :  { %v6611_v57 = vmax.f32 %v2381_v31, %v2397_v18 }
 0xcff   :  { %2524 = vperm.xlu2 %4108, %v6466_v28  }
 0xd00   :  { %2437 = vmax.xlane.f32.xlu0 %v6611_v57 }
 0xd01   :  { %v2354_v35 = vpop.permute.xlu2 %2353 }
 0xd02   :  { %v2384_v26 = vadd.f32 %v6393_v42, %v2354_v35  ;;  %v2370_v35 = vpop.permute.xlu1 %2369 }
 0xd04   :  { %v2400_v15 = vmul.f32 0.2, %v2384_v26  ;;  %v2830_v18 = vpop.permute.xlu0 %2829 }
 0xd06   :  { %v6616_v44 = vmax.f32 %v2384_v26, %v2400_v15  ;;  %v2386_v26 = vadd.f32 %v6393_v42, %v2362_v17  ;;  %v2388_v15 = vadd.f32 %v6393_v42, %v2370_v35 }
 0xd07   :  { %2534 = vperm.xlu2 %4108, %v6454_v32  }
 0xd08   :  { %2443 = vmax.xlane.f32.xlu0 %v6616_v44 }
 0xd09   :  { %v2840_v25 = vpop.permute.xlu2 %2839 }
 0xd0a   :  { %2855 = vmatpush.bf16.msra.mxu3 %v2840_v25  ;;  %v2404_v25 = vmul.f32 0.2, %v2388_v15 }
 0xd0e   :  { %2856 = vmatpush.bf16.msra.mxu3 %v2838_v6  ;;  %v2402_v6 = vmul.f32 0.2, %v2386_v26 }
 0xd0f   :  { %2539 = vperm.xlu2 %4108, %v6479_v54  }
 0xd11   :  { %v2832_v31 = vpop.permute.xlu2 %2831 }
 0xd12   :  { %2857 = vmatpush.bf16.msra.mxu3 %v2836_v12  ;;  %v6627_v12 = vmax.f32 %v2386_v26, %v2402_v6  ;;  %v8107_v6 = vld [vmem:[#allocation93_spill] sm:$0xff] }
 0xd16   :  { %2858 = vmatpush.bf16.msra.mxu3 %v6543_v22  ;;  %v6629_v22 = vmax.f32 %v2388_v15, %v2404_v25  ;;  %v8108_v25 = vld [vmem:[#allocation22_spill] sm:$0xff] }
 0xd17   :  { %2544 = vperm.xlu2 %4108, %v6503_v48   ;;  %v2995_v9 = vsel %vm2982_vm3, %v8108_v25, %v8107_v6 }
 0xd1a   :  { %2859 = vmatpush.bf16.msra.mxu3 %v2832_v31 }
 0xd1c   :  { %2554 = vperm.xlu0 %4110, %v6600_v11  }
 0xd1e   :  { %2860 = vmatpush.bf16.msra.mxu3 %v2830_v18  ;;  %v2993_v18 = vsel %vm2982_vm3, %v8106_v36, %v8105_v60  ;;  %v3012_v60 = vsel %vm2999_vm2, %v2995_v9, %v8005_v30 }
 0xd1f   :  { %2564 = vperm.xlu2 %4108, %v6565_v50   ;;  %v3010_v35 = vsel %vm2999_vm2, %v2993_v18, %v5952_v43 }
 0xd46   :  { %2447 = vmax.xlane.f32.xlu0 %v6627_v12 }
 0xd48   :  { %2451 = vmax.xlane.f32.xlu2 %v6629_v22 }
 0xd4a   :  { %v2442_v31 = vpop.xlane.xlu2 %2441 }
 0xd4b   :  { %v6639_v17 = vmax.f32 %v6636_v27, %v2442_v31  ;;  %v2520_v31 = vpop.permute.xlu1 %2519 }
 0xd4d   :  { %v3027_v26 = vsel %vm3016_vm6, %v3010_v35, %v6639_v17  ;;  %v2597_v35 = vsub.f32 %v6403_v52, %v2520_v31 }
 0xd4e   :  { %3044 = vst.msk [vmem:[#allocation2 + $0x50] sm:$0xff] %vm135_vm0, %v3027_v26 }
 0xd4f   :  { %v2613_v26 = vmul.f32 1.442695, %v2597_v35 }
 0xd51   :  { %4307 = vpow2.f32 %v2613_v26 }
 0xd52   :  { %v2446_v15 = vpop.xlane.xlu2 %2445 }
 0xd53   :  { %v6652_v36 = vmax.f32 %v6649_v24, %v2446_v15  ;;  %v2530_v9 = vpop.permute.xlu1 %2529 }
 0xd54   :  { %v2599_v0 = vsub.f32 %v6427_v19, %v2530_v9 }
 0xd55   :  { %v3029_v43 = vsel %vm3016_vm6, %v3012_v60, %v6652_v36 }
 0xd56   :  { %3046 = vst.msk [vmem:[#allocation2 + $0x60] sm:$0xff] %vm135_vm0, %v3029_v43  ;;  %v2617_v35 = vmul.f32 1.442695, %v2599_v0 }
 0xd57   :  { %v4308_v60 = vpop.eup %4307 }
 0xd58   :  { %v6668_v7 = vmul.f32 %v4308_v60, %v8109_v23 }
 0xd5a   :  { %v6659_v18 = vpop.permute.xlu2 %2365  ;;  %2569 = vperm.xlu0 %4110, %v6639_v17  }
 0xd62   :  { %v2525_v6 = vpop.permute.xlu2 %2524  ;;  %2579 = vperm.xlu0 %4110, %v6652_v36  }
 0xd63   :  { %v2598_v15 = vsub.f32 %v6419_v40, %v2525_v6 }
 0xd65   :  { %v2615_v30 = vmul.f32 1.442695, %v2598_v15  ;;  %v8110_v15 = vld [vmem:[#allocation83_spill] sm:$0xff] }
 0xd67   :  { %4309 = vpow2.f32 %v2615_v30 }
 0xd6a   :  { %v2535_v25 = vpop.permute.xlu2 %2534 }
 0xd6b   :  { %v2600_v43 = vsub.f32 %v6410_v4, %v2535_v25  ;;  %v8111_v4 = vld [vmem:[#allocation18_spill] sm:$0xff] }
 0xd6c   :  { %v2991_v30 = vsel %vm2982_vm3, %v8111_v4, %v8110_v15 }
 0xd6d   :  { %v4310_v33 = vpop.eup %4309  ;;  %v2619_v31 = vmul.f32 1.442695, %v2600_v43  ;;  %v8112_v43 = vld [vmem:[#allocation84_spill] sm:$0xff] }
 0xd6e   :  { %v6671_v52 = vmul.f32 %v4310_v33, %v5083_v38  ;;  %v3008_v38 = vsel %vm2999_vm2, %v2991_v30, %v5980_v45 }
 0xd6f   :  { %4311 = vpow2.f32 %v2619_v31  ;;  %v8113_v31 = vld [vmem:[#allocation20_spill] sm:$0xff] }
 0xd70   :  { %v2821_v40 = vpack.c.bf16 %v6671_v52, %v6668_v7  ;;  %4313 = vpow2.f32 %v2617_v35  ;;  %v8114_v35 = vld [vmem:[#allocation41_spill] sm:$0xff] }
 0xd72   :  { %v2540_v26 = vpop.permute.xlu2 %2539  ;;  %2861 = vmatmul.bf16.vlgmr.msra.gmra.mxu3 %v2821_v40  ;;  %v2994_v40 = vsel %vm2982_vm3, %v8113_v31, %v8112_v43  ;;  %v2550_v43 = vpop.permute.xlu1 %2549 }
 0xd73   :  { %v2438_v6 = vpop.xlane.xlu0 %2437  ;;  %v3011_v4 = vsel %vm2999_vm2, %v2994_v40, %v8021_v2  ;;  %v2601_v30 = vsub.f32 %v6424_v20, %v2540_v26  ;;  %v2603_v20 = vsub.f32 %v6511_v63, %v2550_v43  ;;  %v8116_v43 = vld [vmem:[#allocation17_spill] sm:$0xff] }
 0xd74   :  { %v6679_v19 = vmax.f32 %v6187_v5, %v2438_v6  ;;  %v6691_v6 = vld [vmem:[#allocation2 + $0x58] sm:$0xff] }
 0xd75   :  { %v4312_v33 = vpop.eup %4311  ;;  %v2625_v40 = vmul.f32 1.442695, %v2603_v20 }
 0xd76   :  { %v3025_v23 = vsel %vm3016_vm6, %v3008_v38, %v6679_v19  ;;  %2559 = vperm.xlu1 %4109, %v6679_v19   ;;  %v4314_v9 = vpop.eup %4313  ;;  %v6697_v15 = vmul.f32 %v4312_v33, %v8114_v35 }
 0xd77   :  { %3042 = vst.msk [vmem:[#allocation2 + $0x40] sm:$0xff] %vm135_vm0, %v3025_v23  ;;  %v2647_v38 = vmul.f32 %v4314_v9, %v5104_v49 }
 0xd7a   :  { %v2545_v0 = vpop.permute.xlu2 %2544 }
 0xd7b   :  { %v2602_v25 = vsub.f32 %v6431_v37, %v2545_v0  ;;  %v2444_v60 = vpop.xlane.xlu0 %2443  ;;  %v2822_v0 = vpack.c.bf16 %v6697_v15, %v2647_v38 }
 0xd7c   :  { %v6694_v45 = vmax.f32 %v6691_v6, %v2444_v60  ;;  %v2621_v60 = vmul.f32 1.442695, %v2601_v30 }
 0xd7d   :  { %v2623_v23 = vmul.f32 1.442695, %v2602_v25 }
 0xd7e   :  { %v3028_v37 = vsel %vm3016_vm6, %v3011_v4, %v6694_v45  ;;  %v2387_v4 = vadd.f32 %v6393_v42, %v6659_v18  ;;  %v6725_v18 = vld [vmem:[#allocation2 + $0x68] sm:$0xff] }
 0xd7f   :  { %3045 = vst.msk [vmem:[#allocation2 + $0x58] sm:$0xff] %vm135_vm0, %v3028_v37  ;;  %4315 = vpow2.f32 %v2623_v23 }
 0xd80   :  { %4317 = vpow2.f32 %v2621_v60 }
 0xd82   :  { %2866 = vmatmul.bf16.gmra.mxu3 %v2822_v0  ;;  %v2565_v0 = vpop.permute.xlu2 %2564 }
 0xd85   :  { %v4316_v33 = vpop.eup %4315 }
 0xd86   :  { %v4318_v31 = vpop.eup %4317  ;;  %v6708_v2 = vmul.f32 %v4316_v33, %v5122_v13  ;;  %v2403_v13 = vmul.f32 0.2, %v2387_v4  ;;  %v8115_v33 = vld [vmem:[#allocation89_spill] sm:$0xff] }
 0xd87   :  { %v2649_v49 = vmul.f32 %v4318_v31, %v5140_v16  ;;  %v2996_v42 = vsel %vm2982_vm3, %v8116_v43, %v8115_v33  ;;  %v8117_v31 = vld [vmem:[#allocation172_spill] sm:$0xff] }
 0xd88   :  { %v6717_v23 = vmax.f32 %v2387_v4, %v2403_v13 }
 0xd89   :  { %v2823_v25 = vpack.c.bf16 %v6708_v2, %v2649_v49 }
 0xd8e   :  { %v2555_v26 = vpop.permute.xlu0 %2554 }
 0xd8f   :  { %v2604_v9 = vsub.f32 %v6573_v58, %v2555_v26  ;;  %v8118_v26 = vld [vmem:[#allocation106_spill] sm:$0xff] }
 0xd91   :  { %v2627_v35 = vmul.f32 1.442695, %v2604_v9  ;;  %v8119_v9 = vld [vmem:[#allocation25_spill] sm:$0xff] }
 0xd92   :  { %2871 = vmatmul.bf16.gmra.mxu3 %v2823_v25  ;;  %v2998_v25 = vsel %vm2982_vm3, %v8119_v9, %v8118_v26 }
 0xd93   :  { %4319 = vpow2.f32 %v2627_v35  ;;  %v6737_v35 = vld [vmem:[#allocation2 + $0x78] sm:$0xff] }
 0xd94   :  { %4321 = vpow2.f32 %v2625_v40 }
 0xd99   :  { %v4320_v30 = vpop.eup %4319 }
 0xd9a   :  { %v4322_v37 = vpop.eup %4321  ;;  %v2652_v63 = vmul.f32 %v4320_v30, %v5197_v59  ;;  %v8120_v30 = vld [vmem:[#allocation186_spill] sm:$0xff] }
 0xd9b   :  { %v2651_v16 = vmul.f32 %v4322_v37, %v5120_v39  ;;  %v3013_v39 = vsel %vm2999_vm2, %v2996_v42, %v8117_v31  ;;  %v3015_v13 = vsel %vm2999_vm2, %v2998_v25, %v8120_v30  ;;  %v8122_v30 = vld [vmem:[#allocation46_spill] sm:$0xff] }
 0xd9d   :  { %v2824_v58 = vpack.c.bf16 %v2652_v63, %v2651_v16 }
 0xda0   :  { %2449 = vmax.xlane.f32.xlu1 %v6717_v23 }
 0xda2   :  { %2876 = vmatmul.bf16.gmra.mxu3 %v2824_v58 }
 0xdb9   :  { %2574 = vperm.xlu1 %4109, %v6694_v45   ;;  %v2448_v60 = vpop.xlane.xlu0 %2447 }
 0xdba   :  { %v6728_v59 = vmax.f32 %v6725_v18, %v2448_v60  ;;  %v2606_v60 = vsub.f32 %v6515_v34, %v2565_v0 }
 0xdbb   :  { %v2452_v20 = vpop.xlane.xlu2 %2451 }
 0xdbc   :  { %v3030_v40 = vsel %vm3016_vm6, %v3013_v39, %v6728_v59  ;;  %v6740_v4 = vmax.f32 %v6737_v35, %v2452_v20  ;;  %2584 = vperm.xlu2 %4108, %v6728_v59   ;;  %v2631_v33 = vmul.f32 1.442695, %v2606_v60  ;;  %v8125_v60 = vld [vmem:[#allocation94_spill] sm:$0xff] }
 0xdbd   :  { %3047 = vst.msk [vmem:[#allocation2 + $0x68] sm:$0xff] %vm135_vm0, %v3030_v40 }
 0xdbe   :  { %v3032_v37 = vsel %vm3016_vm6, %v3015_v13, %v6740_v4  ;;  %4323 = vpow2.f32 %v2631_v33  ;;  %v8126_v33 = vld [vmem:[#allocation23_spill] sm:$0xff] }
 0xdbf   :  { %3049 = vst.msk [vmem:[#allocation2 + $0x78] sm:$0xff] %vm135_vm0, %v3032_v37  ;;  %v8124_v37 = vld [vmem:[#allocation59_spill] sm:$0xff] }
 0xdc1   :  { %2594 = vperm.xlu1 %4109, %v6740_v4  }
 0xdc4   :  { %v4324_v9 = vpop.eup %4323 }
 0xdcc   :  { %v2570_v58 = vpop.permute.xlu0 %2569 }
 0xdcd   :  { %v2607_v25 = vsub.f32 %v6587_v10, %v2570_v58 }
 0xdcf   :  { %v2633_v40 = vmul.f32 1.442695, %v2607_v25 }
 0xdd4   :  { %v2580_v43 = vpop.permute.xlu0 %2579 }
 0xdd5   :  { %v2609_v39 = vsub.f32 %v6591_v21, %v2580_v43  ;;  %v2997_v43 = vsel %vm2982_vm3, %v8126_v33, %v8125_v60  ;;  %v2473_v60 = vsub.f32 %v6476_v41, %v6479_v54  ;;  %v2476_v41 = vsub.f32 %v6597_v53, %v6600_v11  ;;  %v8130_v54 = vld [vmem:[#allocation54_spill] sm:$0xff] }
 0xdd6   :  { %v2479_v53 = vsub.f32 %v6636_v27, %v6639_v17  ;;  %v2482_v27 = vsub.f32 %v6725_v18, %v6728_v59  ;;  %v8134_v18 = vld [vmem:[#allocation112_spill] sm:$0xff] }
 0xdd7   :  { %v2637_v26 = vmul.f32 1.442695, %v2609_v39  ;;  %v8127_v39 = vld [vmem:[#allocation175_spill] sm:$0xff] }
 0xde5   :  { %2681 = vadd.xlane.f32.xlu2 %v2647_v38  ;;  %v8121_v38 = vld [vmem:[#allocation45_spill] sm:$0xff] }
 0xde6   :  { %v2654_v0 = vmul.f32 %v4324_v9, %v8121_v38  ;;  %v8128_v38 = vld [vmem:[#allocation63_spill] sm:$0xff] }
 0xde8   :  { %v2560_v42 = vpop.permute.xlu1 %2559 }
 0xde9   :  { %v2605_v31 = vsub.f32 %v6611_v57, %v2560_v42  ;;  %v6765_v42 = vld [vmem:[#allocation2 + $0x70] sm:$0xff] }
 0xdeb   :  { %v2629_v20 = vmul.f32 1.442695, %v2605_v31  ;;  %2679 = vadd.xlane.f32.xlu1 %v6671_v52  ;;  %v8123_v52 = vld [vmem:[#allocation49_spill] sm:$0xff] }
 0xded   :  { %4325 = vpow2.f32 %v2629_v20  ;;  %2689 = vadd.xlane.f32.xlu2 %v2651_v16 }
 0xdee   :  { %4327 = vpow2.f32 %v2637_v26 }
 0xdef   :  { %4329 = vpow2.f32 %v2633_v40 }
 0xdf3   :  { %v4326_v34 = vpop.eup %4325  ;;  %2685 = vadd.xlane.f32.xlu1 %v2649_v49 }
 0xdf4   :  { %v6757_v57 = vmul.f32 %v4326_v34, %v8122_v30  ;;  %v4328_v13 = vpop.eup %4327 }
 0xdf5   :  { %2695 = vadd.xlane.f32.xlu2 %v2654_v0  ;;  %v2657_v16 = vmul.f32 %v4328_v13, %v8123_v52  ;;  %v4330_v10 = vpop.eup %4329  ;;  %v2469_v13 = vsub.f32 %v6444_v55, %v6447_v51  ;;  %v2493_v51 = vmul.f32 1.442695, %v2473_v60  ;;  %v8136_v60 = vld [vmem:[#allocation68_spill] sm:$0xff] }
 0xdf6   :  { %v2825_v21 = vpack.c.bf16 %v2654_v0, %v6757_v57  ;;  %v2655_v58 = vmul.f32 %v4330_v10, %v8124_v37 }
 0xdf7   :  { %v2485_v10 = vmul.f32 1.442695, %v2469_v13 }
 0xdf8   :  { %2881 = vmatmul.bf16.gmra.mxu3 %v2825_v21  ;;  %v6779_v21 = vpop.f32.mrf.mxu3 }
 0xdfb   :  { %2691 = vadd.xlane.f32.xlu1 %v2652_v63  ;;  %v3014_v63 = vsel %vm2999_vm2, %v2997_v43, %v8127_v39 }
 0xdfd   :  { %2701 = vadd.xlane.f32.xlu2 %v2657_v16 }
 0xe00   :  { %v6786_v43 = vpop.f32.mrf.mxu3 }
 0xe03   :  { %2697 = vadd.xlane.f32.xlu1 %v2655_v58 }
 0xe13   :  { %v2450_v49 = vpop.xlane.xlu1 %2449 }
 0xe14   :  { %v6768_v31 = vmax.f32 %v6765_v42, %v2450_v49 }
 0xe16   :  { %v3031_v20 = vsel %vm3016_vm6, %v3014_v63, %v6768_v31  ;;  %2589 = vperm.xlu0 %4110, %v6768_v31   ;;  %v2585_v26 = vpop.permute.xlu2 %2584 }
 0xe17   :  { %3048 = vst.msk [vmem:[#allocation2 + $0x70] sm:$0xff] %vm135_vm0, %v3031_v20  ;;  %v2610_v9 = vsub.f32 %v6627_v12, %v2585_v26  ;;  %v6801_v26 = vpop.f32.mrf.mxu3 }
 0xe19   :  { %v2639_v25 = vmul.f32 1.442695, %v2610_v9 }
 0xe1b   :  { %4331 = vpow2.f32 %v2639_v25  ;;  %v2471_v25 = vsub.f32 %v6486_v3, %v6489_v1  ;;  %v2475_v3 = vsub.f32 %v6548_v61, %v6551_v29  ;;  %v8132_v61 = vld [vmem:[#allocation191_spill] sm:$0xff] }
 0xe1d   :  { %v2489_v11 = vmul.f32 1.442695, %v2471_v25  ;;  %v2497_v17 = vmul.f32 1.442695, %v2475_v3 }
 0xe21   :  { %v4332_v34 = vpop.eup %4331 }
 0xe22   :  { %v2658_v0 = vmul.f32 %v4332_v34, %v8128_v38  ;;  %v2505_v34 = vmul.f32 1.442695, %v2479_v53  ;;  %v6812_v38 = vpop.f32.mrf.mxu3 }
 0xe24   :  { %2703 = vadd.xlane.f32.xlu1 %v2658_v0 }
 0xe2b   :  { %v2575_v40 = vpop.permute.xlu1 %2574 }
 0xe2c   :  { %v2608_v30 = vsub.f32 %v6616_v44, %v2575_v40  ;;  %v8129_v44 = vld [vmem:[#allocation50_spill] sm:$0xff] }
 0xe2e   :  { %v2635_v52 = vmul.f32 1.442695, %v2608_v30  ;;  %v2470_v30 = vsub.f32 %v6463_v62, %v6466_v28  ;;  %v8131_v28 = vld [vmem:[#allocation119_spill] sm:$0xff] }
 0xe30   :  { %4333 = vpow2.f32 %v2635_v52  ;;  %v2487_v1 = vmul.f32 1.442695, %v2470_v30  ;;  %v8139_v30 = vld [vmem:[#allocation28_spill] sm:$0xff] }
 0xe31   :  { %4335 = vpow2.f32 %v2485_v10  ;;  %v8133_v10 = vld [vmem:[#allocation21_spill] sm:$0xff] }
 0xe33   :  { %v2595_v37 = vpop.permute.xlu1 %2594 }
 0xe34   :  { %v2612_v12 = vsub.f32 %v6629_v22, %v2595_v37 }
 0xe36   :  { %v4334_v49 = vpop.eup %4333  ;;  %v2643_v33 = vmul.f32 1.442695, %v2612_v12  ;;  %v8135_v12 = vld [vmem:[#allocation125_spill] sm:$0xff] }
 0xe37   :  { %v6789_v39 = vmul.f32 %v4334_v49, %v8129_v44  ;;  %v6792_v63 = vpop.eup %4335  ;;  %v2478_v49 = vsub.f32 %v6562_v46, %v6565_v50 }
 0xe38   :  { %4337 = vpow2.f32 %v2643_v33 }
 0xe39   :  { %v2826_v55 = vpack.c.bf16 %v6789_v39, %v2655_v58  ;;  %4339 = vpow2.f32 %v2493_v51  ;;  %v2499_v58 = vmul.f32 1.442695, %v2476_v41  ;;  %v2503_v50 = vmul.f32 1.442695, %v2478_v49 }
 0xe3b   :  { %2886 = vmatmul.bf16.gmra.mxu3 %v2826_v55  ;;  %4341 = vpow2.f32 %v2499_v58  ;;  %v243_v55 = vld [vmem:[#allocation3 + $0x8] sm:$0xff]  ;;  %v8138_v58 = vld [vmem:[#allocation187_spill] sm:$0xff] }
 0xe3c   :  { %4343 = vpow2.f32 %v2489_v11  ;;  %v1987_v25 = vmul.f32 %v8138_v58, %v243_v55  ;;  %v661_v3 = vmul.f32 %v8139_v30, %v243_v55 }
 0xe3d   :  { %2727 = vperm.xlu1 %4109, %v6792_v63   ;;  %4345 = vpow2.f32 %v2505_v34  ;;  %v2477_v34 = vsub.f32 %v6187_v5, %v6679_v19  ;;  %v8145_v19 = vld [vmem:[#allocation72_spill] sm:$0xff] }
 0xe3e   :  { %v4338_v22 = vpop.eup %4337  ;;  %4347 = vpow2.f32 %v2487_v1 }
 0xe3f   :  { %v6798_v20 = vmul.f32 %v4338_v22, %v8130_v54  ;;  %v6804_v9 = vpop.eup %4339  ;;  %4349 = vpow2.f32 %v2497_v17  ;;  %v8137_v22 = vld [vmem:[#allocation107_spill] sm:$0xff]  ;;  %v8141_v17 = vld [vmem:[#allocation120_spill] sm:$0xff]  ;;  %v2501_v49 = vmul.f32 1.442695, %v2477_v34 }
 0xe40   :  { %2677 = vadd.xlane.f32.xlu0 %v6668_v7  ;;  %v2827_v7 = vpack.c.bf16 %v2658_v0, %v2657_v16  ;;  %v2474_v16 = vsub.f32 %v6180_v47, %v6503_v48  ;;  %v2511_v0 = vmul.f32 1.442695, %v2482_v27  ;;  %v1312_v41 = vmul.f32 %v8137_v22, %v243_v55  ;;  %v8140_v27 = vld [vmem:[#allocation101_spill] sm:$0xff] }
 0xe41   :  { %2707 = vadd.xlane.f32.xlu2 %v6798_v20  ;;  %v6814_v40 = vpop.eup %4341 }
 0xe42   :  { %v4344_v62 = vpop.eup %4343  ;;  %v2495_v48 = vmul.f32 1.442695, %v2474_v16  ;;  %4351 = vpow2.f32 %v2511_v0  ;;  %v1360_v1 = vadd.f32 %v8140_v27, %v1312_v41  ;;  %v251_v27 = vld [vmem:[#allocation3 + $0x48] sm:$0xff] }
 0xe43   :  { %v6827_v52 = vpop.eup %4345 }
 0xe44   :  { %v6843_v11 = vpop.eup %4347  ;;  %4353 = vpow2.f32 %v2495_v48  ;;  %v2481_v48 = vsub.f32 %v6649_v24, %v6652_v36 }
 0xe45   :  { %2747 = vperm.xlu1 %4109, %v6804_v9   ;;  %4355 = vpow2.f32 %v2503_v50  ;;  %v8150_v50 = vld [vmem:[#allocation177_spill] sm:$0xff] }
 0xe46   :  { %4357 = vpow2.f32 %v2501_v49  ;;  %v8159_v49 = vld [vmem:[#allocation197_spill] sm:$0xff] }
 0xe48   :  { %2683 = vadd.xlane.f32.xlu0 %v6697_v15  ;;  %v244_v15 = vld [vmem:[#allocation3 + $0x10] sm:$0xff] }
 0xe49   :  { %v1313_v13 = vmul.f32 %v8131_v28, %v244_v15  ;;  %v1988_v29 = vmul.f32 %v8132_v61, %v244_v15  ;;  %v662_v37 = vmul.f32 %v8133_v10, %v244_v15  ;;  %v2663_v44 = vmul.f32 %v4344_v62, %v244_v15 }
 0xe4a   :  { %v709_v10 = vadd.f32 %v8145_v19, %v661_v3 }
 0xe4b   :  { %2891 = vmatmul.bf16.gmra.mxu3 %v2827_v7  ;;  %v1361_v59 = vadd.f32 %v8134_v18, %v1313_v13  ;;  %v2036_v47 = vadd.f32 %v8135_v12, %v1988_v29  ;;  %v710_v33 = vadd.f32 %v8136_v60, %v662_v37  ;;  %v248_v7 = vld [vmem:[#allocation3 + $0x30] sm:$0xff]  ;;  %v8143_v13 = vld [vmem:[#allocation181_spill] sm:$0xff]  ;;  %v8144_v29 = vld [vmem:[#allocation32_spill] sm:$0xff] }
 0xe4c   :  { %v1317_v15 = vmul.f32 %v8141_v17, %v248_v7  ;;  %v2035_v61 = vadd.f32 %v8143_v13, %v1987_v25  ;;  %v666_v5 = vmul.f32 %v8144_v29, %v248_v7  ;;  %v8146_v37 = vld [vmem:[#allocation134_spill] sm:$0xff]  ;;  %v8147_v12 = vld [vmem:[#allocation196_spill] sm:$0xff]  ;;  %v3051_v22 = vsel %vm2982_vm3, %v709_v10, %v1360_v1 }
 0xe4d   :  { %2762 = vperm.xlu1 %4109, %v6814_v40   ;;  %v3052_v54 = vsel %vm2982_vm3, %v710_v33, %v1361_v59  ;;  %v2662_v59 = vmul.f32 %v6843_v11, %v243_v55  ;;  %v8148_v33 = vld [vmem:[#allocation69_spill] sm:$0xff]  ;;  %v8149_v55 = vld [vmem:[#allocation108_spill] sm:$0xff]  ;;  %v2509_v1 = vmul.f32 1.442695, %v2481_v48  ;;  %v2480_v17 = vsub.f32 %v6691_v6, %v6694_v45  ;;  %v8155_v10 = vld [vmem:[#allocation182_spill] sm:$0xff] }
 0xe4e   :  { %v3068_v46 = vsel %vm2999_vm2, %v3052_v54, %v2036_v47  ;;  %v1365_v18 = vadd.f32 %v8146_v37, %v1317_v15  ;;  %v8157_v45 = vld [vmem:[#allocation73_spill] sm:$0xff] }
 0xe4f   :  { %4359 = vpow2.f32 %v2509_v1 }
 0xe50   :  { %2687 = vadd.xlane.f32.xlu0 %v6708_v2  ;;  %v6832_v2 = vpop.f32.mrf.mxu3 }
 0xe55   :  { %2777 = vperm.xlu1 %4109, %v6827_v52  }
 0xe58   :  { %2693 = vadd.xlane.f32.xlu0 %v6757_v57  ;;  %v2682_v51 = vpop.xlane.xlu2 %2681  ;;  %v6848_v57 = vpop.eup %4349 }
 0xe59   :  { %v2711_v53 = vadd.f32 %v2682_v51, %v2663_v44  ;;  %2737 = vperm.xlu2 %4108, %v4344_v62   ;;  %v6854_v0 = vpop.eup %4351  ;;  %v8142_v62 = vld [vmem:[#allocation189_spill] sm:$0xff]  ;;  %v714_v44 = vadd.f32 %v8148_v33, %v666_v5  ;;  %v246_v51 = vld [vmem:[#allocation3 + $0x20] sm:$0xff]  ;;  %v6869_v41 = vpop.f32.mrf.mxu3  ;;  %v2667_v58 = vmul.f32 %v6848_v57, %v248_v7  ;;  %v8154_v5 = vld [vmem:[#allocation171_spill] sm:$0xff]  ;;  %v2507_v33 = vmul.f32 1.442695, %v2480_v17 }
 0xe5a   :  { %v1992_v28 = vmul.f32 %v8142_v62, %v248_v7  ;;  %v6872_v25 = vpop.eup %4353  ;;  %v1990_v34 = vmul.f32 %v8150_v50, %v246_v51  ;;  %v1995_v19 = vmul.f32 %v8154_v5, %v251_v27  ;;  %v2665_v48 = vmul.f32 %v6804_v9, %v246_v51  ;;  %v8161_v50 = vld [vmem:[#allocation109_spill] sm:$0xff] }
 0xe5b   :  { %v3084_v16 = vsel %vm3016_vm6, %v3068_v46, %v2711_v53  ;;  %v1315_v53 = vmul.f32 %v8149_v55, %v246_v51  ;;  %v3067_v46 = vsel %vm2999_vm2, %v3051_v22, %v2035_v61  ;;  %v3056_v36 = vsel %vm2982_vm3, %v714_v44, %v1365_v18  ;;  %v6889_v29 = vpop.eup %4355  ;;  %v8156_v18 = vld [vmem:[#allocation35_spill] sm:$0xff] }
 0xe5c   :  { %3100 = vst.msk [vmem:[#allocation3 + $0x10] sm:$0xff] %vm135_vm0, %v3084_v16  ;;  %v2040_v47 = vadd.f32 %v8147_v12, %v1992_v28  ;;  %v8152_v16 = vld [vmem:[#allocation102_spill] sm:$0xff]  ;;  %v2038_v37 = vadd.f32 %v8155_v10, %v1990_v34  ;;  %v669_v6 = vmul.f32 %v8156_v18, %v251_v27  ;;  %v8158_v12 = vld [vmem:[#allocation137_spill] sm:$0xff]  ;;  %v8160_v22 = vld [vmem:[#allocation71_spill] sm:$0xff]  ;;  %4361 = vpow2.f32 %v2507_v33 }
 0xe5d   :  { %2792 = vperm.xlu1 %4109, %v6854_v0   ;;  %v1363_v62 = vadd.f32 %v8152_v16, %v1315_v53  ;;  %v8153_v28 = vld [vmem:[#allocation122_spill] sm:$0xff]  ;;  %v2670_v53 = vmul.f32 %v6889_v29, %v251_v27  ;;  %v8166_v10 = vld [vmem:[#allocation121_spill] sm:$0xff]  ;;  %v8167_v18 = vld [vmem:[#allocation183_spill] sm:$0xff] }
 0xe5e   :  { %v2680_v60 = vpop.xlane.xlu1 %2679  ;;  %v3072_v7 = vsel %vm2999_vm2, %v3056_v36, %v2040_v47  ;;  %v1320_v13 = vmul.f32 %v8153_v28, %v251_v27  ;;  %v8162_v27 = vld [vmem:[#allocation178_spill] sm:$0xff] }
 0xe5f   :  { %v2710_v54 = vadd.f32 %v2680_v60, %v2662_v59  ;;  %v2043_v60 = vadd.f32 %v8159_v49, %v1995_v19  ;;  %v8171_v49 = vld [vmem:[#allocation198_spill] sm:$0xff] }
 0xe60   :  { %2699 = vadd.xlane.f32.xlu0 %v6789_v39  ;;  %v2690_v24 = vpop.xlane.xlu2 %2689  ;;  %v8151_v39 = vld [vmem:[#allocation24_spill] sm:$0xff]  ;;  %v1368_v47 = vadd.f32 %v8158_v12, %v1320_v13  ;;  %v8165_v13 = vld [vmem:[#allocation123_spill] sm:$0xff] }
 0xe61   :  { %v3083_v30 = vsel %vm3016_vm6, %v3067_v46, %v2710_v54  ;;  %v2715_v3 = vadd.f32 %v2690_v24, %v2667_v58  ;;  %2752 = vperm.xlu2 %4108, %v6872_v25   ;;  %v664_v15 = vmul.f32 %v8151_v39, %v246_v51  ;;  %v717_v54 = vadd.f32 %v8160_v22, %v669_v6  ;;  %v6904_v46 = vpop.eup %4357  ;;  %v249_v24 = vld [vmem:[#allocation3 + $0x38] sm:$0xff]  ;;  %v2877_v34 = vpop.f32.mrf.mxu3  ;;  %v8170_v12 = vld [vmem:[#allocation140_spill] sm:$0xff] }
 0xe62   :  { %3099 = vst.msk [vmem:[#allocation3 + $0x8] sm:$0xff] %vm135_vm0, %v3083_v30  ;;  %v1318_v9 = vmul.f32 %v8161_v50, %v249_v24  ;;  %v1993_v17 = vmul.f32 %v8162_v27, %v249_v24  ;;  %v2483_v39 = vsub.f32 %v6765_v42, %v6768_v31  ;;  %v6920_v19 = vpop.eup %4359  ;;  %v8169_v31 = vld [vmem:[#allocation76_spill] sm:$0xff]  ;;  %v8172_v22 = vld [vmem:[#allocation75_spill] sm:$0xff] }
 0xe63   :  { %v3088_v61 = vsel %vm3016_vm6, %v3072_v7, %v2715_v3  ;;  %v712_v59 = vadd.f32 %v8157_v45, %v664_v15  ;;  %v3059_v51 = vsel %vm2982_vm3, %v717_v54, %v1368_v47  ;;  %v254_v7 = vld [vmem:[#allocation3 + $0x60] sm:$0xff]  ;;  %v8163_v15 = vld [vmem:[#allocation27_spill] sm:$0xff]  ;;  %v8168_v45 = vld [vmem:[#allocation37_spill] sm:$0xff] }
 0xe64   :  { %3104 = vst.msk [vmem:[#allocation3 + $0x30] sm:$0xff] %vm135_vm0, %v3088_v61  ;;  %v3075_v1 = vsel %vm2999_vm2, %v3059_v51, %v2043_v60  ;;  %v667_v16 = vmul.f32 %v8163_v15, %v249_v24  ;;  %v1323_v61 = vmul.f32 %v8165_v13, %v254_v7  ;;  %v2041_v6 = vadd.f32 %v8167_v18, %v1993_v17 }
 0xe65   :  { %2918 = vrot.lane.b32.xlu1 %v6779_v21, %s4560_s4  ;;  %v3054_v58 = vsel %vm2982_vm3, %v712_v59, %v1363_v62  ;;  %v8164_v62 = vld [vmem:[#allocation103_spill] sm:$0xff]  ;;  %v672_v42 = vmul.f32 %v8168_v45, %v254_v7  ;;  %v2513_v33 = vmul.f32 1.442695, %v2483_v39  ;;  %v8176_v39 = vld [vmem:[#allocation104_spill] sm:$0xff] }
 0xe66   :  { %v2686_v44 = vpop.xlane.xlu1 %2685  ;;  %v3070_v36 = vsel %vm2999_vm2, %v3054_v58, %v2038_v37  ;;  %v1366_v28 = vadd.f32 %v8164_v62, %v1318_v9  ;;  %v1998_v37 = vmul.f32 %v8166_v10, %v254_v7  ;;  %v715_v59 = vadd.f32 %v8169_v31, %v667_v16 }
 0xe67   :  { %v2713_v55 = vadd.f32 %v2686_v44, %v2665_v48  ;;  %v1371_v47 = vadd.f32 %v8170_v12, %v1323_v61  ;;  %v2668_v48 = vmul.f32 %v6814_v40, %v249_v24  ;;  %v720_v54 = vadd.f32 %v8172_v22, %v672_v42  ;;  %v8178_v61 = vld [vmem:[#allocation79_spill] sm:$0xff] }
 0xe68   :  { %v2696_v21 = vpop.xlane.xlu2 %2695  ;;  %v2046_v60 = vadd.f32 %v8171_v49, %v1998_v37  ;;  %v3057_v58 = vsel %vm2982_vm3, %v715_v59, %v1366_v28  ;;  %4363 = vpow2.f32 %v2513_v33  ;;  %v8177_v28 = vld [vmem:[#allocation184_spill] sm:$0xff]  ;;  %v8179_v49 = vld [vmem:[#allocation111_spill] sm:$0xff] }
 0xe69   :  { %v3086_v30 = vsel %vm3016_vm6, %v3070_v36, %v2713_v55  ;;  %v2718_v3 = vadd.f32 %v2696_v21, %v2670_v53  ;;  %2767 = vperm.xlu2 %4108, %v6904_v46   ;;  %v2673_v53 = vmul.f32 %v6920_v19, %v254_v7  ;;  %v6935_v36 = vpop.eup %4361  ;;  %v252_v21 = vld [vmem:[#allocation3 + $0x50] sm:$0xff]  ;;  %v3073_v50 = vsel %vm2999_vm2, %v3057_v58, %v2041_v6  ;;  %v2879_v16 = vpop.f32.mrf.mxu3  ;;  %v8182_v58 = vld [vmem:[#allocation105_spill] sm:$0xff] }
 0xe6a   :  { %3102 = vst.msk [vmem:[#allocation3 + $0x20] sm:$0xff] %vm135_vm0, %v3086_v30  ;;  %v3062_v40 = vsel %vm2982_vm3, %v720_v54, %v1371_v47  ;;  %v8175_v7 = vld [vmem:[#allocation30_spill] sm:$0xff]  ;;  %v2671_v10 = vmul.f32 %v6827_v52, %v252_v21 }
 0xe6b   :  { %v3091_v5 = vsel %vm3016_vm6, %v3075_v1, %v2718_v3  ;;  %v3078_v3 = vsel %vm2999_vm2, %v3062_v40, %v2046_v60  ;;  %v8174_v1 = vld [vmem:[#allocation179_spill] sm:$0xff]  ;;  %v670_v17 = vmul.f32 %v8175_v7, %v252_v21  ;;  %v2472_v7 = vsub.f32 %v6120_v14, %v6454_v32  ;;  %v8190_v32 = vld [vmem:[#allocation194_spill] sm:$0xff] }
 0xe6c   :  { %3107 = vst.msk [vmem:[#allocation3 + $0x48] sm:$0xff] %vm135_vm0, %v3091_v5  ;;  %v1996_v27 = vmul.f32 %v8174_v1, %v252_v21 }
 0xe6d   :  { %2924 = vrot.lane.b32.xlu1 %v6812_v38, %s4560_s4  ;;  %v8173_v38 = vld [vmem:[#allocation110_spill] sm:$0xff]  ;;  %v718_v5 = vadd.f32 %v8178_v61, %v670_v17  ;;  %v2491_v17 = vmul.f32 1.442695, %v2472_v7  ;;  %v8199_v7 = vld [vmem:[#allocation97_spill] sm:$0xff] }
 0xe6e   :  { %v2692_v44 = vpop.xlane.xlu1 %2691  ;;  %v1321_v51 = vmul.f32 %v8173_v38, %v252_v21  ;;  %v2044_v13 = vadd.f32 %v8177_v28, %v1996_v27  ;;  %v6954_v45 = vpop.eup %4363  ;;  %v2484_v27 = vsub.f32 %v6737_v35, %v6740_v4  ;;  %v8188_v61 = vld [vmem:[#allocation26_spill] sm:$0xff] }
 0xe6f   :  { %v2716_v55 = vadd.f32 %v2692_v44, %v2668_v48  ;;  %v255_v48 = vld [vmem:[#allocation3 + $0x68] sm:$0xff]  ;;  %v8180_v44 = vld [vmem:[#allocation180_spill] sm:$0xff]  ;;  %v8189_v4 = vld [vmem:[#allocation130_spill] sm:$0xff] }
 0xe70   :  { %v2702_v9 = vpop.xlane.xlu2 %2701  ;;  %v1369_v15 = vadd.f32 %v8176_v39, %v1321_v51  ;;  %v1324_v60 = vmul.f32 %v8179_v49, %v255_v48  ;;  %v1999_v22 = vmul.f32 %v8180_v44, %v255_v48  ;;  %v2674_v38 = vmul.f32 %v6854_v0, %v255_v48  ;;  %v8186_v39 = vld [vmem:[#allocation95_spill] sm:$0xff] }
 0xe71   :  { %v3089_v24 = vsel %vm3016_vm6, %v3073_v50, %v2716_v55  ;;  %v2721_v30 = vadd.f32 %v2702_v9, %v2673_v53  ;;  %2782 = vperm.xlu2 %4108, %v6935_v36   ;;  %v8183_v53 = vld [vmem:[#allocation55_spill] sm:$0xff]  ;;  %v8185_v9 = vld [vmem:[#allocation81_spill] sm:$0xff]  ;;  %v2515_v0 = vmul.f32 1.442695, %v2484_v27 }
 0xe72   :  { %3105 = vst.msk [vmem:[#allocation3 + $0x38] sm:$0xff] %vm135_vm0, %v3089_v24  ;;  %v3060_v18 = vsel %vm2982_vm3, %v718_v5, %v1369_v15  ;;  %v1372_v55 = vadd.f32 %v8182_v58, %v1324_v60  ;;  %v8192_v60 = vld [vmem:[#allocation96_spill] sm:$0xff] }
 0xe73   :  { %v3094_v62 = vsel %vm3016_vm6, %v3078_v3, %v2721_v30  ;;  %v3076_v42 = vsel %vm2999_vm2, %v3060_v18, %v2044_v13 }
 0xe74   :  { %3110 = vst.msk [vmem:[#allocation3 + $0x60] sm:$0xff] %vm135_vm0, %v3094_v62 }
 0xe75   :  { %2930 = vrot.lane.b32.xlu1 %v2877_v34, %s4560_s4 }
 0xe76   :  { %v2698_v37 = vpop.xlane.xlu1 %2697 }
 0xe77   :  { %v2719_v6 = vadd.f32 %v2698_v37, %v2671_v10  ;;  %v8191_v37 = vld [vmem:[#allocation66_spill] sm:$0xff] }
 0xe79   :  { %v3092_v31 = vsel %vm3016_vm6, %v3076_v42, %v2719_v6  ;;  %2797 = vperm.xlu2 %4108, %v6954_v45   ;;  %v4443_v42 = vld [vmem:[#allocation3 + $0x78] sm:$0xff] }
 0xe7a   :  { %3108 = vst.msk [vmem:[#allocation3 + $0x50] sm:$0xff] %vm135_vm0, %v3092_v31 }
 0xe7b   :  { %v6960_v59 = vpop.f32.mrf.mxu3 }
 0xe81   :  { %2920 = vrot.lane.b32.xlu2 %v6786_v43, %s4560_s4  ;;  %v8181_v43 = vld [vmem:[#allocation33_spill] sm:$0xff] }
 0xe82   :  { %v673_v54 = vmul.f32 %v8181_v43, %v255_v48 }
 0xe83   :  { %v2884_v52 = vpop.f32.mrf.mxu3 }
 0xe84   :  { %2936 = vrot.lane.b32.xlu1 %v2884_v52, %s4560_s4 }
 0xe88   :  { %v2590_v34 = vpop.permute.xlu0 %2589 }
 0xe89   :  { %v2611_v12 = vsub.f32 %v6717_v23, %v2590_v34  ;;  %2926 = vrot.lane.b32.xlu2 %v6832_v2, %s4560_s4  ;;  %v8184_v23 = vld [vmem:[#allocation185_spill] sm:$0xff]  ;;  %v721_v2 = vadd.f32 %v8185_v9, %v673_v54 }
 0xe8a   :  { %v2047_v50 = vadd.f32 %v8184_v23, %v1999_v22  ;;  %v8193_v22 = vld [vmem:[#allocation188_spill] sm:$0xff] }
 0xe8b   :  { %v2641_v47 = vmul.f32 1.442695, %v2611_v12  ;;  %v3063_v24 = vsel %vm2982_vm3, %v721_v2, %v1372_v55  ;;  %v8195_v55 = vld [vmem:[#allocation29_spill] sm:$0xff]  ;;  %v8198_v2 = vld [vmem:[#allocation67_spill] sm:$0xff] }
 0xe8c   :  { %v3079_v3 = vsel %vm2999_vm2, %v3063_v24, %v2047_v50  ;;  %v8197_v50 = vld [vmem:[#allocation195_spill] sm:$0xff] }
 0xe8d   :  { %4365 = vpow2.f32 %v2641_v47  ;;  %v245_v47 = vld [vmem:[#allocation3 + $0x18] sm:$0xff] }
 0xe8e   :  { %4367 = vpow2.f32 %v2515_v0  ;;  %v1989_v43 = vmul.f32 %v8193_v22, %v245_v47  ;;  %v8209_v22 = vld [vmem:[#allocation113_spill] sm:$0xff] }
 0xe8f   :  { %4369 = vpow2.f32 %v2491_v17 }
 0xe90   :  { %v2037_v9 = vadd.f32 %v8197_v50, %v1989_v43 }
 0xe91   :  { %2932 = vrot.lane.b32.xlu2 %v2879_v16, %s4560_s4  ;;  %v8187_v16 = vld [vmem:[#allocation176_spill] sm:$0xff] }
 0xe93   :  { %v4366_v33 = vpop.eup %4365 }
 0xe94   :  { %v2659_v21 = vmul.f32 %v4366_v33, %v8183_v53  ;;  %v6991_v13 = vpop.eup %4367  ;;  %v1314_v33 = vmul.f32 %v8192_v60, %v245_v47  ;;  %v663_v53 = vmul.f32 %v8195_v55, %v245_v47 }
 0xe95   :  { %v4370_v14 = vpop.eup %4369  ;;  %v2676_v31 = vmul.f32 %v4443_v42, %v6991_v13  ;;  %v250_v42 = vld [vmem:[#allocation3 + $0x40] sm:$0xff] }
 0xe96   :  { %2705 = vadd.xlane.f32.xlu0 %v2659_v21  ;;  %v2828_v51 = vpack.c.bf16 %v6798_v20, %v2659_v21  ;;  %v242_v20 = vld [vmem:[#allocation3] sm:$0xff]  ;;  %v8196_v21 = vld [vmem:[#allocation133_spill] sm:$0xff]  ;;  %v2669_v55 = vmul.f32 %v6904_v46, %v250_v42 }
 0xe97   :  { %v2704_v40 = vpop.xlane.xlu1 %2703  ;;  %v1311_v15 = vmul.f32 %v8186_v39, %v242_v20  ;;  %v1986_v62 = vmul.f32 %v8187_v16, %v242_v20  ;;  %v660_v35 = vmul.f32 %v8188_v61, %v242_v20  ;;  %v1362_v23 = vadd.f32 %v8196_v21, %v1314_v33  ;;  %v8200_v39 = vld [vmem:[#allocation192_spill] sm:$0xff]  ;;  %v8201_v16 = vld [vmem:[#allocation31_spill] sm:$0xff]  ;;  %v8202_v61 = vld [vmem:[#allocation114_spill] sm:$0xff] }
 0xe98   :  { %v2722_v30 = vadd.f32 %v2704_v40, %v2674_v38  ;;  %2896 = vmatmul.bf16.gmra.mxu3 %v2828_v51  ;;  %v711_v38 = vadd.f32 %v8198_v2, %v663_v53  ;;  %v2664_v51 = vmul.f32 %v4370_v14, %v245_v47  ;;  %v8208_v33 = vld [vmem:[#allocation116_spill] sm:$0xff] }
 0xe99   :  { %v1359_v5 = vadd.f32 %v8189_v4, %v1311_v15  ;;  %v2034_v10 = vadd.f32 %v8190_v32, %v1986_v62  ;;  %v708_v18 = vadd.f32 %v8191_v37, %v660_v35  ;;  %v8203_v4 = vld [vmem:[#allocation126_spill] sm:$0xff]  ;;  %v8213_v46 = vld [vmem:[#allocation36_spill] sm:$0xff] }
 0xe9a   :  { %v3095_v1 = vsel %vm3016_vm6, %v3079_v3, %v2722_v30  ;;  %v3053_v24 = vsel %vm2982_vm3, %v711_v38, %v1362_v23  ;;  %v8211_v38 = vld [vmem:[#allocation99_spill] sm:$0xff] }
 0xe9b   :  { %3111 = vst.msk [vmem:[#allocation3 + $0x68] sm:$0xff] %vm135_vm0, %v3095_v1  ;;  %v3050_v52 = vsel %vm2982_vm3, %v708_v18, %v1359_v5  ;;  %v247_v1 = vld [vmem:[#allocation3 + $0x28] sm:$0xff]  ;;  %v3069_v27 = vsel %vm2999_vm2, %v3053_v24, %v2037_v9  ;;  %v253_v9 = vld [vmem:[#allocation3 + $0x58] sm:$0xff] }
 0xe9c   :  { %v3066_v48 = vsel %vm2999_vm2, %v3050_v52, %v2034_v10  ;;  %v1316_v0 = vmul.f32 %v8199_v7, %v247_v1  ;;  %v1991_v15 = vmul.f32 %v8200_v39, %v247_v1  ;;  %v665_v62 = vmul.f32 %v8201_v16, %v247_v1  ;;  %v8205_v52 = vld [vmem:[#allocation98_spill] sm:$0xff]  ;;  %v8214_v7 = vld [vmem:[#allocation117_spill] sm:$0xff]  ;;  %v4444_v16 = vld [vmem:[#allocation4] sm:$0xff] }
 0xe9d   :  { %v2666_v10 = vmul.f32 %v6872_v25, %v247_v1  ;;  %v8216_v39 = vld [vmem:[#allocation77_spill] sm:$0xff] }
 0xe9e   :  { %v1364_v35 = vadd.f32 %v8202_v61, %v1316_v0  ;;  %v2039_v5 = vadd.f32 %v8203_v4, %v1991_v15 }
 0xeaa   :  { %2732 = vperm.xlu0 %4110, %v6843_v11   ;;  %v2661_v11 = vmul.f32 %v6792_v63, %v242_v20  ;;  %v8194_v63 = vld [vmem:[#allocation124_spill] sm:$0xff] }
 0xeaf   :  { %v6989_v28 = vpop.permute.xlu1 %2727 }
 0xeb2   :  { %2742 = vperm.xlu0 %4110, %v4370_v14   ;;  %v8204_v14 = vld [vmem:[#allocation70_spill] sm:$0xff] }
 0xeb3   :  { %v2678_v6 = vpop.xlane.xlu0 %2677  ;;  %v713_v32 = vadd.f32 %v8204_v14, %v665_v62  ;;  %v8217_v62 = vld [vmem:[#allocation127_spill] sm:$0xff] }
 0xeb4   :  { %v2709_v34 = vadd.f32 %v2678_v6, %v2661_v11  ;;  %v2708_v12 = vpop.xlane.xlu2 %2707  ;;  %v1455_v61 = vmul.f32 %v4444_v16, %v8217_v62  ;;  %v8230_v62 = vld [vmem:[#allocation100_spill] sm:$0xff] }
 0xeb5   :  { %v2724_v49 = vadd.f32 %v2708_v12, %v2676_v31  ;;  %v3055_v18 = vsel %vm2982_vm3, %v713_v32, %v1364_v35  ;;  %v2672_v35 = vmul.f32 %v6935_v36, %v253_v9 }
 0xeb6   :  { %v3082_v44 = vsel %vm3016_vm6, %v3066_v48, %v2709_v34  ;;  %v3071_v31 = vsel %vm2999_vm2, %v3055_v18, %v2039_v5  ;;  %v1319_v34 = vmul.f32 %v8205_v52, %v250_v42  ;;  %v8206_v48 = vld [vmem:[#allocation174_spill] sm:$0xff]  ;;  %v2805_v52 = vmul.f32 %v4444_v16, %v6989_v28 }
 0xeb7   :  { %3098 = vst.msk [vmem:[#allocation3] sm:$0xff] %vm135_vm0, %v3082_v44  ;;  %v3097_v54 = vsel %vm3016_vm6, %v8194_v63, %v2724_v49  ;;  %v7007_v58 = vpop.permute.xlu1 %2747  ;;  %v1994_v49 = vmul.f32 %v8206_v48, %v250_v42  ;;  %v8210_v63 = vld [vmem:[#allocation74_spill] sm:$0xff] }
 0xeb8   :  { %3113 = vst.msk [vmem:[#allocation3 + $0x78] sm:$0xff] %vm135_vm0, %v3097_v54  ;;  %v1367_v44 = vadd.f32 %v8208_v33, %v1319_v34  ;;  %v8218_v5 = vld [vmem:[#allocation42_spill] sm:$0xff]  ;;  %v8220_v33 = vld [vmem:[#allocation132_spill] sm:$0xff] }
 0xeb9   :  { %v2042_v43 = vadd.f32 %v8209_v22, %v1994_v49  ;;  %v804_v14 = vmul.f32 %v4444_v16, %v8218_v5  ;;  %v8221_v22 = vld [vmem:[#allocation47_spill] sm:$0xff]  ;;  %v256_v16 = vld [vmem:[#allocation3 + $0x70] sm:$0xff] }
 0xeba   :  { %2757 = vperm.xlu0 %4110, %v6848_v57  }
 0xebb   :  { %v2684_v40 = vpop.xlane.xlu0 %2683 }
 0xebc   :  { %v2712_v30 = vadd.f32 %v2684_v40, %v2664_v51  ;;  %v7016_v3 = vpop.permute.xlu2 %2737  ;;  %v1322_v51 = vmul.f32 %v8211_v38, %v253_v9  ;;  %v8225_v38 = vld [vmem:[#allocation136_spill] sm:$0xff] }
 0xebe   :  { %v3085_v17 = vsel %vm3016_vm6, %v3069_v27, %v2712_v30  ;;  %v2887_v20 = vpop.f32.mrf.mxu3  ;;  %v8212_v30 = vld [vmem:[#allocation173_spill] sm:$0xff]  ;;  %v671_v27 = vmul.f32 %v8213_v46, %v253_v9  ;;  %v1370_v0 = vadd.f32 %v8214_v7, %v1322_v51 }
 0xebf   :  { %3101 = vst.msk [vmem:[#allocation3 + $0x18] sm:$0xff] %vm135_vm0, %v3085_v17  ;;  %v7023_v57 = vpop.permute.xlu1 %2762  ;;  %2938 = vrot.lane.b32.xlu2 %v2887_v20, %s4560_s4  ;;  %v1997_v1 = vmul.f32 %v8212_v30, %v253_v9  ;;  %v8215_v17 = vld [vmem:[#allocation115_spill] sm:$0xff]  ;;  %v8227_v30 = vld [vmem:[#allocation157_spill] sm:$0xff] }
 0xec0   :  { %v719_v15 = vadd.f32 %v8216_v39, %v671_v27 }
 0xec1   :  { %v2045_v20 = vadd.f32 %v8215_v17, %v1997_v1 }
 0xec2   :  { %2772 = vperm.xlu0 %4110, %v6889_v29   ;;  %v8207_v29 = vld [vmem:[#allocation34_spill] sm:$0xff]  ;;  %v3061_v32 = vsel %vm2982_vm3, %v719_v15, %v1370_v0 }
 0xec3   :  { %v2688_v37 = vpop.xlane.xlu0 %2687  ;;  %v668_v60 = vmul.f32 %v8207_v29, %v250_v42  ;;  %v3077_v42 = vsel %vm2999_vm2, %v3061_v32, %v2045_v20  ;;  %v8229_v20 = vld [vmem:[#allocation150_spill] sm:$0xff] }
 0xec4   :  { %v2714_v11 = vadd.f32 %v2688_v37, %v2666_v10  ;;  %v7033_v6 = vpop.permute.xlu2 %2752  ;;  %v8219_v10 = vld [vmem:[#allocation161_spill] sm:$0xff]  ;;  %v8234_v32 = vld [vmem:[#allocation190_spill] sm:$0xff] }
 0xec5   :  { %v716_v54 = vadd.f32 %v8210_v63, %v668_v60  ;;  %v1616_v37 = vadd.f32 %v8219_v10, %v1455_v61  ;;  %v4445_v60 = vld [vmem:[#allocation4 + $0x20] sm:$0xff]  ;;  %v1325_v61 = vmul.f32 %v8230_v62, %v256_v16 }
 0xec6   :  { %v3087_v12 = vsel %vm3016_vm6, %v3071_v31, %v2714_v11  ;;  %v7038_v47 = vpop.f32.mrf.mxu3  ;;  %v941_v31 = vadd.f32 %v6305_v8, %v804_v14  ;;  %v8222_v63 = vld [vmem:[#allocation156_spill] sm:$0xff]  ;;  %v8233_v14 = vld [vmem:[#allocation118_spill] sm:$0xff] }
 0xec7   :  { %3103 = vst.msk [vmem:[#allocation3 + $0x28] sm:$0xff] %vm135_vm0, %v3087_v12  ;;  %v7042_v25 = vpop.permute.xlu1 %2777  ;;  %v3058_v21 = vsel %vm2982_vm3, %v716_v54, %v1367_v44  ;;  %v1459_v44 = vmul.f32 %v4445_v60, %v8220_v33  ;;  %v8223_v54 = vld [vmem:[#allocation53_spill] sm:$0xff]  ;;  %v8238_v33 = vld [vmem:[#allocation158_spill] sm:$0xff] }
 0xec8   :  { %v3074_v2 = vsel %vm2999_vm2, %v3058_v21, %v2042_v43  ;;  %v3115_v12 = vsel %vm3114_vm4, %v941_v31, %v1616_v37  ;;  %v808_v43 = vmul.f32 %v4445_v60, %v8221_v22  ;;  %v8235_v37 = vld [vmem:[#allocation80_spill] sm:$0xff] }
 0xec9   :  { %v3132_v49 = vsel %vm3131_vm5, %v3115_v12, %v6321_v56  ;;  %v1620_v56 = vadd.f32 %v8222_v63, %v1459_v44  ;;  %v4447_v12 = vld [vmem:[#allocation4 + $0x50] sm:$0xff]  ;;  %v8239_v22 = vld [vmem:[#allocation128_spill] sm:$0xff] }
 0xeca   :  { %2787 = vperm.xlu0 %4110, %v6920_v19  }
 0xecb   :  { %v2694_v53 = vpop.xlane.xlu0 %2693 }
 0xecc   :  { %v2717_v23 = vadd.f32 %v2694_v53, %v2669_v55  ;;  %v7051_v50 = vpop.permute.xlu2 %2767  ;;  %v2809_v55 = vmul.f32 %v4445_v60, %v7007_v58  ;;  %v8228_v58 = vld [vmem:[#allocation144_spill] sm:$0xff] }
 0xece   :  { %v3090_v40 = vsel %vm3016_vm6, %v3074_v2, %v2717_v23  ;;  %v2892_v24 = vpop.f32.mrf.mxu3  ;;  %v4446_v2 = vld [vmem:[#allocation4 + $0x38] sm:$0xff] }
 0xecf   :  { %3106 = vst.msk [vmem:[#allocation3 + $0x40] sm:$0xff] %vm135_vm0, %v3090_v40  ;;  %v7058_v19 = vpop.permute.xlu1 %2792  ;;  %2942 = vrot.lane.b32.xlu1 %v2892_v24, %s4560_s4  ;;  %v1462_v51 = vmul.f32 %v4446_v2, %v8225_v38  ;;  %v8226_v24 = vld [vmem:[#allocation51_spill] sm:$0xff]  ;;  %v2812_v27 = vmul.f32 %v4446_v2, %v7023_v57  ;;  %v1373_v57 = vadd.f32 %v8233_v14, %v1325_v61  ;;  %v8241_v38 = vld [vmem:[#allocation78_spill] sm:$0xff]  ;;  %v8245_v61 = vld [vmem:[#allocation60_spill] sm:$0xff] }
 0xed0   :  { %v8247_v14 = vld [vmem:[#allocation44_spill] sm:$0xff] }
 0xed1   :  { %v1623_v1 = vadd.f32 %v8227_v30, %v1462_v51  ;;  %v931_v51 = vpop.f32.mrf.mxu0  ;;  %v4449_v30 = vld [vmem:[#allocation4 + $0x18] sm:$0xff] }
 0xed2   :  { %2802 = vperm.xlu0 %4110, %v6991_v13  }
 0xed3   :  { %v2700_v4 = vpop.xlane.xlu0 %2699 }
 0xed4   :  { %v2720_v18 = vadd.f32 %v2700_v4, %v2672_v35  ;;  %v7071_v11 = vpop.permute.xlu2 %2782  ;;  %v8231_v35 = vld [vmem:[#allocation193_spill] sm:$0xff]  ;;  %v8232_v4 = vld [vmem:[#allocation38_spill] sm:$0xff] }
 0xed5   :  { %v674_v5 = vmul.f32 %v8232_v4, %v256_v16 }
 0xed6   :  { %v3093_v13 = vsel %vm3016_vm6, %v3077_v42, %v2720_v18  ;;  %v2894_v34 = vpop.f32.mrf.mxu3  ;;  %v2675_v42 = vmul.f32 %v6954_v45, %v256_v16  ;;  %v2815_v45 = vmul.f32 %v4447_v12, %v7042_v25 }
 0xed7   :  { %3109 = vst.msk [vmem:[#allocation3 + $0x58] sm:$0xff] %vm135_vm0, %v3093_v13  ;;  %v2919_v36 = vpop.permute.xlu1 %2918  ;;  %2944 = vrot.lane.b32.xlu2 %v2894_v34, %s4560_s4  ;;  %v722_v18 = vadd.f32 %v8235_v37, %v674_v5 }
 0xed8   :  { %v2966_v48 = vadd.f32 %v2919_v36, %v2805_v52 }
 0xed9   :  { %v3064_v52 = vsel %vm2982_vm3, %v722_v18, %v1373_v57  ;;  %v4451_v18 = vld [vmem:[#allocation4 + $0x48] sm:$0xff] }
 0xeda   :  { %v3149_v29 = vsel %vm3148_vm7, %v3132_v49, %v2966_v48  ;;  %2922 = vrot.lane.b32.xlu0 %v6801_v26, %s4560_s4  ;;  %v945_v26 = vadd.f32 %v8223_v54, %v808_v43  ;;  %v8236_v48 = vld [vmem:[#allocation139_spill] sm:$0xff] }
 0xedb   :  { %3166 = vst.msk [vmem:[#allocation4] sm:$0xff] %vm168_vm1, %v3149_v29  ;;  %v1465_v49 = vmul.f32 %v4447_v12, %v8236_v48  ;;  %v8237_v29 = vld [vmem:[#allocation56_spill] sm:$0xff] }
 0xedc   :  { %v7086_v8 = vpop.permute.xlu2 %2797  ;;  %v3119_v21 = vsel %vm3114_vm4, %v945_v26, %v1620_v56  ;;  %v814_v60 = vmul.f32 %v4447_v12, %v8237_v29  ;;  %v8240_v26 = vld [vmem:[#allocation159_spill] sm:$0xff]  ;;  %v8250_v48 = vld [vmem:[#allocation52_spill] sm:$0xff] }
 0xedd   :  { %v1626_v44 = vadd.f32 %v8238_v33, %v1465_v49  ;;  %v813_v49 = vmul.f32 %v4451_v18, %v8250_v48  ;;  %v8251_v29 = vld [vmem:[#allocation167_spill] sm:$0xff] }
 0xede   :  { %v951_v43 = vadd.f32 %v8239_v22, %v814_v60  ;;  %v8252_v22 = vld [vmem:[#allocation154_spill] sm:$0xff] }
 0xee0   :  { %v3125_v56 = vsel %vm3114_vm4, %v951_v43, %v1626_v44  ;;  %v950_v43 = vadd.f32 %v8252_v22, %v813_v49  ;;  %v8264_v49 = vld [vmem:[#allocation168_spill] sm:$0xff]  ;;  %v273_v22 = vld [vmem:[#allocation4 + $0x78] sm:$0xff] }
 0xee2   :  { %2928 = vrot.lane.b32.xlu0 %v6869_v41, %s4560_s4  ;;  %v8224_v41 = vld [vmem:[#allocation129_spill] sm:$0xff] }
 0xee3   :  { %v3136_v9 = vsel %vm3131_vm5, %v3119_v21, %v8224_v41  ;;  %v4448_v41 = vld [vmem:[#allocation4 + $0x8] sm:$0xff] }
 0xee4   :  { %v2921_v28 = vpop.permute.xlu2 %2920 }
 0xeea   :  { %2934 = vrot.lane.b32.xlu0 %v6960_v59, %s4560_s4  ;;  %v811_v59 = vmul.f32 %v4446_v2, %v8226_v24  ;;  %v2925_v24 = vpop.permute.xlu1 %2924 }
 0xeec   :  { %v2927_v53 = vpop.permute.xlu2 %2926  ;;  %v948_v46 = vadd.f32 %v8228_v58, %v811_v59 }
 0xeed   :  { %v2970_v23 = vadd.f32 %v2927_v53, %v2809_v55  ;;  %v3142_v55 = vsel %vm3131_vm5, %v3125_v56, %v8240_v26  ;;  %v8253_v26 = vld [vmem:[#allocation153_spill] sm:$0xff] }
 0xeee   :  { %v3122_v0 = vsel %vm3114_vm4, %v948_v46, %v1623_v1  ;;  %v8242_v46 = vld [vmem:[#allocation149_spill] sm:$0xff] }
 0xeef   :  { %v3153_v40 = vsel %vm3148_vm7, %v3136_v9, %v2970_v23  ;;  %v3139_v39 = vsel %vm3131_vm5, %v3122_v0, %v8229_v20  ;;  %v933_v20 = vpop.f32.mrf.mxu0 }
 0xef0   :  { %3170 = vst.msk [vmem:[#allocation4 + $0x20] sm:$0xff] %vm168_vm1, %v3153_v40 }
 0xef2   :  { %2940 = vrot.lane.b32.xlu0 %v7038_v47, %s4560_s4  ;;  %v2000_v47 = vmul.f32 %v8231_v35, %v256_v16  ;;  %v4450_v16 = vld [vmem:[#allocation4 + $0x30] sm:$0xff]  ;;  %v2931_v5 = vpop.permute.xlu1 %2930 }
 0xef4   :  { %v2933_v7 = vpop.permute.xlu2 %2932  ;;  %v2048_v10 = vadd.f32 %v8234_v32, %v2000_v47  ;;  %v8246_v47 = vld [vmem:[#allocation160_spill] sm:$0xff] }
 0xef5   :  { %v2973_v17 = vadd.f32 %v2933_v7, %v2812_v27  ;;  %v8243_v7 = vld [vmem:[#allocation142_spill] sm:$0xff] }
 0xef6   :  { %v3080_v34 = vsel %vm2999_vm2, %v3064_v52, %v2048_v10  ;;  %v8249_v52 = vld [vmem:[#allocation43_spill] sm:$0xff] }
 0xef7   :  { %v3156_v15 = vsel %vm3148_vm7, %v3139_v39, %v2973_v17  ;;  %v8244_v39 = vld [vmem:[#allocation39_spill] sm:$0xff] }
 0xef8   :  { %3173 = vst.msk [vmem:[#allocation4 + $0x38] sm:$0xff] %vm168_vm1, %v3156_v15 }
 0xf09   :  { %v2706_v31 = vpop.xlane.xlu0 %2705 }
 0xf0a   :  { %v2723_v13 = vadd.f32 %v2706_v31, %v2675_v42  ;;  %v8248_v42 = vld [vmem:[#allocation146_spill] sm:$0xff] }
 0xf0b   :  { %v1464_v31 = vmul.f32 %v4451_v18, %v8248_v42 }
 0xf0c   :  { %v3096_v36 = vsel %vm3016_vm6, %v3080_v34, %v2723_v13 }
 0xf0d   :  { %3112 = vst.msk [vmem:[#allocation3 + $0x70] sm:$0xff] %vm135_vm0, %v3096_v36  ;;  %v1625_v60 = vadd.f32 %v8251_v29, %v1464_v31  ;;  %v8261_v31 = vld [vmem:[#allocation163_spill] sm:$0xff] }
 0xf0f   :  { %v3124_v56 = vsel %vm3114_vm4, %v950_v43, %v1625_v60  ;;  %v8265_v43 = vld [vmem:[#allocation58_spill] sm:$0xff] }
 0xf19   :  { %v2939_v63 = vpop.permute.xlu2 %2938 }
 0xf1a   :  { %v2976_v54 = vadd.f32 %v2939_v63, %v2815_v45  ;;  %v2937_v63 = vpop.permute.xlu1 %2936 }
 0xf1b   :  { %v2897_v53 = vpop.f32.mrf.mxu3 }
 0xf1c   :  { %v3159_v21 = vsel %vm3148_vm7, %v3142_v55, %v2976_v54  ;;  %2946 = vrot.lane.b32.xlu0 %v2897_v53, %s4560_s4  ;;  %v2733_v23 = vpop.permute.xlu0 %2732  ;;  %v3141_v55 = vsel %vm3131_vm5, %v3124_v56, %v8253_v26 }
 0xf1d   :  { %3176 = vst.msk [vmem:[#allocation4 + $0x50] sm:$0xff] %vm168_vm1, %v3159_v21  ;;  %v2806_v9 = vmul.f32 %v4448_v41, %v2733_v23  ;;  %v4452_v21 = vld [vmem:[#allocation4 + $0x60] sm:$0xff]  ;;  %v8254_v23 = vld [vmem:[#allocation147_spill] sm:$0xff] }
 0xf1e   :  { %v1467_v41 = vmul.f32 %v4452_v21, %v8254_v23 }
 0xf1f   :  { %v2967_v2 = vadd.f32 %v2921_v28, %v2806_v9  ;;  %v271_v28 = vld [vmem:[#allocation4 + $0x68] sm:$0xff] }
 0xf20   :  { %v1468_v0 = vmul.f32 %v8243_v7, %v271_v28  ;;  %v2143_v15 = vmul.f32 %v8244_v39, %v271_v28  ;;  %v817_v35 = vmul.f32 %v8245_v61, %v271_v28  ;;  %v2818_v37 = vmul.f32 %v7058_v19, %v271_v28 }
 0xf21   :  { %v3150_v25 = vsel %vm3148_vm7, %v8241_v38, %v2967_v2  ;;  %v8255_v2 = vld [vmem:[#allocation57_spill] sm:$0xff] }
 0xf22   :  { %3167 = vst.msk [vmem:[#allocation4 + $0x8] sm:$0xff] %vm168_vm1, %v3150_v25  ;;  %v1629_v4 = vadd.f32 %v8246_v47, %v1468_v0  ;;  %v2304_v57 = vadd.f32 %v8247_v14, %v2143_v15  ;;  %v954_v10 = vadd.f32 %v933_v20, %v817_v35  ;;  %v816_v38 = vmul.f32 %v4452_v21, %v8255_v2  ;;  %v8256_v25 = vld [vmem:[#allocation169_spill] sm:$0xff]  ;;  %v4453_v0 = vld [vmem:[#allocation4 + $0x10] sm:$0xff]  ;;  %v8258_v15 = vld [vmem:[#allocation155_spill] sm:$0xff] }
 0xf23   :  { %v2899_v40 = vpop.f32.mrf.mxu3  ;;  %v8259_v47 = vld [vmem:[#allocation151_spill] sm:$0xff] }
 0xf24   :  { %2948 = vrot.lane.b32.xlu1 %v2899_v40, %s4560_s4  ;;  %v2743_v59 = vpop.permute.xlu0 %2742  ;;  %v3128_v36 = vsel %vm3114_vm4, %v954_v10, %v1629_v4  ;;  %v1628_v40 = vadd.f32 %v8256_v25, %v1467_v41 }
 0xf25   :  { %v2808_v1 = vmul.f32 %v4449_v30, %v2743_v59  ;;  %v3145_v33 = vsel %vm3131_vm5, %v3128_v36, %v2304_v57 }
 0xf27   :  { %v2969_v58 = vadd.f32 %v2925_v24, %v2808_v1  ;;  %v953_v24 = vadd.f32 %v931_v51, %v816_v38 }
 0xf29   :  { %v3152_v27 = vsel %vm3148_vm7, %v8242_v46, %v2969_v58  ;;  %v3127_v1 = vsel %vm3114_vm4, %v953_v24, %v1628_v40  ;;  %v8257_v46 = vld [vmem:[#allocation131_spill] sm:$0xff] }
 0xf2a   :  { %3169 = vst.msk [vmem:[#allocation4 + $0x18] sm:$0xff] %vm168_vm1, %v3152_v27  ;;  %v3144_v27 = vsel %vm3131_vm5, %v3127_v1, %v8257_v46 }
 0xf2c   :  { %v2758_v17 = vpop.permute.xlu0 %2757 }
 0xf2d   :  { %v2811_v62 = vmul.f32 %v4450_v16, %v2758_v17  ;;  %v2807_v17 = vmul.f32 %v4453_v0, %v7016_v3  ;;  %v4454_v16 = vld [vmem:[#allocation4 + $0x28] sm:$0xff] }
 0xf2f   :  { %v2972_v32 = vadd.f32 %v2931_v5, %v2811_v62  ;;  %v2810_v62 = vmul.f32 %v4454_v16, %v7033_v6  ;;  %v4455_v5 = vld [vmem:[#allocation4 + $0x40] sm:$0xff] }
 0xf30   :  { %v2813_v3 = vmul.f32 %v4455_v5, %v7051_v50  ;;  %v8262_v50 = vld [vmem:[#allocation141_spill] sm:$0xff] }
 0xf31   :  { %v3155_v13 = vsel %vm3148_vm7, %v8249_v52, %v2972_v32  ;;  %v2945_v34 = vpop.permute.xlu2 %2944  ;;  %v8260_v32 = vld [vmem:[#allocation152_spill] sm:$0xff] }
 0xf32   :  { %3172 = vst.msk [vmem:[#allocation4 + $0x30] sm:$0xff] %vm168_vm1, %v3155_v13  ;;  %v2979_v12 = vadd.f32 %v2945_v34, %v2818_v37  ;;  %v4456_v37 = vld [vmem:[#allocation4 + $0x58] sm:$0xff]  ;;  %v936_v13 = vpop.f32.mrf.mxu0  ;;  %v4457_v34 = vld [vmem:[#allocation4 + $0x70] sm:$0xff] }
 0xf33   :  { %v2816_v6 = vmul.f32 %v4456_v37, %v7071_v11  ;;  %v1469_v36 = vmul.f32 %v4457_v34, %v8262_v50 }
 0xf34   :  { %v3162_v19 = vsel %vm3148_vm7, %v3145_v33, %v2979_v12  ;;  %v2773_v44 = vpop.permute.xlu0 %2772  ;;  %v8263_v12 = vld [vmem:[#allocation65_spill] sm:$0xff]  ;;  %v2819_v33 = vmul.f32 %v4457_v34, %v7086_v8  ;;  %v8269_v8 = vld [vmem:[#allocation170_spill] sm:$0xff] }
 0xf35   :  { %3179 = vst.msk [vmem:[#allocation4 + $0x68] sm:$0xff] %vm168_vm1, %v3162_v19  ;;  %v2814_v45 = vmul.f32 %v4451_v18, %v2773_v44  ;;  %v818_v48 = vmul.f32 %v4457_v34, %v8263_v12  ;;  %v1630_v29 = vadd.f32 %v8264_v49, %v1469_v36 }
 0xf37   :  { %v2975_v54 = vadd.f32 %v2937_v63, %v2814_v45  ;;  %v955_v60 = vadd.f32 %v936_v13, %v818_v48  ;;  %v8266_v63 = vld [vmem:[#allocation148_spill] sm:$0xff] }
 0xf38   :  { %v1470_v56 = vmul.f32 %v8266_v63, %v273_v22 }
 0xf39   :  { %v3158_v53 = vsel %vm3148_vm7, %v3141_v55, %v2975_v54  ;;  %v3129_v11 = vsel %vm3114_vm4, %v955_v60, %v1630_v29  ;;  %v8267_v55 = vld [vmem:[#allocation143_spill] sm:$0xff] }
 0xf3a   :  { %3175 = vst.msk [vmem:[#allocation4 + $0x48] sm:$0xff] %vm168_vm1, %v3158_v53  ;;  %v3146_v45 = vsel %vm3131_vm5, %v3129_v11, %v8265_v43  ;;  %v938_v26 = vpop.f32.mrf.mxu0  ;;  %v2145_v53 = vmul.f32 %v8267_v55, %v273_v22  ;;  %v1631_v41 = vadd.f32 %v8269_v8, %v1470_v56 }
 0xf3c   :  { %v2788_v9 = vpop.permute.xlu0 %2787 }
 0xf3d   :  { %v2817_v59 = vmul.f32 %v4452_v21, %v2788_v9  ;;  %v8268_v21 = vld [vmem:[#allocation61_spill] sm:$0xff]  ;;  %v8270_v9 = vld [vmem:[#allocation162_spill] sm:$0xff] }
 0xf3e   :  { %v819_v23 = vmul.f32 %v8268_v21, %v273_v22  ;;  %v2306_v2 = vadd.f32 %v8270_v9, %v2145_v53 }
 0xf40   :  { %v956_v38 = vadd.f32 %v938_v26, %v819_v23 }
 0xf41   :  { %v2943_v30 = vpop.permute.xlu1 %2942 }
 0xf42   :  { %v2978_v58 = vadd.f32 %v2943_v30, %v2817_v59  ;;  %v3130_v24 = vsel %vm3114_vm4, %v956_v38, %v1631_v41 }
 0xf43   :  { %v3147_v30 = vsel %vm3131_vm5, %v3130_v24, %v2306_v2 }
 0xf44   :  { %v3161_v28 = vsel %vm3148_vm7, %v3144_v27, %v2978_v58  ;;  %v2803_v7 = vpop.permute.xlu0 %2802 }
 0xf45   :  { %3178 = vst.msk [vmem:[#allocation4 + $0x60] sm:$0xff] %vm168_vm1, %v3161_v28  ;;  %v2820_v25 = vmul.f32 %v2803_v7, %v273_v22 }
 0xf4c   :  { %v2923_v20 = vpop.permute.xlu0 %2922 }
 0xf4d   :  { %v2968_v39 = vadd.f32 %v2923_v20, %v2807_v17 }
 0xf4f   :  { %v3151_v51 = vsel %vm3148_vm7, %v8258_v15, %v2968_v39 }
 0xf50   :  { %3168 = vst.msk [vmem:[#allocation4 + $0x10] sm:$0xff] %vm168_vm1, %v3151_v51 }
 0xf54   :  { %v2929_v61 = vpop.permute.xlu0 %2928 }
 0xf55   :  { %v2971_v35 = vadd.f32 %v2929_v61, %v2810_v62 }
 0xf57   :  { %v3154_v4 = vsel %vm3148_vm7, %v8259_v47, %v2971_v35 }
 0xf58   :  { %3171 = vst.msk [vmem:[#allocation4 + $0x28] sm:$0xff] %vm168_vm1, %v3154_v4 }
 0xf5c   :  { %v2935_v14 = vpop.permute.xlu0 %2934 }
 0xf5d   :  { %v2974_v57 = vadd.f32 %v2935_v14, %v2813_v3 }
 0xf5f   :  { %v3157_v10 = vsel %vm3148_vm7, %v8260_v32, %v2974_v57 }
 0xf60   :  { %3174 = vst.msk [vmem:[#allocation4 + $0x40] sm:$0xff] %vm168_vm1, %v3157_v10 }
 0xf64   :  { %v2941_v18 = vpop.permute.xlu0 %2940 }
 0xf65   :  { %v2977_v42 = vadd.f32 %v2941_v18, %v2816_v6 }
 0xf67   :  { %v3160_v52 = vsel %vm3148_vm7, %v8261_v31, %v2977_v42 }
 0xf68   :  { %3177 = vst.msk [vmem:[#allocation4 + $0x58] sm:$0xff] %vm168_vm1, %v3160_v52 }
 0xf8e   :  { %v2947_v19 = vpop.permute.xlu0 %2946 }
 0xf8f   :  { %v2980_v44 = vadd.f32 %v2947_v19, %v2819_v33 }
 0xf91   :  { %v3163_v54 = vsel %vm3148_vm7, %v3146_v45, %v2980_v44 }
 0xf92   :  { %3180 = vst.msk [vmem:[#allocation4 + $0x70] sm:$0xff] %vm168_vm1, %v3163_v54 }
 0xf96   :  { %v2949_v40 = vpop.permute.xlu1 %2948 }
 0xf97   :  { %v2981_v59 = vadd.f32 %v2949_v40, %v2820_v25 }
 0xf99   :  { %v3164_v1 = vsel %vm3148_vm7, %v3147_v30, %v2981_v59 }
 0xf9a   :  { %3181 = vst.msk [vmem:[#allocation4 + $0x78] sm:$0xff] %vm168_vm1, %v3164_v1 }
 0xf9b PF:  { %v3189_v58 = vld [vmem:[#allocation3 + $0x20] sm:$0xff]  ;;  %v3187_v46 = vld [vmem:[#allocation3 + $0x10] sm:$0xff]  ;;  %v4561_v28 = vmov 0   ;;  %v3190_v20 = vld [vmem:[#allocation3 + $0x28] sm:$0xff]  ;;  %v4562_v55 = vmov 1   ;;  %v4563_v53 = vmov 2  }
 0xf9c   :  { %v3185_v27 = vld [vmem:[#allocation3] sm:$0xff]  ;;  %4460 = vset.pattern.permute.xlu2 %v4561_v28  ;;  %4459 = vset.pattern.permute.xlu1 %v4561_v28  ;;  %v3205_v0 = vmax.f32 %v3189_v58, 1e-09  ;;  %v3203_v17 = vmax.f32 %v3187_v46, 1e-09  ;;  %v3188_v39 = vld [vmem:[#allocation3 + $0x18] sm:$0xff] }
 0xf9d   :  { %v3201_v7 = vmax.f32 %v3185_v27, 1e-09  ;;  %4458 = vset.pattern.permute.xlu0 %v4561_v28  ;;  %v3186_v15 = vld [vmem:[#allocation3 + $0x8] sm:$0xff]  ;;  %v3206_v51 = vmax.f32 %v3190_v20, 1e-09  ;;  %v3193_v47 = vld [vmem:[#allocation3 + $0x40] sm:$0xff] }
 0xf9e   :  { %4485 = vrcp.f32 %v3205_v0  ;;  %v3204_v16 = vmax.f32 %v3188_v39, 1e-09  ;;  %v3202_v62 = vmax.f32 %v3186_v15, 1e-09  ;;  %v3192_v5 = vld [vmem:[#allocation3 + $0x38] sm:$0xff]  ;;  %v3191_v3 = vld [vmem:[#allocation3 + $0x30] sm:$0xff] }
 0xf9f   :  { %4487 = vrcp.f32 %v3203_v17  ;;  %v3209_v14 = vmax.f32 %v3193_v47, 1e-09  ;;  %v3208_v57 = vmax.f32 %v3192_v5, 1e-09  ;;  %v3207_v10 = vmax.f32 %v3191_v3, 1e-09 }
 0xfa0   :  { %4489 = vrcp.f32 %v3201_v7  ;;  %v3196_v18 = vld [vmem:[#allocation3 + $0x58] sm:$0xff]  ;;  %v3195_v42 = vld [vmem:[#allocation3 + $0x50] sm:$0xff]  ;;  %v3194_v31 = vld [vmem:[#allocation3 + $0x48] sm:$0xff]  ;;  %v4564_v23 = vmov 3   ;;  %vm3585_vm8 = vcmask 64512   ;;  %vm3602_vm9 = vcmask 130048  }
 0xfa1   :  { %4491 = vrcp.f32 %v3206_v51  ;;  %v3212_v52 = vmax.f32 %v3196_v18, 1e-09  ;;  %v3211_v13 = vmax.f32 %v3195_v42, 1e-09  ;;  %v3210_v50 = vmax.f32 %v3194_v31, 1e-09 }
 0xfa2   :  { %4493 = vrcp.f32 %v3204_v16  ;;  %v3199_v48 = vld [vmem:[#allocation3 + $0x70] sm:$0xff]  ;;  %v3198_v49 = vld [vmem:[#allocation3 + $0x68] sm:$0xff]  ;;  %v3197_v29 = vld [vmem:[#allocation3 + $0x60] sm:$0xff]  ;;  %vm3619_vm10 = vcmask 195584   ;;  %s4565_s26 = smov 120  }
 0xfa3   :  { %4495 = vrcp.f32 %v3202_v62  ;;  %v3215_v60 = vmax.f32 %v3199_v48, 1e-09  ;;  %v3214_v33 = vmax.f32 %v3198_v49, 1e-09  ;;  %v3213_v11 = vmax.f32 %v3197_v29, 1e-09 }
 0xfa4   :  { %v7207_v61 = vpop.eup %4485  ;;  %4497 = vrcp.f32 %v3209_v14  ;;  %v3200_v43 = vld [vmem:[#allocation3 + $0x78] sm:$0xff]  ;;  %v7291_v59 = vld [vmem:[#allocation4 + $0x8] sm:$0xff]  ;;  %v7304_v0 = vld [vmem:[#allocation4 + $0x20] sm:$0xff] }
 0xfa5   :  { %v7209_v35 = vpop.eup %4487  ;;  %3271 = vperm.xlu2 %4460, %v7207_v61   ;;  %4499 = vrcp.f32 %v3208_v57  ;;  %v3216_v63 = vmax.f32 %v3200_v43, 1e-09  ;;  %v7314_v16 = vld [vmem:[#allocation4 + $0x30] sm:$0xff]  ;;  %v7329_v14 = vld [vmem:[#allocation4] sm:$0xff]  ;;  %v7345_v31 = vld [vmem:[#allocation4 + $0x18] sm:$0xff] }
 0xfa6   :  { %v7212_v4 = vpop.eup %4489  ;;  %3261 = vperm.xlu1 %4459, %v7209_v35   ;;  %4501 = vrcp.f32 %v3207_v10 }
 0xfa7   :  { %3251 = vperm.xlu0 %4458, %v7212_v4   ;;  %v7216_v32 = vpop.eup %4491  ;;  %4503 = vrcp.f32 %v3212_v52  ;;  %v7348_v52 = vld [vmem:[#allocation4 + $0x10] sm:$0xff] }
 0xfa8   :  { %v7218_v37 = vpop.eup %4493  ;;  %4505 = vrcp.f32 %v3211_v13 }
 0xfa9   :  { %v7220_v6 = vpop.eup %4495  ;;  %4507 = vrcp.f32 %v3210_v50 }
 0xfaa   :  { %v7225_v34 = vpop.eup %4497  ;;  %4509 = vrcp.f32 %v3215_v60 }
 0xfab   :  { %v7227_v36 = vpop.eup %4499  ;;  %4511 = vrcp.f32 %v3214_v33 }
 0xfac   :  { %v7229_v12 = vpop.eup %4501  ;;  %4513 = vrcp.f32 %v3213_v11  ;;  %v7366_v11 = vld [vmem:[#allocation4 + $0x38] sm:$0xff] }
 0xfad   :  { %3276 = vperm.xlu2 %4460, %v7216_v32   ;;  %v7234_v19 = vpop.eup %4503  ;;  %4515 = vrcp.f32 %v3216_v63 }
 0xfae   :  { %3266 = vperm.xlu1 %4459, %v7218_v37   ;;  %v7236_v44 = vpop.eup %4505 }
 0xfaf   :  { %3256 = vperm.xlu0 %4458, %v7220_v6   ;;  %v4508_v22 = vpop.eup %4507 }
 0xfb0   :  { %v7240_v45 = vpop.eup %4509 }
 0xfb1   :  { %v4512_v56 = vpop.eup %4511 }
 0xfb2   :  { %v4514_v54 = vpop.eup %4513 }
 0xfb3   :  { %v7243_v26 = vpop.eup %4515 }
 0xfb5   :  { %3291 = vperm.xlu2 %4460, %v7225_v34  }
 0xfb6   :  { %3286 = vperm.xlu1 %4459, %v7227_v36  }
 0xfb7   :  { %3281 = vperm.xlu0 %4458, %v7229_v12  }
 0xfbd   :  { %3306 = vperm.xlu2 %4460, %v7234_v19  }
 0xfbe   :  { %3301 = vperm.xlu1 %4459, %v7236_v44  }
 0xfbf   :  { %3296 = vperm.xlu0 %4458, %v4508_v22  }
 0xfc5   :  { %3321 = vperm.xlu2 %4460, %v7240_v45  }
 0xfc6   :  { %3316 = vperm.xlu1 %4459, %v4512_v56  }
 0xfc7   :  { %3311 = vperm.xlu0 %4458, %v4514_v54  }
 0xfcd   :  { %4462 = vset.pattern.permute.xlu2 %v4562_v55 }
 0xfce   :  { %4461 = vset.pattern.permute.xlu1 %v4562_v55  ;;  %3350 = vperm.xlu2 %4462, %v7220_v6  }
 0xfcf   :  { %3326 = vperm.xlu0 %4458, %v7243_v26   ;;  %3346 = vperm.xlu1 %4461, %v7212_v4  }
 0xfd6   :  { %3362 = vperm.xlu2 %4462, %v7207_v61  }
 0xfd7   :  { %4463 = vset.pattern.permute.xlu0 %v4562_v55  ;;  %3358 = vperm.xlu1 %4461, %v7218_v37  }
 0xfd8   :  { %3354 = vperm.xlu0 %4463, %v7209_v35  }
 0xfde   :  { %3370 = vperm.xlu2 %4462, %v7229_v12  }
 0xfdf   :  { %3366 = vperm.xlu1 %4461, %v7216_v32  }
 0xfe0   :  { %3374 = vperm.xlu0 %4463, %v7227_v36  }
 0xfe6   :  { %3382 = vperm.xlu2 %4462, %v4508_v22  }
 0xfe7   :  { %3378 = vperm.xlu1 %4461, %v7225_v34  }
 0xfe8   :  { %3386 = vperm.xlu0 %4463, %v7236_v44  }
 0xfee   :  { %3394 = vperm.xlu2 %4462, %v4514_v54  }
 0xfef   :  { %3390 = vperm.xlu1 %4461, %v7234_v19  }
 0xff0   :  { %3398 = vperm.xlu0 %4463, %v4512_v56  }
 0xff6   :  { %4465 = vset.pattern.permute.xlu2 %v4563_v53 }
 0xff7   :  { %4464 = vset.pattern.permute.xlu1 %v4563_v53  ;;  %3462 = vperm.xlu2 %4465, %v4508_v22  }
 0xff8   :  { %4466 = vset.pattern.permute.xlu0 %v4563_v53  ;;  %3458 = vperm.xlu1 %4464, %v7225_v34  }
 0xff9   :  { %3474 = vperm.xlu0 %4466, %v4514_v54  }
 0xfff   :  { %v3272_v21 = vpop.permute.xlu2 %3271  ;;  %4467 = vset.pattern.permute.xlu2 %v4564_v23 }
0x1000   :  { %3478 = vperm.xlu1 %4464, %v4512_v56   ;;  %3538 = vperm.xlu2 %4467, %v7225_v34   ;;  %v3333_v20 = vmul.f32 %v3272_v21, %v7304_v0 }
0x1001   :  { %3466 = vperm.xlu0 %4466, %v7236_v44  }
0x1007   :  { %v7267_v8 = vpop.permute.xlu2 %3276 }
0x1008   :  { %4468 = vset.pattern.permute.xlu1 %v4564_v23  ;;  %3554 = vperm.xlu2 %4467, %v4514_v54   ;;  %v7379_v54 = vld [vmem:[#allocation4 + $0x50] sm:$0xff] }
0x1009   :  { %3450 = vperm.xlu0 %4466, %v7229_v12   ;;  %3542 = vperm.xlu1 %4468, %v4508_v22  }
0x100f   :  { %v7271_v41 = vpop.permute.xlu2 %3291 }
0x1010   :  { %4470 = vset.pattern.permute.xlu2 %v4563_v53 }
0x1011   :  { %4481 = vset.pattern.permute.xlu0 %v4564_v23  ;;  %4469 = vset.pattern.permute.xlu1 %v4563_v53 }
0x1012   :  { %3558 = vperm.xlu0 %4481, %v4512_v56   ;;  %3430 = vperm.xlu2 %4470, %v7220_v6  }
0x1013   :  { %3426 = vperm.xlu1 %4469, %v7212_v4  }
0x1017   :  { %v7278_v9 = vpop.permute.xlu2 %3306 }
0x1018   :  { %v7280_v2 = vpop.permute.xlu1 %3261 }
0x1019   :  { %v3252_v38 = vpop.permute.xlu0 %3251  ;;  %v3331_v29 = vmul.f32 %v7280_v2, %v7348_v52 }
0x101a   :  { %3506 = vperm.xlu0 %4481, %v7212_v4   ;;  %3446 = vperm.xlu2 %4470, %v7216_v32   ;;  %v3329_v57 = vmul.f32 %v3252_v38, %v7329_v14 }
0x101b   :  { %3442 = vperm.xlu1 %4469, %v7207_v61  }
0x101f   :  { %v7285_v25 = vpop.permute.xlu2 %3321 }
0x1020   :  { %v3267_v40 = vpop.permute.xlu1 %3266 }
0x1021   :  { %v3257_v24 = vpop.permute.xlu0 %3256  ;;  %v3332_v50 = vmul.f32 %v3267_v40, %v7345_v31  ;;  %v7388_v40 = vld [vmem:[#allocation4 + $0x58] sm:$0xff] }
0x1022   :  { %3526 = vperm.xlu0 %4481, %v7216_v32   ;;  %4472 = vset.pattern.permute.xlu2 %v4564_v23  ;;  %v3330_v30 = vmul.f32 %v3257_v24, %v7291_v59 }
0x1023   :  { %4471 = vset.pattern.permute.xlu1 %v4564_v23  ;;  %3522 = vperm.xlu2 %4472, %v7207_v61  }
0x1024   :  { %3510 = vperm.xlu1 %4471, %v7220_v6  }
0x1028   :  { %v3287_v1 = vpop.permute.xlu1 %3286  ;;  %v3351_v58 = vpop.permute.xlu2 %3350 }
0x1029   :  { %v3410_v46 = vmul.f32 %v3351_v58, %v7291_v59  ;;  %v3282_v27 = vpop.permute.xlu0 %3281 }
0x102a   :  { %3550 = vperm.xlu0 %4481, %v7234_v19   ;;  %v3335_v62 = vmul.f32 %v3282_v27, %v7314_v16 }
0x102b   :  { %v7298_v28 = vsel %vm3585_vm8, %v3330_v30, %v3410_v46  ;;  %4474 = vset.pattern.permute.xlu2 %v4562_v55  ;;  %v3241_v46 = vld [vmem:[#allocation4 + $0x40] sm:$0xff] }
0x102c   :  { %4473 = vset.pattern.permute.xlu1 %v4562_v55  ;;  %3406 = vperm.xlu2 %4474, %v7243_v26  }
0x102d   :  { %3402 = vperm.xlu1 %4473, %v7240_v45  }
0x1030   :  { %v3302_v17 = vpop.permute.xlu1 %3301  ;;  %v3363_v7 = vpop.permute.xlu2 %3362 }
0x1031   :  { %v3413_v39 = vmul.f32 %v3363_v7, %v7304_v0  ;;  %v7308_v15 = vpop.permute.xlu0 %3296  ;;  %v3339_v21 = vmul.f32 %v3302_v17, %v7379_v54 }
0x1032   :  { %3534 = vperm.xlu0 %4481, %v7227_v36  }
0x1033   :  { %v7312_v51 = vsel %vm3585_vm8, %v3333_v20, %v3413_v39 }
0x1034   :  { %4476 = vset.pattern.permute.xlu2 %v4563_v53 }
0x1035   :  { %4475 = vset.pattern.permute.xlu1 %v4563_v53  ;;  %3482 = vperm.xlu2 %4476, %v7240_v45  }
0x1036   :  { %3470 = vperm.xlu1 %4475, %v7234_v19  }
0x1038   :  { %v7321_v61 = vpop.permute.xlu1 %3316  ;;  %v3371_v47 = vpop.permute.xlu2 %3370 }
0x1039   :  { %v3415_v4 = vmul.f32 %v3371_v47, %v7314_v16  ;;  %v7324_v5 = vpop.permute.xlu0 %3311 }
0x103b   :  { %v7327_v3 = vsel %vm3585_vm8, %v3335_v62, %v3415_v4  ;;  %v4068_v62 = vld [vmem:[%s7695_s7] sm:$0xff] }
0x103d   :  { %4477 = vset.pattern.permute.xlu2 %v4564_v23 }
0x103e   :  { %3486 = vperm.xlu1 %4475, %v7243_v26   ;;  %3546 = vperm.xlu2 %4477, %v7236_v44  }
0x1040   :  { %v7335_v32 = vpop.permute.xlu2 %3382 }
0x1041   :  { %v3347_v10 = vpop.permute.xlu1 %3346  ;;  %v7337_v6 = vpop.permute.xlu0 %3326 }
0x1042   :  { %v3409_v18 = vmul.f32 %v3347_v10, %v7329_v14 }
0x1044   :  { %v7341_v42 = vsel %vm3585_vm8, %v3329_v57, %v3409_v18  ;;  %v3245_v57 = vld [vmem:[#allocation4 + $0x60] sm:$0xff] }
0x1046   :  { %4478 = vset.pattern.permute.xlu1 %v4564_v23  ;;  %3566 = vperm.xlu2 %4477, %v7243_v26  }
0x1047   :  { %3562 = vperm.xlu1 %4478, %v7240_v45   ;;  %v3336_v45 = vmul.f32 %v3287_v1, %v7366_v11 }
0x1048   :  { %v7350_v13 = vpop.permute.xlu2 %3394 }
0x1049   :  { %v3359_v34 = vpop.permute.xlu1 %3358  ;;  %v3421_v18 = vmul.f32 %v7350_v13, %v3245_v57 }
0x104a   :  { %v3412_v48 = vmul.f32 %v3359_v34, %v7345_v31  ;;  %v3355_v49 = vpop.permute.xlu0 %3354 }
0x104b   :  { %v3411_v60 = vmul.f32 %v3355_v49, %v7348_v52  ;;  %v3242_v49 = vld [vmem:[#allocation4 + $0x48] sm:$0xff] }
0x104c   :  { %v7358_v33 = vsel %vm3585_vm8, %v3332_v50, %v3412_v48 }
0x104d   :  { %v7361_v19 = vsel %vm3585_vm8, %v3331_v29, %v3411_v60  ;;  %v3341_v29 = vmul.f32 %v7324_v5, %v3245_v57 }
0x104e   :  { %4480 = vset.pattern.permute.xlu2 %v4563_v53 }
0x104f   :  { %4479 = vset.pattern.permute.xlu1 %v4563_v53  ;;  %3438 = vperm.xlu2 %4480, %v7218_v37  }
0x1050   :  { %3434 = vperm.xlu1 %4479, %v7209_v35  }
0x1051   :  { %v7369_v44 = vpop.permute.xlu1 %3366  ;;  %v7371_v43 = vpop.permute.xlu2 %3462 }
0x1052   :  { %v3375_v22 = vpop.permute.xlu0 %3374 }
0x1053   :  { %v3416_v63 = vmul.f32 %v3375_v22, %v7366_v11  ;;  %v3598_v22 = vsel %vm3585_vm8, %v3341_v29, %v3421_v18 }
0x1055   :  { %v7376_v56 = vsel %vm3585_vm8, %v3336_v45, %v3416_v63  ;;  %v3338_v63 = vmul.f32 %v7308_v15, %v3242_v49 }
0x1057   :  { %4482 = vset.pattern.permute.xlu2 %v4564_v23 }
0x1058   :  { %3454 = vperm.xlu1 %4479, %v7227_v36   ;;  %3514 = vperm.xlu2 %4482, %v7209_v35   ;;  %v3340_v35 = vmul.f32 %v7278_v9, %v7388_v40 }
0x1059   :  { %v3379_v26 = vpop.permute.xlu1 %3378 }
0x105a   :  { %v3387_v55 = vpop.permute.xlu0 %3386  ;;  %v3539_v53 = vpop.permute.xlu2 %3538  ;;  %v3417_v27 = vmul.f32 %v3379_v26, %v3241_v46  ;;  %v3418_v26 = vmul.f32 %v7335_v32, %v3242_v49 }
0x105b   :  { %v3419_v2 = vmul.f32 %v3387_v55, %v7379_v54  ;;  %v3577_v39 = vmul.f32 %v3539_v53, %v3241_v46  ;;  %v3498_v53 = vmul.f32 %v7371_v43, %v3242_v49 }
0x105c   :  { %v3595_v5 = vsel %vm3585_vm8, %v3338_v63, %v3418_v26 }
0x105d   :  { %v7386_v38 = vsel %vm3585_vm8, %v3339_v21, %v3419_v2 }
0x1060   :  { %4483 = vset.pattern.permute.xlu1 %v4564_v23  ;;  %3530 = vperm.xlu2 %4482, %v7229_v12   ;;  %v4069_v23 = vld [vmem:[%s7695_s7 + $0x8] sm:$0xff] }
0x1061   :  { %3518 = vperm.xlu1 %4483, %v7218_v37   ;;  %v3391_v36 = vpop.permute.xlu1 %3390  ;;  %v3337_v37 = vmul.f32 %v7271_v41, %v3241_v46  ;;  %4071 = vmatpush.bf16.msra.mxu2 %v4069_v23  ;;  %v7413_v41 = vld [vmem:[%s7694_s6] ss:$0 sm:$0xff] }
0x1062   :  { %v3420_v24 = vmul.f32 %v3391_v36, %v7388_v40  ;;  %v3399_v30 = vpop.permute.xlu0 %3398  ;;  %v3555_v1 = vpop.permute.xlu2 %3554  ;;  %4072 = vmatpush.bf16.msra.mxu3 %v4069_v23  ;;  %4070 = vmatpush.bf16.msra.mxu1 %v4069_v23 }
0x1063   :  { %3807 = vmatpush.bf16.msra.mxu0 %v4069_v23  ;;  %v3594_v20 = vsel %vm3585_vm8, %v3337_v37, %v3417_v27  ;;  %v3581_v45 = vmul.f32 %v3555_v1, %v3245_v57  ;;  %v3612_v1 = vsel %vm3602_vm9, %v3595_v5, %v3498_v53 }
0x1064   :  { %v7397_v58 = vsel %vm3585_vm8, %v3340_v35, %v3420_v24 }
0x1065   :  { %4074 = vmatpush.bf16.msra.mxu2 %v4068_v62 }
0x1066   :  { %4075 = vmatpush.bf16.msra.mxu3 %v4068_v62  ;;  %4073 = vmatpush.bf16.msra.mxu1 %v4068_v62 }
0x1067   :  { %3808 = vmatpush.bf16.msra.mxu0 %v4068_v62 }
0x106a   :  { %v3459_v12 = vpop.permute.xlu1 %3458 }
0x106b   :  { %v3497_v17 = vmul.f32 %v3459_v12, %v3241_v46  ;;  %v3475_v7 = vpop.permute.xlu0 %3474  ;;  %v3246_v12 = vld [vmem:[#allocation4 + $0x68] sm:$0xff] }
0x106c   :  { %v7403_v9 = vpop.permute.xlu2 %3430  ;;  %v3501_v50 = vmul.f32 %v3475_v7, %v3245_v57  ;;  %v3422_v37 = vmul.f32 %v3399_v30, %v3246_v12 }
0x106d   :  { %v3611_v47 = vsel %vm3602_vm9, %v3594_v20, %v3497_v17 }
0x106e   :  { %v3628_v4 = vsel %vm3619_vm10, %v3611_v47, %v3577_v39  ;;  %v3615_v55 = vsel %vm3602_vm9, %v3598_v22, %v3501_v50  ;;  %v3342_v39 = vmul.f32 %v7321_v61, %v3246_v12 }
0x106f   :  { %v3648_v48 = vadd.f32 %v7413_v41, %v3628_v4  ;;  %v3632_v21 = vsel %vm3619_vm10, %v3615_v55, %v3581_v45 }
0x1070   :  { %v7438_v43 = vadd.f32 %v7413_v41, %v3632_v21 }
0x1071   :  { %v3680_v13 = vmin.f32 %v3648_v48, 0.0  ;;  %vm3664_vm11 = vcmp.gt.f32.partialorder %v3648_v48, 0.0 }
0x1072   :  { %v3479_v10 = vpop.permute.xlu1 %3478  ;;  %v3684_v20 = vmin.f32 %v7438_v43, 0.0  ;;  %vm3668_vm13 = vcmp.gt.f32.partialorder %v7438_v43, 0.0 }
0x1073   :  { %v7417_v34 = vpop.permute.xlu0 %3466  ;;  %v3704_v46 = vmul.f32 1.442695, %v3680_v13  ;;  %v3502_v7 = vmul.f32 %v3479_v10, %v3246_v12 }
0x1074   :  { %v7421_v60 = vpop.permute.xlu2 %3446 }
0x1075   :  { %4517 = vpow2.f32 %v3704_v46 }
0x107b   :  { %v3451_v2 = vpop.permute.xlu0 %3450  ;;  %v3543_v36 = vpop.permute.xlu1 %3542 }
0x107c   :  { %v3495_v35 = vmul.f32 %v3451_v2, %v7314_v16  ;;  %v3578_v24 = vmul.f32 %v3543_v36, %v3242_v49  ;;  %v4518_v18 = vpop.eup %4517  ;;  %v3712_v49 = vmul.f32 1.442695, %v3684_v20 }
0x107d   :  { %v3523_v15 = vpop.permute.xlu2 %3522  ;;  %v4036_v22 = vadd.f32 -1.0, %v4518_v18 }
0x107e   :  { %v7434_v32 = vsel %vm3602_vm9, %v7327_v3, %v3495_v35  ;;  %v3629_v27 = vsel %vm3619_vm10, %v3612_v1, %v3578_v24  ;;  %v3599_v3 = vsel %vm3585_vm8, %v3342_v39, %v3422_v37  ;;  %v3573_v53 = vmul.f32 %v3523_v15, %v7304_v0  ;;  %v3238_v37 = vld [vmem:[#allocation4 + $0x28] sm:$0xff] }
0x107f   :  { %v3649_v23 = vadd.f32 %v7413_v41, %v3629_v27  ;;  %v3616_v50 = vsel %vm3602_vm9, %v3599_v3, %v3502_v7  ;;  %v3744_v36 = vsel %vm3664_vm11, %v3648_v48, %v4036_v22  ;;  %v3414_v48 = vmul.f32 %v7369_v44, %v3238_v37 }
0x1080   :  { %v3490_v39 = vmul.f32 %v7403_v9, %v7291_v59 }
0x1081   :  { %v3681_v17 = vmin.f32 %v3649_v23, 0.0  ;;  %vm3665_vm12 = vcmp.gt.f32.partialorder %v3649_v23, 0.0 }
0x1083   :  { %v3706_v62 = vmul.f32 1.442695, %v3681_v17  ;;  %v3334_v17 = vmul.f32 %v7267_v8, %v3238_v37 }
0x1084   :  { %v3559_v47 = vpop.permute.xlu0 %3558 }
0x1085   :  { %v3582_v4 = vmul.f32 %v3559_v47, %v3246_v12  ;;  %v3427_v57 = vpop.permute.xlu1 %3426  ;;  %4519 = vpow2.f32 %v3706_v62  ;;  %v3591_v44 = vsel %vm3585_vm8, %v3334_v17, %v3414_v48 }
0x1086   :  { %v7446_v30 = vpop.permute.xlu2 %3406  ;;  %v3489_v61 = vmul.f32 %v3427_v57, %v7329_v14  ;;  %4521 = vpow2.f32 %v3712_v49 }
0x1087   :  { %v3633_v29 = vsel %vm3619_vm10, %v3616_v50, %v3582_v4 }
0x1088   :  { %v3653_v10 = vadd.f32 %v7413_v41, %v3633_v29  ;;  %v3603_v5 = vsel %vm3602_vm9, %v7341_v42, %v3489_v61  ;;  %v3604_v29 = vsel %vm3602_vm9, %v7298_v28, %v3490_v39 }
0x108a   :  { %v3685_v45 = vmin.f32 %v3653_v10, 0.0  ;;  %vm3669_vm14 = vcmp.gt.f32.partialorder %v3653_v10, 0.0 }
0x108b   :  { %v4520_v63 = vpop.eup %4519 }
0x108c   :  { %v3507_v26 = vpop.permute.xlu0 %3506  ;;  %v4037_v55 = vadd.f32 -1.0, %v4520_v63  ;;  %v3714_v13 = vmul.f32 1.442695, %v3685_v45  ;;  %v4522_v12 = vpop.eup %4521 }
0x108d   :  { %v3569_v21 = vmul.f32 %v3507_v26, %v7329_v14  ;;  %v3443_v2 = vpop.permute.xlu1 %3442  ;;  %v4040_v7 = vadd.f32 -1.0, %v4522_v12 }
0x108e   :  { %v3493_v35 = vmul.f32 %v3443_v2, %v7304_v0  ;;  %v3745_v24 = vsel %vm3665_vm12, %v3649_v23, %v4037_v55  ;;  %4523 = vpow2.f32 %v3714_v13  ;;  %v3494_v0 = vmul.f32 %v7421_v60, %v3238_v37 }
0x108f   :  { %v3620_v46 = vsel %vm3619_vm10, %v3603_v5, %v3569_v21  ;;  %v7456_v1 = vpop.permute.xlu2 %3482  ;;  %v3756_v27 = vpack.c.bf16 %v3745_v24, %v3744_v36  ;;  %v3748_v9 = vsel %vm3668_vm13, %v7438_v43, %v4040_v7  ;;  %vm3866_vm12 = vcmask 60416  }
0x1090   :  { %v7459_v15 = vadd.f32 %v7413_v41, %v3620_v46  ;;  %v3607_v14 = vsel %vm3602_vm9, %v7312_v51, %v3493_v35  ;;  %v3608_v57 = vsel %vm3602_vm9, %v3591_v44, %v3494_v0 }
0x1091   :  { %v3624_v42 = vsel %vm3619_vm10, %v3607_v14, %v3573_v53  ;;  %4056 = vmatmul.msk.bf16.vlgmr.msra.gmra.mxu2 %vm168_vm1, %v3756_v27 }
0x1092   :  { %v3644_v23 = vadd.f32 %v7413_v41, %v3624_v42  ;;  %v3672_v51 = vmin.f32 %v7459_v15, 0.0  ;;  %vm3656_vm2 = vcmp.gt.f32.partialorder %v7459_v15, 0.0 }
0x1094   :  { %v4524_v20 = vpop.eup %4523  ;;  %v3527_v62 = vpop.permute.xlu0 %3526  ;;  %v3676_v47 = vmin.f32 %v3644_v23, 0.0  ;;  %v3688_v63 = vmul.f32 1.442695, %v3672_v51  ;;  %vm3660_vm15 = vcmp.gt.f32.partialorder %v3644_v23, 0.0 }
0x1095   :  { %v3574_v3 = vmul.f32 %v3527_v62, %v3238_v37  ;;  %v4041_v4 = vadd.f32 -1.0, %v4524_v20 }
0x1096   :  { %v3511_v60 = vpop.permute.xlu1 %3510  ;;  %v3696_v8 = vmul.f32 1.442695, %v3676_v47 }
0x1097   :  { %v3625_v18 = vsel %vm3619_vm10, %v3608_v57, %v3574_v3  ;;  %v3570_v50 = vmul.f32 %v3511_v60, %v7291_v59  ;;  %v3749_v49 = vsel %vm3669_vm14, %v3653_v10, %v4041_v4  ;;  %v3499_v59 = vmul.f32 %v7417_v34, %v7379_v54  ;;  %v3248_v57 = vld [vmem:[#allocation4 + $0x78] sm:$0xff] }
0x1098   :  { %v3645_v22 = vadd.f32 %v7413_v41, %v3625_v18  ;;  %v3547_v61 = vpop.permute.xlu2 %3546  ;;  %v3758_v45 = vpack.c.bf16 %v3749_v49, %v3748_v9  ;;  %4525 = vpow2.f32 %v3696_v8 }
0x1099   :  { %v3621_v26 = vsel %vm3619_vm10, %v3604_v29, %v3570_v50  ;;  %v3579_v43 = vmul.f32 %v3547_v61, %v7379_v54  ;;  %4527 = vpow2.f32 %v3688_v63  ;;  %v3613_v21 = vsel %vm3602_vm9, %v7386_v38, %v3499_v59 }
0x109a   :  { %v3641_v55 = vadd.f32 %v7413_v41, %v3621_v26  ;;  %4058 = vmatmul.msk.bf16.vlgmr.msra.gmra.mxu3 %vm168_vm1, %v3758_v45  ;;  %v3677_v13 = vmin.f32 %v3645_v22, 0.0  ;;  %vm3661_vm0 = vcmp.gt.f32.partialorder %v3645_v22, 0.0 }
0x109b   :  { %v3630_v5 = vsel %vm3619_vm10, %v3613_v21, %v3579_v43 }
0x109c   :  { %v3698_v10 = vmul.f32 1.442695, %v3677_v13  ;;  %v3673_v28 = vmin.f32 %v3641_v55, 0.0  ;;  %v7491_v46 = vadd.f32 %v7413_v41, %v3630_v5  ;;  %v3551_v27 = vpop.permute.xlu0 %3550  ;;  %vm3657_vm3 = vcmp.gt.f32.partialorder %v3641_v55, 0.0 }
0x109d   :  { %v3580_v7 = vmul.f32 %v3551_v27, %v7388_v40 }
0x109e   :  { %4529 = vpow2.f32 %v3698_v10  ;;  %v3690_v53 = vmul.f32 1.442695, %v3673_v28  ;;  %v4526_v36 = vpop.eup %4525  ;;  %v3682_v0 = vmin.f32 %v7491_v46, 0.0  ;;  %vm3666_vm4 = vcmp.gt.f32.partialorder %v7491_v46, 0.0 }
0x109f   :  { %v3403_v2 = vpop.permute.xlu1 %3402  ;;  %v4528_v24 = vpop.eup %4527  ;;  %v4032_v34 = vadd.f32 -1.0, %v4526_v36 }
0x10a0   :  { %v3567_v35 = vpop.permute.xlu2 %3566  ;;  %4531 = vpow2.f32 %v3690_v53  ;;  %v4028_v37 = vadd.f32 -1.0, %v4528_v24  ;;  %v3708_v3 = vmul.f32 1.442695, %v3682_v0 }
0x10a1   :  { %v3740_v48 = vsel %vm3660_vm15, %v3644_v23, %v4032_v34  ;;  %v3584_v18 = vmul.f32 %v3567_v35, %v3248_v57 }
0x10a2   :  { %v3736_v47 = vsel %vm3656_vm2, %v7459_v15, %v4028_v37  ;;  %4533 = vpow2.f32 %v3708_v3  ;;  %v3344_v15 = vmul.f32 %v7337_v6, %v3248_v57 }
0x10a4   :  { %v4530_v54 = vpop.eup %4529 }
0x10a5   :  { %v4033_v12 = vadd.f32 -1.0, %v4530_v54 }
0x10a6   :  { %v4532_v14 = vpop.eup %4531 }
0x10a7   :  { %v3741_v38 = vsel %vm3661_vm0, %v3645_v22, %v4033_v12  ;;  %v4029_v42 = vadd.f32 -1.0, %v4532_v14  ;;  %v3247_v22 = vld [vmem:[#allocation4 + $0x70] sm:$0xff] }
0x10a8   :  { %v3471_v17 = vpop.permute.xlu1 %3470  ;;  %v3754_v20 = vpack.c.bf16 %v3741_v38, %v3740_v48  ;;  %v3423_v45 = vmul.f32 %v3403_v2, %v3247_v22  ;;  %v4534_v26 = vpop.eup %4533  ;;  %v3503_v6 = vmul.f32 %v7456_v1, %v3247_v22 }
0x10a9   :  { %v3500_v39 = vmul.f32 %v3471_v17, %v7388_v40  ;;  %v7497_v62 = vpop.permute.xlu2 %3438  ;;  %v3737_v51 = vsel %vm3657_vm3, %v3641_v55, %v4029_v42  ;;  %v3424_v40 = vmul.f32 %v7446_v30, %v3248_v57  ;;  %v3343_v55 = vmul.f32 %v7285_v25, %v3247_v22 }
0x10aa   :  { %4054 = vmatmul.msk.bf16.vlgmr.msra.gmra.mxu1 %vm168_vm1, %v3754_v20  ;;  %v3752_v23 = vpack.c.bf16 %v3737_v51, %v3736_v47  ;;  %v4038_v43 = vadd.f32 -1.0, %v4534_v26 }
0x10ab   :  { %v3614_v44 = vsel %vm3602_vm9, %v7397_v58, %v3500_v39  ;;  %v3601_v58 = vsel %vm3585_vm8, %v3344_v15, %v3424_v40  ;;  %v3600_v59 = vsel %vm3585_vm8, %v3343_v55, %v3423_v45 }
0x10ac   :  { %v3631_v4 = vsel %vm3619_vm10, %v3614_v44, %v3580_v7  ;;  %4052 = vmatmul.msk.bf16.vlgmr.msra.gmra.mxu0 %vm168_vm1, %v3752_v23  ;;  %v3617_v36 = vsel %vm3602_vm9, %v3600_v59, %v3503_v6  ;;  %v3746_v25 = vsel %vm3666_vm4, %v7491_v46, %v4038_v43  ;;  %v3535_v7 = vpop.permute.xlu0 %3534 }
0x10ad   :  { %v3651_v60 = vadd.f32 %v7413_v41, %v3631_v4  ;;  %v3576_v23 = vmul.f32 %v3535_v7, %v7366_v11 }
0x10af   :  { %v3683_v8 = vmin.f32 %v3651_v60, 0.0  ;;  %vm3667_vm5 = vcmp.gt.f32.partialorder %v3651_v60, 0.0 }
0x10b0   :  { %v3487_v50 = vpop.permute.xlu1 %3486 }
0x10b1   :  { %v3504_v9 = vmul.f32 %v3487_v50, %v3248_v57  ;;  %v3710_v49 = vmul.f32 1.442695, %v3683_v8  ;;  %v3492_v8 = vmul.f32 %v7497_v62, %v7345_v31 }
0x10b2   :  { %v3515_v29 = vpop.permute.xlu2 %3514 }
0x10b3   :  { %v3618_v61 = vsel %vm3602_vm9, %v3601_v58, %v3504_v9  ;;  %4535 = vpow2.f32 %v3710_v49  ;;  %v3571_v42 = vmul.f32 %v3515_v29, %v7348_v52  ;;  %v3606_v9 = vsel %vm3602_vm9, %v7358_v33, %v3492_v8 }
0x10b4   :  { %v3635_v63 = vsel %vm3619_vm10, %v3618_v61, %v3584_v18 }
0x10b5   :  { %v3655_v30 = vadd.f32 %v7413_v41, %v3635_v63 }
0x10b7   :  { %v3687_v13 = vmin.f32 %v3655_v30, 0.0  ;;  %vm3671_vm7 = vcmp.gt.f32.partialorder %v3655_v30, 0.0 }
0x10b9   :  { %v4536_v10 = vpop.eup %4535  ;;  %v3563_v28 = vpop.permute.xlu1 %3562  ;;  %v3718_v5 = vmul.f32 1.442695, %v3687_v13 }
0x10ba   :  { %v3583_v53 = vmul.f32 %v3563_v28, %v3247_v22  ;;  %v4039_v21 = vadd.f32 -1.0, %v4536_v10  ;;  %v3531_v2 = vpop.permute.xlu2 %3530 }
0x10bb   :  { %v3575_v54 = vmul.f32 %v3531_v2, %v7314_v16  ;;  %4537 = vpow2.f32 %v3718_v5 }
0x10bc   :  { %v3634_v35 = vsel %vm3619_vm10, %v3617_v36, %v3583_v53  ;;  %v3747_v1 = vsel %vm3667_vm5, %v3651_v60, %v4039_v21 }
0x10bd   :  { %v3654_v24 = vadd.f32 %v7413_v41, %v3634_v35  ;;  %v3757_v34 = vpack.c.bf16 %v3747_v1, %v3746_v25  ;;  %v3626_v37 = vsel %vm3619_vm10, %v7434_v32, %v3575_v54 }
0x10be   :  { %v3646_v46 = vadd.f32 %v7413_v41, %v3626_v37 }
0x10bf   :  { %4057 = vmatmul.msk.bf16.gmra.mxu2 %vm168_vm1, %v3757_v34  ;;  %v3686_v27 = vmin.f32 %v3654_v24, 0.0  ;;  %vm3670_vm6 = vcmp.gt.f32.partialorder %v3654_v24, 0.0 }
0x10c0   :  { %v3678_v20 = vmin.f32 %v3646_v46, 0.0  ;;  %vm3662_vm8 = vcmp.gt.f32.partialorder %v3646_v46, 0.0 }
0x10c1   :  { %v3716_v12 = vmul.f32 1.442695, %v3686_v27  ;;  %v4538_v38 = vpop.eup %4537 }
0x10c2   :  { %v3435_v14 = vpop.permute.xlu1 %3434  ;;  %v4043_v0 = vadd.f32 -1.0, %v4538_v38  ;;  %v3700_v4 = vmul.f32 1.442695, %v3678_v20 }
0x10c3   :  { %v3491_v48 = vmul.f32 %v3435_v14, %v7348_v52  ;;  %4539 = vpow2.f32 %v3716_v12 }
0x10c4   :  { %v3751_v3 = vsel %vm3671_vm7, %v3655_v30, %v4043_v0  ;;  %4541 = vpow2.f32 %v3700_v4 }
0x10c5   :  { %v3605_v16 = vsel %vm3602_vm9, %v7361_v19, %v3491_v48 }
0x10c6   :  { %v3622_v39 = vsel %vm3619_vm10, %v3605_v16, %v3571_v42 }
0x10c7   :  { %v3642_v57 = vadd.f32 %v7413_v41, %v3622_v39 }
0x10c9   :  { %v4540_v17 = vpop.eup %4539 }
0x10ca   :  { %v3455_v47 = vpop.permute.xlu1 %3454  ;;  %v4042_v32 = vadd.f32 -1.0, %v4540_v17  ;;  %v4542_v29 = vpop.eup %4541 }
0x10cb   :  { %v3496_v51 = vmul.f32 %v3455_v47, %v7366_v11  ;;  %v3674_v11 = vmin.f32 %v3642_v57, 0.0  ;;  %v4034_v62 = vadd.f32 -1.0, %v4542_v29 }
0x10cc   :  { %v3750_v44 = vsel %vm3670_vm6, %v3654_v24, %v4042_v32 }
0x10cd   :  { %v3610_v52 = vsel %vm3602_vm9, %v7376_v56, %v3496_v51  ;;  %v3759_v19 = vpack.c.bf16 %v3751_v3, %v3750_v44  ;;  %v3692_v49 = vmul.f32 1.442695, %v3674_v11  ;;  %vm3658_vm9 = vcmp.gt.f32.partialorder %v3642_v57, 0.0 }
0x10ce   :  { %v3627_v60 = vsel %vm3619_vm10, %v3610_v52, %v3576_v23 }
0x10cf   :  { %4059 = vmatmul.msk.bf16.gmra.mxu3 %vm168_vm1, %v3759_v19  ;;  %v3647_v40 = vadd.f32 %v7413_v41, %v3627_v60 }
0x10d1   :  { %v3679_v15 = vmin.f32 %v3647_v40, 0.0  ;;  %vm3663_vm11 = vcmp.gt.f32.partialorder %v3647_v40, 0.0 }
0x10d3   :  { %v3519_v18 = vpop.permute.xlu1 %3518  ;;  %v3702_v50 = vmul.f32 1.442695, %v3679_v15 }
0x10d4   :  { %v3572_v56 = vmul.f32 %v3519_v18, %v7345_v31  ;;  %v3742_v31 = vsel %vm3662_vm8, %v3646_v46, %v4034_v62 }
0x10d5   :  { %4543 = vpow2.f32 %v3702_v50 }
0x10d6   :  { %v3623_v58 = vsel %vm3619_vm10, %v3606_v9, %v3572_v56  ;;  %4545 = vpow2.f32 %v3692_v49 }
0x10d7   :  { %v3643_v22 = vadd.f32 %v7413_v41, %v3623_v58 }
0x10d9   :  { %v3675_v61 = vmin.f32 %v3643_v22, 0.0  ;;  %vm3659_vm10 = vcmp.gt.f32.partialorder %v3643_v22, 0.0 }
0x10db   :  { %v4544_v45 = vpop.eup %4543  ;;  %v3694_v63 = vmul.f32 1.442695, %v3675_v61 }
0x10dc   :  { %v4035_v26 = vadd.f32 -1.0, %v4544_v45  ;;  %v4546_v55 = vpop.eup %4545 }
0x10dd   :  { %4547 = vpow2.f32 %v3694_v63  ;;  %v4030_v6 = vadd.f32 -1.0, %v4546_v55 }
0x10de   :  { %v3743_v30 = vsel %vm3663_vm11, %v3647_v40, %v4035_v26 }
0x10df   :  { %v3755_v33 = vpack.c.bf16 %v3743_v30, %v3742_v31  ;;  %v3738_v41 = vsel %vm3658_vm9, %v3642_v57, %v4030_v6 }
0x10e1   :  { %4055 = vmatmul.msk.bf16.gmra.mxu1 %vm168_vm1, %v3755_v33 }
0x10e3   :  { %v4548_v13 = vpop.eup %4547 }
0x10e4   :  { %v4031_v59 = vadd.f32 -1.0, %v4548_v13 }
0x10e6   :  { %v3739_v43 = vsel %vm3659_vm10, %v3643_v22, %v4031_v59 }
0x10e7   :  { %v3753_v10 = vpack.c.bf16 %v3739_v43, %v3738_v41 }
0x10e9   :  { %4053 = vmatmul.msk.bf16.gmra.mxu0 %vm168_vm1, %v3753_v10  ;;  %vm3947_vm1 = vcmask 15360  }
0x1114   :  { %v3830_v28 = vpop.f32.mrf.mxu2 }
0x1115   :  { %v3858_v53 = vpack.c.bf16 %v3830_v28, %v3830_v28 }
0x1117   :  { %3875 = vst.msk [vmem:[%s7696_s8 + $0x20] sm:$0xf] %vm3866_vm12, %v3858_v53 }
0x111c   :  { %v3832_v21 = vpop.f32.mrf.mxu2 }
0x111d   :  { %v3859_v36 = vpack.c.bf16 %v3832_v21, %v3832_v21  ;;  %v3840_v2 = vpop.f32.mrf.mxu3 }
0x111e   :  { %v3862_v5 = vpack.c.bf16 %v3840_v2, %v3840_v2  ;;  %3923 = vrot.lane.b32.xlu2 %v3840_v2, %s4565_s26 }
0x111f   :  { %3876 = vst.msk [vmem:[%s7696_s8 + $0x24] sm:$0xf] %vm3866_vm12, %v3859_v36 }
0x1120   :  { %3879 = vst.msk [vmem:[%s7696_s8 + $0x30] sm:$0xf] %vm3866_vm12, %v3862_v5 }
0x1125   :  { %v3842_v35 = vpop.f32.mrf.mxu3 }
0x1126   :  { %v3863_v25 = vpack.c.bf16 %v3842_v35, %v3842_v35 }
0x1127   :  { %v3820_v1 = vpop.f32.mrf.mxu1 }
0x1128   :  { %3880 = vst.msk [vmem:[%s7696_s8 + $0x34] sm:$0xf] %vm3866_vm12, %v3863_v25  ;;  %v3854_v24 = vpack.c.bf16 %v3820_v1, %v3820_v1  ;;  %3907 = vrot.lane.b32.xlu0 %v3820_v1, %s4565_s26 }
0x1129   :  { %v3810_v34 = vpop.f32.mrf.mxu0 }
0x112a   :  { %3871 = vst.msk [vmem:[%s7696_s8 + $0x10] sm:$0xf] %vm3866_vm12, %v3854_v24  ;;  %v3850_v54 = vpack.c.bf16 %v3810_v34, %v3810_v34  ;;  %3899 = vrot.lane.b32.xlu1 %v3810_v34, %s4565_s26 }
0x112c   :  { %3867 = vst.msk [vmem:[%s7696_s8] sm:$0xf] %vm3866_vm12, %v3850_v54 }
0x112f   :  { %v3822_v27 = vpop.f32.mrf.mxu1 }
0x1130   :  { %v3855_v12 = vpack.c.bf16 %v3822_v27, %v3822_v27 }
0x1131   :  { %v3812_v37 = vpop.f32.mrf.mxu0 }
0x1132   :  { %3872 = vst.msk [vmem:[%s7696_s8 + $0x14] sm:$0xf] %vm3866_vm12, %v3855_v12  ;;  %v3851_v14 = vpack.c.bf16 %v3812_v37, %v3812_v37  ;;  %3915 = vrot.lane.b32.xlu1 %v3830_v28, %s4565_s26  ;;  %3901 = vrot.lane.b32.xlu2 %v3812_v37, %s4565_s26 }
0x1134   :  { %3868 = vst.msk [vmem:[%s7696_s8 + $0x4] sm:$0xf] %vm3866_vm12, %v3851_v14 }
0x113a   :  { %3917 = vrot.lane.b32.xlu2 %v3832_v21, %s4565_s26  ;;  %3909 = vrot.lane.b32.xlu1 %v3822_v27, %s4565_s26 }
0x1142   :  { %v3835_v48 = vpop.f32.mrf.mxu2 }
0x1143   :  { %v3860_v38 = vpack.c.bf16 %v3835_v48, %v3835_v48  ;;  %3919 = vrot.lane.b32.xlu0 %v3835_v48, %s4565_s26 }
0x1145   :  { %3877 = vst.msk [vmem:[%s7696_s8 + $0x28] sm:$0xf] %vm3866_vm12, %v3860_v38 }
0x114a   :  { %v3837_v46 = vpop.f32.mrf.mxu2 }
0x114b   :  { %v3861_v42 = vpack.c.bf16 %v3837_v46, %v3837_v46 }
0x114d   :  { %3878 = vst.msk [vmem:[%s7696_s8 + $0x2c] sm:$0xf] %vm3866_vm12, %v3861_v42 }
0x1152   :  { %v3845_v16 = vpop.f32.mrf.mxu3 }
0x1153   :  { %v3864_v0 = vpack.c.bf16 %v3845_v16, %v3845_v16 }
0x1155   :  { %3881 = vst.msk [vmem:[%s7696_s8 + $0x38] sm:$0xf] %vm3866_vm12, %v3864_v0 }
0x115a   :  { %v3847_v17 = vpop.f32.mrf.mxu3 }
0x115b   :  { %v3865_v7 = vpack.c.bf16 %v3847_v17, %v3847_v17 }
0x115d   :  { %3882 = vst.msk [vmem:[%s7696_s8 + $0x3c] sm:$0xf] %vm3866_vm12, %v3865_v7 }
0x115e   :  { %v3825_v20 = vpop.f32.mrf.mxu1 }
0x115f   :  { %v3856_v39 = vpack.c.bf16 %v3825_v20, %v3825_v20  ;;  %3911 = vrot.lane.b32.xlu2 %v3825_v20, %s4565_s26 }
0x1161   :  { %3873 = vst.msk [vmem:[%s7696_s8 + $0x18] sm:$0xf] %vm3866_vm12, %v3856_v39 }
0x1166   :  { %v3815_v47 = vpop.f32.mrf.mxu0  ;;  %v3827_v32 = vpop.f32.mrf.mxu1 }
0x1167   :  { %v3852_v51 = vpack.c.bf16 %v3815_v47, %v3815_v47  ;;  %v3857_v23 = vpack.c.bf16 %v3827_v32, %v3827_v32  ;;  %3903 = vrot.lane.b32.xlu1 %v3815_v47, %s4565_s26  ;;  %3913 = vrot.lane.b32.xlu0 %v3827_v32, %s4565_s26 }
0x1169   :  { %3869 = vst.msk [vmem:[%s7696_s8 + $0x8] sm:$0xf] %vm3866_vm12, %v3852_v51 }
0x116a   :  { %3874 = vst.msk [vmem:[%s7696_s8 + $0x1c] sm:$0xf] %vm3866_vm12, %v3857_v23 }
0x116e   :  { %v3817_v44 = vpop.f32.mrf.mxu0 }
0x116f   :  { %v3853_v3 = vpack.c.bf16 %v3817_v44, %v3817_v44  ;;  %3921 = vrot.lane.b32.xlu1 %v3837_v46, %s4565_s26  ;;  %3905 = vrot.lane.b32.xlu2 %v3817_v44, %s4565_s26 }
0x1170   :  { %3925 = vrot.lane.b32.xlu0 %v3842_v35, %s4565_s26 }
0x1171   :  { %3870 = vst.msk [vmem:[%s7696_s8 + $0xc] sm:$0xf] %vm3866_vm12, %v3853_v3 }
0x1177   :  { %3927 = vrot.lane.b32.xlu1 %v3845_v16, %s4565_s26  ;;  %3929 = vrot.lane.b32.xlu2 %v3847_v17, %s4565_s26 }
0x1178   :  { %v3924_v52 = vpop.permute.xlu2 %3923 }
0x1179   :  { %3960 = vst.msk [vmem:[%s7697_s9 + $0x60] sm:$0xff] %vm3947_vm1, %v3924_v52 }
0x118c   :  { %v3902_v19 = vpop.permute.xlu2 %3901 }
0x118d   :  { %3949 = vst.msk [vmem:[%s7697_s9 + $0x8] sm:$0xff] %vm3947_vm1, %v3902_v19 }
0x1194   :  { %v3918_v4 = vpop.permute.xlu2 %3917 }
0x1195   :  { %3957 = vst.msk [vmem:[%s7697_s9 + $0x48] sm:$0xff] %vm3947_vm1, %v3918_v4 }
0x119a   :  { %v3908_v57 = vpop.permute.xlu0 %3907 }
0x119b   :  { %3952 = vst.msk [vmem:[%s7697_s9 + $0x20] sm:$0xff] %vm3947_vm1, %v3908_v57 }
0x119c   :  { %v3900_v60 = vpop.permute.xlu1 %3899 }
0x119d   :  { %3948 = vst.msk [vmem:[%s7697_s9] sm:$0xff] %vm3947_vm1, %v3900_v60 }
0x11a4   :  { %v3916_v40 = vpop.permute.xlu1 %3915 }
0x11a5   :  { %3956 = vst.msk [vmem:[%s7697_s9 + $0x40] sm:$0xff] %vm3947_vm1, %v3916_v40 }
0x11ac   :  { %v3910_v8 = vpop.permute.xlu1 %3909 }
0x11ad   :  { %3953 = vst.msk [vmem:[%s7697_s9 + $0x28] sm:$0xff] %vm3947_vm1, %v3910_v8 }
0x11b5   :  { %v3920_v15 = vpop.permute.xlu0 %3919 }
0x11b6   :  { %3958 = vst.msk [vmem:[%s7697_s9 + $0x50] sm:$0xff] %vm3947_vm1, %v3920_v15 }
0x11b9   :  { %v3912_v11 = vpop.permute.xlu2 %3911 }
0x11ba   :  { %3954 = vst.msk [vmem:[%s7697_s9 + $0x30] sm:$0xff] %vm3947_vm1, %v3912_v11 }
0x11c9   :  { %v3906_v18 = vpop.permute.xlu2 %3905 }
0x11ca   :  { %3951 = vst.msk [vmem:[%s7697_s9 + $0x18] sm:$0xff] %vm3947_vm1, %v3906_v18 }
0x11d1   :  { %v3930_v50 = vpop.permute.xlu2 %3929 }
0x11d2   :  { %3963 = vst.msk [vmem:[%s7697_s9 + $0x78] sm:$0xff] %vm3947_vm1, %v3930_v50 }
0x11d9   :  { %v3904_v56 = vpop.permute.xlu1 %3903  ;;  %v3914_v9 = vpop.permute.xlu0 %3913 }
0x11da   :  { %3950 = vst.msk [vmem:[%s7697_s9 + $0x10] sm:$0xff] %vm3947_vm1, %v3904_v56 }
0x11db   :  { %3955 = vst.msk [vmem:[%s7697_s9 + $0x38] sm:$0xff] %vm3947_vm1, %v3914_v9 }
0x11e1   :  { %v3922_v49 = vpop.permute.xlu1 %3921 }
0x11e2   :  { %3959 = vst.msk [vmem:[%s7697_s9 + $0x58] sm:$0xff] %vm3947_vm1, %v3922_v49  ;;  %v3926_v58 = vpop.permute.xlu0 %3925 }
0x11e3   :  { %3961 = vst.msk [vmem:[%s7697_s9 + $0x68] sm:$0xff] %vm3947_vm1, %v3926_v58 }
0x11e9   :  { %v3928_v29 = vpop.permute.xlu1 %3927 }
0x11ea   :  { %3962 = vst.msk [vmem:[%s7697_s9 + $0x70] sm:$0xff] %vm3947_vm1, %v3928_v29 }

</bundles_post_ra>
